<compile_context>
chip_gen: v6e
topology: v6e:2x2x1
jax: 0.10.0
libtpu: 0.0.40
codegen_flags: <defaults>
</compile_context>

<pallas_src>
import functools

import jax
import jax.numpy as jnp
from jax.experimental import pallas as pl
from jax.experimental.pallas import tpu as pltpu


def _silu(v):
    return v * (1.0 / (1.0 + jnp.exp(-v)))


# ----------------------------------------------------------------------------
# Fused kernel: SiLU(x) + Gram basis + (base conv ⊕ poly conv as ONE matmul)
#               + residual + InstanceNorm + SiLU, one (group, batch) per step.
# ----------------------------------------------------------------------------
def kagn_fused_kernel(coef_ref, x_ref, w_ref, out_ref, *,
                      H, W, pad, kH, kW, order, cg, c_all, out_g, eps,
                      matmul_dtype):
    Hp, Wp = H + 2 * pad, W + 2 * pad
    Hout, Wout = Hp - kH + 1, Wp - kW + 1

    x = x_ref[...]                                    # (Hp, Wp, cg) f32

    # Halo mask: gram features must be zero in the padding ring because the
    # reference pads AFTER the activation and SiLU(P0) = SiLU(1) != 0.
    if pad > 0:
        hh = jax.lax.broadcasted_iota(jnp.int32, (Hp, Wp, cg), 0)
        ww = jax.lax.broadcasted_iota(jnp.int32, (Hp, Wp, cg), 1)
        interior = ((hh >= pad) & (hh < pad + H) &
                    (ww >= pad) & (ww < pad + W))
        mask = jnp.where(interior, 1.0, 0.0).astype(jnp.float32)
    else:
        mask = None

    def masked_silu(v):
        s = _silu(v)
        return s if mask is None else s * mask

    # Feature channels per pixel: [SiLU(x) | SiLU(P0) | ... | SiLU(P_order)]
    feats = [_silu(x)]                                # SiLU(0)=0 in the halo
    t = jnp.tanh(x)
    p_prev = jnp.ones_like(t)                         # P0
    feats.append(masked_silu(p_prev))
    if order >= 1:
        p_cur = t                                     # P1
        feats.append(masked_silu(p_cur))
        for i in range(2, order + 1):
            c = coef_ref[i]                           # beta(i-1, i), SMEM scalar
            p_next = t * p_cur - c * p_prev
            feats.append(masked_silu(p_next))
            p_prev, p_cur = p_cur, p_next
    feat = jnp.concatenate(feats, axis=-1)            # (Hp, Wp, c_all)

    # im2col: fold all taps + (base|poly) channels into one contraction.
    cols = []
    for dy in range(kH):
        for dx in range(kW):
            cols.append(feat[dy:dy + Hout, dx:dx + Wout, :]
                        .reshape(Hout * Wout, c_all))
    patches = jnp.concatenate(cols, axis=-1)          # (Hout*Wout, kH*kW*c_all)

    z = jnp.dot(patches.astype(matmul_dtype), w_ref[...],
                preferred_element_type=jnp.float32)   # (Hout*Wout, out_g) f32

    # InstanceNorm2d (affine=False, biased variance) for this (group, batch).
    mean = jnp.mean(z, axis=0, keepdims=True)
    var = jnp.mean((z - mean) * (z - mean), axis=0, keepdims=True)
    zn = (z - mean) * jax.lax.rsqrt(var + eps)

    out_ref[...] = _silu(zn).reshape(Hout, Wout, out_g)


# ----------------------------------------------------------------------------
# Wrapper
# ----------------------------------------------------------------------------
def kagn_conv2d_forward(x_nchw, base_w, poly_w, beta_w, *,
                        groups, spline_order, padding, eps=1e-5,
                        matmul_dtype=jnp.float32):
    x_nchw = x_nchw.astype(jnp.float32)
    base_w = base_w.astype(jnp.float32)
    poly_w = poly_w.astype(jnp.float32)

    B, Cin, H, W = x_nchw.shape
    G = groups
    cg = Cin // G
    out_g, _, kH, kW = base_w.shape
    o = spline_order
    cin_eff = cg * (o + 1)
    c_all = cg * (o + 2)                   # SiLU(x) channels + gram channels
    p = padding
    Hp, Wp = H + 2 * p, W + 2 * p
    Hout, Wout = Hp - kH + 1, Wp - kW + 1

    # Grouped channels-last + zero pad of the RAW input only (the activated /
    # gram features and their padding are produced inside the kernel).
    x_g = x_nchw.reshape(B, G, cg, H, W).transpose(1, 0, 3, 4, 2)
    x_g = jnp.pad(x_g, ((0, 0), (0, 0), (p, p), (p, p), (0, 0)))

    # Gram recurrence coefficients c[i] = beta(i-1, i).
    coef = [jnp.zeros((), jnp.float32)] * min(2, o + 1)
    for i in range(2, o + 1):
        n, m = float(i - 1), float(i)
        scale = (m + n) * (m - n) * n * n / (m * m / (4.0 * n * n - 1.0))
        coef.append(scale * beta_w[i - 1].astype(jnp.float32))
    coeffs = jnp.stack(coef)

    # Repack weights into one lane-dense matmul slab per group:
    #   rows: tap-major (kH*kW), channel-minor; channel order = [base cg | poly cin_eff]
    #   cols: out_g
    wbase = jnp.broadcast_to(base_w.transpose(2, 3, 1, 0)[None],
                             (G, kH, kW, cg, out_g))            # shared base conv
    wpoly = poly_w.transpose(0, 3, 4, 2, 1)                     # (G,kH,kW,cin_eff,out_g)
    wcat = jnp.concatenate([wbase, wpoly], axis=3)              # (G,kH,kW,c_all,out_g)
    wcat = wcat.reshape(G, kH * kW * c_all, out_g).astype(matmul_dtype)

    y = pl.pallas_call(
        functools.partial(kagn_fused_kernel, H=H, W=W, pad=p, kH=kH, kW=kW,
                          order=o, cg=cg, c_all=c_all, out_g=out_g, eps=eps,
                          matmul_dtype=matmul_dtype),
        grid=(G, B),
        in_specs=[
            pl.BlockSpec(memory_space=pltpu.MemorySpace.SMEM),
            pl.BlockSpec((None, None, Hp, Wp, cg), lambda g, b: (g, b, 0, 0, 0)),
            pl.BlockSpec((None, kH * kW * c_all, out_g), lambda g, b: (g, 0, 0)),
        ],
        out_specs=pl.BlockSpec((None, None, Hout, Wout, out_g),
                               lambda g, b: (g, b, 0, 0, 0)),
        out_shape=jax.ShapeDtypeStruct((G, B, Hout, Wout, out_g), jnp.float32),
        compiler_params=pltpu.CompilerParams(
            dimension_semantics=("parallel", "parallel"),
            vmem_limit_bytes=48 * 1024 * 1024),   # > default scoped, < v7x 64MiB
    )(coeffs, x_g, wcat)

    # Back to NCHW, group outputs concatenated along channels.
    return y.transpose(1, 0, 4, 2, 3).reshape(B, G * out_g, Hout, Wout)


# ----------------------------------------------------------------------------
# Pure-JAX reference (mirrors the PyTorch forward exactly)
# ----------------------------------------------------------------------------
def reference_forward(x, base_w, poly_w, beta_w, *, groups, spline_order,
                      padding, eps=1e-5, matmul_dtype=jnp.float32):
    B, Cin, H, W = x.shape
    G, cg, o, p = groups, Cin // groups, spline_order, padding

    def beta(n, m):
        return (m + n) * (m - n) * n ** 2 / (m ** 2 / (4.0 * n ** 2 - 1.0)) * beta_w[n]

    def conv(inp, w):
        prec = (jax.lax.Precision.HIGHEST if matmul_dtype == jnp.float32
                else jax.lax.Precision.DEFAULT)
        return jax.lax.conv_general_dilated(
            inp.astype(matmul_dtype), w.astype(matmul_dtype),
            window_strides=(1, 1), padding=[(p, p), (p, p)],
            dimension_numbers=('NCHW', 'OIHW', 'NCHW'),
            preferred_element_type=jnp.float32, precision=prec)

    outs = []
    for g in range(G):
        xg = x[:, g * cg:(g + 1) * cg]
        basis = conv(_silu(xg), base_w)          # base_conv shared across groups
        t = jnp.tanh(xg)
        p0, p1 = jnp.ones_like(t), t
        grams = [p0] if o == 0 else [p0, p1]
        for i in range(2, o + 1):
            p2 = t * p1 - beta(i - 1, i) * p0
            grams.append(p2)
            p0, p1 = p1, p2
        gb = _silu(jnp.concatenate(grams, axis=1))
        y = conv(gb, poly_w[g]) + basis
        mean = y.mean(axis=(2, 3), keepdims=True)
        var = ((y - mean) ** 2).mean(axis=(2, 3), keepdims=True)
        outs.append(_silu((y - mean) / jnp.sqrt(var + eps)))
    return jnp.concatenate(outs, axis=1)


if __name__ == "__main__":
    B, Cin, H, W = 2, 4, 16, 16
    Cout, G, order, k, p = 8, 2, 3, 3, 1
    ndim = 2
    cg, out_g = Cin // G, Cout // G
    cin_eff = cg * (order + 1)

    key = jax.random.PRNGKey(0)
    kx, kb, kp, kbeta = jax.random.split(key, 4)

    x = jax.random.normal(kx, (B, Cin, H, W), jnp.float32)

    # Deterministic parameter init (kaiming_uniform / normal, as in __init__).
    fan_in_base = cg * k * k
    bb = (3.0 / fan_in_base) ** 0.5
    base_w = jax.random.uniform(kb, (out_g, cg, k, k), jnp.float32, -bb, bb)

    fan_in_poly = out_g * cin_eff * k * k
    bp = (3.0 / fan_in_poly) ** 0.5
    poly_w = jax.random.uniform(kp, (G, out_g, cin_eff, k, k), jnp.float32, -bp, bp)

    ks = (k,) * ndim
    std = 1.0 / (sum(ks) / len(ks) ** ndim * Cin * (order + 1.0))
    beta_w = std * jax.random.normal(kbeta, (order + 1,), jnp.float32)

    # --- f32 MXU path: strict check against the f32 reference ----------------
    fwd_f32 = jax.jit(functools.partial(kagn_conv2d_forward, groups=G,
                                        spline_order=order, padding=p,
                                        matmul_dtype=jnp.float32))
    y = jax.block_until_ready(fwd_f32(x, base_w, poly_w, beta_w))
    y_ref = reference_forward(x, base_w, poly_w, beta_w, groups=G,
                              spline_order=order, padding=p,
                              matmul_dtype=jnp.float32)
    assert y.shape == (B, Cout, H, W), y.shape
    err = float(jnp.max(jnp.abs(y - y_ref)))
    assert err < 2e-3, f"f32 path max abs err {err}"

    # --- bf16 MXU-input path (v6e/v7x perf mode), f32 accumulation ------------
    fwd_bf16 = jax.jit(functools.partial(kagn_conv2d_forward, groups=G,
                                         spline_order=order, padding=p,
                                         matmul_dtype=jnp.bfloat16))
    y16 = jax.block_until_ready(fwd_bf16(x, base_w, poly_w, beta_w))
    y16_ref = reference_forward(x, base_w, poly_w, beta_w, groups=G,
                                spline_order=order, padding=p,
                                matmul_dtype=jnp.bfloat16)
    assert bool(jnp.all(jnp.isfinite(y16)))
    err16 = float(jnp.max(jnp.abs(y16 - y16_ref)))
    assert err16 < 2e-3, f"bf16 path max abs err {err16}"

    print("KERNEL_OK")
</pallas_src>

<mosaic_0001>
module attributes {stable_mosaic.version = 11 : i64} {
  func.func @kagn_fused_kernel(%arg0: i32, %arg1: i32, %arg2: memref<4xf32, #tpu.memory_space<smem>>, %arg3: memref<1x1x18x18x2xf32, #tpu.memory_space<vmem>>, %arg4: memref<1x90x4xf32, #tpu.memory_space<vmem>>, %arg5: memref<1x1x16x16x4xf32, #tpu.memory_space<vmem>>) attributes {dimension_semantics = [#tpu.dimension_semantics<parallel>, #tpu.dimension_semantics<parallel>], iteration_bounds = array<i64: 2, 2>, scalar_prefetch = 0 : i64, scratch_operands = 0 : i64, tpu.core_type = #tpu.core_type<tc>, window_params = [{transform_indices = @transform_0, window_bounds = array<i64: 4>}, {transform_indices = @transform_1, window_bounds = array<i64: 1, 1, 18, 18, 2>}, {transform_indices = @transform_2, window_bounds = array<i64: 1, 90, 4>}, {transform_indices = @transform_3, window_bounds = array<i64: 1, 1, 16, 16, 4>}]} {
    %c0 = arith.constant 0 : index
    %c0_0 = arith.constant 0 : index
    %c0_1 = arith.constant 0 : index
    %c0_2 = arith.constant 0 : index
    %c0_3 = arith.constant 0 : index
    %0 = vector.load %arg3[%c0, %c0_0, %c0_1, %c0_2, %c0_3] : memref<1x1x18x18x2xf32, #tpu.memory_space<vmem>>, vector<1x1x18x18x2xf32>
    %1 = vector.shape_cast %0 : vector<1x1x18x18x2xf32> to vector<18x18x2xf32>
    %2 = tpu.iota {dimensions = array<i32: 0>} : vector<18x18x2xi32>
    %3 = tpu.iota {dimensions = array<i32: 1>} : vector<18x18x2xi32>
    %c1_i32 = arith.constant 1 : i32
    %4 = vector.broadcast %c1_i32 : i32 to vector<18x18x2xi32>
    %5 = arith.cmpi sge, %2, %4 : vector<18x18x2xi32>
    %c17_i32 = arith.constant 17 : i32
    %6 = vector.broadcast %c17_i32 : i32 to vector<18x18x2xi32>
    %7 = arith.cmpi slt, %2, %6 : vector<18x18x2xi32>
    %8 = arith.andi %5, %7 : vector<18x18x2xi1>
    %c1_i32_4 = arith.constant 1 : i32
    %9 = vector.broadcast %c1_i32_4 : i32 to vector<18x18x2xi32>
    %10 = arith.cmpi sge, %3, %9 : vector<18x18x2xi32>
    %11 = arith.andi %8, %10 : vector<18x18x2xi1>
    %c17_i32_5 = arith.constant 17 : i32
    %12 = vector.broadcast %c17_i32_5 : i32 to vector<18x18x2xi32>
    %13 = arith.cmpi slt, %3, %12 : vector<18x18x2xi32>
    %14 = arith.andi %11, %13 : vector<18x18x2xi1>
    %cst = arith.constant 1.000000e+00 : f32
    %cst_6 = arith.constant 0.000000e+00 : f32
    %15 = vector.broadcast %cst : f32 to vector<18x18x2xf32>
    %16 = vector.broadcast %cst_6 : f32 to vector<18x18x2xf32>
    %17 = arith.select %14, %15, %16 : vector<18x18x2xi1>, vector<18x18x2xf32>
    %cst_7 = arith.constant 0.000000e+00 : f32
    %18 = vector.broadcast %cst_7 : f32 to vector<18x18x2xf32>
    %19 = arith.subf %18, %1 : vector<18x18x2xf32>
    %20 = math.exp %19 : vector<18x18x2xf32>
    %cst_8 = arith.constant 1.000000e+00 : f32
    %21 = vector.broadcast %cst_8 : f32 to vector<18x18x2xf32>
    %22 = arith.addf %21, %20 : vector<18x18x2xf32>
    %cst_9 = arith.constant 1.000000e+00 : f32
    %23 = vector.broadcast %cst_9 : f32 to vector<18x18x2xf32>
    %24 = arith.divf %23, %22 : vector<18x18x2xf32>
    %25 = arith.mulf %1, %24 : vector<18x18x2xf32>
    %26 = math.tanh %1 : vector<18x18x2xf32>
    %cst_10 = arith.constant 1.000000e+00 : f32
    %27 = vector.broadcast %cst_10 : f32 to vector<18x18x2xf32>
    %cst_11 = arith.constant 0.000000e+00 : f32
    %28 = vector.broadcast %cst_11 : f32 to vector<18x18x2xf32>
    %29 = arith.subf %28, %27 : vector<18x18x2xf32>
    %30 = math.exp %29 : vector<18x18x2xf32>
    %cst_12 = arith.constant 1.000000e+00 : f32
    %31 = vector.broadcast %cst_12 : f32 to vector<18x18x2xf32>
    %32 = arith.addf %31, %30 : vector<18x18x2xf32>
    %cst_13 = arith.constant 1.000000e+00 : f32
    %33 = vector.broadcast %cst_13 : f32 to vector<18x18x2xf32>
    %34 = arith.divf %33, %32 : vector<18x18x2xf32>
    %35 = arith.mulf %27, %34 : vector<18x18x2xf32>
    %36 = arith.mulf %35, %17 : vector<18x18x2xf32>
    %cst_14 = arith.constant 0.000000e+00 : f32
    %37 = vector.broadcast %cst_14 : f32 to vector<18x18x2xf32>
    %38 = arith.subf %37, %26 : vector<18x18x2xf32>
    %39 = math.exp %38 : vector<18x18x2xf32>
    %cst_15 = arith.constant 1.000000e+00 : f32
    %40 = vector.broadcast %cst_15 : f32 to vector<18x18x2xf32>
    %41 = arith.addf %40, %39 : vector<18x18x2xf32>
    %cst_16 = arith.constant 1.000000e+00 : f32
    %42 = vector.broadcast %cst_16 : f32 to vector<18x18x2xf32>
    %43 = arith.divf %42, %41 : vector<18x18x2xf32>
    %44 = arith.mulf %26, %43 : vector<18x18x2xf32>
    %45 = arith.mulf %44, %17 : vector<18x18x2xf32>
    %c2 = arith.constant 2 : index
    %46 = memref.load %arg2[%c2] : memref<4xf32, #tpu.memory_space<smem>>
    %47 = arith.mulf %26, %26 : vector<18x18x2xf32>
    %48 = vector.broadcast %46 : f32 to vector<18x18x2xf32>
    %49 = arith.mulf %48, %27 : vector<18x18x2xf32>
    %50 = arith.subf %47, %49 : vector<18x18x2xf32>
    %cst_17 = arith.constant 0.000000e+00 : f32
    %51 = vector.broadcast %cst_17 : f32 to vector<18x18x2xf32>
    %52 = arith.subf %51, %50 : vector<18x18x2xf32>
    %53 = math.exp %52 : vector<18x18x2xf32>
    %cst_18 = arith.constant 1.000000e+00 : f32
    %54 = vector.broadcast %cst_18 : f32 to vector<18x18x2xf32>
    %55 = arith.addf %54, %53 : vector<18x18x2xf32>
    %cst_19 = arith.constant 1.000000e+00 : f32
    %56 = vector.broadcast %cst_19 : f32 to vector<18x18x2xf32>
    %57 = arith.divf %56, %55 : vector<18x18x2xf32>
    %58 = arith.mulf %50, %57 : vector<18x18x2xf32>
    %59 = arith.mulf %58, %17 : vector<18x18x2xf32>
    %c3 = arith.constant 3 : index
    %60 = memref.load %arg2[%c3] : memref<4xf32, #tpu.memory_space<smem>>
    %61 = arith.mulf %26, %50 : vector<18x18x2xf32>
    %62 = vector.broadcast %60 : f32 to vector<18x18x2xf32>
    %63 = arith.mulf %62, %26 : vector<18x18x2xf32>
    %64 = arith.subf %61, %63 : vector<18x18x2xf32>
    %cst_20 = arith.constant 0.000000e+00 : f32
    %65 = vector.broadcast %cst_20 : f32 to vector<18x18x2xf32>
    %66 = arith.subf %65, %64 : vector<18x18x2xf32>
    %67 = math.exp %66 : vector<18x18x2xf32>
    %cst_21 = arith.constant 1.000000e+00 : f32
    %68 = vector.broadcast %cst_21 : f32 to vector<18x18x2xf32>
    %69 = arith.addf %68, %67 : vector<18x18x2xf32>
    %cst_22 = arith.constant 1.000000e+00 : f32
    %70 = vector.broadcast %cst_22 : f32 to vector<18x18x2xf32>
    %71 = arith.divf %70, %69 : vector<18x18x2xf32>
    %72 = arith.mulf %64, %71 : vector<18x18x2xf32>
    %73 = arith.mulf %72, %17 : vector<18x18x2xf32>
    %74 = tpu.concatenate %25, %36, %45, %59, %73 in 2 : vector<18x18x2xf32>, vector<18x18x2xf32>, vector<18x18x2xf32>, vector<18x18x2xf32>, vector<18x18x2xf32> -> vector<18x18x10xf32>
    %75 = vector.extract_strided_slice %74 {offsets = [0, 0, 0], sizes = [16, 16, 10], strides = [1, 1, 1]} : vector<18x18x10xf32> to vector<16x16x10xf32>
    %76 = vector.shape_cast %75 : vector<16x16x10xf32> to vector<256x10xf32>
    %77 = vector.extract_strided_slice %74 {offsets = [0, 1, 0], sizes = [16, 16, 10], strides = [1, 1, 1]} : vector<18x18x10xf32> to vector<16x16x10xf32>
    %78 = vector.shape_cast %77 : vector<16x16x10xf32> to vector<256x10xf32>
    %79 = vector.extract_strided_slice %74 {offsets = [0, 2, 0], sizes = [16, 16, 10], strides = [1, 1, 1]} : vector<18x18x10xf32> to vector<16x16x10xf32>
    %80 = vector.shape_cast %79 : vector<16x16x10xf32> to vector<256x10xf32>
    %81 = vector.extract_strided_slice %74 {offsets = [1, 0, 0], sizes = [16, 16, 10], strides = [1, 1, 1]} : vector<18x18x10xf32> to vector<16x16x10xf32>
    %82 = vector.shape_cast %81 : vector<16x16x10xf32> to vector<256x10xf32>
    %83 = vector.extract_strided_slice %74 {offsets = [1, 1, 0], sizes = [16, 16, 10], strides = [1, 1, 1]} : vector<18x18x10xf32> to vector<16x16x10xf32>
    %84 = vector.shape_cast %83 : vector<16x16x10xf32> to vector<256x10xf32>
    %85 = vector.extract_strided_slice %74 {offsets = [1, 2, 0], sizes = [16, 16, 10], strides = [1, 1, 1]} : vector<18x18x10xf32> to vector<16x16x10xf32>
    %86 = vector.shape_cast %85 : vector<16x16x10xf32> to vector<256x10xf32>
    %87 = vector.extract_strided_slice %74 {offsets = [2, 0, 0], sizes = [16, 16, 10], strides = [1, 1, 1]} : vector<18x18x10xf32> to vector<16x16x10xf32>
    %88 = vector.shape_cast %87 : vector<16x16x10xf32> to vector<256x10xf32>
    %89 = vector.extract_strided_slice %74 {offsets = [2, 1, 0], sizes = [16, 16, 10], strides = [1, 1, 1]} : vector<18x18x10xf32> to vector<16x16x10xf32>
    %90 = vector.shape_cast %89 : vector<16x16x10xf32> to vector<256x10xf32>
    %91 = vector.extract_strided_slice %74 {offsets = [2, 2, 0], sizes = [16, 16, 10], strides = [1, 1, 1]} : vector<18x18x10xf32> to vector<16x16x10xf32>
    %92 = vector.shape_cast %91 : vector<16x16x10xf32> to vector<256x10xf32>
    %93 = tpu.concatenate %76, %78, %80, %82, %84, %86, %88, %90, %92 in 1 : vector<256x10xf32>, vector<256x10xf32>, vector<256x10xf32>, vector<256x10xf32>, vector<256x10xf32>, vector<256x10xf32>, vector<256x10xf32>, vector<256x10xf32>, vector<256x10xf32> -> vector<256x90xf32>
    %c0_23 = arith.constant 0 : index
    %c0_24 = arith.constant 0 : index
    %c0_25 = arith.constant 0 : index
    %94 = vector.load %arg4[%c0_23, %c0_24, %c0_25] : memref<1x90x4xf32, #tpu.memory_space<vmem>>, vector<1x90x4xf32>
    %95 = vector.shape_cast %94 : vector<1x90x4xf32> to vector<90x4xf32>
    %cst_26 = arith.constant dense<0.000000e+00> : vector<256x4xf32>
    %96 = tpu.matmul %93, %95, %cst_26 {dimension_numbers = #tpu.dot_dimension_numbers<[1], [0], [0], [1], [0, 0, 1, 1], [], []>} : vector<256x90xf32>, vector<90x4xf32>, vector<256x4xf32> -> vector<256x4xf32>
    %cst_27 = arith.constant dense<0.000000e+00> : vector<4xf32>
    %97 = vector.multi_reduction <add>, %96, %cst_27 [0] : vector<256x4xf32> to vector<4xf32>
    %98 = vector.shape_cast %97 : vector<4xf32> to vector<1x4xf32>
    %cst_28 = arith.constant 2.560000e+02 : f32
    %99 = vector.broadcast %cst_28 : f32 to vector<1x4xf32>
    %100 = arith.divf %98, %99 : vector<1x4xf32>
    %101 = vector.broadcast %100 : vector<1x4xf32> to vector<256x4xf32>
    %102 = arith.subf %96, %101 : vector<256x4xf32>
    %103 = vector.broadcast %100 : vector<1x4xf32> to vector<256x4xf32>
    %104 = arith.subf %96, %103 : vector<256x4xf32>
    %105 = arith.mulf %102, %104 : vector<256x4xf32>
    %cst_29 = arith.constant dense<0.000000e+00> : vector<4xf32>
    %106 = vector.multi_reduction <add>, %105, %cst_29 [0] : vector<256x4xf32> to vector<4xf32>
    %107 = vector.shape_cast %106 : vector<4xf32> to vector<1x4xf32>
    %cst_30 = arith.constant 2.560000e+02 : f32
    %108 = vector.broadcast %cst_30 : f32 to vector<1x4xf32>
    %109 = arith.divf %107, %108 : vector<1x4xf32>
    %110 = vector.broadcast %100 : vector<1x4xf32> to vector<256x4xf32>
    %111 = arith.subf %96, %110 : vector<256x4xf32>
    %cst_31 = arith.constant 9.99999974E-6 : f32
    %112 = vector.broadcast %cst_31 : f32 to vector<1x4xf32>
    %113 = arith.addf %109, %112 : vector<1x4xf32>
    %114 = math.rsqrt %113 : vector<1x4xf32>
    %115 = vector.broadcast %114 : vector<1x4xf32> to vector<256x4xf32>
    %116 = arith.mulf %111, %115 : vector<256x4xf32>
    %cst_32 = arith.constant 0.000000e+00 : f32
    %117 = vector.broadcast %cst_32 : f32 to vector<256x4xf32>
    %118 = arith.subf %117, %116 : vector<256x4xf32>
    %119 = math.exp %118 : vector<256x4xf32>
    %cst_33 = arith.constant 1.000000e+00 : f32
    %120 = vector.broadcast %cst_33 : f32 to vector<256x4xf32>
    %121 = arith.addf %120, %119 : vector<256x4xf32>
    %cst_34 = arith.constant 1.000000e+00 : f32
    %122 = vector.broadcast %cst_34 : f32 to vector<256x4xf32>
    %123 = arith.divf %122, %121 : vector<256x4xf32>
    %124 = arith.mulf %116, %123 : vector<256x4xf32>
    %125 = vector.shape_cast %124 : vector<256x4xf32> to vector<16x16x4xf32>
    %c0_35 = arith.constant 0 : index
    %c0_36 = arith.constant 0 : index
    %c0_37 = arith.constant 0 : index
    %c0_38 = arith.constant 0 : index
    %c0_39 = arith.constant 0 : index
    %126 = vector.load %arg5[%c0_35, %c0_36, %c0_37, %c0_38, %c0_39] : memref<1x1x16x16x4xf32, #tpu.memory_space<vmem>>, vector<1x1x16x16x4xf32>
    %127 = vector.shape_cast %126 : vector<1x1x16x16x4xf32> to vector<16x16x4xf32>
    %128 = vector.shape_cast %125 : vector<16x16x4xf32> to vector<1x1x16x16x4xf32>
    tpu.vector_store %arg5[%c0_35, %c0_36, %c0_37, %c0_38, %c0_39], %128 {strides = array<i32>} : memref<1x1x16x16x4xf32, #tpu.memory_space<vmem>>, vector<1x1x16x16x4xf32>,
    return
  }
  func.func @transform_0(%arg0: i32, %arg1: i32) -> i32 {
    %c0_i32 = arith.constant 0 : i32
    %c0_i32_0 = arith.constant 0 : i32
    return %c0_i32 : i32
  }
  func.func @transform_1(%arg0: i32, %arg1: i32) -> (i32, i32, i32, i32, i32) {
    %c0_i32 = arith.constant 0 : i32
    %c0_i32_0 = arith.constant 0 : i32
    %c0_i32_1 = arith.constant 0 : i32
    %c0_i32_2 = arith.constant 0 : i32
    return %arg0, %arg1, %c0_i32, %c0_i32_0, %c0_i32_1 : i32, i32, i32, i32, i32
  }
  func.func @transform_2(%arg0: i32, %arg1: i32) -> (i32, i32, i32) {
    %c0_i32 = arith.constant 0 : i32
    %c0_i32_0 = arith.constant 0 : i32
    %c0_i32_1 = arith.constant 0 : i32
    return %arg0, %c0_i32, %c0_i32_0 : i32, i32, i32
  }
  func.func @transform_3(%arg0: i32, %arg1: i32) -> (i32, i32, i32, i32, i32) {
    %c0_i32 = arith.constant 0 : i32
    %c0_i32_0 = arith.constant 0 : i32
    %c0_i32_1 = arith.constant 0 : i32
    %c0_i32_2 = arith.constant 0 : i32
    return %arg0, %arg1, %c0_i32, %c0_i32_0, %c0_i32_1 : i32, i32, i32, i32, i32
  }
}

</mosaic_0001>

<bundles_post_ra>
// kernel: kagn_conv2d_forward.1
= control target key start
LH: loop header
LB: loop body
LE: loop exit
PB: predicated region body
PF: predicated region fallthrough
CT: control target
= control target key end

     0   :  { %8 = vsyncpa [#allocation3], 0  ;;  %s6928_s12 = smov 0   ;;  %s6930_s13 = smov 0   ;;  %s11376_s0 = inlined_call_operand.vmem [shape: f32[4], index: 0, kind: input, shape index: {}]   ;;  %s11377_s1 = inlined_call_operand.vmem [shape: f32[2,2,18,18,2], index: 1, kind: input, shape index: {}]   ;;  %s11378_s2 = inlined_call_operand.vmem [shape: f32[2,90,4], index: 2, kind: input, shape index: {}]   ;;  %s11379_s3 = inlined_call_operand.vmem [shape: f32[2,2,16,16,4], index: 3, kind: output, shape index: {}]  }
   0x1   :  { %s6932_s14 = smov 0   ;;  %s6934_s15 = smov 0  }
   0x2   :  { %s6936_s16 = smov 0  }
   0x3 LB: > { %s5420_s17 = sadd.s32 4294967295, %s6893_s16   ;;  %s23_s18 = sadd.s32 1, %s6885_s14  ;;  %s6893_s16 = sphi %s6936_s16, %s14_s16   ;;  %s6889_s15 = sphi %s6934_s15, %s12009_s15   ;;  %s6885_s14 = sphi %s6932_s14, %s12008_s14   ;;  %s6881_s13 = sphi %s6930_s13, %s12007_s13   ;;  %s6877_s12 = sphi %s6928_s12, %s12006_s12  }
   0x4   : > { %p24_p0 = scmp.ge.s32.totalorder %s23_s18, 2  ;;  %s26_s19 = sadd.s32 1, %s6889_s15 }
   0x5   : > { %p5422_p1 = scmp.ge.s32.totalorder %s6893_s16, 1  ;;  %p134_p2 = scmp.lt.s32.totalorder %s6893_s16, 5 }
   0x6   : > { %s12011_s18 = smov (%p24_p0, %s23_s18), 0  ;;  %s12013_s19 = smov (!%p24_p0, %s26_s19), %s6889_s15 }
   0x7   : > { %p6961_p3 = pnand %p5422_p1, %p134_p2  ;;  %p28_p4 = scmp.ge.s32.totalorder %s12013_s19, 2 }
   0x8   : > { %p6965_p5 = scmp.eq.s32.totalorder %s5420_s17, 0  ;;  %s147_s24 = sshll.u32 %s11376_s0, 4  ;;  %s148_s24 = int_to_ptr.vmem [resolvable:$true] %s147_s24 }
   0x9   : > { %p5616_p6 = pneg %p6961_p3  ;;  %s12015_s19 = smov (%p28_p4, %s12013_s19), 0 }
   0xa   : > { %s6836_s25 = scalar_lea.vmem %s148_s24, 16  ;;  %p6844_p12 = scmp.lt.s32.totalorder %s148_s24, %s148_s24 }
   0xb   : > { %p5617_p7 = pnand %p6965_p5, %p5616_p6  ;;  %p6837_p8 = scmp.ne.s32.totalorder %s148_s24, %s6836_s25 }
   0xc   : > { %p6845_p13 = scmp.lt.s32.totalorder %s6836_s25, %s6836_s25 }
   0xd   : > { %p6838_p9 = pneg %p5617_p7 }
   0xe   : > { %p6846_p0 = por %p6845_p13, %p6844_p12 }
   0xf   : > { %p6839_p10 = pnand %p6838_p9, %p6837_p8 }
  0x11   : > { %p6840_p11 = pneg %p6839_p10 }
  0x13   : > { %p6847_p1 = pnand %p6846_p0, %p6840_p11 }
  0x15   : > { %6850 = shalt.err (!%p6847_p1)
}
  0x16   : > { %s6895_s26 = smov [#allocation2]   ;;  %180 = sbr.rel (%p6961_p3) target bundleno = 1591 (0x637), region = 32 }
  0x17   : > { %5619 = dma.vmem_to_smem (!%p5617_p7), %s148_s24, 16, %s6895_s26, [#allocation3]  }
  0x1b   : > { %6872 = dma.done.wait (%p6965_p5), [#allocation3], 16  }
  0x1c   : > { %6874 = vsyncadd (%p6965_p5), [#allocation3], 4294967280 }
  0x1d   : > { %186 = sfence }
  0x1e   : > { %p218_p2 = scmp.lt.s32.totalorder %s6881_s13, 1  ;;  %p220_p4 = scmp.lt.s32.totalorder %s6877_s12, 1  ;;  %vm2979_vm2 = vcmask 15360   ;;  %vm3034_vm3 = vcmask 31744   ;;  %vm3089_vm4 = vcmask 48128   ;;  %vm3144_vm5 = vcmask 64512  }
  0x1f   : > { %s6896_s7 = smov 4   ;;  %s7281_s8 = sld [smem:[#allocation2 + $0x2]]  ;;  %vm3247_vm6 = vcmask 1046528   ;;  %vm3328_vm7 = vcmask 1045504   ;;  %vm4576_vm8 = vcmask 1041408   ;;  %vm4203_vm9 = vcmask 80896  }
  0x20   : > { %s12017_s13 = smov (!%p218_p2, %s6881_s13), 1  ;;  %s12019_s12 = smov (!%p220_p4, %s6877_s12), 1  ;;  %vm4236_vm10 = vcmask 162816   ;;  %vm4269_vm11 = vcmask 244736   ;;  %vm4302_vm12 = vcmask 326656   ;;  %vm4335_vm13 = vcmask 408576  }
  0x21   : > { %s5610_s27 = smul.u32 108, %s12017_s13  ;;  %s6898_s9 = smov 6   ;;  %vm4368_vm14 = vcmask 490496   ;;  %vm4401_vm15 = vcmask 572416  }
  0x22   : > { %s5609_s28 = smul.u32 54, %s12019_s12  ;;  %s7851_s10 = sld [smem:[#allocation2 + $0x3]] }
  0x23   : > { %s6899_s11 = smov 8   ;;  %s6900_s17 = smov 10  }
  0x24   : > { %s224_s29 = sadd.s32 %s5610_s27, %s5609_s28  ;;  %s6901_s20 = smov 20  }
  0x25   : > { %s5427_s30 = sshll.u32 %s224_s29, 3  ;;  %s5611_s21 = smul.u32 96, %s12017_s13 }
  0x26   : > { %s6997_s6 = scalar_lea.vmem %s11377_s1, %s5427_s30  ;;  %s6902_s22 = smov 30  }
  0x27   : > { %v248_v0 = vld [vmem:[%s6997_s6 + $0x38] sm:$0xff]  ;;  %v245_v1 = vld [vmem:[%s6997_s6 + $0x20] sm:$0xff]  ;;  %v254_v2 = vld [vmem:[%s6997_s6 + $0x68] sm:$0xff]  ;;  %s9266_s25 = scalar_lea.vmem %s11378_s2, %s5611_s21  ;;  %s6903_s26 = smov 40  }
  0x28   : > { %5675 = vtanh.f32 %v248_v0  ;;  %v251_v3 = vld [vmem:[%s6997_s6 + $0x50] sm:$0xff]  ;;  %v260_v4 = vld [vmem:[%s6997_s6 + $0x98] sm:$0xff]  ;;  %v257_v5 = vld [vmem:[%s6997_s6 + $0x80] sm:$0xff]  ;;  %s6904_s27 = smov 50   ;;  %s6905_s28 = smov 60  }
  0x29   : > { %5677 = vtanh.f32 %v245_v1  ;;  %v266_v6 = vld [vmem:[%s6997_s6 + $0xc8] sm:$0xff]  ;;  %v263_v7 = vld [vmem:[%s6997_s6 + $0xb0] sm:$0xff]  ;;  %v272_v8 = vld [vmem:[%s6997_s6 + $0xf8] sm:$0xff]  ;;  %s6906_s29 = smov 70   ;;  %s6907_s30 = smov 80  }
  0x2a   : > { %5679 = vtanh.f32 %v254_v2  ;;  %v269_v9 = vld [vmem:[%s6997_s6 + $0xe0] sm:$0xff]  ;;  %v243_v10 = vld [vmem:[%s6997_s6 + $0x10] sm:$0x3]  ;;  %v244_v12 = vld [vmem:[%s6997_s6 + $0x18] sm:$0xff]  ;;  %s5429_s4 = sshll.u32 %s12019_s12, 5  ;;  %s5430_s5 = sshll.u32 %s12017_s13, 6 }
  0x2b   : > { %5681 = vtanh.f32 %v251_v3  ;;  %v241_v11 = vld [vmem:[%s6997_s6] sm:$0xff]  ;;  %v242_v13 = vld [vmem:[%s6997_s6 + $0x8] sm:$0xff]  ;;  %v247_v15 = vld [vmem:[%s6997_s6 + $0x30] sm:$0xff] }
  0x2c   : > { %5683 = vtanh.f32 %v260_v4  ;;  %v246_v14 = vld [vmem:[%s6997_s6 + $0x28] sm:$0x3]  ;;  %v249_v20 = vld [vmem:[%s6997_s6 + $0x40] sm:$0x3] }
  0x2d   : > { %5685 = vtanh.f32 %v257_v5  ;;  %v250_v17 = vld [vmem:[%s6997_s6 + $0x48] sm:$0xff] }
  0x2e   : > { %5687 = vtanh.f32 %v266_v6 }
  0x2f   : > { %5689 = vtanh.f32 %v263_v7 }
  0x30   : > { %5691 = vtanh.f32 %v272_v8 }
  0x31   : > { %5693 = vtanh.f32 %v269_v9 }
  0x32   : > { %5695 = vtanh.f32 %v243_v10 }
  0x33   : > { %5697 = vtanh.f32 %v241_v11 }
  0x34   : > { %5699 = vtanh.f32 %v244_v12 }
  0x35   : > { %v7015_v16 = vpop.eup %5675  ;;  %5701 = vtanh.f32 %v242_v13 }
  0x36   : > { %11529 = vst [vmem:[#allocation5_spill] sm:$0xff] %v7015_v16  ;;  %v7018_v18 = vpop.eup %5677  ;;  %v768_v19 = vsub.f32 0.0, %v7015_v16  ;;  %5703 = vtanh.f32 %v246_v14 }
  0x37   : > { %11530 = vst [vmem:[#allocation6_spill] sm:$0xff] %v7018_v18  ;;  %v7022_v21 = vpop.eup %5679  ;;  %v765_v22 = vsub.f32 0.0, %v7018_v18  ;;  %5705 = vtanh.f32 %v247_v15 }
  0x38   : > { %11531 = vst [vmem:[#allocation7_spill] sm:$0xff] %v7022_v21  ;;  %v7025_v23 = vpop.eup %5681  ;;  %v829_v24 = vmul.f32 1.442695, %v768_v19  ;;  %v774_v25 = vsub.f32 0.0, %v7022_v21  ;;  %5707 = vtanh.f32 %v250_v17 }
  0x39   : > { %11532 = vst [vmem:[#allocation8_spill] sm:$0xff] %v7025_v23  ;;  %v7028_v26 = vpop.eup %5683  ;;  %v823_v27 = vmul.f32 1.442695, %v765_v22  ;;  %v771_v28 = vsub.f32 0.0, %v7025_v23  ;;  %5709 = vtanh.f32 %v249_v20 }
  0x3a   : > { %11533 = vst [vmem:[#allocation9_spill] sm:$0xff] %v7028_v26  ;;  %v7031_v29 = vpop.eup %5685  ;;  %5711 = vpow2.f32 %v829_v24  ;;  %v841_v30 = vmul.f32 1.442695, %v774_v25  ;;  %v780_v31 = vsub.f32 0.0, %v7028_v26 }
  0x3b   : > { %11534 = vst [vmem:[#allocation10_spill] sm:$0xff] %v7031_v29  ;;  %v7034_v32 = vpop.eup %5687  ;;  %5713 = vpow2.f32 %v823_v27  ;;  %v835_v33 = vmul.f32 1.442695, %v771_v28  ;;  %v777_v34 = vsub.f32 0.0, %v7031_v29 }
  0x3c   : > { %11535 = vst [vmem:[#allocation11_spill] sm:$0xff] %v7034_v32  ;;  %v7037_v35 = vpop.eup %5689  ;;  %5715 = vpow2.f32 %v841_v30  ;;  %v853_v36 = vmul.f32 1.442695, %v780_v31  ;;  %v786_v37 = vsub.f32 0.0, %v7034_v32 }
  0x3d   : > { %11536 = vst [vmem:[#allocation12_spill] sm:$0xff] %v7037_v35  ;;  %v7040_v38 = vpop.eup %5691  ;;  %5717 = vpow2.f32 %v835_v33  ;;  %v847_v39 = vmul.f32 1.442695, %v777_v34  ;;  %v783_v40 = vsub.f32 0.0, %v7037_v35 }
  0x3e   : > { %11537 = vst [vmem:[#allocation13_spill] sm:$0xff] %v7040_v38  ;;  %v7043_v41 = vpop.eup %5693  ;;  %5719 = vpow2.f32 %v853_v36  ;;  %v865_v42 = vmul.f32 1.442695, %v786_v37  ;;  %v792_v43 = vsub.f32 0.0, %v7040_v38 }
  0x3f   : > { %11538 = vst [vmem:[#allocation14_spill] sm:$0xff] %v7043_v41  ;;  %v7046_v44 = vpop.eup %5695  ;;  %5721 = vpow2.f32 %v847_v39  ;;  %v859_v45 = vmul.f32 1.442695, %v783_v40  ;;  %v789_v46 = vsub.f32 0.0, %v7043_v41 }
  0x40   : > { %11539 = vst [vmem:[#allocation15_spill] sm:$0xff] %v7046_v44  ;;  %v7049_v47 = vpop.eup %5697  ;;  %5723 = vpow2.f32 %v865_v42  ;;  %v877_v48 = vmul.f32 1.442695, %v792_v43  ;;  %v763_v49 = vsub.f32 0.0, %v7046_v44 }
  0x41   : > { %11540 = vst [vmem:[#allocation16_spill] sm:$0xff] %v7049_v47  ;;  %v7052_v50 = vpop.eup %5699  ;;  %5725 = vpow2.f32 %v859_v45  ;;  %v871_v51 = vmul.f32 1.442695, %v789_v46  ;;  %v761_v52 = vsub.f32 0.0, %v7049_v47 }
  0x42   : > { %11541 = vst [vmem:[#allocation17_spill] sm:$0xff] %v7052_v50  ;;  %v7055_v53 = vpop.eup %5701  ;;  %5727 = vpow2.f32 %v877_v48  ;;  %v819_v54 = vmul.f32 1.442695, %v763_v49  ;;  %v764_v55 = vsub.f32 0.0, %v7052_v50 }
  0x43   : > { %11542 = vst [vmem:[#allocation18_spill] sm:$0xff] %v7055_v53  ;;  %v7058_v56 = vpop.eup %5703  ;;  %5729 = vpow2.f32 %v871_v51  ;;  %v815_v57 = vmul.f32 1.442695, %v761_v52  ;;  %v762_v58 = vsub.f32 0.0, %v7055_v53 }
  0x44   : > { %11543 = vst [vmem:[#allocation19_spill] sm:$0xff] %v7058_v56  ;;  %v7061_v59 = vpop.eup %5705  ;;  %5731 = vpow2.f32 %v819_v54  ;;  %v821_v60 = vmul.f32 1.442695, %v764_v55  ;;  %v766_v61 = vsub.f32 0.0, %v7058_v56 }
  0x45   : > { %11544 = vst [vmem:[#allocation20_spill] sm:$0xff] %v7061_v59  ;;  %v7064_v62 = vpop.eup %5707  ;;  %5733 = vpow2.f32 %v815_v57  ;;  %v817_v63 = vmul.f32 1.442695, %v762_v58  ;;  %v767_v0 = vsub.f32 0.0, %v7061_v59 }
  0x46   : > { %11545 = vst [vmem:[#allocation21_spill] sm:$0xff] %v7064_v62  ;;  %v7067_v1 = vpop.eup %5709  ;;  %5735 = vpow2.f32 %v821_v60  ;;  %v825_v2 = vmul.f32 1.442695, %v766_v61  ;;  %v770_v34 = vsub.f32 0.0, %v7064_v62  ;;  %v252_v61 = vld [vmem:[%s6997_s6 + $0x58] sm:$0x3] }
  0x47   : > { %11546 = vst [vmem:[#allocation22_spill] sm:$0xff] %v7067_v1  ;;  %v5712_v3 = vpop.eup %5711  ;;  %5737 = vpow2.f32 %v817_v63  ;;  %v827_v4 = vmul.f32 1.442695, %v767_v0  ;;  %v769_v39 = vsub.f32 0.0, %v7067_v1 }
  0x48   : > { %v5714_v5 = vpop.eup %5713  ;;  %v930_v6 = vadd.f32 1.0, %v5712_v3  ;;  %5739 = vpow2.f32 %v825_v2  ;;  %v833_v49 = vmul.f32 1.442695, %v770_v34  ;;  %v253_v2 = vld [vmem:[%s6997_s6 + $0x60] sm:$0xff]  ;;  %v268_v34 = vld [vmem:[%s6997_s6 + $0xd8] sm:$0xff] }
  0x49   : > { %v5716_v7 = vpop.eup %5715  ;;  %v927_v8 = vadd.f32 1.0, %v5714_v5  ;;  %5741 = vpow2.f32 %v827_v4  ;;  %v831_v54 = vmul.f32 1.442695, %v769_v39  ;;  %v256_v5 = vld [vmem:[%s6997_s6 + $0x78] sm:$0xff]  ;;  %v267_v39 = vld [vmem:[%s6997_s6 + $0xd0] sm:$0x3] }
  0x4a   : > { %v5718_v9 = vpop.eup %5717  ;;  %5743 = vrcp.f32 %v930_v6  ;;  %v936_v10 = vadd.f32 1.0, %v5716_v7  ;;  %v255_v7 = vld [vmem:[%s6997_s6 + $0x70] sm:$0x3] }
  0x4b   : > { %v5720_v11 = vpop.eup %5719  ;;  %5745 = vrcp.f32 %v927_v8  ;;  %v933_v12 = vadd.f32 1.0, %v5718_v9  ;;  %v258_v9 = vld [vmem:[%s6997_s6 + $0x88] sm:$0x3] }
  0x4c   : > { %v5722_v13 = vpop.eup %5721  ;;  %5747 = vrcp.f32 %v936_v10  ;;  %v942_v14 = vadd.f32 1.0, %v5720_v11 }
  0x4d   : > { %v5724_v15 = vpop.eup %5723  ;;  %5749 = vrcp.f32 %v933_v12  ;;  %v939_v17 = vadd.f32 1.0, %v5722_v13  ;;  %v295_v12 = vlaneseq  ;;  %v259_v13 = vld [vmem:[%s6997_s6 + $0x90] sm:$0xff] }
  0x4e   : > { %v5726_v19 = vpop.eup %5725  ;;  %5751 = vrcp.f32 %v942_v14  ;;  %v948_v20 = vadd.f32 1.0, %v5724_v15 }
  0x4f   : > { %v5728_v22 = vpop.eup %5727  ;;  %5753 = vrcp.f32 %v939_v17  ;;  %v945_v24 = vadd.f32 1.0, %v5726_v19  ;;  %v262_v17 = vld [vmem:[%s6997_s6 + $0xa8] sm:$0xff] }
  0x50   : > { %v5730_v25 = vpop.eup %5729  ;;  %5755 = vrcp.f32 %v948_v20  ;;  %v954_v27 = vadd.f32 1.0, %v5728_v22  ;;  %v261_v20 = vld [vmem:[%s6997_s6 + $0xa0] sm:$0x3] }
  0x51   : > { %v5732_v28 = vpop.eup %5731  ;;  %5757 = vrcp.f32 %v945_v24  ;;  %v951_v30 = vadd.f32 1.0, %v5730_v25  ;;  %v264_v24 = vld [vmem:[%s6997_s6 + $0xb8] sm:$0x3] }
  0x52   : > { %v5734_v31 = vpop.eup %5733  ;;  %5759 = vrcp.f32 %v954_v27  ;;  %v925_v33 = vadd.f32 1.0, %v5732_v28  ;;  %v296_v28 = vshrl.u32 %v295_v12, 7 }
  0x53   : > { %v5736_v36 = vpop.eup %5735  ;;  %5761 = vrcp.f32 %v951_v30  ;;  %v923_v37 = vadd.f32 1.0, %v5734_v31  ;;  %v265_v30 = vld [vmem:[%s6997_s6 + $0xc0] sm:$0xff] }
  0x54   : > { %v5738_v40 = vpop.eup %5737  ;;  %5763 = vrcp.f32 %v925_v33  ;;  %v926_v42 = vadd.f32 1.0, %v5736_v36  ;;  %vm299_vm0 = vcmp.ge.s32.totalorder %v296_v28, 1 }
  0x55   : > { %v5740_v43 = vpop.eup %5739  ;;  %5765 = vrcp.f32 %v923_v37  ;;  %v924_v45 = vadd.f32 1.0, %v5738_v40  ;;  %v298_v37 = vadd.s32 16, %v296_v28 }
  0x56   : > { %v5742_v46 = vpop.eup %5741  ;;  %5767 = vrcp.f32 %v926_v42  ;;  %v928_v48 = vadd.f32 1.0, %v5740_v43  ;;  %v270_v42 = vld [vmem:[%s6997_s6 + $0xe8] sm:$0x3] }
  0x57   : > { %v5744_v51 = vpop.eup %5743  ;;  %5769 = vrcp.f32 %v924_v45  ;;  %v929_v52 = vadd.f32 1.0, %v5742_v46  ;;  %vm310_vm1 = vcmp.lt.s32.totalorder %v298_v37, 17 }
  0x58   : > { %v5746_v55 = vpop.eup %5745  ;;  %v1092_v57 = vmul.f32 %v5744_v51, %v7015_v16  ;;  %5771 = vrcp.f32 %v928_v48  ;;  %v271_v48 = vld [vmem:[%s6997_s6 + $0xf0] sm:$0xff] }
  0x59   : > { %v5748_v58 = vpop.eup %5747  ;;  %v1089_v60 = vmul.f32 %v5746_v55, %v7018_v18  ;;  %5773 = vrcp.f32 %v929_v52 }
  0x5a   : > { %v5750_v63 = vpop.eup %5749  ;;  %2399 = vrot.lane.b32.xlu1 %v1092_v57, %s6896_s7  ;;  %v1098_v0 = vmul.f32 %v5748_v58, %v7022_v21  ;;  %5775 = vpow2.f32 %v833_v49 }
  0x5b   : > { %v5752_v3 = vpop.eup %5751  ;;  %2393 = vrot.lane.b32.xlu0 %v1089_v60, %s6896_s7  ;;  %v1095_v4 = vmul.f32 %v5750_v63, %v7025_v23  ;;  %5777 = vpow2.f32 %v831_v54  ;;  %v6897_v60 = vmov 0.0  }
  0x5c   : > { %v5754_v6 = vpop.eup %5753  ;;  %5779 = vtanh.f32 %v252_v61  ;;  %v1104_v11 = vmul.f32 %v5752_v3, %v7028_v26  ;;  %v7108_v61 = vsel %vm299_vm0, 1.0, %v6897_v60  ;;  %vm4434_vm0 = vcmask 654336  }
  0x5d   : > { %v5756_v8 = vpop.eup %5755  ;;  %5781 = vtanh.f32 %v253_v2  ;;  %v1101_v15 = vmul.f32 %v5754_v6, %v7031_v29  ;;  %v273_v6 = vld [vmem:[%s6997_s6 + $0x100] sm:$0x3] }
  0x5e   : > { %v5758_v10 = vpop.eup %5757  ;;  %2411 = vrot.lane.b32.xlu1 %v1098_v0, %s6896_s7  ;;  %5783 = vtanh.f32 %v256_v5  ;;  %v1110_v27 = vmul.f32 %v5756_v8, %v7034_v32  ;;  %v274_v0 = vld [vmem:[%s6997_s6 + $0x108] sm:$0xff] }
  0x5f   : > { %v5760_v14 = vpop.eup %5759  ;;  %2405 = vrot.lane.b32.xlu0 %v1095_v4, %s6896_s7  ;;  %5785 = vtanh.f32 %v255_v7  ;;  %v1107_v33 = vmul.f32 %v5758_v10, %v7037_v35 }
  0x60   : > { %v5762_v19 = vpop.eup %5761  ;;  %5787 = vtanh.f32 %v258_v9  ;;  %v1116_v45 = vmul.f32 %v5760_v14, %v7040_v38  ;;  %v7121_v9 = vsel %vm310_vm1, 1.0, %v6897_v60  ;;  %v291_v38 = vld [vmem:[%s6997_s6 + $0x190] sm:$0x3]  ;;  %vm4479_vm1 = vcmask 736256  }
  0x61   : > { %v5764_v22 = vpop.eup %5763  ;;  %5789 = vtanh.f32 %v259_v13  ;;  %v1113_v51 = vmul.f32 %v5762_v19, %v7043_v41 }
  0x62   : > { %v5766_v25 = vpop.eup %5765  ;;  %2423 = vrot.lane.b32.xlu1 %v1104_v11, %s6896_s7  ;;  %5791 = vtanh.f32 %v262_v17  ;;  %v1087_v46 = vmul.f32 %v5764_v22, %v7046_v44 }
  0x63   : > { %v5768_v31 = vpop.eup %5767  ;;  %2417 = vrot.lane.b32.xlu0 %v1101_v15, %s6896_s7  ;;  %5793 = vtanh.f32 %v261_v20  ;;  %v1085_v52 = vmul.f32 %v5766_v25, %v7049_v47 }
  0x64   : > { %v5770_v36 = vpop.eup %5769  ;;  %5795 = vtanh.f32 %v264_v24  ;;  %v1088_v55 = vmul.f32 %v5768_v31, %v7052_v50  ;;  %v1141_v3 = vmul.f32 0.0, %v1087_v46 }
  0x65   : > { %v5772_v40 = vpop.eup %5771  ;;  %5797 = vtanh.f32 %v265_v30  ;;  %v1086_v4 = vmul.f32 %v5770_v36, %v7055_v53  ;;  %v1139_v8 = vmul.f32 0.0, %v1085_v52 }
  0x66   : > { %v5774_v43 = vpop.eup %5773  ;;  %2435 = vrot.lane.b32.xlu1 %v1110_v27, %s6896_s7  ;;  %5799 = vtanh.f32 %v268_v34  ;;  %v1142_v12 = vmul.f32 %v1088_v55, %v7108_v61  ;;  %v1090_v17 = vmul.f32 %v5772_v40, %v7058_v56 }
  0x67   : > { %v5776_v49 = vpop.eup %5775  ;;  %2429 = vrot.lane.b32.xlu0 %v1107_v33, %s6896_s7  ;;  %5801 = vtanh.f32 %v267_v39  ;;  %v1140_v24 = vmul.f32 0.0, %v1086_v4  ;;  %v1091_v30 = vmul.f32 %v5774_v43, %v7061_v59 }
  0x68   : > { %v5778_v54 = vpop.eup %5777  ;;  %v932_v57 = vadd.f32 1.0, %v5776_v49  ;;  %5803 = vtanh.f32 %v270_v42  ;;  %v1144_v43 = vmul.f32 %v1090_v17, %v7121_v9 }
  0x69   : > { %v7106_v58 = vpop.eup %5779  ;;  %v931_v63 = vadd.f32 1.0, %v5778_v54  ;;  %5805 = vtanh.f32 %v271_v48 }
  0x6a   : > { %11547 = vst [vmem:[#allocation23_spill] sm:$0xff] %v7106_v58  ;;  %v7111_v2 = vpop.eup %5781  ;;  %2447 = vrot.lane.b32.xlu1 %v1116_v45, %s6896_s7  ;;  %5807 = vrcp.f32 %v932_v57  ;;  %v772_v5 = vsub.f32 0.0, %v7106_v58 }
  0x6b   : > { %11548 = vst [vmem:[#allocation24_spill] sm:$0xff] %v7111_v2  ;;  %v7117_v7 = vpop.eup %5783  ;;  %2441 = vrot.lane.b32.xlu0 %v1113_v51, %s6896_s7  ;;  %5809 = vrcp.f32 %v931_v63  ;;  %v773_v10 = vsub.f32 0.0, %v7111_v2  ;;  %v1145_v51 = vmul.f32 %v1091_v30, %v7108_v61 }
  0x6c   : > { %11549 = vst [vmem:[#allocation25_spill] sm:$0xff] %v7117_v7  ;;  %v7124_v11 = vpop.eup %5785  ;;  %v837_v13 = vmul.f32 1.442695, %v772_v5  ;;  %v776_v14 = vsub.f32 0.0, %v7117_v7  ;;  %5811 = vtanh.f32 %v274_v0 }
  0x6d   : > { %11550 = vst [vmem:[#allocation26_spill] sm:$0xff] %v7124_v11  ;;  %v7128_v15 = vpop.eup %5787  ;;  %v839_v19 = vmul.f32 1.442695, %v773_v10  ;;  %v775_v20 = vsub.f32 0.0, %v7124_v11  ;;  %5813 = vtanh.f32 %v273_v6 }
  0x6e   : > { %11551 = vst [vmem:[#allocation27_spill] sm:$0xff] %v7128_v15  ;;  %v7132_v22 = vpop.eup %5789  ;;  %2389 = vrot.lane.b32.xlu1 %v1141_v3, %s6896_s7  ;;  %5815 = vpow2.f32 %v837_v13  ;;  %v845_v25 = vmul.f32 1.442695, %v776_v14  ;;  %v778_v27 = vsub.f32 0.0, %v7128_v15 }
  0x6f   : > { %11552 = vst [vmem:[#allocation28_spill] sm:$0xff] %v7132_v22  ;;  %v7136_v28 = vpop.eup %5791  ;;  %2385 = vrot.lane.b32.xlu0 %v1139_v8, %s6896_s7  ;;  %5817 = vpow2.f32 %v839_v19  ;;  %v843_v31 = vmul.f32 1.442695, %v775_v20  ;;  %v779_v33 = vsub.f32 0.0, %v7132_v22 }
  0x70   : > { %11553 = vst [vmem:[#allocation29_spill] sm:$0xff] %v7136_v28  ;;  %v7141_v34 = vpop.eup %5793  ;;  %5819 = vpow2.f32 %v845_v25  ;;  %v849_v36 = vmul.f32 1.442695, %v778_v27  ;;  %v782_v37 = vsub.f32 0.0, %v7136_v28  ;;  %v276_v25 = vld [vmem:[%s6997_s6 + $0x118] sm:$0x3] }
  0x71   : > { %11554 = vst [vmem:[#allocation30_spill] sm:$0xff] %v7141_v34  ;;  %v7144_v39 = vpop.eup %5795  ;;  %5821 = vpow2.f32 %v843_v31  ;;  %v851_v40 = vmul.f32 1.442695, %v779_v33  ;;  %v781_v42 = vsub.f32 0.0, %v7141_v34  ;;  %v275_v31 = vld [vmem:[%s6997_s6 + $0x110] sm:$0xff] }
  0x72   : > { %11555 = vst [vmem:[#allocation31_spill] sm:$0xff] %v7144_v39  ;;  %v7147_v45 = vpop.eup %5797  ;;  %2391 = vrot.lane.b32.xlu1 %v1142_v12, %s6896_s7  ;;  %5823 = vpow2.f32 %v849_v36  ;;  %v857_v46 = vmul.f32 1.442695, %v782_v37  ;;  %v784_v48 = vsub.f32 0.0, %v7144_v39 }
  0x73   : > { %11556 = vst [vmem:[#allocation32_spill] sm:$0xff] %v7147_v45  ;;  %v7152_v49 = vpop.eup %5799  ;;  %2387 = vrot.lane.b32.xlu0 %v1140_v24, %s6896_s7  ;;  %5825 = vpow2.f32 %v851_v40  ;;  %v855_v52 = vmul.f32 1.442695, %v781_v42  ;;  %v785_v54 = vsub.f32 0.0, %v7147_v45 }
  0x74   : > { %11557 = vst [vmem:[#allocation33_spill] sm:$0xff] %v7152_v49  ;;  %v7157_v55 = vpop.eup %5801  ;;  %5827 = vpow2.f32 %v857_v46  ;;  %v861_v57 = vmul.f32 1.442695, %v784_v48  ;;  %v788_v60 = vsub.f32 0.0, %v7152_v49 }
  0x75   : > { %11558 = vst [vmem:[#allocation34_spill] sm:$0xff] %v7157_v55  ;;  %v7160_v63 = vpop.eup %5803  ;;  %5829 = vpow2.f32 %v855_v52  ;;  %v863_v0 = vmul.f32 1.442695, %v785_v54  ;;  %v787_v3 = vsub.f32 0.0, %v7157_v55 }
  0x76   : > { %11559 = vst [vmem:[#allocation35_spill] sm:$0xff] %v7160_v63  ;;  %v7163_v4 = vpop.eup %5805  ;;  %2395 = vrot.lane.b32.xlu1 %v1144_v43, %s6896_s7  ;;  %5831 = vpow2.f32 %v861_v57  ;;  %v869_v5 = vmul.f32 1.442695, %v788_v60  ;;  %v790_v6 = vsub.f32 0.0, %v7160_v63 }
  0x77   : > { %11560 = vst [vmem:[#allocation36_spill] sm:$0xff] %v7163_v4  ;;  %v5808_v8 = vpop.eup %5807  ;;  %2397 = vrot.lane.b32.xlu0 %v1145_v51, %s6896_s7  ;;  %5833 = vpow2.f32 %v863_v0  ;;  %v867_v10 = vmul.f32 1.442695, %v787_v3  ;;  %v791_v12 = vsub.f32 0.0, %v7163_v4 }
  0x78   : > { %v5810_v13 = vpop.eup %5809  ;;  %v1094_v14 = vmul.f32 %v5808_v8, %v7064_v62  ;;  %5835 = vpow2.f32 %v869_v5  ;;  %v873_v17 = vmul.f32 1.442695, %v790_v6 }
  0x79   : > { %v7170_v19 = vpop.eup %5811  ;;  %v1093_v20 = vmul.f32 %v5810_v13, %v7067_v1  ;;  %5837 = vpow2.f32 %v867_v10  ;;  %v875_v24 = vmul.f32 1.442695, %v791_v12 }
  0x7a   : > { %11561 = vst [vmem:[#allocation37_spill] sm:$0xff] %v7170_v19  ;;  %v7174_v27 = vpop.eup %5813  ;;  %v1148_v30 = vmul.f32 %v1094_v14, %v7108_v61  ;;  %5839 = vpow2.f32 %v873_v17  ;;  %v794_v13 = vsub.f32 0.0, %v7170_v19 }
  0x7b   : > { %11562 = vst [vmem:[#allocation38_spill] sm:$0xff] %v7174_v27  ;;  %v5816_v33 = vpop.eup %5815  ;;  %v1147_v36 = vmul.f32 %v1093_v20, %v7121_v9  ;;  %5841 = vpow2.f32 %v875_v24  ;;  %v793_v20 = vsub.f32 0.0, %v7174_v27 }
  0x7c   : > { %v5818_v37 = vpop.eup %5817  ;;  %2403 = vrot.lane.b32.xlu1 %v1148_v30, %s6896_s7  ;;  %v934_v40 = vadd.f32 1.0, %v5816_v33  ;;  %5843 = vtanh.f32 %v276_v25 }
  0x7d   : > { %v5820_v42 = vpop.eup %5819  ;;  %2401 = vrot.lane.b32.xlu0 %v1147_v36, %s6896_s7  ;;  %v935_v43 = vadd.f32 1.0, %v5818_v37  ;;  %5845 = vtanh.f32 %v275_v31  ;;  %v881_v37 = vmul.f32 1.442695, %v794_v13  ;;  %v277_v13 = vld [vmem:[%s6997_s6 + $0x120] sm:$0xff] }
  0x7e   : > { %v5822_v46 = vpop.eup %5821  ;;  %5847 = vrcp.f32 %v934_v40  ;;  %v938_v48 = vadd.f32 1.0, %v5820_v42 }
  0x7f   : > { %v5824_v51 = vpop.eup %5823  ;;  %5849 = vrcp.f32 %v935_v43  ;;  %v937_v52 = vadd.f32 1.0, %v5822_v46  ;;  %v879_v43 = vmul.f32 1.442695, %v793_v20 }
  0x80   : > { %v5826_v54 = vpop.eup %5825  ;;  %5851 = vrcp.f32 %v938_v48  ;;  %v940_v57 = vadd.f32 1.0, %v5824_v51 }
  0x81   : > { %v5828_v60 = vpop.eup %5827  ;;  %5853 = vrcp.f32 %v937_v52  ;;  %v941_v0 = vadd.f32 1.0, %v5826_v54 }
  0x82   : > { %v5830_v3 = vpop.eup %5829  ;;  %5855 = vrcp.f32 %v940_v57  ;;  %v944_v5 = vadd.f32 1.0, %v5828_v60 }
  0x83   : > { %v5832_v6 = vpop.eup %5831  ;;  %5857 = vrcp.f32 %v941_v0  ;;  %v943_v8 = vadd.f32 1.0, %v5830_v3 }
  0x84   : > { %v5834_v10 = vpop.eup %5833  ;;  %5859 = vrcp.f32 %v944_v5  ;;  %v946_v12 = vadd.f32 1.0, %v5832_v6  ;;  %v278_v6 = vld [vmem:[%s6997_s6 + $0x128] sm:$0xff] }
  0x85   : > { %v5836_v14 = vpop.eup %5835  ;;  %5861 = vrcp.f32 %v943_v8  ;;  %v947_v17 = vadd.f32 1.0, %v5834_v10 }
  0x86   : > { %v5838_v24 = vpop.eup %5837  ;;  %5863 = vrcp.f32 %v946_v12  ;;  %v950_v25 = vadd.f32 1.0, %v5836_v14 }
  0x87   : > { %v5840_v30 = vpop.eup %5839  ;;  %5865 = vrcp.f32 %v947_v17  ;;  %v949_v31 = vadd.f32 1.0, %v5838_v24  ;;  %v280_v24 = vld [vmem:[%s6997_s6 + $0x138] sm:$0xff] }
  0x88   : > { %v5842_v33 = vpop.eup %5841  ;;  %5867 = vrcp.f32 %v950_v25  ;;  %v952_v36 = vadd.f32 1.0, %v5840_v30 }
  0x89   : > { %v7183_v40 = vpop.eup %5843  ;;  %5869 = vrcp.f32 %v949_v31  ;;  %v953_v42 = vadd.f32 1.0, %v5842_v33  ;;  %v279_v33 = vld [vmem:[%s6997_s6 + $0x130] sm:$0x3] }
  0x8a   : > { %11563 = vst [vmem:[#allocation39_spill] sm:$0xff] %v7183_v40  ;;  %v7185_v46 = vpop.eup %5845  ;;  %5871 = vrcp.f32 %v952_v36  ;;  %v796_v48 = vsub.f32 0.0, %v7183_v40 }
  0x8b   : > { %11564 = vst [vmem:[#allocation40_spill] sm:$0xff] %v7185_v46  ;;  %v5848_v51 = vpop.eup %5847  ;;  %5873 = vrcp.f32 %v953_v42  ;;  %v795_v52 = vsub.f32 0.0, %v7185_v46 }
  0x8c   : > { %v5850_v54 = vpop.eup %5849  ;;  %v1096_v57 = vmul.f32 %v5848_v51, %v7106_v58  ;;  %5875 = vpow2.f32 %v881_v37  ;;  %v885_v60 = vmul.f32 1.442695, %v796_v48  ;;  %v281_v51 = vld [vmem:[%s6997_s6 + $0x140] sm:$0xff] }
  0x8d   : > { %v5852_v0 = vpop.eup %5851  ;;  %v1097_v3 = vmul.f32 %v5850_v54, %v7111_v2  ;;  %5877 = vpow2.f32 %v879_v43  ;;  %v883_v5 = vmul.f32 1.442695, %v795_v52  ;;  %v282_v43 = vld [vmem:[%s6997_s6 + $0x148] sm:$0x3]  ;;  %v284_v54 = vld [vmem:[%s6997_s6 + $0x158] sm:$0xff] }
  0x8e   : > { %v5854_v8 = vpop.eup %5853  ;;  %v1150_v10 = vmul.f32 %v1096_v57, %v7121_v9  ;;  %v1100_v12 = vmul.f32 %v5852_v0, %v7117_v7  ;;  %5879 = vpow2.f32 %v885_v60 }
  0x8f   : > { %v5856_v14 = vpop.eup %5855  ;;  %v1151_v17 = vmul.f32 %v1097_v3, %v7108_v61  ;;  %v1099_v20 = vmul.f32 %v5854_v8, %v7124_v11  ;;  %5881 = vpow2.f32 %v883_v5  ;;  %v283_v3 = vld [vmem:[%s6997_s6 + $0x150] sm:$0xff] }
  0x90   : > { %v5858_v25 = vpop.eup %5857  ;;  %2407 = vrot.lane.b32.xlu1 %v1150_v10, %s6896_s7  ;;  %v1154_v30 = vmul.f32 %v1100_v12, %v7108_v61  ;;  %v1102_v31 = vmul.f32 %v5856_v14, %v7128_v15  ;;  %5883 = vtanh.f32 %v278_v6  ;;  %v286_v10 = vld [vmem:[%s6997_s6 + $0x168] sm:$0xff] }
  0x91   : > { %v5860_v36 = vpop.eup %5859  ;;  %2409 = vrot.lane.b32.xlu0 %v1151_v17, %s6896_s7  ;;  %v1153_v37 = vmul.f32 %v1099_v20, %v7121_v9  ;;  %v1103_v42 = vmul.f32 %v5858_v25, %v7132_v22  ;;  %5885 = vtanh.f32 %v277_v13  ;;  %v285_v13 = vld [vmem:[%s6997_s6 + $0x160] sm:$0x3]  ;;  %v288_v17 = vld [vmem:[%s6997_s6 + $0x178] sm:$0x3] }
  0x92   : > { %v5862_v48 = vpop.eup %5861  ;;  %5887 = vtanh.f32 %v280_v24  ;;  %v1156_v60 = vmul.f32 %v1102_v31, %v7121_v9  ;;  %v1106_v0 = vmul.f32 %v5860_v36, %v7136_v28 }
  0x93   : > { %v5864_v52 = vpop.eup %5863  ;;  %5889 = vtanh.f32 %v279_v33  ;;  %v1157_v6 = vmul.f32 %v1103_v42, %v7108_v61  ;;  %v1105_v8 = vmul.f32 %v5862_v48, %v7141_v34 }
  0x94   : > { %v5866_v57 = vpop.eup %5865  ;;  %2415 = vrot.lane.b32.xlu1 %v1154_v30, %s6896_s7  ;;  %5891 = vtanh.f32 %v282_v43  ;;  %v1160_v24 = vmul.f32 %v1106_v0, %v7108_v61  ;;  %v1108_v25 = vmul.f32 %v5864_v52, %v7144_v39  ;;  %v287_v30 = vld [vmem:[%s6997_s6 + $0x170] sm:$0xff] }
  0x95   : > { %v5868_v5 = vpop.eup %5867  ;;  %2413 = vrot.lane.b32.xlu0 %v1153_v37, %s6896_s7  ;;  %5893 = vtanh.f32 %v281_v51  ;;  %v1159_v33 = vmul.f32 %v1105_v8, %v7121_v9  ;;  %v1109_v36 = vmul.f32 %v5866_v57, %v7147_v45 }
  0x96   : > { %v5870_v12 = vpop.eup %5869  ;;  %5895 = vtanh.f32 %v284_v54  ;;  %v1112_v48 = vmul.f32 %v5868_v5, %v7152_v49  ;;  %v1162_v54 = vmul.f32 %v1108_v25, %v7121_v9 }
  0x97   : > { %v5872_v14 = vpop.eup %5871  ;;  %5897 = vtanh.f32 %v283_v3  ;;  %v1163_v3 = vmul.f32 %v1109_v36, %v7108_v61 }
  0x98   : > { %v5874_v20 = vpop.eup %5873  ;;  %2419 = vrot.lane.b32.xlu1 %v1156_v60, %s6896_s7  ;;  %5899 = vtanh.f32 %v286_v10  ;;  %v1111_v60 = vmul.f32 %v5870_v12, %v7157_v55  ;;  %v1166_v12 = vmul.f32 %v1112_v48, %v7108_v61 }
  0x99   : > { %v5876_v31 = vpop.eup %5875  ;;  %2421 = vrot.lane.b32.xlu0 %v1157_v6, %s6896_s7  ;;  %5901 = vtanh.f32 %v285_v13  ;;  %v290_v6 = vld [vmem:[%s6997_s6 + $0x188] sm:$0xff]  ;;  %v289_v13 = vld [vmem:[%s6997_s6 + $0x180] sm:$0xff] }
  0x9a   : > { %v5878_v37 = vpop.eup %5877  ;;  %v956_v42 = vadd.f32 1.0, %v5876_v31  ;;  %5903 = vtanh.f32 %v288_v17  ;;  %v1165_v31 = vmul.f32 %v1111_v60, %v7121_v9 }
  0x9b   : > { %v5880_v43 = vpop.eup %5879  ;;  %v955_v51 = vadd.f32 1.0, %v5878_v37  ;;  %5905 = vtanh.f32 %v287_v30 }
  0x9c   : > { %v5882_v52 = vpop.eup %5881  ;;  %2427 = vrot.lane.b32.xlu1 %v1160_v24, %s6896_s7  ;;  %5907 = vrcp.f32 %v956_v42  ;;  %v958_v57 = vadd.f32 1.0, %v5880_v43  ;;  %v1114_v24 = vmul.f32 %v5872_v14, %v7160_v63  ;;  %v1115_v42 = vmul.f32 %v5874_v20, %v7163_v4 }
  0x9d   : > { %v7229_v0 = vpop.eup %5883  ;;  %2425 = vrot.lane.b32.xlu0 %v1159_v33, %s6896_s7  ;;  %5909 = vrcp.f32 %v955_v51  ;;  %v957_v5 = vadd.f32 1.0, %v5882_v52 }
  0x9e   : > { %11565 = vst [vmem:[#allocation41_spill] sm:$0xff] %v7229_v0  ;;  %v7234_v8 = vpop.eup %5885  ;;  %5911 = vrcp.f32 %v958_v57  ;;  %v798_v10 = vsub.f32 0.0, %v7229_v0  ;;  %v1168_v20 = vmul.f32 %v1114_v24, %v7121_v9 }
  0x9f   : > { %11566 = vst [vmem:[#allocation42_spill] sm:$0xff] %v7234_v8  ;;  %v7238_v17 = vpop.eup %5887  ;;  %5913 = vrcp.f32 %v957_v5  ;;  %v797_v25 = vsub.f32 0.0, %v7234_v8 }
  0xa0   : > { %11567 = vst [vmem:[#allocation43_spill] sm:$0xff] %v7238_v17  ;;  %v7243_v30 = vpop.eup %5889  ;;  %2431 = vrot.lane.b32.xlu1 %v1162_v54, %s6896_s7  ;;  %v889_v33 = vmul.f32 1.442695, %v798_v10  ;;  %v800_v36 = vsub.f32 0.0, %v7238_v17  ;;  %5915 = vtanh.f32 %v290_v6 }
  0xa1   : > { %11568 = vst [vmem:[#allocation44_spill] sm:$0xff] %v7243_v30  ;;  %v7248_v37 = vpop.eup %5891  ;;  %2433 = vrot.lane.b32.xlu0 %v1163_v3, %s6896_s7  ;;  %v887_v14 = vmul.f32 1.442695, %v797_v25  ;;  %v799_v43 = vsub.f32 0.0, %v7243_v30  ;;  %5917 = vtanh.f32 %v289_v13  ;;  %v1169_v13 = vmul.f32 %v1115_v42, %v7108_v61 }
  0xa2   : > { %11569 = vst [vmem:[#allocation45_spill] sm:$0xff] %v7248_v37  ;;  %v7253_v48 = vpop.eup %5893  ;;  %5919 = vpow2.f32 %v889_v33  ;;  %v893_v51 = vmul.f32 1.442695, %v800_v36  ;;  %v802_v52 = vsub.f32 0.0, %v7248_v37 }
  0xa3   : > { %11570 = vst [vmem:[#allocation46_spill] sm:$0xff] %v7253_v48  ;;  %v7256_v54 = vpop.eup %5895  ;;  %5921 = vpow2.f32 %v887_v14  ;;  %v891_v60 = vmul.f32 1.442695, %v799_v43  ;;  %v801_v57 = vsub.f32 0.0, %v7253_v48 }
  0xa4   : > { %11571 = vst [vmem:[#allocation47_spill] sm:$0xff] %v7256_v54  ;;  %v7259_v5 = vpop.eup %5897  ;;  %2439 = vrot.lane.b32.xlu1 %v1166_v12, %s6896_s7  ;;  %5923 = vpow2.f32 %v893_v51  ;;  %v897_v3 = vmul.f32 1.442695, %v802_v52  ;;  %v804_v6 = vsub.f32 0.0, %v7256_v54 }
  0xa5   : > { %11572 = vst [vmem:[#allocation48_spill] sm:$0xff] %v7259_v5  ;;  %v7264_v10 = vpop.eup %5899  ;;  %2437 = vrot.lane.b32.xlu0 %v1165_v31, %s6896_s7  ;;  %5925 = vpow2.f32 %v891_v60  ;;  %v895_v25 = vmul.f32 1.442695, %v801_v57  ;;  %v803_v33 = vsub.f32 0.0, %v7259_v5 }
  0xa6   : > { %11573 = vst [vmem:[#allocation49_spill] sm:$0xff] %v7264_v10  ;;  %v7269_v36 = vpop.eup %5901  ;;  %5927 = vpow2.f32 %v897_v3  ;;  %v901_v12 = vmul.f32 1.442695, %v804_v6  ;;  %v806_v24 = vsub.f32 0.0, %v7264_v10 }
  0xa7   : > { %11574 = vst [vmem:[#allocation50_spill] sm:$0xff] %v7269_v36  ;;  %v7272_v14 = vpop.eup %5903  ;;  %5929 = vpow2.f32 %v895_v25  ;;  %v899_v43 = vmul.f32 1.442695, %v803_v33  ;;  %v805_v51 = vsub.f32 0.0, %v7269_v36 }
  0xa8   : > { %11575 = vst [vmem:[#allocation51_spill] sm:$0xff] %v7272_v14  ;;  %v7275_v52 = vpop.eup %5905  ;;  %2443 = vrot.lane.b32.xlu1 %v1168_v20, %s6896_s7  ;;  %5931 = vpow2.f32 %v901_v12  ;;  %v905_v31 = vmul.f32 1.442695, %v806_v24  ;;  %v808_v42 = vsub.f32 0.0, %v7272_v14 }
  0xa9   : > { %11576 = vst [vmem:[#allocation52_spill] sm:$0xff] %v7275_v52  ;;  %v5908_v60 = vpop.eup %5907  ;;  %2445 = vrot.lane.b32.xlu0 %v1169_v13, %s6896_s7  ;;  %5933 = vpow2.f32 %v899_v43  ;;  %v903_v57 = vmul.f32 1.442695, %v805_v51  ;;  %v807_v3 = vsub.f32 0.0, %v7275_v52  ;;  %v292_v13 = vld [vmem:[%s6997_s6 + $0x198] sm:$0xff] }
  0xaa   : > { %v5910_v6 = vpop.eup %5909  ;;  %v1118_v25 = vmul.f32 %v5908_v60, %v7170_v19  ;;  %5935 = vpow2.f32 %v905_v31  ;;  %v909_v20 = vmul.f32 1.442695, %v808_v42  ;;  %v294_v31 = vld [vmem:[%s6997_s6 + $0x1a8] sm:$0x3] }
  0xab   : > { %v5912_v33 = vpop.eup %5911  ;;  %v1117_v12 = vmul.f32 %v5910_v6, %v7174_v27  ;;  %5937 = vpow2.f32 %v903_v57  ;;  %v907_v24 = vmul.f32 1.442695, %v807_v3  ;;  %v293_v3 = vld [vmem:[%s6997_s6 + $0x1a0] sm:$0xff] }
  0xac   : > { %v5914_v43 = vpop.eup %5913  ;;  %v1172_v51 = vmul.f32 %v1118_v25, %v7108_v61  ;;  %v1120_v4 = vmul.f32 %v5912_v33, %v7183_v40  ;;  %5939 = vpow2.f32 %v909_v20 }
  0xad   : > { %v7289_v41 = vpop.eup %5915  ;;  %v1171_v60 = vmul.f32 %v1117_v12, %v7121_v9  ;;  %5941 = vpow2.f32 %v907_v24  ;;  %v1119_v25 = vmul.f32 %v5914_v43, %v7185_v46  ;;  %v1195_v12 = vmul.f32 %v7055_v53, %v7055_v53 }
  0xae   : > { %11577 = vst [vmem:[#allocation53_spill] sm:$0xff] %v7289_v41  ;;  %v7293_v42 = vpop.eup %5917  ;;  %2451 = vrot.lane.b32.xlu1 %v1172_v51, %s6896_s7  ;;  %v1174_v57 = vmul.f32 %v1120_v4, %v7121_v9  ;;  %5943 = vtanh.f32 %v292_v13  ;;  %v7303_v51 = vstv %s7281_s8 }
  0xaf   : > { %11578 = vst [vmem:[#allocation54_spill] sm:$0xff] %v7293_v42  ;;  %v5920_v6 = vpop.eup %5919  ;;  %2449 = vrot.lane.b32.xlu0 %v1171_v60, %s6896_s7  ;;  %5945 = vtanh.f32 %v291_v38 }
  0xb0   : > { %v5922_v20 = vpop.eup %5921  ;;  %v960_v33 = vadd.f32 1.0, %v5920_v6  ;;  %5947 = vtanh.f32 %v294_v31  ;;  %v7308_v6 = vsub.f32 %v1195_v12, %v7303_v51  ;;  %v809_v12 = vsub.f32 0.0, %v7293_v42 }
  0xb1   : > { %v5924_v24 = vpop.eup %5923  ;;  %v959_v40 = vadd.f32 1.0, %v5922_v20  ;;  %5949 = vtanh.f32 %v293_v3  ;;  %v1194_v3 = vmul.f32 %v7049_v47, %v7049_v47 }
  0xb2   : > { %v5926_v4 = vpop.eup %5925  ;;  %2455 = vrot.lane.b32.xlu1 %v1174_v57, %s6896_s7  ;;  %5951 = vrcp.f32 %v960_v33  ;;  %v962_v13 = vadd.f32 1.0, %v5924_v24  ;;  %v810_v24 = vsub.f32 0.0, %v7289_v41  ;;  %v911_v27 = vmul.f32 1.442695, %v809_v12 }
  0xb3   : > { %v5928_v60 = vpop.eup %5927  ;;  %2453 = vrot.lane.b32.xlu0 %v1119_v25, %s6896_s7  ;;  %5953 = vrcp.f32 %v959_v40  ;;  %v961_v38 = vadd.f32 1.0, %v5926_v4  ;;  %v1197_v40 = vmul.f32 %v7052_v50, %v7052_v50  ;;  %v1198_v12 = vmul.f32 %v7018_v18, %v7018_v18 }
  0xb4   : > { %v5930_v43 = vpop.eup %5929  ;;  %5955 = vrcp.f32 %v962_v13  ;;  %v964_v31 = vadd.f32 1.0, %v5928_v60  ;;  %v1196_v13 = vmul.f32 %v7046_v44, %v7046_v44  ;;  %v913_v46 = vmul.f32 1.442695, %v810_v24 }
  0xb5   : > { %v5932_v20 = vpop.eup %5931  ;;  %5957 = vrcp.f32 %v961_v38  ;;  %v963_v53 = vadd.f32 1.0, %v5930_v43  ;;  %v1304_v43 = vsub.f32 0.0, %v7308_v6  ;;  %v7325_v44 = vsub.f32 %v1197_v40, %v7303_v51 }
  0xb6   : > { %v5934_v57 = vpop.eup %5933  ;;  %5959 = vrcp.f32 %v964_v31  ;;  %v966_v33 = vadd.f32 1.0, %v5932_v20  ;;  %v7320_v31 = vsub.f32 %v1194_v3, %v7303_v51  ;;  %v7330_v3 = vsub.f32 %v1196_v13, %v7303_v51 }
  0xb7   : > { %v5936_v25 = vpop.eup %5935  ;;  %5961 = vrcp.f32 %v963_v53  ;;  %v965_v4 = vadd.f32 1.0, %v5934_v57  ;;  %v1199_v53 = vmul.f32 %v7058_v56, %v7058_v56  ;;  %v1359_v56 = vmul.f32 1.442695, %v1304_v43 }
  0xb8   : > { %v5938_v60 = vpop.eup %5937  ;;  %5963 = vrcp.f32 %v966_v33  ;;  %v968_v38 = vadd.f32 1.0, %v5936_v25  ;;  %v1306_v43 = vsub.f32 0.0, %v7325_v44  ;;  %v1305_v63 = vsub.f32 0.0, %v7330_v3 }
  0xb9   : > { %v5940_v20 = vpop.eup %5939  ;;  %5965 = vrcp.f32 %v965_v4  ;;  %v967_v47 = vadd.f32 1.0, %v5938_v60  ;;  %v7353_v32 = vsub.f32 %v1198_v12, %v7303_v51 }
  0xba   : > { %v5942_v57 = vpop.eup %5941  ;;  %5967 = vrcp.f32 %v968_v38  ;;  %v970_v50 = vadd.f32 1.0, %v5940_v20  ;;  %v1303_v38 = vsub.f32 0.0, %v7320_v31  ;;  %v1363_v35 = vmul.f32 1.442695, %v1306_v43 }
  0xbb   : > { %v7327_v33 = vpop.eup %5943  ;;  %5969 = vrcp.f32 %v967_v47  ;;  %v969_v25 = vadd.f32 1.0, %v5942_v57  ;;  %v7340_v47 = vsub.f32 %v1199_v53, %v7303_v51 }
  0xbc   : > { %11579 = vst [vmem:[#allocation55_spill] sm:$0xff] %v7327_v33  ;;  %v7332_v4 = vpop.eup %5945  ;;  %5971 = vrcp.f32 %v970_v50  ;;  %v812_v60 = vsub.f32 0.0, %v7327_v33  ;;  %v1357_v49 = vmul.f32 1.442695, %v1303_v38 }
  0xbd   : > { %11580 = vst [vmem:[#allocation56_spill] sm:$0xff] %v7332_v4  ;;  %v7336_v24 = vpop.eup %5947  ;;  %5973 = vrcp.f32 %v969_v25  ;;  %v811_v40 = vsub.f32 0.0, %v7332_v4 }
  0xbe   : > { %11581 = vst [vmem:[#allocation57_spill] sm:$0xff] %v7336_v24  ;;  %v7344_v13 = vpop.eup %5949  ;;  %5975 = vpow2.f32 %v913_v46  ;;  %v917_v50 = vmul.f32 1.442695, %v812_v60  ;;  %v814_v20 = vsub.f32 0.0, %v7336_v24 }
  0xbf   : > { %11582 = vst [vmem:[#allocation58_spill] sm:$0xff] %v7344_v13  ;;  %v5952_v57 = vpop.eup %5951  ;;  %5977 = vpow2.f32 %v911_v27  ;;  %v915_v19 = vmul.f32 1.442695, %v811_v40  ;;  %v813_v25 = vsub.f32 0.0, %v7344_v13 }
  0xc0   : > { %v5954_v53 = vpop.eup %5953  ;;  %v1122_v55 = vmul.f32 %v5952_v57, %v7229_v0  ;;  %5979 = vpow2.f32 %v917_v50  ;;  %v921_v18 = vmul.f32 1.442695, %v814_v20  ;;  %v1308_v57 = vsub.f32 0.0, %v7340_v47 }
  0xc1   : > { %v5956_v45 = vpop.eup %5955  ;;  %v1121_v46 = vmul.f32 %v5954_v53, %v7234_v8  ;;  %5981 = vpow2.f32 %v915_v19  ;;  %v919_v60 = vmul.f32 1.442695, %v813_v25  ;;  %v1361_v19 = vmul.f32 1.442695, %v1305_v63 }
  0xc2   : > { %v5958_v27 = vpop.eup %5957  ;;  %2459 = vrot.lane.b32.xlu1 %v1122_v55, %s6896_s7  ;;  %v1124_v40 = vmul.f32 %v5956_v45, %v7238_v17  ;;  %5983 = vpow2.f32 %v921_v18  ;;  %v1307_v45 = vsub.f32 0.0, %v7353_v32  ;;  %v1367_v63 = vmul.f32 1.442695, %v1308_v57 }
  0xc3   : > { %v5960_v50 = vpop.eup %5959  ;;  %v1175_v38 = vmul.f32 %v1121_v46, %v7108_v61  ;;  %v1123_v20 = vmul.f32 %v5958_v27, %v7243_v30  ;;  %5985 = vpow2.f32 %v919_v60 }
  0xc4   : > { %v5962_v25 = vpop.eup %5961  ;;  %v1178_v12 = vmul.f32 %v1124_v40, %v7108_v61  ;;  %v1126_v53 = vmul.f32 %v5960_v50, %v7248_v37  ;;  %5987 = vpow2.f32 %v1359_v56 }
  0xc5   : > { %v5964_v55 = vpop.eup %5963  ;;  %2457 = vrot.lane.b32.xlu0 %v1175_v38, %s6896_s7  ;;  %v1177_v18 = vmul.f32 %v1123_v20, %v7121_v9  ;;  %5989 = vpow2.f32 %v1357_v49  ;;  %v1125_v56 = vmul.f32 %v5962_v25, %v7253_v48  ;;  %v1365_v49 = vmul.f32 1.442695, %v1307_v45 }
  0xc6   : > { %v5966_v43 = vpop.eup %5965  ;;  %2463 = vrot.lane.b32.xlu1 %v1178_v12, %s6896_s7  ;;  %v1180_v46 = vmul.f32 %v1126_v53, %v7121_v9  ;;  %5991 = vpow2.f32 %v1363_v35  ;;  %v1128_v20 = vmul.f32 %v5964_v55, %v7256_v54  ;;  %v1201_v53 = vmul.f32 %v7015_v16, %v7015_v16 }
  0xc7   : > { %v5968_v60 = vpop.eup %5967  ;;  %5993 = vpow2.f32 %v1361_v19  ;;  %v1127_v50 = vmul.f32 %v5966_v43, %v7259_v5 }
  0xc8   : > { %v5970_v27 = vpop.eup %5969  ;;  %v1130_v12 = vmul.f32 %v5968_v60, %v7264_v10  ;;  %5995 = vpow2.f32 %v1367_v63 }
  0xc9   : > { %v5972_v40 = vpop.eup %5971  ;;  %2461 = vrot.lane.b32.xlu0 %v1177_v18, %s6896_s7  ;;  %v1181_v25 = vmul.f32 %v1127_v50, %v7108_v61  ;;  %v1129_v45 = vmul.f32 %v5970_v27, %v7269_v36  ;;  %5997 = vpow2.f32 %v1365_v49  ;;  %v1203_v49 = vmul.f32 %v7064_v62, %v7064_v62 }
  0xca   : > { %v5974_v38 = vpop.eup %5973  ;;  %2467 = vrot.lane.b32.xlu1 %v1180_v46, %s6896_s7  ;;  %v1184_v55 = vmul.f32 %v1130_v12, %v7108_v61  ;;  %v1132_v63 = vmul.f32 %v5972_v40, %v7272_v14 }
  0xcb   : > { %v5976_v35 = vpop.eup %5975  ;;  %v1183_v40 = vmul.f32 %v1129_v45, %v7121_v9  ;;  %v7398_v45 = vsub.f32 %v1203_v49, %v7303_v51 }
  0xcc   : > { %v5978_v57 = vpop.eup %5977  ;;  %v972_v19 = vadd.f32 1.0, %v5976_v35 }
  0xcd   : > { %v5980_v18 = vpop.eup %5979  ;;  %2465 = vrot.lane.b32.xlu0 %v1125_v56, %s6896_s7  ;;  %v971_v43 = vadd.f32 1.0, %v5978_v57  ;;  %v1200_v56 = vmul.f32 %v7061_v59, %v7061_v59 }
  0xce   : > { %v5982_v46 = vpop.eup %5981  ;;  %2471 = vrot.lane.b32.xlu1 %v1128_v20, %s6896_s7  ;;  %5999 = vrcp.f32 %v972_v19  ;;  %v974_v60 = vadd.f32 1.0, %v5980_v18  ;;  %v1202_v20 = vmul.f32 %v7067_v1, %v7067_v1  ;;  %v1186_v18 = vmul.f32 %v1132_v63, %v7121_v9 }
  0xcf   : > { %v5984_v35 = vpop.eup %5983  ;;  %6001 = vrcp.f32 %v971_v43  ;;  %v973_v16 = vadd.f32 1.0, %v5982_v46  ;;  %v7392_v46 = vsub.f32 %v1201_v53, %v7303_v51  ;;  %v7395_v1 = vsub.f32 %v1200_v56, %v7303_v51 }
  0xd0   : > { %v5986_v50 = vpop.eup %5985  ;;  %6003 = vrcp.f32 %v974_v60  ;;  %v976_v27 = vadd.f32 1.0, %v5984_v35  ;;  %v1131_v53 = vmul.f32 %v5974_v38, %v7275_v52 }
  0xd1   : > { %v5988_v12 = vpop.eup %5987  ;;  %2469 = vrot.lane.b32.xlu0 %v1181_v25, %s6896_s7  ;;  %6005 = vrcp.f32 %v973_v16  ;;  %v975_v57 = vadd.f32 1.0, %v5986_v50  ;;  %v1205_v50 = vmul.f32 %v7106_v58, %v7106_v58  ;;  %v1310_v56 = vsub.f32 0.0, %v7392_v46 }
  0xd2   : > { %v5990_v19 = vpop.eup %5989  ;;  %2475 = vrot.lane.b32.xlu1 %v1184_v55, %s6896_s7  ;;  %6007 = vrcp.f32 %v976_v27  ;;  %v1466_v43 = vadd.f32 1.0, %v5988_v12  ;;  %v7401_v55 = vsub.f32 %v1202_v20, %v7303_v51  ;;  %v1204_v27 = vmul.f32 %v7025_v23, %v7025_v23 }
  0xd3   : > { %v5992_v60 = vpop.eup %5991  ;;  %6009 = vrcp.f32 %v975_v57  ;;  %v1465_v35 = vadd.f32 1.0, %v5990_v19  ;;  %v1309_v20 = vsub.f32 0.0, %v7395_v1  ;;  %v7416_v57 = vsub.f32 %v1205_v50, %v7303_v51 }
  0xd4   : > { %v5994_v25 = vpop.eup %5993  ;;  %6011 = vrcp.f32 %v1466_v43  ;;  %v1468_v16 = vadd.f32 1.0, %v5992_v60  ;;  %v1311_v38 = vsub.f32 0.0, %v7401_v55  ;;  %v7419_v43 = vsub.f32 %v1204_v27, %v7303_v51 }
  0xd5   : > { %2473 = vrot.lane.b32.xlu0 %v1183_v40, %s6896_s7  ;;  %6013 = vrcp.f32 %v1465_v35  ;;  %v1467_v63 = vadd.f32 1.0, %v5994_v25  ;;  %v5996_v49 = vpop.eup %5995  ;;  %v1312_v40 = vsub.f32 0.0, %v7398_v45  ;;  %11583 = vst [vmem:[#allocation59_spill] sm:$0xff] %v7416_v57  ;;  %v1207_v60 = vmul.f32 %v7022_v21, %v7022_v21 }
  0xd6   : > { %2479 = vrot.lane.b32.xlu1 %v1186_v18, %s6896_s7  ;;  %6015 = vrcp.f32 %v1468_v16  ;;  %v1470_v12 = vadd.f32 1.0, %v5996_v49  ;;  %v5998_v19 = vpop.eup %5997  ;;  %v1371_v18 = vmul.f32 1.442695, %v1310_v56  ;;  %11584 = vst [vmem:[#allocation60_spill] sm:$0xff] %v7419_v43  ;;  %v1369_v25 = vmul.f32 1.442695, %v1309_v20 }
  0xd7   : > { %6017 = vrcp.f32 %v1467_v63  ;;  %v1206_v16 = vmul.f32 %v7111_v2, %v7111_v2  ;;  %v1375_v49 = vmul.f32 1.442695, %v1312_v40  ;;  %v1373_v56 = vmul.f32 1.442695, %v1311_v38 }
  0xd8   : > { %6019 = vrcp.f32 %v1470_v12  ;;  %v1469_v12 = vadd.f32 1.0, %v5998_v19  ;;  %v1314_v27 = vsub.f32 0.0, %v7416_v57  ;;  %v1313_v20 = vsub.f32 0.0, %v7419_v43 }
  0xd9   : > { %2477 = vrot.lane.b32.xlu0 %v1131_v53, %s6896_s7  ;;  %6021 = vpow2.f32 %v1371_v18  ;;  %v7432_v2 = vsub.f32 %v1207_v60, %v7303_v51  ;;  %v7437_v38 = vsub.f32 %v1206_v16, %v7303_v51 }
  0xda   : > { %6023 = vpow2.f32 %v1369_v25  ;;  %v1379_v59 = vmul.f32 1.442695, %v1314_v27 }
  0xdb   : > { %v6000_v35 = vpop.eup %5999  ;;  %11585 = vst [vmem:[#allocation61_spill] sm:$0xff] %v7432_v2  ;;  %11586 = vst [vmem:[#allocation62_spill] sm:$0xff] %v7437_v38  ;;  %6025 = vrcp.f32 %v1469_v12 }
  0xdc   : > { %v6002_v53 = vpop.eup %6001  ;;  %v1134_v63 = vmul.f32 %v6000_v35, %v7289_v41  ;;  %6027 = vpow2.f32 %v1375_v49 }
  0xdd   : > { %v6004_v50 = vpop.eup %6003  ;;  %v1133_v23 = vmul.f32 %v6002_v53, %v7293_v42  ;;  %6029 = vpow2.f32 %v1373_v56 }
  0xde   : > { %v6006_v58 = vpop.eup %6005  ;;  %2483 = vrot.lane.b32.xlu1 %v1134_v63, %s6896_s7  ;;  %v1136_v21 = vmul.f32 %v6004_v50, %v7327_v33  ;;  %6031 = vpow2.f32 %v1379_v59 }
  0xdf   : > { %v6008_v35 = vpop.eup %6007  ;;  %v1187_v40 = vmul.f32 %v1133_v23, %v7108_v61  ;;  %v1135_v53 = vmul.f32 %v6006_v58, %v7332_v4 }
  0xe0   : > { %v6010_v19 = vpop.eup %6009  ;;  %v1190_v62 = vmul.f32 0.0, %v1136_v21  ;;  %v1138_v63 = vmul.f32 %v6008_v35, %v7336_v24  ;;  %v1316_v21 = vsub.f32 0.0, %v7432_v2  ;;  %v1377_v35 = vmul.f32 1.442695, %v1313_v20 }
  0xe1   : > { %v6012_v50 = vpop.eup %6011  ;;  %2481 = vrot.lane.b32.xlu0 %v1187_v40, %s6896_s7  ;;  %v1189_v18 = vmul.f32 %v1135_v53, %v7121_v9  ;;  %v1137_v60 = vmul.f32 %v6010_v19, %v7344_v13  ;;  %v1315_v40 = vsub.f32 0.0, %v7437_v38 }
  0xe2   : > { %v6014_v23 = vpop.eup %6013  ;;  %2487 = vrot.lane.b32.xlu1 %v1190_v62, %s6896_s7  ;;  %v1192_v58 = vmul.f32 0.0, %v1138_v63  ;;  %v1628_v25 = vmul.f32 %v6012_v50, %v7308_v6  ;;  %v1383_v49 = vmul.f32 1.442695, %v1316_v21  ;;  %6033 = vpow2.f32 %v1377_v35 }
  0xe3   : > { %v6016_v16 = vpop.eup %6015  ;;  %v1191_v53 = vmul.f32 0.0, %v1137_v60  ;;  %v1627_v12 = vmul.f32 %v6014_v23, %v7320_v31  ;;  %v1381_v50 = vmul.f32 1.442695, %v1315_v40  ;;  %v7460_v40 = vpop.permute.xlu1 %2399 }
  0xe4   : > { %v6018_v27 = vpop.eup %6017  ;;  %v1682_v62 = vmul.f32 0.0, %v1628_v25  ;;  %v1630_v19 = vmul.f32 %v6016_v16, %v7325_v44  ;;  %6035 = vpow2.f32 %v1383_v49  ;;  %v1209_v16 = vmul.f32 %v7117_v7, %v7117_v7  ;;  %11587 = vst [vmem:[#allocation63_spill] sm:$0xff] %v7460_v40 }
  0xe5   : > { %2485 = vrot.lane.b32.xlu0 %v1189_v18, %s6896_s7  ;;  %v6020_v63 = vpop.eup %6019  ;;  %v1681_v56 = vmul.f32 0.0, %v1627_v12  ;;  %v1629_v20 = vmul.f32 %v6018_v27, %v7330_v3  ;;  %6037 = vpow2.f32 %v1381_v50  ;;  %v7463_v27 = vpop.permute.xlu0 %2393 }
  0xe6   : > { %2491 = vrot.lane.b32.xlu1 %v1192_v58, %s6896_s7  ;;  %v1684_v18 = vmul.f32 %v1630_v19, %v7108_v61  ;;  %v1632_v60 = vmul.f32 %v6020_v63, %v7340_v47  ;;  %v6022_v23 = vpop.eup %6021  ;;  %11588 = vst [vmem:[#allocation64_spill] sm:$0xff] %v7463_v27 }
  0xe7   : > { %v6024_v59 = vpop.eup %6023  ;;  %v1472_v58 = vadd.f32 1.0, %v6022_v23  ;;  %v1683_v25 = vmul.f32 0.0, %v1629_v20  ;;  %v1211_v20 = vmul.f32 %v7128_v15, %v7128_v15 }
  0xe8   : > { %v1471_v21 = vadd.f32 1.0, %v6024_v59  ;;  %v6026_v35 = vpop.eup %6025 }
  0xe9   : > { %2489 = vrot.lane.b32.xlu0 %v1191_v53, %s6896_s7  ;;  %v1686_v53 = vmul.f32 %v1632_v60, %v7121_v9  ;;  %6039 = vrcp.f32 %v1472_v58  ;;  %v6028_v12 = vpop.eup %6027  ;;  %v1631_v63 = vmul.f32 %v6026_v35, %v7353_v32  ;;  %v7480_v58 = vpop.permute.xlu1 %2411 }
  0xea   : > { %2603 = vrot.lane.b32.xlu1 %v1682_v62, %s6898_s9  ;;  %6041 = vrcp.f32 %v1471_v21  ;;  %v1208_v62 = vmul.f32 %v7124_v11, %v7124_v11  ;;  %v6030_v19 = vpop.eup %6029  ;;  %v1474_v49 = vadd.f32 1.0, %v6028_v12  ;;  %11589 = vst [vmem:[#allocation65_spill] sm:$0xff] %v7480_v58  ;;  %v7483_v21 = vpop.permute.xlu0 %2405  ;;  %v11614_v11 = vld [vmem:[#allocation35_spill] sm:$0xff] }
  0xeb   : > { %v1473_v50 = vadd.f32 1.0, %v6030_v19  ;;  %v6032_v60 = vpop.eup %6031  ;;  %11590 = vst [vmem:[#allocation66_spill] sm:$0xff] %v7483_v21  ;;  %v1223_v7 = vmul.f32 %v11614_v11, %v11614_v11 }
  0xec   : > { %6043 = vrcp.f32 %v1474_v49  ;;  %v7478_v23 = vsub.f32 %v1208_v62, %v7303_v51  ;;  %v1213_v62 = vmul.f32 %v7028_v26, %v7028_v26 }
  0xed   : > { %2601 = vrot.lane.b32.xlu0 %v1681_v56, %s6898_s9  ;;  %v7470_v56 = vsub.f32 %v1209_v16, %v7303_v51  ;;  %6045 = vrcp.f32 %v1473_v50 }
  0xee   : > { %2607 = vrot.lane.b32.xlu1 %v1684_v18, %s6898_s9  ;;  %v1210_v18 = vmul.f32 %v7031_v29, %v7031_v29  ;;  %v1317_v49 = vsub.f32 0.0, %v7478_v23  ;;  %v7502_v21 = vsub.f32 %v1213_v62, %v7303_v51  ;;  %v7506_v40 = vpop.permute.xlu0 %2417 }
  0xef   : > { %v6034_v59 = vpop.eup %6033  ;;  %v1318_v35 = vsub.f32 0.0, %v7470_v56  ;;  %11594 = vst [vmem:[#allocation70_spill] sm:$0xff] %v7506_v40 }
  0xf0   : > { %v1475_v16 = vadd.f32 1.0, %v6034_v59  ;;  %v7490_v12 = vsub.f32 %v1210_v18, %v7303_v51  ;;  %11593 = vst [vmem:[#allocation69_spill] sm:$0xff] %v7502_v21  ;;  %v1322_v40 = vsub.f32 0.0, %v7502_v21 }
  0xf1   : > { %2605 = vrot.lane.b32.xlu0 %v1683_v25, %s6898_s9  ;;  %v1476_v25 = vadd.f32 1.0, %v6032_v60  ;;  %v6036_v19 = vpop.eup %6035  ;;  %v1387_v58 = vmul.f32 1.442695, %v1318_v35 }
  0xf2   : > { %2611 = vrot.lane.b32.xlu1 %v1686_v53, %s6898_s9  ;;  %v7487_v53 = vsub.f32 %v1211_v20, %v7303_v51  ;;  %11591 = vst [vmem:[#allocation67_spill] sm:$0xff] %v7490_v12  ;;  %v6038_v50 = vpop.eup %6037  ;;  %v1478_v60 = vadd.f32 1.0, %v6036_v19  ;;  %v1319_v18 = vsub.f32 0.0, %v7490_v12  ;;  %v1385_v19 = vmul.f32 1.442695, %v1317_v49 }
  0xf3   : > { %6047 = vrcp.f32 %v1476_v25  ;;  %v1477_v59 = vadd.f32 1.0, %v6038_v50  ;;  %v7498_v25 = vpop.permute.xlu1 %2423  ;;  %v1214_v50 = vmul.f32 %v7141_v34, %v7141_v34 }
  0xf4   : > { %6049 = vrcp.f32 %v1475_v16  ;;  %v1320_v20 = vsub.f32 0.0, %v7487_v53  ;;  %11592 = vst [vmem:[#allocation68_spill] sm:$0xff] %v7498_v25  ;;  %v1215_v16 = vmul.f32 %v7136_v28, %v7136_v28  ;;  %v1389_v28 = vmul.f32 1.442695, %v1319_v18  ;;  %v7530_v18 = vpop.permute.xlu0 %2429 }
  0xf5   : > { %2609 = vrot.lane.b32.xlu0 %v1631_v63, %s6898_s9  ;;  %v1212_v63 = vmul.f32 %v7132_v22, %v7132_v22  ;;  %6051 = vrcp.f32 %v1478_v60  ;;  %11599 = vst [vmem:[#allocation75_spill] sm:$0xff] %v7530_v18 }
  0xf6   : > { %v6040_v27 = vpop.eup %6039  ;;  %6053 = vrcp.f32 %v1477_v59  ;;  %v1391_v22 = vmul.f32 1.442695, %v1320_v20  ;;  %v7518_v49 = vsub.f32 %v1215_v16, %v7303_v51 }
  0xf7   : > { %v7509_v35 = vsub.f32 %v1212_v63, %v7303_v51  ;;  %v6042_v60 = vpop.eup %6041  ;;  %v1634_v25 = vmul.f32 %v6040_v27, %v7392_v46  ;;  %6055 = vpow2.f32 %v1387_v58  ;;  %v7523_v27 = vsub.f32 %v1214_v50, %v7303_v51 }
  0xf8   : > { %v1633_v62 = vmul.f32 %v6042_v60, %v7395_v1  ;;  %11596 = vst [vmem:[#allocation72_spill] sm:$0xff] %v7518_v49  ;;  %6057 = vpow2.f32 %v1385_v19  ;;  %v1395_v19 = vmul.f32 1.442695, %v1322_v40 }
  0xf9   : > { %11595 = vst [vmem:[#allocation71_spill] sm:$0xff] %v7509_v35  ;;  %2615 = vrot.lane.b32.xlu1 %v1634_v25, %s6898_s9  ;;  %v6044_v63 = vpop.eup %6043  ;;  %v1321_v34 = vsub.f32 0.0, %v7509_v35  ;;  %11597 = vst [vmem:[#allocation73_spill] sm:$0xff] %v7523_v27  ;;  %v7526_v25 = vpop.permute.xlu1 %2435  ;;  %6059 = vpow2.f32 %v1391_v22 }
  0xfa   : > { %v1687_v59 = vmul.f32 %v1633_v62, %v7108_v61  ;;  %v6046_v60 = vpop.eup %6045  ;;  %v1636_v20 = vmul.f32 %v6044_v63, %v7398_v45  ;;  %11598 = vst [vmem:[#allocation74_spill] sm:$0xff] %v7526_v25  ;;  %v1324_v62 = vsub.f32 0.0, %v7518_v49  ;;  %6061 = vpow2.f32 %v1389_v28  ;;  %v7543_v28 = vpop.permute.xlu0 %2441 }
  0xfb   : > { %v1635_v58 = vmul.f32 %v6046_v60, %v7401_v55  ;;  %v1393_v29 = vmul.f32 1.442695, %v1321_v34  ;;  %v1323_v63 = vsub.f32 0.0, %v7523_v27  ;;  %6063 = vpow2.f32 %v1395_v19  ;;  %11601 = vst [vmem:[#allocation77_spill] sm:$0xff] %v7543_v28 }
  0xfc   : > { %2613 = vrot.lane.b32.xlu0 %v1687_v59, %s6898_s9  ;;  %v1690_v16 = vmul.f32 %v1636_v20, %v7108_v61  ;;  %v1399_v20 = vmul.f32 1.442695, %v1324_v62 }
  0xfd   : > { %v1689_v50 = vmul.f32 %v1635_v58, %v7121_v9  ;;  %v7541_v40 = vpop.permute.xlu1 %2447  ;;  %6065 = vpow2.f32 %v1393_v29  ;;  %v1397_v34 = vmul.f32 1.442695, %v1323_v63 }
  0xfe   : > { %2619 = vrot.lane.b32.xlu1 %v1690_v16, %s6898_s9  ;;  %11600 = vst [vmem:[#allocation76_spill] sm:$0xff] %v7541_v40  ;;  %6067 = vpow2.f32 %v1399_v20  ;;  %v7554_v63 = vpop.permute.xlu0 %2385  ;;  %v11606_v40 = vld [vmem:[#allocation32_spill] sm:$0xff] }
  0xff   : > { %6069 = vpow2.f32 %v1397_v34  ;;  %11603 = vst [vmem:[#allocation79_spill] sm:$0xff] %v7554_v63 }
 0x100   : > { %v6048_v26 = vpop.eup %6047  ;;  %2617 = vrot.lane.b32.xlu0 %v1689_v50, %s6898_s9 }
 0x101   : > { %v6050_v25 = vpop.eup %6049  ;;  %v1638_v59 = vmul.f32 %v6048_v26, %v7416_v57  ;;  %v7551_v62 = vpop.permute.xlu1 %2389 }
 0x102   : > { %v1637_v60 = vmul.f32 %v6050_v25, %v7419_v43  ;;  %v6052_v58 = vpop.eup %6051  ;;  %11602 = vst [vmem:[#allocation78_spill] sm:$0xff] %v7551_v62 }
 0x103   : > { %v1692_v22 = vmul.f32 %v1638_v59, %v7121_v9  ;;  %v6054_v18 = vpop.eup %6053  ;;  %v1640_v26 = vmul.f32 %v6052_v58, %v7432_v2 }
 0x104   : > { %2621 = vrot.lane.b32.xlu0 %v1637_v60, %s6898_s9  ;;  %v1639_v25 = vmul.f32 %v6054_v18, %v7437_v38  ;;  %v6056_v16 = vpop.eup %6055  ;;  %v1217_v18 = vmul.f32 %v7144_v39, %v7144_v39 }
 0x105   : > { %2623 = vrot.lane.b32.xlu1 %v1692_v22, %s6898_s9  ;;  %v6058_v19 = vpop.eup %6057  ;;  %v1480_v29 = vadd.f32 1.0, %v6056_v16  ;;  %v11604_v22 = vld [vmem:[#allocation12_spill] sm:$0xff]  ;;  %v7564_v28 = vpop.permute.xlu1 %2391 }
 0x106   : > { %v1693_v50 = vmul.f32 %v1639_v25, %v7108_v61  ;;  %v1479_v59 = vadd.f32 1.0, %v6058_v19  ;;  %v6060_v60 = vpop.eup %6059  ;;  %v1216_v20 = vmul.f32 %v11604_v22, %v11604_v22  ;;  %v11605_v25 = vld [vmem:[#allocation11_spill] sm:$0xff]  ;;  %11607 = vst [vmem:[#allocation80_spill] sm:$0xff] %v7564_v28  ;;  %v7567_v19 = vsub.f32 %v1217_v18, %v7303_v51 }
 0x107   : > { %6071 = vrcp.f32 %v1480_v29  ;;  %v6062_v58 = vpop.eup %6061  ;;  %v1482_v34 = vadd.f32 1.0, %v6060_v60  ;;  %v1219_v16 = vmul.f32 %v11605_v25, %v11605_v25 }
 0x108   : > { %2625 = vrot.lane.b32.xlu0 %v1693_v50, %s6898_s9  ;;  %6073 = vrcp.f32 %v1479_v59  ;;  %v1218_v50 = vmul.f32 %v11606_v40, %v11606_v40  ;;  %v6064_v29 = vpop.eup %6063  ;;  %v7569_v59 = vpop.permute.xlu0 %2387  ;;  %v7572_v62 = vsub.f32 %v1216_v20, %v7303_v51  ;;  %v1326_v18 = vsub.f32 0.0, %v7567_v19 }
 0x109   : > { %2627 = vrot.lane.b32.xlu1 %v1640_v26, %s6898_s9  ;;  %v1481_v26 = vadd.f32 1.0, %v6062_v58  ;;  %6075 = vrcp.f32 %v1482_v34  ;;  %11608 = vst [vmem:[#allocation81_spill] sm:$0xff] %v7569_v59  ;;  %v1484_v58 = vadd.f32 1.0, %v6064_v29  ;;  %v7575_v25 = vsub.f32 %v1219_v16, %v7303_v51  ;;  %v11610_v34 = vld [vmem:[#allocation33_spill] sm:$0xff]  ;;  %v7586_v22 = vpop.permute.xlu1 %2395 }
 0x10a   : > { %11609 = vst [vmem:[#allocation82_spill] sm:$0xff] %v7572_v62  ;;  %v6066_v60 = vpop.eup %6065  ;;  %v7578_v40 = vsub.f32 %v1218_v50, %v7303_v51  ;;  %v1221_v28 = vmul.f32 %v11610_v34, %v11610_v34  ;;  %v1325_v20 = vsub.f32 0.0, %v7572_v62  ;;  %11612 = vst [vmem:[#allocation83_spill] sm:$0xff] %v7586_v22  ;;  %v1403_v34 = vmul.f32 1.442695, %v1326_v18 }
 0x10b   : > { %6077 = vrcp.f32 %v1481_v26  ;;  %v1483_v63 = vadd.f32 1.0, %v6066_v60  ;;  %v6068_v59 = vpop.eup %6067  ;;  %v11611_v26 = vld [vmem:[#allocation34_spill] sm:$0xff] }
 0x10c   : > { %6079 = vrcp.f32 %v1484_v58  ;;  %v1220_v29 = vmul.f32 %v11611_v26, %v11611_v26  ;;  %v6070_v60 = vpop.eup %6069  ;;  %v1486_v16 = vadd.f32 1.0, %v6068_v59  ;;  %v7588_v39 = vpop.permute.xlu0 %2397  ;;  %v1328_v58 = vsub.f32 0.0, %v7575_v25 }
 0x10d   : > { %6081 = vrcp.f32 %v1483_v63  ;;  %11613 = vst [vmem:[#allocation84_spill] sm:$0xff] %v7588_v39  ;;  %v1485_v50 = vadd.f32 1.0, %v6070_v60  ;;  %v1327_v15 = vsub.f32 0.0, %v7578_v40  ;;  %v7593_v63 = vsub.f32 %v1221_v28, %v7303_v51  ;;  %v11615_v39 = vld [vmem:[#allocation14_spill] sm:$0xff]  ;;  %v7605_v57 = vpop.permute.xlu1 %2403 }
 0x10e   : > { %6083 = vrcp.f32 %v1486_v16  ;;  %v1401_v38 = vmul.f32 1.442695, %v1325_v20  ;;  %v7598_v59 = vsub.f32 %v1220_v29, %v7303_v51  ;;  %v1222_v60 = vmul.f32 %v11615_v39, %v11615_v39  ;;  %11616 = vst [vmem:[#allocation85_spill] sm:$0xff] %v7605_v57 }
 0x10f   : > { %6085 = vrcp.f32 %v1485_v50  ;;  %v1407_v16 = vmul.f32 1.442695, %v1328_v58  ;;  %v1405_v28 = vmul.f32 1.442695, %v1327_v15  ;;  %v1330_v20 = vsub.f32 0.0, %v7593_v63 }
 0x110   : > { %6087 = vpow2.f32 %v1403_v34  ;;  %v7609_v29 = vsub.f32 %v1223_v7, %v7303_v51  ;;  %v7612_v11 = vpop.permute.xlu0 %2401  ;;  %v7616_v15 = vsub.f32 %v1222_v60, %v7303_v51 }
 0x111   : > { %11617 = vst [vmem:[#allocation86_spill] sm:$0xff] %v7612_v11  ;;  %6089 = vpow2.f32 %v1401_v38  ;;  %v1411_v58 = vmul.f32 1.442695, %v1330_v20 }
 0x112   : > { %6091 = vpow2.f32 %v1407_v16  ;;  %v1332_v38 = vsub.f32 0.0, %v7609_v29  ;;  %v1331_v60 = vsub.f32 0.0, %v7616_v15 }
 0x113   : > { %6093 = vpow2.f32 %v1405_v28 }
 0x114   : > { %v6072_v26 = vpop.eup %6071  ;;  %v7631_v16 = vpop.permute.xlu0 %2409  ;;  %6095 = vpow2.f32 %v1411_v58  ;;  %v1415_v20 = vmul.f32 1.442695, %v1332_v38 }
 0x115   : > { %v6074_v22 = vpop.eup %6073  ;;  %v1642_v2 = vmul.f32 %v6072_v26, %v7470_v56  ;;  %11619 = vst [vmem:[#allocation88_spill] sm:$0xff] %v7631_v16 }
 0x116   : > { %v1641_v18 = vmul.f32 %v6074_v22, %v7478_v23  ;;  %v6076_v50 = vpop.eup %6075  ;;  %v1329_v22 = vsub.f32 0.0, %v7598_v59 }
 0x117   : > { %v1696_v43 = vmul.f32 %v1642_v2, %v7108_v61  ;;  %v1644_v34 = vmul.f32 %v6076_v50, %v7487_v53  ;;  %v7627_v50 = vpop.permute.xlu1 %2407 }
 0x118   : > { %v1695_v39 = vmul.f32 %v1641_v18, %v7121_v9  ;;  %v6078_v2 = vpop.eup %6077  ;;  %v1409_v57 = vmul.f32 1.442695, %v1329_v22  ;;  %11618 = vst [vmem:[#allocation87_spill] sm:$0xff] %v7627_v50  ;;  %v1413_v22 = vmul.f32 1.442695, %v1331_v60 }
 0x119   : > { %2631 = vrot.lane.b32.xlu1 %v1696_v43, %s6898_s9  ;;  %v1643_v7 = vmul.f32 %v6078_v2, %v7490_v12  ;;  %v1698_v26 = vmul.f32 %v1644_v34, %v7121_v9  ;;  %v6080_v18 = vpop.eup %6079 }
 0x11a   : > { %2629 = vrot.lane.b32.xlu0 %v1695_v39, %s6898_s9  ;;  %v6082_v11 = vpop.eup %6081  ;;  %v1646_v43 = vmul.f32 %v6080_v18, %v7502_v21  ;;  %6097 = vpow2.f32 %v1409_v57 }
 0x11b   : > { %v1645_v39 = vmul.f32 %v6082_v11, %v7509_v35  ;;  %v6084_v2 = vpop.eup %6083  ;;  %v7639_v18 = vpop.permute.xlu1 %2415  ;;  %6099 = vpow2.f32 %v1415_v20 }
 0x11c   : > { %v6086_v34 = vpop.eup %6085  ;;  %11620 = vst [vmem:[#allocation89_spill] sm:$0xff] %v7639_v18  ;;  %6101 = vpow2.f32 %v1413_v22 }
 0x11d   : > { %2635 = vrot.lane.b32.xlu1 %v1698_v26, %s6898_s9  ;;  %v1699_v28 = vmul.f32 %v1645_v39, %v7108_v61  ;;  %v1648_v26 = vmul.f32 %v6084_v2, %v7518_v49  ;;  %v6088_v58 = vpop.eup %6087  ;;  %v7642_v39 = vpop.permute.xlu0 %2413  ;;  %v11622_v2 = vld [vmem:[#allocation13_spill] sm:$0xff] }
 0x11e   : > { %2633 = vrot.lane.b32.xlu0 %v1643_v7, %s6898_s9  ;;  %v1647_v7 = vmul.f32 %v6086_v34, %v7523_v27  ;;  %11621 = vst [vmem:[#allocation90_spill] sm:$0xff] %v7642_v39  ;;  %v6090_v57 = vpop.eup %6089  ;;  %v1488_v60 = vadd.f32 1.0, %v6088_v58  ;;  %v11623_v34 = vld [vmem:[#allocation36_spill] sm:$0xff]  ;;  %v11626_v58 = vld [vmem:[#allocation37_spill] sm:$0xff] }
 0x11f   : > { %v1702_v11 = vmul.f32 %v1648_v26, %v7108_v61  ;;  %v1224_v20 = vmul.f32 %v11623_v34, %v11623_v34  ;;  %v6092_v26 = vpop.eup %6091  ;;  %v7650_v39 = vpop.permute.xlu1 %2419 }
 0x120   : > { %v1701_v38 = vmul.f32 %v1647_v7, %v7121_v9  ;;  %6103 = vrcp.f32 %v1488_v60  ;;  %v6094_v7 = vpop.eup %6093  ;;  %v1490_v18 = vadd.f32 1.0, %v6092_v26  ;;  %11624 = vst [vmem:[#allocation91_spill] sm:$0xff] %v7650_v39 }
 0x121   : > { %2639 = vrot.lane.b32.xlu1 %v1646_v43, %s6898_s9  ;;  %v1487_v43 = vadd.f32 1.0, %v6090_v57  ;;  %v1489_v22 = vadd.f32 1.0, %v6094_v7  ;;  %v7652_v16 = vpop.permute.xlu0 %2421  ;;  %v7660_v57 = vsub.f32 %v1224_v20, %v7303_v51  ;;  %v6096_v60 = vpop.eup %6095  ;;  %v11630_v20 = vld [vmem:[#allocation39_spill] sm:$0xff] }
 0x122   : > { %2637 = vrot.lane.b32.xlu0 %v1699_v28, %s6898_s9  ;;  %v1225_v28 = vmul.f32 %v11622_v2, %v11622_v2  ;;  %11625 = vst [vmem:[#allocation92_spill] sm:$0xff] %v7652_v16  ;;  %v1492_v39 = vadd.f32 1.0, %v6096_v60 }
 0x123   : > { %6105 = vrcp.f32 %v1487_v43  ;;  %v11627_v43 = vld [vmem:[#allocation38_spill] sm:$0xff]  ;;  %v7668_v34 = vpop.permute.xlu1 %2427 }
 0x124   : > { %6107 = vrcp.f32 %v1490_v18  ;;  %v1226_v26 = vmul.f32 %v11627_v43, %v11627_v43  ;;  %11629 = vst [vmem:[#allocation94_spill] sm:$0xff] %v7668_v34  ;;  %v1333_v18 = vsub.f32 0.0, %v7660_v57 }
 0x125   : > { %2643 = vrot.lane.b32.xlu1 %v1702_v11, %s6898_s9  ;;  %v7655_v11 = vsub.f32 %v1225_v28, %v7303_v51  ;;  %6109 = vrcp.f32 %v1489_v22  ;;  %v7673_v2 = vpop.permute.xlu0 %2425 }
 0x126   : > { %2641 = vrot.lane.b32.xlu0 %v1701_v38, %s6898_s9  ;;  %v1227_v38 = vmul.f32 %v11626_v58, %v11626_v58  ;;  %6111 = vrcp.f32 %v1492_v39  ;;  %v1229_v58 = vmul.f32 %v11630_v20, %v11630_v20  ;;  %11631 = vst [vmem:[#allocation95_spill] sm:$0xff] %v7673_v2  ;;  %v7676_v60 = vsub.f32 %v1226_v26, %v7303_v51 }
 0x127   : > { %v6098_v50 = vpop.eup %6097  ;;  %v1334_v16 = vsub.f32 0.0, %v7655_v11  ;;  %v1417_v35 = vmul.f32 1.442695, %v1333_v18  ;;  %v7693_v18 = vpop.permute.xlu1 %2431 }
 0x128   : > { %v1491_v7 = vadd.f32 1.0, %v6098_v50  ;;  %v7666_v28 = vsub.f32 %v1227_v38, %v7303_v51  ;;  %v6100_v22 = vpop.eup %6099  ;;  %11632 = vst [vmem:[#allocation96_spill] sm:$0xff] %v7676_v60  ;;  %v11633_v50 = vld [vmem:[#allocation40_spill] sm:$0xff]  ;;  %v7682_v20 = vsub.f32 %v1229_v58, %v7303_v51  ;;  %v1335_v26 = vsub.f32 0.0, %v7676_v60  ;;  %11636 = vst [vmem:[#allocation99_spill] sm:$0xff] %v7693_v18 }
 0x129   : > { %v1228_v43 = vmul.f32 %v11633_v50, %v11633_v50  ;;  %v6102_v38 = vpop.eup %6101  ;;  %v1494_v27 = vadd.f32 1.0, %v6100_v22  ;;  %v1419_v49 = vmul.f32 1.442695, %v1334_v16  ;;  %v1230_v16 = vmul.f32 %v7234_v8, %v7234_v8 }
 0x12a   : > { %11628 = vst [vmem:[#allocation93_spill] sm:$0xff] %v7666_v28  ;;  %6113 = vrcp.f32 %v1491_v7  ;;  %v1493_v39 = vadd.f32 1.0, %v6102_v38  ;;  %v1336_v34 = vsub.f32 0.0, %v7666_v28  ;;  %11634 = vst [vmem:[#allocation97_spill] sm:$0xff] %v7682_v20  ;;  %v1231_v7 = vmul.f32 %v7229_v0, %v7229_v0  ;;  %v7696_v38 = vpop.permute.xlu0 %2433 }
 0x12b   : > { %6115 = vrcp.f32 %v1494_v27  ;;  %v7688_v50 = vsub.f32 %v1228_v43, %v7303_v51  ;;  %11637 = vst [vmem:[#allocation100_spill] sm:$0xff] %v7696_v38  ;;  %v1338_v21 = vsub.f32 0.0, %v7682_v20 }
 0x12c   : > { %6117 = vrcp.f32 %v1493_v39  ;;  %v1423_v0 = vmul.f32 1.442695, %v1336_v34  ;;  %v7701_v43 = vsub.f32 %v1231_v7, %v7303_v51 }
 0x12d   : > { %v6104_v2 = vpop.eup %6103  ;;  %11635 = vst [vmem:[#allocation98_spill] sm:$0xff] %v7688_v50  ;;  %6119 = vpow2.f32 %v1419_v49  ;;  %v1337_v18 = vsub.f32 0.0, %v7688_v50  ;;  %v1427_v7 = vmul.f32 1.442695, %v1338_v21 }
 0x12e   : > { %v1650_v27 = vmul.f32 %v6104_v2, %v7567_v19  ;;  %11638 = vst [vmem:[#allocation101_spill] sm:$0xff] %v7701_v43  ;;  %6121 = vpow2.f32 %v1417_v35  ;;  %v1421_v2 = vmul.f32 1.442695, %v1335_v26  ;;  %v7715_v8 = vpop.permute.xlu0 %2437 }
 0x12f   : > { %6123 = vpow2.f32 %v1423_v0  ;;  %11641 = vst [vmem:[#allocation104_spill] sm:$0xff] %v7715_v8 }
 0x130   : > { %v6106_v22 = vpop.eup %6105  ;;  %v1704_v39 = vmul.f32 %v1650_v27, %v7121_v9  ;;  %v7711_v27 = vpop.permute.xlu1 %2439  ;;  %6125 = vpow2.f32 %v1421_v2 }
 0x131   : > { %v1649_v58 = vmul.f32 %v6106_v22, %v7572_v62  ;;  %v6108_v12 = vpop.eup %6107  ;;  %v7706_v22 = vsub.f32 %v1230_v16, %v7303_v51  ;;  %11640 = vst [vmem:[#allocation103_spill] sm:$0xff] %v7711_v27  ;;  %v1425_v16 = vmul.f32 1.442695, %v1337_v18  ;;  %6127 = vpow2.f32 %v1427_v7 }
 0x132   : > { %v6110_v38 = vpop.eup %6109  ;;  %2647 = vrot.lane.b32.xlu1 %v1704_v39, %s6898_s9  ;;  %v1652_v49 = vmul.f32 %v6108_v12, %v7575_v25 }
 0x133   : > { %2645 = vrot.lane.b32.xlu0 %v1649_v58, %s6898_s9  ;;  %11639 = vst [vmem:[#allocation102_spill] sm:$0xff] %v7706_v22  ;;  %v1651_v34 = vmul.f32 %v6110_v38, %v7578_v40  ;;  %v1340_v58 = vsub.f32 0.0, %v7701_v43  ;;  %v6112_v35 = vpop.eup %6111  ;;  %v1339_v62 = vsub.f32 0.0, %v7706_v22  ;;  %6129 = vpow2.f32 %v1425_v16 }
 0x134   : > { %v1654_v12 = vmul.f32 %v6112_v35, %v7593_v63  ;;  %v7726_v8 = vpop.permute.xlu1 %2443 }
 0x135   : > { %v1705_v26 = vmul.f32 %v1651_v34, %v7108_v61  ;;  %v1431_v38 = vmul.f32 1.442695, %v1340_v58  ;;  %v1429_v18 = vmul.f32 1.442695, %v1339_v62  ;;  %11642 = vst [vmem:[#allocation105_spill] sm:$0xff] %v7726_v8 }
 0x136   : > { %2651 = vrot.lane.b32.xlu1 %v1652_v49, %s6898_s9  ;;  %v1708_v21 = vmul.f32 %v1654_v12, %v7108_v61  ;;  %v1233_v12 = vmul.f32 %v7238_v17, %v7238_v17 }
 0x137   : > { %v6114_v39 = vpop.eup %6113  ;;  %2649 = vrot.lane.b32.xlu0 %v1705_v26, %s6898_s9  ;;  %v7730_v26 = vpop.permute.xlu0 %2445  ;;  %6131 = vpow2.f32 %v1431_v38  ;;  %v1232_v38 = vmul.f32 %v7243_v30, %v7243_v30 }
 0x138   : > { %v1653_v0 = vmul.f32 %v6114_v39, %v7598_v59  ;;  %v6116_v34 = vpop.eup %6115  ;;  %11643 = vst [vmem:[#allocation106_spill] sm:$0xff] %v7730_v26  ;;  %6133 = vpow2.f32 %v1429_v18 }
 0x139   : > { %v6118_v2 = vpop.eup %6117  ;;  %v1656_v49 = vmul.f32 %v6116_v34, %v7609_v29 }
 0x13a   : > { %v1707_v27 = vmul.f32 %v1653_v0, %v7121_v9  ;;  %2655 = vrot.lane.b32.xlu1 %v1708_v21, %s6898_s9  ;;  %v1655_v35 = vmul.f32 %v6118_v2, %v7616_v15  ;;  %v6120_v58 = vpop.eup %6119 }
 0x13b   : > { %v1710_v7 = vmul.f32 %v1656_v49, %v7121_v9  ;;  %v6122_v16 = vpop.eup %6121  ;;  %v1496_v62 = vadd.f32 1.0, %v6120_v58  ;;  %v7739_v21 = vpop.permute.xlu0 %2449  ;;  %v7744_v49 = vsub.f32 %v1233_v12, %v7303_v51 }
 0x13c   : > { %2653 = vrot.lane.b32.xlu0 %v1707_v27, %s6898_s9  ;;  %v1495_v39 = vadd.f32 1.0, %v6122_v16  ;;  %v7737_v27 = vpop.permute.xlu1 %2451  ;;  %v6124_v0 = vpop.eup %6123  ;;  %11645 = vst [vmem:[#allocation108_spill] sm:$0xff] %v7739_v21  ;;  %v7751_v16 = vsub.f32 %v1232_v38, %v7303_v51  ;;  %v1237_v38 = vmul.f32 %v7256_v54, %v7256_v54 }
 0x13d   : > { %6135 = vrcp.f32 %v1496_v62  ;;  %11644 = vst [vmem:[#allocation107_spill] sm:$0xff] %v7737_v27  ;;  %v6126_v34 = vpop.eup %6125  ;;  %v1498_v18 = vadd.f32 1.0, %v6124_v0  ;;  %11646 = vst [vmem:[#allocation109_spill] sm:$0xff] %v7744_v49  ;;  %v1342_v12 = vsub.f32 0.0, %v7744_v49 }
 0x13e   : > { %2659 = vrot.lane.b32.xlu1 %v1710_v7, %s6898_s9  ;;  %6137 = vrcp.f32 %v1495_v39  ;;  %v1497_v2 = vadd.f32 1.0, %v6126_v34  ;;  %v1234_v7 = vmul.f32 %v7253_v48, %v7253_v48  ;;  %v6128_v58 = vpop.eup %6127  ;;  %11647 = vst [vmem:[#allocation110_spill] sm:$0xff] %v7751_v16  ;;  %v7774_v54 = vsub.f32 %v1237_v38, %v7303_v51 }
 0x13f   : > { %6139 = vrcp.f32 %v1498_v18  ;;  %v1500_v39 = vadd.f32 1.0, %v6128_v58  ;;  %v7755_v34 = vpop.permute.xlu0 %2453  ;;  %v1341_v58 = vsub.f32 0.0, %v7751_v16  ;;  %v1435_v8 = vmul.f32 1.442695, %v1342_v12 }
 0x140   : > { %2657 = vrot.lane.b32.xlu0 %v1655_v35, %s6898_s9  ;;  %v1235_v35 = vmul.f32 %v7248_v37, %v7248_v37  ;;  %6141 = vrcp.f32 %v1497_v2  ;;  %v6130_v62 = vpop.eup %6129  ;;  %v7753_v27 = vpop.permute.xlu1 %2455  ;;  %11649 = vst [vmem:[#allocation112_spill] sm:$0xff] %v7755_v34  ;;  %v7762_v18 = vsub.f32 %v1234_v7, %v7303_v51  ;;  %11653 = vst [vmem:[#allocation116_spill] sm:$0xff] %v7774_v54 }
 0x141   : > { %11648 = vst [vmem:[#allocation111_spill] sm:$0xff] %v7753_v27  ;;  %v1499_v0 = vadd.f32 1.0, %v6130_v62  ;;  %6143 = vrcp.f32 %v1500_v39  ;;  %v1236_v62 = vmul.f32 %v7259_v5, %v7259_v5  ;;  %v1433_v5 = vmul.f32 1.442695, %v1341_v58 }
 0x142   : > { %v7759_v21 = vsub.f32 %v1235_v35, %v7303_v51  ;;  %11651 = vst [vmem:[#allocation114_spill] sm:$0xff] %v7762_v18  ;;  %v1343_v7 = vsub.f32 0.0, %v7762_v18 }
 0x143   : > { %6145 = vrcp.f32 %v1499_v0  ;;  %v1239_v0 = vmul.f32 %v7264_v10, %v7264_v10  ;;  %v7778_v37 = vpop.permute.xlu0 %2457 }
 0x144   : > { %11650 = vst [vmem:[#allocation113_spill] sm:$0xff] %v7759_v21  ;;  %v6132_v2 = vpop.eup %6131  ;;  %v1344_v35 = vsub.f32 0.0, %v7759_v21  ;;  %v7770_v39 = vpop.permute.xlu1 %2459  ;;  %11654 = vst [vmem:[#allocation117_spill] sm:$0xff] %v7778_v37  ;;  %v1437_v10 = vmul.f32 1.442695, %v1343_v7 }
 0x145   : > { %v6134_v27 = vpop.eup %6133  ;;  %v1502_v34 = vadd.f32 1.0, %v6132_v2  ;;  %11652 = vst [vmem:[#allocation115_spill] sm:$0xff] %v7770_v39  ;;  %v7790_v58 = vsub.f32 %v1239_v0, %v7303_v51 }
 0x146   : > { %v1501_v26 = vadd.f32 1.0, %v6134_v27  ;;  %v7781_v27 = vsub.f32 %v1236_v62, %v7303_v51  ;;  %v1439_v39 = vmul.f32 1.442695, %v1344_v35 }
 0x147   : > { %6147 = vrcp.f32 %v1502_v34  ;;  %v1238_v34 = vmul.f32 %v7269_v36, %v7269_v36  ;;  %11656 = vst [vmem:[#allocation119_spill] sm:$0xff] %v7790_v58  ;;  %v7802_v7 = vpop.permute.xlu0 %2461 }
 0x148   : > { %6149 = vrcp.f32 %v1501_v26  ;;  %11655 = vst [vmem:[#allocation118_spill] sm:$0xff] %v7781_v27  ;;  %v1346_v26 = vsub.f32 0.0, %v7774_v54  ;;  %v1345_v36 = vsub.f32 0.0, %v7781_v27  ;;  %11659 = vst [vmem:[#allocation122_spill] sm:$0xff] %v7802_v7 }
 0x149   : > { %6151 = vpow2.f32 %v1435_v8 }
 0x14a   : > { %v6136_v48 = vpop.eup %6135  ;;  %6153 = vpow2.f32 %v1433_v5  ;;  %v1443_v5 = vmul.f32 1.442695, %v1346_v26  ;;  %v1441_v17 = vmul.f32 1.442695, %v1345_v36 }
 0x14b   : > { %v6138_v12 = vpop.eup %6137  ;;  %v1658_v2 = vmul.f32 %v6136_v48, %v7655_v11  ;;  %v7795_v48 = vsub.f32 %v1238_v34, %v7303_v51  ;;  %6155 = vpow2.f32 %v1439_v39 }
 0x14c   : > { %v1657_v38 = vmul.f32 %v6138_v12, %v7660_v57  ;;  %v6140_v62 = vpop.eup %6139  ;;  %6157 = vpow2.f32 %v1437_v10  ;;  %v7815_v10 = vpop.permute.xlu0 %2465 }
 0x14d   : > { %2663 = vrot.lane.b32.xlu1 %v1658_v2, %s6898_s9  ;;  %11657 = vst [vmem:[#allocation120_spill] sm:$0xff] %v7795_v48  ;;  %v6142_v12 = vpop.eup %6141  ;;  %v1660_v35 = vmul.f32 %v6140_v62, %v7666_v28  ;;  %v7798_v2 = vpop.permute.xlu1 %2463  ;;  %v1347_v62 = vsub.f32 0.0, %v7795_v48  ;;  %6159 = vpow2.f32 %v1443_v5  ;;  %11661 = vst [vmem:[#allocation124_spill] sm:$0xff] %v7815_v10 }
 0x14e   : > { %v1711_v37 = vmul.f32 %v1657_v38, %v7108_v61  ;;  %11658 = vst [vmem:[#allocation121_spill] sm:$0xff] %v7798_v2  ;;  %v1659_v8 = vmul.f32 %v6142_v12, %v7676_v60  ;;  %v1348_v38 = vsub.f32 0.0, %v7790_v58  ;;  %v6144_v30 = vpop.eup %6143  ;;  %6161 = vpow2.f32 %v1441_v17 }
 0x14f   : > { %v1714_v0 = vmul.f32 %v1660_v35, %v7108_v61  ;;  %v1445_v36 = vmul.f32 1.442695, %v1347_v62 }
 0x150   : > { %2661 = vrot.lane.b32.xlu0 %v1711_v37, %s6898_s9  ;;  %v1713_v34 = vmul.f32 %v1659_v8, %v7121_v9  ;;  %v6146_v2 = vpop.eup %6145  ;;  %v1662_v37 = vmul.f32 %v6144_v30, %v7682_v20  ;;  %v1447_v35 = vmul.f32 1.442695, %v1348_v38 }
 0x151   : > { %2667 = vrot.lane.b32.xlu1 %v1714_v0, %s6898_s9  ;;  %v1661_v12 = vmul.f32 %v6146_v2, %v7688_v50  ;;  %v7813_v26 = vpop.permute.xlu1 %2467 }
 0x152   : > { %v1716_v39 = vmul.f32 %v1662_v37, %v7121_v9  ;;  %11660 = vst [vmem:[#allocation123_spill] sm:$0xff] %v7813_v26  ;;  %6163 = vpow2.f32 %v1447_v35  ;;  %v7826_v37 = vpop.permute.xlu0 %2469 }
 0x153   : > { %6165 = vpow2.f32 %v1445_v36  ;;  %11663 = vst [vmem:[#allocation126_spill] sm:$0xff] %v7826_v37 }
 0x154   : > { %2665 = vrot.lane.b32.xlu0 %v1713_v34, %s6898_s9  ;;  %v6148_v8 = vpop.eup %6147 }
 0x155   : > { %v6150_v7 = vpop.eup %6149  ;;  %2671 = vrot.lane.b32.xlu1 %v1716_v39, %s6898_s9  ;;  %v1664_v30 = vmul.f32 %v6148_v8, %v7701_v43  ;;  %v7823_v34 = vpop.permute.xlu1 %2471  ;;  %v1240_v39 = vmul.f32 %v7275_v52, %v7275_v52  ;;  %v6777_v8 = vld [vmem:[%s6997_s6 + $0x38] sm:$0xff] }
 0x156   : > { %v1663_v2 = vmul.f32 %v6150_v7, %v7706_v22  ;;  %v6152_v0 = vpop.eup %6151  ;;  %11662 = vst [vmem:[#allocation125_spill] sm:$0xff] %v7823_v34  ;;  %v1241_v7 = vmul.f32 %v7272_v14, %v7272_v14  ;;  %v330_v36 = vsub.f32 0.0, %v6777_v8  ;;  %v7845_v8 = vpop.permute.xlu0 %2473 }
 0x157   : > { %v6154_v38 = vpop.eup %6153  ;;  %v1504_v17 = vadd.f32 1.0, %v6152_v0  ;;  %v7843_v34 = vsub.f32 %v1240_v39, %v7303_v51  ;;  %11667 = vst [vmem:[#allocation130_spill] sm:$0xff] %v7845_v8  ;;  %v1245_v39 = vmul.f32 %v7327_v33, %v7327_v33 }
 0x158   : > { %2669 = vrot.lane.b32.xlu0 %v1661_v12, %s6898_s9  ;;  %v1717_v5 = vmul.f32 %v1663_v2, %v7108_v61  ;;  %v1503_v62 = vadd.f32 1.0, %v6154_v38  ;;  %v6156_v12 = vpop.eup %6155  ;;  %v1243_v2 = vmul.f32 %v7289_v41, %v7289_v41  ;;  %v7838_v38 = vsub.f32 %v1241_v7, %v7303_v51 }
 0x159   : > { %2675 = vrot.lane.b32.xlu1 %v1664_v30, %s6898_s9  ;;  %6167 = vrcp.f32 %v1504_v17  ;;  %v6158_v35 = vpop.eup %6157  ;;  %v1506_v30 = vadd.f32 1.0, %v6156_v12  ;;  %v7840_v17 = vpop.permute.xlu1 %2475  ;;  %11666 = vst [vmem:[#allocation129_spill] sm:$0xff] %v7843_v34  ;;  %v391_v37 = vmul.f32 1.442695, %v330_v36 }
 0x15a   : > { %6169 = vrcp.f32 %v1503_v62  ;;  %v1505_v0 = vadd.f32 1.0, %v6158_v35  ;;  %11664 = vst [vmem:[#allocation127_spill] sm:$0xff] %v7838_v38  ;;  %11665 = vst [vmem:[#allocation128_spill] sm:$0xff] %v7840_v17  ;;  %v6160_v62 = vpop.eup %6159  ;;  %v6778_v35 = vld [vmem:[%s6997_s6 + $0x20] sm:$0xff]  ;;  %v1350_v36 = vsub.f32 0.0, %v7838_v38  ;;  %v7871_v14 = vpop.permute.xlu0 %2477 }
 0x15b   : > { %6171 = vrcp.f32 %v1506_v30  ;;  %v6162_v12 = vpop.eup %6161  ;;  %v327_v26 = vsub.f32 0.0, %v6778_v35  ;;  %v1508_v10 = vadd.f32 1.0, %v6160_v62  ;;  %v7849_v30 = vsub.f32 %v1243_v2, %v7303_v51  ;;  %11669 = vst [vmem:[#allocation132_spill] sm:$0xff] %v7871_v14 }
 0x15c   : > { %2673 = vrot.lane.b32.xlu0 %v1717_v5, %s6898_s9  ;;  %v1242_v5 = vmul.f32 %v7293_v42, %v7293_v42  ;;  %6173 = vrcp.f32 %v1505_v0  ;;  %v1507_v7 = vadd.f32 1.0, %v6162_v12  ;;  %v1244_v0 = vmul.f32 %v7332_v4, %v7332_v4  ;;  %v6779_v12 = vld [vmem:[%s6997_s6 + $0x50] sm:$0xff] }
 0x15d   : > { %6175 = vrcp.f32 %v1508_v10  ;;  %v1247_v62 = vmul.f32 %v7336_v24, %v7336_v24  ;;  %v1246_v2 = vmul.f32 %v7344_v13, %v7344_v13  ;;  %v333_v8 = vsub.f32 0.0, %v6779_v12  ;;  %v7868_v41 = vpop.permute.xlu1 %2479  ;;  %v6780_v12 = vld [vmem:[%s6997_s6 + $0x68] sm:$0xff] }
 0x15e   : > { %v7854_v17 = vsub.f32 %v1242_v5, %v7303_v51  ;;  %6177 = vrcp.f32 %v1507_v7  ;;  %v1349_v5 = vsub.f32 0.0, %v7843_v34  ;;  %v385_v33 = vmul.f32 1.442695, %v327_v26  ;;  %11668 = vst [vmem:[#allocation131_spill] sm:$0xff] %v7868_v41 }
 0x15f   : > { %v6164_v35 = vpop.eup %6163  ;;  %6179 = vpow2.f32 %v391_v37  ;;  %v1352_v10 = vsub.f32 0.0, %v7849_v30  ;;  %v7874_v13 = vsub.f32 %v1245_v39, %v7303_v51  ;;  %v7877_v7 = vsub.f32 %v1244_v0, %v7303_v51 }
 0x160   : > { %v6166_v42 = vpop.eup %6165  ;;  %v1510_v4 = vadd.f32 1.0, %v6164_v35  ;;  %v1351_v24 = vsub.f32 0.0, %v7854_v17  ;;  %v1451_v37 = vmul.f32 1.442695, %v1350_v36  ;;  %v7880_v26 = vsub.f32 %v1247_v62, %v7303_v51 }
 0x161   : > { %v1509_v52 = vadd.f32 1.0, %v6166_v42  ;;  %11670 = vst [vmem:[#allocation133_spill] sm:$0xff] %v7877_v7  ;;  %v7883_v35 = vsub.f32 %v1246_v2, %v7303_v51  ;;  %v336_v41 = vsub.f32 0.0, %v6780_v12  ;;  %v7886_v22 = vmul.f32 1.442695, %v333_v8  ;;  %v7896_v8 = vpop.permute.xlu1 %2483 }
 0x162   : > { %6181 = vrcp.f32 %v1510_v4  ;;  %11671 = vst [vmem:[#allocation134_spill] sm:$0xff] %v7880_v26  ;;  %v1449_v39 = vmul.f32 1.442695, %v1349_v5  ;;  %v1455_v43 = vmul.f32 1.442695, %v1352_v10  ;;  %v7890_v4 = vstv %s7851_s10  ;;  %11673 = vst [vmem:[#allocation136_spill] sm:$0xff] %v7896_v8 }
 0x163   : > { %11672 = vst [vmem:[#allocation135_spill] sm:$0xff] %v7883_v35  ;;  %6183 = vrcp.f32 %v1509_v52  ;;  %v1453_v62 = vmul.f32 1.442695, %v1351_v24  ;;  %v1354_v51 = vsub.f32 0.0, %v7874_v13  ;;  %v1353_v2 = vsub.f32 0.0, %v7877_v7  ;;  %v11676_v8 = vld [vmem:[#allocation16_spill] sm:$0xff] }
 0x164   : > { %6185 = vpow2.f32 %v385_v33  ;;  %v1356_v52 = vsub.f32 0.0, %v7880_v26  ;;  %v1355_v33 = vsub.f32 0.0, %v7883_v35 }
 0x165   : > { %6187 = vpow2.f32 %v1451_v37  ;;  %v7927_v28 = vpop.permute.xlu1 %2487 }
 0x166   : > { %v6168_v42 = vpop.eup %6167  ;;  %6189 = vpow2.f32 %v1449_v39  ;;  %v1791_v39 = vmul.f32 %v11676_v8, %v7890_v4 }
 0x167   : > { %v6170_v14 = vpop.eup %6169  ;;  %v1666_v0 = vmul.f32 %v6168_v42, %v7744_v49  ;;  %v7901_v42 = vpop.permute.xlu0 %2481  ;;  %v1736_v49 = vmul.f32 %v11676_v8, %v7320_v31  ;;  %v403_v31 = vmul.f32 1.442695, %v336_v41  ;;  %6191 = vpow2.f32 %v1455_v43 }
 0x168   : > { %v1665_v36 = vmul.f32 %v6170_v14, %v7751_v16  ;;  %v6172_v5 = vpop.eup %6171  ;;  %11674 = vst [vmem:[#allocation137_spill] sm:$0xff] %v7901_v42  ;;  %v11675_v14 = vld [vmem:[#allocation18_spill] sm:$0xff]  ;;  %v1459_v8 = vmul.f32 1.442695, %v1354_v51  ;;  %6193 = vpow2.f32 %v1453_v62 }
 0x169   : > { %v1720_v12 = vmul.f32 %v1666_v0, %v7108_v61  ;;  %v1737_v24 = vmul.f32 %v11675_v14, %v7308_v6  ;;  %v1792_v16 = vmul.f32 %v11675_v14, %v7890_v4  ;;  %v6174_v0 = vpop.eup %6173  ;;  %v1668_v37 = vmul.f32 %v6172_v5, %v7759_v21  ;;  %11679 = vst [vmem:[#allocation18_spill] sm:$0xff] %v7927_v28 }
 0x16a   : > { %v1719_v10 = vmul.f32 %v1665_v36, %v7121_v9  ;;  %v11677_v36 = vld [vmem:[#allocation17_spill] sm:$0xff]  ;;  %v1667_v6 = vmul.f32 %v6174_v0, %v7762_v18  ;;  %v6176_v20 = vpop.eup %6175  ;;  %v1463_v0 = vmul.f32 1.442695, %v1356_v52  ;;  %v7931_v41 = vsub.f32 %v1736_v49, %v1791_v39 }
 0x16b   : > { %2679 = vrot.lane.b32.xlu1 %v1720_v12, %s6898_s9  ;;  %v1739_v42 = vmul.f32 %v11677_v36, %v7325_v44  ;;  %v1794_v14 = vmul.f32 %v11677_v36, %v7890_v4  ;;  %v11678_v12 = vld [vmem:[#allocation15_spill] sm:$0xff]  ;;  %v1722_v21 = vmul.f32 %v1668_v37, %v7121_v9  ;;  %v6781_v44 = vld [vmem:[%s6997_s6] sm:$0xff]  ;;  %v6178_v18 = vpop.eup %6177  ;;  %v1670_v36 = vmul.f32 %v6176_v20, %v7774_v54  ;;  %v7937_v51 = vpop.permute.xlu0 %2485 }
 0x16c   : > { %2677 = vrot.lane.b32.xlu0 %v1719_v10, %s6898_s9  ;;  %v1738_v50 = vmul.f32 %v11678_v12, %v7330_v3  ;;  %v1793_v5 = vmul.f32 %v11678_v12, %v7890_v4  ;;  %v323_v60 = vsub.f32 0.0, %v6781_v44  ;;  %v1457_v10 = vmul.f32 1.442695, %v1353_v2  ;;  %v7933_v43 = vpop.eup %6179  ;;  %11681 = vst [vmem:[#allocation17_spill] sm:$0xff] %v7937_v51  ;;  %v11682_v20 = vld [vmem:[#allocation19_spill] sm:$0xff]  ;;  %v11696_v51 = vld [vmem:[#allocation8_spill] sm:$0xff] }
 0x16d   : > { %v1461_v3 = vmul.f32 1.442695, %v1355_v33  ;;  %v7929_v12 = vsub.f32 %v1737_v24, %v1792_v16  ;;  %11680 = vst [vmem:[#allocation16_spill] sm:$0xff] %v7933_v43  ;;  %v1669_v62 = vmul.f32 %v6178_v18, %v7781_v27  ;;  %v7939_v2 = vsub.f32 %v1739_v42, %v1794_v14  ;;  %v11683_v16 = vld [vmem:[#allocation6_spill] sm:$0xff] }
 0x16e   : > { %v1741_v52 = vmul.f32 %v11682_v20, %v7340_v47  ;;  %6195 = vpow2.f32 %v1459_v8  ;;  %v1796_v49 = vmul.f32 %v11682_v20, %v7890_v4  ;;  %v1740_v33 = vmul.f32 %v11683_v16, %v7353_v32 }
 0x16f   : > { %2683 = vrot.lane.b32.xlu1 %v1722_v21, %s6898_s9  ;;  %v7941_v21 = vsub.f32 %v1738_v50, %v1793_v5  ;;  %v1795_v24 = vmul.f32 %v11683_v16, %v7890_v4  ;;  %v6182_v18 = vpop.eup %6181  ;;  %v1723_v37 = vmul.f32 %v1669_v62, %v7108_v61  ;;  %6197 = vpow2.f32 %v1457_v10  ;;  %v11684_v50 = vld [vmem:[#allocation5_spill] sm:$0xff] }
 0x170   : > { %2681 = vrot.lane.b32.xlu0 %v1667_v6, %s6898_s9  ;;  %v1743_v42 = vmul.f32 %v11684_v50, %v7392_v46  ;;  %v1798_v47 = vmul.f32 %v11684_v50, %v7890_v4  ;;  %v6184_v39 = vpop.eup %6183  ;;  %6199 = vpow2.f32 %v403_v31  ;;  %v377_v6 = vmul.f32 1.442695, %v323_v60  ;;  %v7967_v31 = vpop.permute.xlu1 %2491  ;;  %v11688_v50 = vld [vmem:[#allocation20_spill] sm:$0xff] }
 0x171   : > { %v1672_v32 = vmul.f32 %v6182_v18, %v7790_v58  ;;  %v1900_v14 = vsub.f32 0.0, %v7929_v12  ;;  %v7959_v5 = vpop.eup %6185  ;;  %v1671_v8 = vmul.f32 %v6184_v39, %v7795_v48  ;;  %v1899_v46 = vsub.f32 0.0, %v7931_v41  ;;  %11686 = vst [vmem:[#allocation19_spill] sm:$0xff] %v7967_v31  ;;  %v7974_v18 = vpop.permute.xlu0 %2489 }
 0x172   : > { %11685 = vst [vmem:[#allocation15_spill] sm:$0xff] %v7959_v5  ;;  %v1902_v44 = vsub.f32 0.0, %v7939_v2  ;;  %v1901_v10 = vsub.f32 0.0, %v7941_v21  ;;  %6201 = vpow2.f32 %v1463_v0  ;;  %v7971_v62 = vsub.f32 %v1740_v33, %v1795_v24  ;;  %v6188_v20 = vpop.eup %6187  ;;  %11687 = vst [vmem:[#allocation6_spill] sm:$0xff] %v7974_v18 }
 0x173   : > { %2687 = vrot.lane.b32.xlu1 %v1670_v36, %s6898_s9  ;;  %v1726_v60 = vmul.f32 %v1672_v32, %v7108_v61  ;;  %v7969_v36 = vsub.f32 %v1741_v52, %v1796_v49  ;;  %v1725_v16 = vmul.f32 %v1671_v8, %v7121_v9  ;;  %6203 = vpow2.f32 %v1461_v3  ;;  %v6190_v28 = vpop.eup %6189  ;;  %v11689_v49 = vld [vmem:[#allocation21_spill] sm:$0xff] }
 0x174   : > { %2685 = vrot.lane.b32.xlu0 %v1723_v37, %s6898_s9  ;;  %v7976_v37 = vsub.f32 %v1743_v42, %v1798_v47  ;;  %v1742_v39 = vmul.f32 %v11688_v50, %v7395_v1  ;;  %v1512_v0 = vadd.f32 1.0, %v6188_v20  ;;  %v1797_v52 = vmul.f32 %v11688_v50, %v7890_v4  ;;  %v11690_v1 = vld [vmem:[#allocation22_spill] sm:$0xff]  ;;  %v8003_v50 = vpop.permute.xlu1 %2603 }
 0x175   : > { %v1745_v33 = vmul.f32 %v11689_v49, %v7398_v45  ;;  %v1800_v3 = vmul.f32 %v11689_v49, %v7890_v4  ;;  %6205 = vpow2.f32 %v7886_v22  ;;  %v1511_v24 = vadd.f32 1.0, %v6190_v28  ;;  %11691 = vst [vmem:[#allocation5_spill] sm:$0xff] %v8003_v50  ;;  %v8010_v49 = vpop.permute.xlu0 %2601 }
 0x176   : > { %v1744_v42 = vmul.f32 %v11690_v1, %v7401_v55  ;;  %v1799_v47 = vmul.f32 %v11690_v1, %v7890_v4  ;;  %6207 = vrcp.f32 %v1512_v0  ;;  %v7993_v32 = vmul.f32 1.442695, %v1900_v14  ;;  %11692 = vst [vmem:[#allocation20_spill] sm:$0xff] %v8010_v49  ;;  %v11694_v1 = vld [vmem:[#allocation23_spill] sm:$0xff] }
 0x177   : > { %2691 = vrot.lane.b32.xlu1 %v1726_v60, %s6898_s9  ;;  %v7995_v8 = vmul.f32 1.442695, %v1899_v46  ;;  %v7997_v45 = vmul.f32 1.442695, %v1902_v44  ;;  %v6192_v60 = vpop.eup %6191  ;;  %6209 = vrcp.f32 %v1511_v24  ;;  %v7999_v20 = vmul.f32 1.442695, %v1901_v10 }
 0x178   : > { %2689 = vrot.lane.b32.xlu0 %v1725_v16, %s6898_s9  ;;  %v1904_v22 = vsub.f32 0.0, %v7969_v36  ;;  %v1903_v28 = vsub.f32 0.0, %v7971_v62  ;;  %v6194_v16 = vpop.eup %6193  ;;  %v1514_v55 = vadd.f32 1.0, %v6192_v60  ;;  %v1906_v0 = vsub.f32 0.0, %v7976_v37  ;;  %v11693_v10 = vld [vmem:[#allocation59_spill] sm:$0xff]  ;;  %v11695_v60 = vld [vmem:[#allocation60_spill] sm:$0xff] }
 0x179   : > { %v8006_v14 = vsub.f32 %v1742_v39, %v1797_v52  ;;  %v8008_v46 = vsub.f32 %v1745_v33, %v1800_v3  ;;  %v1513_v44 = vadd.f32 1.0, %v6194_v16  ;;  %v8012_v24 = vsub.f32 %v1744_v42, %v1799_v47  ;;  %v11697_v52 = vld [vmem:[#allocation61_spill] sm:$0xff]  ;;  %v11698_v33 = vld [vmem:[#allocation7_spill] sm:$0xff]  ;;  %v11699_v47 = vld [vmem:[#allocation62_spill] sm:$0xff] }
 0x17a   : > { %v1747_v18 = vmul.f32 %v11694_v1, %v11693_v10  ;;  %v1802_v31 = vmul.f32 %v11694_v1, %v7890_v4  ;;  %6211 = vrcp.f32 %v1514_v55  ;;  %v1746_v50 = vmul.f32 %v11696_v51, %v11695_v60  ;;  %v11700_v10 = vld [vmem:[#allocation24_spill] sm:$0xff] }
 0x17b   : > { %v1801_v39 = vmul.f32 %v11696_v51, %v7890_v4  ;;  %v1749_v3 = vmul.f32 %v11698_v33, %v11697_v52  ;;  %v6196_v16 = vpop.eup %6195  ;;  %6213 = vrcp.f32 %v1513_v44  ;;  %v1804_v42 = vmul.f32 %v11698_v33, %v7890_v4 }
 0x17c   : > { %v1748_v49 = vmul.f32 %v11700_v10, %v11699_v47  ;;  %v1803_v55 = vmul.f32 %v11700_v10, %v7890_v4  ;;  %v6198_v1 = vpop.eup %6197  ;;  %6215 = vpow2.f32 %v377_v6  ;;  %v1516_v60 = vadd.f32 1.0, %v6196_v16  ;;  %v8040_v47 = vpop.permute.xlu1 %2607 }
 0x17d   : > { %v8030_v5 = vmul.f32 1.442695, %v1904_v22  ;;  %v8032_v51 = vmul.f32 1.442695, %v1903_v28  ;;  %v8034_v43 = vpop.eup %6199  ;;  %v1515_v52 = vadd.f32 1.0, %v6198_v1  ;;  %v1905_v33 = vsub.f32 0.0, %v8006_v14  ;;  %v8047_v16 = vpop.permute.xlu0 %2605 }
 0x17e   : > { %11701 = vst [vmem:[#allocation21_spill] sm:$0xff] %v8034_v43  ;;  %v8036_v44 = vmul.f32 1.442695, %v1906_v0  ;;  %v1908_v48 = vsub.f32 0.0, %v8008_v46  ;;  %6217 = vrcp.f32 %v1516_v60  ;;  %11702 = vst [vmem:[#allocation22_spill] sm:$0xff] %v8040_v47  ;;  %v1907_v10 = vsub.f32 0.0, %v8012_v24 }
 0x17f   : > { %v8043_v6 = vsub.f32 %v1747_v18, %v1802_v31  ;;  %v8045_v22 = vsub.f32 %v1746_v50, %v1801_v39  ;;  %v6202_v28 = vpop.eup %6201  ;;  %6219 = vrcp.f32 %v1515_v52  ;;  %11705 = vst [vmem:[#allocation60_spill] sm:$0xff] %v8047_v16  ;;  %v8049_v1 = vsub.f32 %v1749_v3, %v1804_v42  ;;  %v11708_v43 = vld [vmem:[#allocation25_spill] sm:$0xff]  ;;  %v11709_v31 = vld [vmem:[#allocation26_spill] sm:$0xff] }
 0x180   : > { %v8051_v0 = vsub.f32 %v1748_v49, %v1803_v55  ;;  %v1751_v58 = vmul.f32 %v11708_v43, %v7470_v56  ;;  %v6204_v60 = vpop.eup %6203  ;;  %v1518_v27 = vadd.f32 1.0, %v6202_v28  ;;  %v1806_v47 = vmul.f32 %v11708_v43, %v7890_v4  ;;  %v11710_v49 = vld [vmem:[#allocation27_spill] sm:$0xff]  ;;  %v8078_v16 = vpop.permute.xlu1 %2611 }
 0x181   : > { %11703 = vst [vmem:[#allocation59_spill] sm:$0xff] %v8043_v6  ;;  %11704 = vst [vmem:[#allocation23_spill] sm:$0xff] %v8045_v22  ;;  %v1750_v18 = vmul.f32 %v11709_v31, %v7478_v23  ;;  %v1805_v50 = vmul.f32 %v11709_v31, %v7890_v4  ;;  %v1517_v39 = vadd.f32 1.0, %v6204_v60  ;;  %v8061_v52 = vmul.f32 1.442695, %v1905_v33 }
 0x182   : > { %11706 = vst [vmem:[#allocation8_spill] sm:$0xff] %v8049_v1  ;;  %11707 = vst [vmem:[#allocation61_spill] sm:$0xff] %v8051_v0  ;;  %v1753_v3 = vmul.f32 %v11710_v49, %v7487_v53  ;;  %v1808_v56 = vmul.f32 %v11710_v49, %v7890_v4  ;;  %v8067_v42 = vpop.eup %6205  ;;  %6221 = vrcp.f32 %v1518_v27  ;;  %v8069_v55 = vmul.f32 1.442695, %v1908_v48 }
 0x183   : > { %11711 = vst [vmem:[#allocation7_spill] sm:$0xff] %v8067_v42  ;;  %v8071_v43 = vmul.f32 1.442695, %v1907_v10  ;;  %v1910_v23 = vsub.f32 0.0, %v8043_v6  ;;  %v6208_v28 = vpop.eup %6207  ;;  %6223 = vrcp.f32 %v1517_v39  ;;  %v1909_v33 = vsub.f32 0.0, %v8045_v22  ;;  %11712 = vst [vmem:[#allocation62_spill] sm:$0xff] %v8078_v16  ;;  %v8087_v6 = vpop.permute.xlu0 %2609 }
 0x184   : > { %v1912_v60 = vsub.f32 0.0, %v8049_v1  ;;  %v1911_v53 = vsub.f32 0.0, %v8051_v0  ;;  %v6210_v31 = vpop.eup %6209  ;;  %v1674_v49 = vmul.f32 %v6208_v28, %v7838_v38  ;;  %v8080_v27 = vsub.f32 %v1751_v58, %v1806_v47  ;;  %v11713_v10 = vld [vmem:[#allocation67_spill] sm:$0xff]  ;;  %v11714_v42 = vld [vmem:[#allocation10_spill] sm:$0xff]  ;;  %11715 = vst [vmem:[#allocation24_spill] sm:$0xff] %v8087_v6  ;;  %v11716_v0 = vld [vmem:[#allocation69_spill] sm:$0xff] }
 0x185   : > { %v8082_v48 = vsub.f32 %v1750_v18, %v1805_v50  ;;  %v1752_v54 = vmul.f32 %v11714_v42, %v11713_v10  ;;  %v1673_v39 = vmul.f32 %v6210_v31, %v7843_v34  ;;  %v8089_v22 = vsub.f32 %v1753_v3, %v1808_v56  ;;  %v11717_v28 = vld [vmem:[#allocation9_spill] sm:$0xff]  ;;  %v11718_v18 = vld [vmem:[#allocation71_spill] sm:$0xff]  ;;  %v11719_v50 = vld [vmem:[#allocation28_spill] sm:$0xff] }
 0x186   : > { %v1807_v1 = vmul.f32 %v11714_v42, %v7890_v4  ;;  %v1755_v38 = vmul.f32 %v11717_v28, %v11716_v0  ;;  %v1728_v58 = vmul.f32 %v1674_v49, %v7121_v9  ;;  %6225 = vpow2.f32 %v7993_v32  ;;  %v11720_v56 = vld [vmem:[#allocation72_spill] sm:$0xff]  ;;  %v11721_v0 = vld [vmem:[#allocation29_spill] sm:$0xff] }
 0x187   : > { %v1810_v47 = vmul.f32 %v11717_v28, %v7890_v4  ;;  %v1754_v31 = vmul.f32 %v11719_v50, %v11718_v18  ;;  %v6212_v10 = vpop.eup %6211  ;;  %2693 = vrot.lane.b32.xlu0 %v1673_v39, %s6898_s9  ;;  %6227 = vpow2.f32 %v7995_v8  ;;  %v1809_v3 = vmul.f32 %v11719_v50, %v7890_v4 }
 0x188   : > { %v1757_v42 = vmul.f32 %v11721_v0, %v11720_v56  ;;  %v1812_v32 = vmul.f32 %v11721_v0, %v7890_v4  ;;  %v6214_v49 = vpop.eup %6213  ;;  %2695 = vrot.lane.b32.xlu1 %v1728_v58, %s6898_s9  ;;  %v1676_v28 = vmul.f32 %v6212_v10, %v7849_v30  ;;  %v1975_v18 = vmul.f32 1.442695, %v1910_v23  ;;  %v8119_v0 = vpop.permute.xlu1 %2615 }
 0x189   : > { %v1973_v6 = vmul.f32 1.442695, %v1909_v33  ;;  %v1979_v16 = vmul.f32 1.442695, %v1912_v60  ;;  %v8111_v39 = vpop.eup %6215  ;;  %v1675_v8 = vmul.f32 %v6214_v49, %v7854_v17  ;;  %v8114_v34 = vmul.f32 1.442695, %v1911_v53  ;;  %v8128_v53 = vpop.permute.xlu0 %2613 }
 0x18a   : > { %11722 = vst [vmem:[#allocation25_spill] sm:$0xff] %v8111_v39  ;;  %v1914_v50 = vsub.f32 0.0, %v8080_v27  ;;  %v1913_v56 = vsub.f32 0.0, %v8082_v48  ;;  %6229 = vpow2.f32 %v7997_v45  ;;  %11723 = vst [vmem:[#allocation26_spill] sm:$0xff] %v8119_v0  ;;  %v1916_v58 = vsub.f32 0.0, %v8089_v22 }
 0x18b   : > { %v8122_v10 = vsub.f32 %v1752_v54, %v1807_v1  ;;  %v8124_v23 = vsub.f32 %v1755_v38, %v1810_v47  ;;  %v6218_v33 = vpop.eup %6217  ;;  %v1729_v60 = vmul.f32 %v1675_v8, %v7108_v61  ;;  %6231 = vpow2.f32 %v7999_v20  ;;  %11724 = vst [vmem:[#allocation27_spill] sm:$0xff] %v8128_v53  ;;  %v11725_v54 = vld [vmem:[#allocation73_spill] sm:$0xff]  ;;  %v11726_v38 = vld [vmem:[#allocation30_spill] sm:$0xff] }
 0x18c   : > { %v8130_v49 = vsub.f32 %v1754_v31, %v1809_v3  ;;  %v8132_v39 = vsub.f32 %v1757_v42, %v1812_v32  ;;  %v6220_v45 = vpop.eup %6219  ;;  %2699 = vrot.lane.b32.xlu1 %v1676_v28, %s6898_s9  ;;  %v1678_v0 = vmul.f32 %v6218_v33, %v7874_v13  ;;  %6233 = vpow2.f32 %v8030_v5 }
 0x18d   : > { %v1756_v1 = vmul.f32 %v11726_v38, %v11725_v54  ;;  %v1811_v47 = vmul.f32 %v11726_v38, %v7890_v4  ;;  %2697 = vrot.lane.b32.xlu0 %v1729_v60, %s6898_s9  ;;  %v1677_v20 = vmul.f32 %v6220_v45, %v7877_v7  ;;  %6235 = vpow2.f32 %v8032_v51  ;;  %v8167_v60 = vpop.permute.xlu0 %2617  ;;  %v11729_v45 = vld [vmem:[#allocation31_spill] sm:$0xff] }
 0x18e   : > { %v8144_v31 = vmul.f32 1.442695, %v1914_v50  ;;  %v8146_v3 = vmul.f32 1.442695, %v1913_v56  ;;  %v1732_v42 = vmul.f32 0.0, %v1678_v0  ;;  %6237 = vpow2.f32 %v8036_v44  ;;  %v8159_v44 = vpop.permute.xlu1 %2619  ;;  %11728 = vst [vmem:[#allocation10_spill] sm:$0xff] %v8167_v60 }
 0x18f   : > { %v8149_v5 = vmul.f32 1.442695, %v1916_v58  ;;  %v1915_v32 = vsub.f32 0.0, %v8122_v10  ;;  %v6222_v28 = vpop.eup %6221  ;;  %v1731_v8 = vmul.f32 %v1677_v20, %v7121_v9  ;;  %6239 = vpow2.f32 %v8061_v52  ;;  %11727 = vst [vmem:[#allocation67_spill] sm:$0xff] %v8159_v44  ;;  %v11730_v20 = vld [vmem:[#allocation82_spill] sm:$0xff] }
 0x190   : > { %v1918_v33 = vsub.f32 0.0, %v8124_v23  ;;  %v1917_v51 = vsub.f32 0.0, %v8130_v49  ;;  %v6224_v50 = vpop.eup %6223  ;;  %2703 = vrot.lane.b32.xlu1 %v1732_v42, %s6898_s9  ;;  %v1680_v56 = vmul.f32 %v6222_v28, %v7880_v26  ;;  %6241 = vpow2.f32 %v8069_v55  ;;  %v11731_v42 = vld [vmem:[#allocation12_spill] sm:$0xff] }
 0x191   : > { %v1920_v0 = vsub.f32 0.0, %v8132_v39  ;;  %v8162_v58 = vsub.f32 %v1756_v1, %v1811_v47  ;;  %2701 = vrot.lane.b32.xlu0 %v1731_v8, %s6898_s9  ;;  %v1679_v52 = vmul.f32 %v6224_v50, %v7883_v35  ;;  %6243 = vpow2.f32 %v8071_v43  ;;  %v11732_v43 = vld [vmem:[#allocation11_spill] sm:$0xff] }
 0x192   : > { %v1759_v54 = vmul.f32 %v11729_v45, %v7567_v19  ;;  %v1814_v55 = vmul.f32 %v11729_v45, %v7890_v4  ;;  %v1734_v38 = vmul.f32 0.0, %v1680_v56  ;;  %6245 = vpow2.f32 %v1975_v18  ;;  %v11733_v18 = vld [vmem:[#allocation32_spill] sm:$0xff] }
 0x193   : > { %v1758_v1 = vmul.f32 %v11731_v42, %v11730_v20  ;;  %v1813_v47 = vmul.f32 %v11731_v42, %v7890_v4  ;;  %v6226_v28 = vpop.eup %6225  ;;  %v1733_v8 = vmul.f32 0.0, %v1679_v52  ;;  %6247 = vpow2.f32 %v1973_v6 }
 0x194   : > { %v1761_v50 = vmul.f32 %v11732_v43, %v7575_v25  ;;  %v1816_v19 = vmul.f32 %v11732_v43, %v7890_v4  ;;  %v6228_v44 = vpop.eup %6227  ;;  %2707 = vrot.lane.b32.xlu1 %v1734_v38, %s6898_s9  ;;  %v2062_v56 = vadd.f32 1.0, %v6226_v28  ;;  %6249 = vpow2.f32 %v1979_v16  ;;  %v11734_v25 = vld [vmem:[#allocation33_spill] sm:$0xff]  ;;  %v8192_v38 = vpop.permute.xlu1 %2623 }
 0x195   : > { %v1760_v45 = vmul.f32 %v11733_v18, %v7578_v40  ;;  %v1815_v20 = vmul.f32 %v11733_v18, %v7890_v4  ;;  %2705 = vrot.lane.b32.xlu0 %v1733_v8, %s6898_s9  ;;  %v2061_v6 = vadd.f32 1.0, %v6228_v44  ;;  %6251 = vpow2.f32 %v8114_v34  ;;  %11735 = vst [vmem:[#allocation69_spill] sm:$0xff] %v8192_v38  ;;  %v11736_v40 = vld [vmem:[#allocation34_spill] sm:$0xff]  ;;  %v8200_v34 = vpop.permute.xlu0 %2621 }
 0x196   : > { %v1763_v52 = vmul.f32 %v11734_v25, %v7593_v63  ;;  %v1818_v42 = vmul.f32 %v11734_v25, %v7890_v4  ;;  %6253 = vrcp.f32 %v2062_v56  ;;  %v8194_v16 = vsub.f32 %v1759_v54, %v1814_v55  ;;  %11737 = vst [vmem:[#allocation9_spill] sm:$0xff] %v8200_v34 }
 0x197   : > { %v1762_v28 = vmul.f32 %v11736_v40, %v7598_v59  ;;  %v1817_v8 = vmul.f32 %v11736_v40, %v7890_v4  ;;  %v6230_v44 = vpop.eup %6229  ;;  %6255 = vrcp.f32 %v2061_v6  ;;  %v8202_v43 = vmul.f32 1.442695, %v1915_v32 }
 0x198   : > { %v8204_v63 = vmul.f32 1.442695, %v1918_v33  ;;  %v8206_v18 = vmul.f32 1.442695, %v1917_v51  ;;  %v6232_v56 = vpop.eup %6231  ;;  %v2064_v25 = vadd.f32 1.0, %v6230_v44  ;;  %v8210_v55 = vsub.f32 %v1758_v1, %v1813_v47  ;;  %v11738_v47 = vld [vmem:[#allocation35_spill] sm:$0xff] }
 0x199   : > { %v8208_v54 = vmul.f32 1.442695, %v1920_v0  ;;  %v8212_v59 = vsub.f32 %v1761_v50, %v1816_v19  ;;  %v6234_v38 = vpop.eup %6233  ;;  %v2063_v40 = vadd.f32 1.0, %v6232_v56  ;;  %v1919_v6 = vsub.f32 0.0, %v8162_v58  ;;  %v8230_v56 = vpop.permute.xlu0 %2625 }
 0x19a   : > { %v8215_v60 = vsub.f32 %v1760_v45, %v1815_v20  ;;  %v8217_v32 = vsub.f32 %v1763_v52, %v1818_v42  ;;  %v6236_v33 = vpop.eup %6235  ;;  %6257 = vrcp.f32 %v2064_v25  ;;  %v2066_v51 = vadd.f32 1.0, %v6234_v38  ;;  %v8226_v52 = vpop.permute.xlu1 %2627  ;;  %11740 = vst [vmem:[#allocation28_spill] sm:$0xff] %v8230_v56 }
 0x19b   : > { %v1922_v34 = vsub.f32 0.0, %v8194_v16  ;;  %v8220_v44 = vsub.f32 %v1762_v28, %v1817_v8  ;;  %v6238_v0 = vpop.eup %6237  ;;  %6259 = vrcp.f32 %v2063_v40  ;;  %v2065_v1 = vadd.f32 1.0, %v6236_v33  ;;  %11739 = vst [vmem:[#allocation71_spill] sm:$0xff] %v8226_v52 }
 0x19c   : > { %v1765_v50 = vmul.f32 %v11738_v47, %v7609_v29  ;;  %v1820_v19 = vmul.f32 %v11738_v47, %v7890_v4  ;;  %v6240_v45 = vpop.eup %6239  ;;  %6261 = vrcp.f32 %v2066_v51  ;;  %v2068_v20 = vadd.f32 1.0, %v6238_v0 }
 0x19d   : > { %v1921_v42 = vsub.f32 0.0, %v8210_v55  ;;  %v1924_v38 = vsub.f32 0.0, %v8212_v59  ;;  %v6242_v28 = vpop.eup %6241  ;;  %6263 = vrcp.f32 %v2065_v1  ;;  %v2067_v8 = vadd.f32 1.0, %v6240_v45 }
 0x19e   : > { %v1923_v25 = vsub.f32 0.0, %v8215_v60  ;;  %v1926_v29 = vsub.f32 0.0, %v8217_v32  ;;  %v6244_v40 = vpop.eup %6243  ;;  %6265 = vrcp.f32 %v2068_v20  ;;  %v2070_v33 = vadd.f32 1.0, %v6242_v28 }
 0x19f   : > { %v8234_v51 = vmul.f32 1.442695, %v1919_v6  ;;  %v1925_v0 = vsub.f32 0.0, %v8220_v44  ;;  %v6246_v47 = vpop.eup %6245  ;;  %6267 = vrcp.f32 %v2067_v8  ;;  %v2069_v52 = vadd.f32 1.0, %v6244_v40  ;;  %v8249_v40 = vpop.permute.xlu1 %2631 }
 0x1a0   : > { %v8237_v53 = vmul.f32 1.442695, %v1922_v34  ;;  %v8239_v1 = vsub.f32 %v1765_v50, %v1820_v19  ;;  %v6248_v45 = vpop.eup %6247  ;;  %6269 = vrcp.f32 %v2070_v33  ;;  %v2072_v56 = vadd.f32 1.0, %v6246_v47  ;;  %11741 = vst [vmem:[#allocation72_spill] sm:$0xff] %v8249_v40  ;;  %v11742_v19 = vld [vmem:[#allocation14_spill] sm:$0xff]  ;;  %v8255_v47 = vpop.permute.xlu0 %2629 }
 0x1a1   : > { %v8241_v35 = vmul.f32 1.442695, %v1921_v42  ;;  %v8243_v26 = vmul.f32 1.442695, %v1924_v38  ;;  %v6250_v20 = vpop.eup %6249  ;;  %6271 = vrcp.f32 %v2069_v52  ;;  %v2071_v6 = vadd.f32 1.0, %v6248_v45 }
 0x1a2   : > { %v8245_v28 = vmul.f32 1.442695, %v1923_v25  ;;  %v8247_v7 = vmul.f32 1.442695, %v1926_v29  ;;  %v6252_v8 = vpop.eup %6251  ;;  %6273 = vrcp.f32 %v2072_v56  ;;  %v2074_v34 = vadd.f32 1.0, %v6250_v20 }
 0x1a3   : > { %v8251_v50 = vmul.f32 1.442695, %v1925_v0  ;;  %v1764_v42 = vmul.f32 %v11742_v19, %v7616_v15  ;;  %v6254_v33 = vpop.eup %6253  ;;  %6275 = vrcp.f32 %v2071_v6  ;;  %v2073_v38 = vadd.f32 1.0, %v6252_v8  ;;  %v11743_v0 = vld [vmem:[#allocation13_spill] sm:$0xff]  ;;  %v11744_v6 = vld [vmem:[#allocation36_spill] sm:$0xff] }
 0x1a4   : > { %v1819_v25 = vmul.f32 %v11742_v19, %v7890_v4  ;;  %v6256_v29 = vpop.eup %6255  ;;  %v2224_v56 = vmul.f32 %v6254_v33, %v7929_v12  ;;  %6277 = vrcp.f32 %v2074_v34  ;;  %v1767_v45 = vmul.f32 %v11743_v0, %v7655_v11  ;;  %v11745_v12 = vld [vmem:[#allocation93_spill] sm:$0xff] }
 0x1a5   : > { %v1822_v15 = vmul.f32 %v11743_v0, %v7890_v4  ;;  %v2223_v20 = vmul.f32 %v6256_v29, %v7931_v41  ;;  %6279 = vrcp.f32 %v2073_v38  ;;  %v1766_v8 = vmul.f32 %v11744_v6, %v7660_v57  ;;  %v11746_v34 = vld [vmem:[#allocation37_spill] sm:$0xff]  ;;  %v11747_v41 = vld [vmem:[#allocation96_spill] sm:$0xff]  ;;  %v11748_v38 = vld [vmem:[#allocation38_spill] sm:$0xff] }
 0x1a6   : > { %v1821_v52 = vmul.f32 %v11744_v6, %v7890_v4  ;;  %v2278_v19 = vmul.f32 0.0, %v2224_v56  ;;  %6281 = vpow2.f32 %v8144_v31  ;;  %v1769_v33 = vmul.f32 %v11746_v34, %v11745_v12  ;;  %v8283_v56 = vpop.permute.xlu1 %2635 }
 0x1a7   : > { %v1824_v11 = vmul.f32 %v11746_v34, %v7890_v4  ;;  %v6258_v40 = vpop.eup %6257  ;;  %v2277_v0 = vmul.f32 0.0, %v2223_v20  ;;  %6283 = vpow2.f32 %v8146_v3  ;;  %v1768_v29 = vmul.f32 %v11748_v38, %v11747_v41  ;;  %v8292_v41 = vpop.permute.xlu0 %2633 }
 0x1a8   : > { %v1823_v57 = vmul.f32 %v11748_v38, %v7890_v4  ;;  %v6260_v6 = vpop.eup %6259  ;;  %2819 = vrot.lane.b32.xlu1 %v2278_v19, %s6899_s11  ;;  %v2226_v31 = vmul.f32 %v6258_v40, %v7939_v2  ;;  %6285 = vpow2.f32 %v8149_v5  ;;  %v8285_v12 = vsub.f32 %v1764_v42, %v1819_v25  ;;  %v11749_v2 = vld [vmem:[#allocation97_spill] sm:$0xff]  ;;  %v11750_v40 = vld [vmem:[#allocation39_spill] sm:$0xff] }
 0x1a9   : > { %v8287_v20 = vsub.f32 %v1767_v45, %v1822_v15  ;;  %v6262_v3 = vpop.eup %6261  ;;  %2817 = vrot.lane.b32.xlu0 %v2277_v0, %s6899_s11  ;;  %v2225_v34 = vmul.f32 %v6260_v6, %v7941_v21  ;;  %6287 = vpow2.f32 %v8202_v43  ;;  %v8294_v19 = vsub.f32 %v1766_v8, %v1821_v52 }
 0x1aa   : > { %v1771_v5 = vmul.f32 %v11750_v40, %v11749_v2  ;;  %v6264_v38 = vpop.eup %6263  ;;  %v2280_v42 = vmul.f32 %v2226_v31, %v7108_v61  ;;  %v2228_v25 = vmul.f32 %v6262_v3, %v7969_v36  ;;  %6289 = vpow2.f32 %v8204_v63  ;;  %v11752_v31 = vld [vmem:[#allocation98_spill] sm:$0xff]  ;;  %v11753_v3 = vld [vmem:[#allocation40_spill] sm:$0xff] }
 0x1ab   : > { %v1826_v45 = vmul.f32 %v11750_v40, %v7890_v4  ;;  %v6266_v21 = vpop.eup %6265  ;;  %v2279_v15 = vmul.f32 0.0, %v2225_v34  ;;  %6291 = vpow2.f32 %v8206_v18  ;;  %v8304_v43 = vsub.f32 %v1769_v33, %v1824_v11  ;;  %v8327_v40 = vpop.permute.xlu0 %2637 }
 0x1ac   : > { %v8306_v52 = vsub.f32 %v1768_v29, %v1823_v57  ;;  %v6268_v8 = vpop.eup %6267  ;;  %2823 = vrot.lane.b32.xlu1 %v2280_v42, %s6899_s11  ;;  %v2282_v0 = vmul.f32 %v2228_v25, %v7121_v9  ;;  %6293 = vpow2.f32 %v8208_v54  ;;  %v1927_v36 = vsub.f32 0.0, %v8285_v12  ;;  %v8318_v57 = vpop.permute.xlu1 %2639  ;;  %11754 = vst [vmem:[#allocation73_spill] sm:$0xff] %v8327_v40  ;;  %v11768_v40 = vld [vmem:[#allocation8_spill] sm:$0xff] }
 0x1ad   : > { %v1930_v63 = vsub.f32 0.0, %v8287_v20  ;;  %v6270_v6 = vpop.eup %6269  ;;  %2821 = vrot.lane.b32.xlu0 %v2279_v15, %s6899_s11  ;;  %v2227_v18 = vmul.f32 %v6264_v38, %v7971_v62  ;;  %v2229_v33 = vmul.f32 %v6268_v8, %v8006_v14  ;;  %6295 = vpow2.f32 %v8234_v51  ;;  %11751 = vst [vmem:[#allocation29_spill] sm:$0xff] %v8318_v57 }
 0x1ae   : > { %v1929_v11 = vsub.f32 0.0, %v8294_v19  ;;  %v6272_v29 = vpop.eup %6271  ;;  %6297 = vpow2.f32 %v8237_v53  ;;  %v8321_v54 = vsub.f32 %v1771_v5, %v1826_v45  ;;  %v1770_v34 = vmul.f32 %v11753_v3, %v11752_v31 }
 0x1af   : > { %v1825_v2 = vmul.f32 %v11753_v3, %v7890_v4  ;;  %v6274_v62 = vpop.eup %6273  ;;  %6299 = vpow2.f32 %v8241_v35  ;;  %v11755_v14 = vsub.f32 0.0, %v8239_v1  ;;  %v1932_v38 = vsub.f32 0.0, %v8304_v43 }
 0x1b0   : > { %v1931_v53 = vsub.f32 0.0, %v8306_v52  ;;  %v6276_v5 = vpop.eup %6275  ;;  %2827 = vrot.lane.b32.xlu1 %v2282_v0, %s6899_s11  ;;  %v2230_v42 = vmul.f32 %v6266_v21, %v7976_v37  ;;  %v2232_v25 = vmul.f32 %v6270_v6, %v8008_v46  ;;  %6301 = vpow2.f32 %v8243_v26  ;;  %v11756_v0 = vld [vmem:[#allocation59_spill] sm:$0xff] }
 0x1b1   : > { %v2011_v51 = vmul.f32 1.442695, %v11755_v14  ;;  %v2009_v45 = vmul.f32 1.442695, %v1927_v36  ;;  %v6278_v15 = vpop.eup %6277  ;;  %2825 = vrot.lane.b32.xlu0 %v2227_v18, %s6899_s11  ;;  %v2283_v35 = vmul.f32 %v2229_v33, %v7108_v61  ;;  %v2231_v8 = vmul.f32 %v6272_v29, %v8012_v24  ;;  %v8358_v18 = vpop.permute.xlu1 %2643  ;;  %v11758_v33 = vld [vmem:[#allocation101_spill] sm:$0xff] }
 0x1b2   : > { %6303 = vpow2.f32 %v8245_v28  ;;  %v8342_v31 = vmul.f32 1.442695, %v1930_v63  ;;  %v6280_v3 = vpop.eup %6279  ;;  %v8345_v37 = vmul.f32 1.442695, %v1929_v11  ;;  %v1934_v46 = vsub.f32 0.0, %v8321_v54  ;;  %11757 = vst [vmem:[#allocation30_spill] sm:$0xff] %v8358_v18 }
 0x1b3   : > { %6305 = vpow2.f32 %v8247_v7  ;;  %v8348_v26 = vsub.f32 %v1770_v34, %v1825_v2  ;;  %v6282_v21 = vpop.eup %6281  ;;  %v2234_v36 = vmul.f32 %v6274_v62, %v11756_v0  ;;  %v8352_v6 = vmul.f32 1.442695, %v1932_v38  ;;  %v11759_v11 = vld [vmem:[#allocation41_spill] sm:$0xff]  ;;  %v8364_v62 = vpop.permute.xlu0 %2641  ;;  %v11764_v18 = vld [vmem:[#allocation23_spill] sm:$0xff] }
 0x1b4   : > { %6307 = vpow2.f32 %v8251_v50  ;;  %v8354_v24 = vmul.f32 1.442695, %v1931_v53  ;;  %v6284_v28 = vpop.eup %6283  ;;  %2831 = vrot.lane.b32.xlu1 %v2230_v42, %s6899_s11  ;;  %v2286_v7 = vmul.f32 %v2232_v25, %v7108_v61  ;;  %v2076_v63 = vadd.f32 1.0, %v6282_v21  ;;  %11760 = vst [vmem:[#allocation31_spill] sm:$0xff] %v8364_v62 }
 0x1b5   : > { %6309 = vpow2.f32 %v2011_v51  ;;  %v1773_v29 = vmul.f32 %v11759_v11, %v11758_v33  ;;  %v6286_v34 = vpop.eup %6285  ;;  %2829 = vrot.lane.b32.xlu0 %v2283_v35, %s6899_s11  ;;  %v2285_v50 = vmul.f32 %v2231_v8, %v7121_v9  ;;  %v2075_v2 = vadd.f32 1.0, %v6284_v28  ;;  %v11761_v35 = vld [vmem:[#allocation61_spill] sm:$0xff]  ;;  %v11762_v33 = vld [vmem:[#allocation102_spill] sm:$0xff] }
 0x1b6   : > { %6311 = vpow2.f32 %v2009_v45  ;;  %v1828_v14 = vmul.f32 %v11759_v11, %v7890_v4  ;;  %v6288_v38 = vpop.eup %6287  ;;  %v2078_v53 = vadd.f32 1.0, %v6286_v34  ;;  %v8368_v42 = vmul.f32 1.442695, %v1934_v46  ;;  %v11763_v11 = vld [vmem:[#allocation42_spill] sm:$0xff] }
 0x1b7   : > { %6313 = vrcp.f32 %v2076_v63  ;;  %v1933_v51 = vsub.f32 0.0, %v8348_v26  ;;  %v6290_v25 = vpop.eup %6289  ;;  %v2288_v21 = vmul.f32 %v2234_v36, %v7121_v9  ;;  %v2235_v0 = vmul.f32 %v6280_v3, %v11761_v35  ;;  %v11767_v35 = vld [vmem:[#allocation43_spill] sm:$0xff] }
 0x1b8   : > { %6315 = vrcp.f32 %v2075_v2  ;;  %v2077_v8 = vadd.f32 1.0, %v6288_v38  ;;  %v6292_v28 = vpop.eup %6291  ;;  %2835 = vrot.lane.b32.xlu1 %v2286_v7, %s6899_s11  ;;  %v2080_v45 = vadd.f32 1.0, %v6290_v25  ;;  %v1772_v63 = vmul.f32 %v11763_v11, %v11762_v33  ;;  %v11766_v25 = vld [vmem:[#allocation109_spill] sm:$0xff] }
 0x1b9   : > { %6317 = vrcp.f32 %v2078_v53  ;;  %v1827_v46 = vmul.f32 %v11763_v11, %v7890_v4  ;;  %v6294_v34 = vpop.eup %6293  ;;  %2833 = vrot.lane.b32.xlu0 %v2285_v50, %s6899_s11  ;;  %v2233_v36 = vmul.f32 %v6276_v5, %v11764_v18  ;;  %v2079_v3 = vadd.f32 1.0, %v6292_v28  ;;  %v8382_v53 = vpop.permute.xlu1 %2647 }
 0x1ba   : > { %6319 = vrcp.f32 %v2077_v8  ;;  %v8380_v2 = vsub.f32 %v1773_v29, %v1828_v14  ;;  %v6296_v38 = vpop.eup %6295  ;;  %v2082_v7 = vadd.f32 1.0, %v6294_v34  ;;  %11765 = vst [vmem:[#allocation82_spill] sm:$0xff] %v8382_v53  ;;  %v1775_v33 = vmul.f32 %v11767_v35, %v11766_v25  ;;  %v8389_v18 = vpop.permute.xlu0 %2645 }
 0x1bb   : > { %6321 = vrcp.f32 %v2080_v45  ;;  %v1830_v11 = vmul.f32 %v11767_v35, %v7890_v4  ;;  %v6298_v62 = vpop.eup %6297  ;;  %v2236_v50 = vmul.f32 %v6278_v15, %v11768_v40  ;;  %v2081_v5 = vadd.f32 1.0, %v6296_v38  ;;  %11769 = vst [vmem:[#allocation12_spill] sm:$0xff] %v8389_v18  ;;  %v11770_v15 = vld [vmem:[#allocation110_spill] sm:$0xff]  ;;  %v11779_v18 = vld [vmem:[#allocation47_spill] sm:$0xff] }
 0x1bc   : > { %6323 = vrcp.f32 %v2079_v3  ;;  %v8391_v29 = vmul.f32 1.442695, %v1933_v51  ;;  %v6300_v14 = vpop.eup %6299  ;;  %2839 = vrot.lane.b32.xlu1 %v2288_v21, %s6899_s11  ;;  %v2289_v8 = vmul.f32 %v2235_v0, %v7108_v61  ;;  %v2084_v28 = vadd.f32 1.0, %v6298_v62  ;;  %v11771_v3 = vld [vmem:[#allocation44_spill] sm:$0xff] }
 0x1bd   : > { %6325 = vrcp.f32 %v2082_v7  ;;  %v8395_v45 = vsub.f32 %v1772_v63, %v1827_v46  ;;  %v6302_v34 = vpop.eup %6301  ;;  %2837 = vrot.lane.b32.xlu0 %v2233_v36, %s6899_s11  ;;  %v2083_v40 = vadd.f32 1.0, %v6300_v14  ;;  %v1774_v38 = vmul.f32 %v11771_v3, %v11770_v15  ;;  %v11772_v46 = vld [vmem:[#allocation113_spill] sm:$0xff] }
 0x1be   : > { %6327 = vrcp.f32 %v2081_v5  ;;  %v1829_v51 = vmul.f32 %v11771_v3, %v7890_v4  ;;  %v2086_v21 = vadd.f32 1.0, %v6302_v34  ;;  %v1936_v0 = vsub.f32 0.0, %v8380_v2  ;;  %v11773_v36 = vld [vmem:[#allocation45_spill] sm:$0xff]  ;;  %v11775_v34 = vld [vmem:[#allocation114_spill] sm:$0xff] }
 0x1bf   : > { %v6304_v25 = vpop.eup %6303  ;;  %6329 = vrcp.f32 %v2084_v28  ;;  %v8403_v7 = vsub.f32 %v1775_v33, %v1830_v11  ;;  %v1777_v35 = vmul.f32 %v11773_v36, %v11772_v46  ;;  %v1832_v5 = vmul.f32 %v11773_v36, %v7890_v4  ;;  %v8410_v28 = vpop.permute.xlu1 %2651  ;;  %v11776_v3 = vld [vmem:[#allocation46_spill] sm:$0xff] }
 0x1c0   : > { %v6306_v62 = vpop.eup %6305  ;;  %6331 = vrcp.f32 %v2083_v40  ;;  %v2085_v63 = vadd.f32 1.0, %v6304_v25  ;;  %2843 = vrot.lane.b32.xlu1 %v2236_v50, %s6899_s11  ;;  %11774 = vst [vmem:[#allocation11_spill] sm:$0xff] %v8410_v28  ;;  %v1776_v33 = vmul.f32 %v11776_v3, %v11775_v34  ;;  %v1831_v11 = vmul.f32 %v11776_v3, %v7890_v4  ;;  %v8417_v46 = vpop.permute.xlu0 %2649  ;;  %v11778_v28 = vld [vmem:[#allocation116_spill] sm:$0xff] }
 0x1c1   : > { %v6308_v14 = vpop.eup %6307  ;;  %6333 = vrcp.f32 %v2086_v21  ;;  %v2088_v15 = vadd.f32 1.0, %v6306_v62  ;;  %2841 = vrot.lane.b32.xlu0 %v2289_v8, %s6899_s11  ;;  %11777 = vst [vmem:[#allocation32_spill] sm:$0xff] %v8417_v46  ;;  %v1935_v36 = vsub.f32 0.0, %v8395_v45  ;;  %v8420_v50 = vsub.f32 %v1774_v38, %v1829_v51 }
 0x1c2   : > { %v6310_v40 = vpop.eup %6309  ;;  %6335 = vrcp.f32 %v2085_v63  ;;  %v2087_v25 = vadd.f32 1.0, %v6308_v14  ;;  %v1779_v34 = vmul.f32 %v11779_v18, %v11778_v28  ;;  %v1834_v3 = vmul.f32 %v11779_v18, %v7890_v4 }
 0x1c3   : > { %v6312_v21 = vpop.eup %6311  ;;  %6337 = vrcp.f32 %v2088_v15  ;;  %v2090_v62 = vadd.f32 1.0, %v6310_v40  ;;  %v1938_v63 = vsub.f32 0.0, %v8403_v7  ;;  %v8427_v14 = vsub.f32 %v1777_v35, %v1832_v5  ;;  %v8436_v5 = vpop.permute.xlu1 %2655 }
 0x1c4   : > { %v6314_v53 = vpop.eup %6313  ;;  %6339 = vrcp.f32 %v2087_v25  ;;  %v2089_v8 = vadd.f32 1.0, %v6312_v21  ;;  %v2027_v51 = vmul.f32 1.442695, %v1936_v0  ;;  %v8430_v15 = vsub.f32 %v1776_v33, %v1831_v11  ;;  %v8442_v33 = vpop.permute.xlu0 %2653 }
 0x1c5   : > { %v6316_v46 = vpop.eup %6315  ;;  %v2238_v38 = vmul.f32 %v6314_v53, %v8080_v27  ;;  %6341 = vrcp.f32 %v2090_v62  ;;  %v2025_v57 = vmul.f32 1.442695, %v1935_v36  ;;  %v1937_v18 = vsub.f32 0.0, %v8420_v50  ;;  %v11780_v36 = vld [vmem:[#allocation118_spill] sm:$0xff]  ;;  %v11781_v62 = vld [vmem:[#allocation48_spill] sm:$0xff] }
 0x1c6   : > { %v6318_v40 = vpop.eup %6317  ;;  %v2237_v28 = vmul.f32 %v6316_v46, %v8082_v48  ;;  %6343 = vrcp.f32 %v2089_v8  ;;  %v8439_v27 = vsub.f32 %v1779_v34, %v1834_v3  ;;  %v2031_v48 = vmul.f32 1.442695, %v1938_v63 }
 0x1c7   : > { %v6320_v25 = vpop.eup %6319  ;;  %v2292_v21 = vmul.f32 %v2238_v38, %v7108_v61  ;;  %v2240_v35 = vmul.f32 %v6318_v40, %v8089_v22  ;;  %6345 = vpow2.f32 %v8342_v31  ;;  %v1940_v11 = vsub.f32 0.0, %v8427_v14  ;;  %v11782_v40 = vld [vmem:[#allocation119_spill] sm:$0xff] }
 0x1c8   : > { %v6322_v53 = vpop.eup %6321  ;;  %v2291_v0 = vmul.f32 %v2237_v28, %v7121_v9  ;;  %6347 = vpow2.f32 %v8345_v37  ;;  %v1939_v31 = vsub.f32 0.0, %v8430_v15  ;;  %v1778_v34 = vmul.f32 %v11781_v62, %v11780_v36  ;;  %v11783_v28 = vld [vmem:[#allocation49_spill] sm:$0xff] }
 0x1c9   : > { %v6324_v46 = vpop.eup %6323  ;;  %2847 = vrot.lane.b32.xlu1 %v2292_v21, %s6899_s11  ;;  %v2294_v22 = vmul.f32 %v2240_v35, %v7121_v9  ;;  %6349 = vpow2.f32 %v8352_v6  ;;  %v2239_v37 = vmul.f32 %v6320_v25, %v8122_v10  ;;  %v1833_v63 = vmul.f32 %v11781_v62, %v7890_v4 }
 0x1ca   : > { %v6326_v3 = vpop.eup %6325  ;;  %2845 = vrot.lane.b32.xlu0 %v2291_v0, %s6899_s11  ;;  %v2241_v8 = vmul.f32 %v6324_v46, %v8130_v49  ;;  %6351 = vpow2.f32 %v8354_v24  ;;  %v1942_v6 = vsub.f32 0.0, %v8439_v27  ;;  %v1781_v21 = vmul.f32 %v11783_v28, %v11782_v40  ;;  %v8468_v46 = vpop.permute.xlu1 %2659 }
 0x1cb   : > { %v6328_v38 = vpop.eup %6327  ;;  %6353 = vpow2.f32 %v8368_v42  ;;  %v1836_v35 = vmul.f32 %v11783_v28, %v7890_v4  ;;  %v2244_v10 = vmul.f32 %v6326_v3, %v8132_v39  ;;  %v2029_v49 = vmul.f32 1.442695, %v1937_v18  ;;  %11784 = vst [vmem:[#allocation33_spill] sm:$0xff] %v8468_v46  ;;  %v8475_v18 = vpop.permute.xlu0 %2657 }
 0x1cc   : > { %v6330_v0 = vpop.eup %6329  ;;  %6355 = vpow2.f32 %v8391_v29  ;;  %v2035_v24 = vmul.f32 1.442695, %v1940_v11  ;;  %v2242_v42 = vmul.f32 %v6322_v53, %v8124_v23  ;;  %v2033_v36 = vmul.f32 1.442695, %v1939_v31 }
 0x1cd   : > { %v6332_v25 = vpop.eup %6331  ;;  %2851 = vrot.lane.b32.xlu1 %v2294_v22, %s6899_s11  ;;  %6357 = vpow2.f32 %v2027_v51  ;;  %v8470_v62 = vsub.f32 %v1778_v34, %v1833_v63  ;;  %v2295_v39 = vmul.f32 %v2241_v8, %v7108_v61  ;;  %v2243_v29 = vmul.f32 %v6328_v38, %v8162_v58  ;;  %v8487_v8 = vld [vmem:[%s6997_s6 + $0x10] sm:$0x3]  ;;  %v8573_v63 = vld [vmem:[%s6997_s6 + $0x18] sm:$0xff] }
 0x1ce   : > { %v6334_v40 = vpop.eup %6333  ;;  %2849 = vrot.lane.b32.xlu0 %v2239_v37, %s6899_s11  ;;  %6359 = vpow2.f32 %v2025_v57  ;;  %v8477_v11 = vsub.f32 %v1781_v21, %v1836_v35  ;;  %v2246_v23 = vmul.f32 %v6330_v0, %v8194_v16  ;;  %v2039_v51 = vmul.f32 1.442695, %v1942_v6  ;;  %v8493_v21 = vld [vmem:[%s6997_s6 + $0x8] sm:$0xff]  ;;  %v8498_v0 = vpop.permute.xlu1 %2663 }
 0x1cf   : > { %v6336_v22 = vpop.eup %6335  ;;  %6361 = vpow2.f32 %v2031_v48  ;;  %v1941_v53 = vsub.f32 0.0, %v8470_v62  ;;  %v2298_v34 = vmul.f32 %v2244_v10, %v7108_v61  ;;  %v2297_v38 = vmul.f32 %v2243_v29, %v7121_v9  ;;  %11785 = vst [vmem:[#allocation34_spill] sm:$0xff] %v8498_v0 }
 0x1d0   : > { %v6338_v31 = vpop.eup %6337  ;;  %6363 = vpow2.f32 %v2029_v49  ;;  %v1944_v58 = vsub.f32 0.0, %v8477_v11  ;;  %v2247_v57 = vmul.f32 %v6336_v22, %v8215_v60  ;;  %v2245_v35 = vmul.f32 %v6332_v25, %v8210_v55 }
 0x1d1   : > { %v6340_v3 = vpop.eup %6339  ;;  %2855 = vrot.lane.b32.xlu1 %v2242_v42, %s6899_s11  ;;  %v2250_v37 = vmul.f32 %v6338_v31, %v8217_v32  ;;  %6365 = vpow2.f32 %v2035_v24  ;;  %v2037_v16 = vmul.f32 1.442695, %v1941_v53  ;;  %v2300_v32 = vmul.f32 %v2246_v23, %v7121_v9  ;;  %v8501_v24 = vpop.permute.xlu0 %2661  ;;  %v11787_v42 = vld [vmem:[#allocation120_spill] sm:$0xff]  ;;  %v11789_v53 = vld [vmem:[#allocation127_spill] sm:$0xff] }
 0x1d2   : > { %v6342_v48 = vpop.eup %6341  ;;  %2853 = vrot.lane.b32.xlu0 %v2295_v39, %s6899_s11  ;;  %6367 = vpow2.f32 %v2033_v36  ;;  %v2043_v6 = vmul.f32 1.442695, %v1944_v58  ;;  %v2248_v49 = vmul.f32 %v6334_v40, %v8212_v59  ;;  %11786 = vst [vmem:[#allocation35_spill] sm:$0xff] %v8501_v24  ;;  %v11788_v36 = vld [vmem:[#allocation50_spill] sm:$0xff]  ;;  %v2301_v55 = vmul.f32 %v2247_v57, %v7108_v61  ;;  %v11790_v31 = vld [vmem:[#allocation51_spill] sm:$0xff] }
 0x1d3   : > { %v6344_v28 = vpop.eup %6343  ;;  %6369 = vpow2.f32 %v2039_v51  ;;  %v1780_v39 = vmul.f32 %v11788_v36, %v11787_v42  ;;  %v1835_v29 = vmul.f32 %v11788_v36, %v7890_v4  ;;  %v8510_v25 = vmul.f32 %v2250_v37, %v7108_v61  ;;  %v11791_v42 = vld [vmem:[#allocation129_spill] sm:$0xff]  ;;  %v11792_v36 = vld [vmem:[#allocation52_spill] sm:$0xff] }
 0x1d4   : > { %v6346_v10 = vpop.eup %6345  ;;  %6371 = vpow2.f32 %v2037_v16  ;;  %v2249_v23 = vmul.f32 %v6340_v3, %v8220_v44  ;;  %v1783_v58 = vmul.f32 %v11790_v31, %v11789_v53  ;;  %v1838_v16 = vmul.f32 %v11790_v31, %v7890_v4 }
 0x1d5   : > { %v6348_v22 = vpop.eup %6347  ;;  %2859 = vrot.lane.b32.xlu1 %v2298_v34, %s6899_s11  ;;  %v2092_v59 = vadd.f32 1.0, %v6346_v10  ;;  %6373 = vpow2.f32 %v2043_v6  ;;  %v2252_v57 = vmul.f32 %v6342_v48, %v8239_v1  ;;  %v1782_v44 = vmul.f32 %v11792_v36, %v11791_v42  ;;  %v11793_v6 = vld [vmem:[#allocation53_spill] sm:$0xff]  ;;  %v8526_v1 = vpop.permute.xlu1 %2667 }
 0x1d6   : > { %v6350_v40 = vpop.eup %6349  ;;  %2857 = vrot.lane.b32.xlu0 %v2297_v38, %s6899_s11  ;;  %v2091_v51 = vadd.f32 1.0, %v6348_v22  ;;  %v1837_v38 = vmul.f32 %v11792_v36, %v7890_v4  ;;  %v1785_v22 = vmul.f32 %v11793_v6, %v7849_v30  ;;  %11794 = vst [vmem:[#allocation14_spill] sm:$0xff] %v8526_v1  ;;  %v8528_v48 = vsub.f32 %v1780_v39, %v1835_v29 }
 0x1d7   : > { %v6352_v34 = vpop.eup %6351  ;;  %6375 = vrcp.f32 %v2092_v59  ;;  %v2094_v37 = vadd.f32 1.0, %v6350_v40  ;;  %v1840_v59 = vmul.f32 %v11793_v6, %v7890_v4  ;;  %v8535_v30 = vsub.f32 %v1783_v58, %v1838_v16 }
 0x1d8   : > { %v6354_v3 = vpop.eup %6353  ;;  %6377 = vrcp.f32 %v2091_v51  ;;  %v2093_v10 = vadd.f32 1.0, %v6352_v34  ;;  %v8533_v34 = vpop.permute.xlu0 %2665  ;;  %v2303_v36 = vmul.f32 %v2249_v23, %v7121_v9  ;;  %v8543_v6 = vsub.f32 %v1782_v44, %v1837_v38 }
 0x1d9   : > { %v6356_v53 = vpop.eup %6355  ;;  %2863 = vrot.lane.b32.xlu1 %v2300_v32, %s6899_s11  ;;  %6379 = vrcp.f32 %v2094_v37  ;;  %v2096_v31 = vadd.f32 1.0, %v6354_v3  ;;  %11795 = vst [vmem:[#allocation13_spill] sm:$0xff] %v8533_v34  ;;  %v11796_v32 = vld [vmem:[#allocation54_spill] sm:$0xff]  ;;  %v1943_v16 = vsub.f32 0.0, %v8528_v48  ;;  %v8554_v38 = vpop.permute.xlu1 %2671  ;;  %v326_v60 = vsub.f32 0.0, %v8573_v63 }
 0x1da   : > { %v6358_v40 = vpop.eup %6357  ;;  %2861 = vrot.lane.b32.xlu0 %v2245_v35, %s6899_s11  ;;  %6381 = vrcp.f32 %v2093_v10  ;;  %v2095_v51 = vadd.f32 1.0, %v6356_v53  ;;  %v1784_v37 = vmul.f32 %v11796_v32, %v7854_v17  ;;  %v1839_v29 = vmul.f32 %v11796_v32, %v7890_v4  ;;  %11797 = vst [vmem:[#allocation36_spill] sm:$0xff] %v8554_v38  ;;  %v11805_v38 = vld [vmem:[#allocation57_spill] sm:$0xff] }
 0x1db   : > { %v6360_v42 = vpop.eup %6359  ;;  %6383 = vrcp.f32 %v2096_v31  ;;  %v2098_v39 = vadd.f32 1.0, %v6358_v40  ;;  %v2251_v35 = vmul.f32 %v6344_v28, %v8285_v12  ;;  %v8545_v53 = vsub.f32 %v1785_v22, %v1840_v59 }
 0x1dc   : > { %v6362_v3 = vpop.eup %6361  ;;  %v2097_v10 = vadd.f32 1.0, %v6360_v42  ;;  %v2306_v17 = vmul.f32 %v2252_v57, %v7121_v9  ;;  %6385 = vrcp.f32 %v2095_v51  ;;  %v1946_v12 = vsub.f32 0.0, %v8535_v30  ;;  %v11798_v57 = vld [vmem:[#allocation55_spill] sm:$0xff]  ;;  %v8560_v32 = vpop.permute.xlu0 %2669 }
 0x1dd   : > { %v6364_v58 = vpop.eup %6363  ;;  %2867 = vrot.lane.b32.xlu1 %v2248_v49, %s6899_s11  ;;  %v2100_v23 = vadd.f32 1.0, %v6362_v3  ;;  %v8552_v28 = vsub.f32 %v1784_v37, %v1839_v29  ;;  %v1787_v22 = vmul.f32 %v11798_v57, %v7874_v13  ;;  %v1842_v59 = vmul.f32 %v11798_v57, %v7890_v4  ;;  %11799 = vst [vmem:[#allocation93_spill] sm:$0xff] %v8560_v32 }
 0x1de   : > { %v6366_v31 = vpop.eup %6365  ;;  %2865 = vrot.lane.b32.xlu0 %v2301_v55, %s6899_s11  ;;  %6387 = vrcp.f32 %v2097_v10  ;;  %v2099_v40 = vadd.f32 1.0, %v6364_v58  ;;  %v1945_v37 = vsub.f32 0.0, %v8543_v6  ;;  %v1948_v42 = vsub.f32 0.0, %v8545_v53 }
 0x1df   : > { %v6368_v44 = vpop.eup %6367  ;;  %6389 = vrcp.f32 %v2098_v39  ;;  %v2102_v49 = vadd.f32 1.0, %v6366_v31  ;;  %v2041_v13 = vmul.f32 1.442695, %v1943_v16  ;;  %v1947_v3 = vsub.f32 0.0, %v8552_v28  ;;  %v11801_v31 = vld [vmem:[#allocation56_spill] sm:$0xff] }
 0x1e0   : > { %v6370_v51 = vpop.eup %6369  ;;  %6391 = vrcp.f32 %v2100_v23  ;;  %v2101_v55 = vadd.f32 1.0, %v6368_v44  ;;  %v8568_v58 = vsub.f32 %v1787_v22, %v1842_v59  ;;  %v11800_v23 = vld [vmem:[#allocation133_spill] sm:$0xff]  ;;  %v1841_v16 = vmul.f32 %v11801_v31, %v7890_v4 }
 0x1e1   : > { %v6372_v39 = vpop.eup %6371  ;;  %2871 = vrot.lane.b32.xlu1 %v8510_v25, %s6899_s11  ;;  %6393 = vrcp.f32 %v2099_v40  ;;  %v2104_v29 = vadd.f32 1.0, %v6370_v51  ;;  %v1786_v44 = vmul.f32 %v11801_v31, %v11800_v23  ;;  %v2047_v25 = vmul.f32 1.442695, %v1946_v12  ;;  %v11804_v31 = vld [vmem:[#allocation134_spill] sm:$0xff] }
 0x1e2   : > { %2869 = vrot.lane.b32.xlu0 %v2303_v36, %s6899_s11  ;;  %6395 = vrcp.f32 %v2102_v49  ;;  %v2103_v10 = vadd.f32 1.0, %v6372_v39  ;;  %v6374_v57 = vpop.eup %6373  ;;  %v2045_v36 = vmul.f32 1.442695, %v1945_v37  ;;  %v2051_v49 = vmul.f32 1.442695, %v1948_v42  ;;  %v8581_v39 = vpop.permute.xlu1 %2675 }
 0x1e3   : > { %6397 = vrcp.f32 %v2101_v55  ;;  %v1950_v22 = vsub.f32 0.0, %v8568_v58  ;;  %11802 = vst [vmem:[#allocation37_spill] sm:$0xff] %v8581_v39  ;;  %v2049_v23 = vmul.f32 1.442695, %v1947_v3  ;;  %v8583_v55 = vsub.f32 %v1786_v44, %v1841_v16  ;;  %v8587_v37 = vpop.permute.xlu0 %2673 }
 0x1e4   : > { %v6376_v40 = vpop.eup %6375  ;;  %6399 = vrcp.f32 %v2104_v29  ;;  %11803 = vst [vmem:[#allocation96_spill] sm:$0xff] %v8587_v37 }
 0x1e5   : > { %v6378_v59 = vpop.eup %6377  ;;  %2875 = vrot.lane.b32.xlu1 %v2306_v17, %s6899_s11  ;;  %v2254_v51 = vmul.f32 %v6376_v40, %v8287_v20  ;;  %6401 = vrcp.f32 %v2103_v10  ;;  %v2055_v42 = vmul.f32 1.442695, %v1950_v22  ;;  %v1789_v17 = vmul.f32 %v11805_v38, %v11804_v31  ;;  %v8608_v31 = vld [vmem:[%s6997_s6 + $0x28] sm:$0x3] }
 0x1e6   : > { %v6380_v12 = vpop.eup %6379  ;;  %2873 = vrot.lane.b32.xlu0 %v2251_v35, %s6899_s11  ;;  %v2253_v29 = vmul.f32 %v6378_v59, %v8294_v19  ;;  %6403 = vpow2.f32 %v2041_v13  ;;  %v1949_v3 = vsub.f32 0.0, %v8583_v55  ;;  %v1844_v10 = vmul.f32 %v11805_v38, %v7890_v4  ;;  %v11806_v35 = vld [vmem:[#allocation16_spill] sm:$0xff] }
 0x1e7   : > { %v6382_v32 = vpop.eup %6381  ;;  %v2256_v20 = vmul.f32 %v6380_v12, %v8304_v43  ;;  %6405 = vpow2.f32 %v2047_v25  ;;  %v492_v16 = vadd.f32 1.0, %v11806_v35  ;;  %v2106_v25 = vadd.f32 1.0, %v6374_v57  ;;  %v11807_v12 = vld [vmem:[#allocation135_spill] sm:$0xff]  ;;  %v8611_v57 = vpop.permute.xlu1 %2679 }
 0x1e8   : > { %v6384_v44 = vpop.eup %6383  ;;  %v2307_v19 = vmul.f32 %v2253_v29, %v7108_v61  ;;  %v2255_v13 = vmul.f32 %v6382_v32, %v8306_v52  ;;  %6407 = vpow2.f32 %v2045_v36  ;;  %v2053_v59 = vmul.f32 1.442695, %v1949_v3  ;;  %v11808_v29 = vld [vmem:[#allocation58_spill] sm:$0xff]  ;;  %11810 = vst [vmem:[#allocation38_spill] sm:$0xff] %v8611_v57  ;;  %v8617_v35 = vpop.permute.xlu0 %2677 }
 0x1e9   : > { %2879 = vrot.lane.b32.xlu1 %v2254_v51, %s6899_s11  ;;  %v2310_v40 = vmul.f32 %v2256_v20, %v7108_v61  ;;  %v2258_v43 = vmul.f32 %v6384_v44, %v8321_v54  ;;  %6409 = vpow2.f32 %v2051_v49  ;;  %v6386_v22 = vpop.eup %6385  ;;  %v1788_v52 = vmul.f32 %v11808_v29, %v11807_v12  ;;  %11812 = vst [vmem:[#allocation97_spill] sm:$0xff] %v8617_v35  ;;  %v8622_v12 = vld [vmem:[%s6997_s6 + $0x30] sm:$0xff] }
 0x1ea   : > { %2877 = vrot.lane.b32.xlu0 %v2307_v19, %s6899_s11  ;;  %v2309_v38 = vmul.f32 %v2255_v13, %v7121_v9  ;;  %6411 = vpow2.f32 %v2049_v23  ;;  %v11809_v36 = vsub.f32 0.0, %v8493_v21  ;;  %v328_v54 = vsub.f32 0.0, %v8608_v31 }
 0x1eb   : > { %v6388_v32 = vpop.eup %6387  ;;  %6413 = vpow2.f32 %v2055_v42  ;;  %v8613_v49 = vsub.f32 %v1789_v17, %v1844_v10  ;;  %v11811_v23 = vsub.f32 0.0, %v8487_v8  ;;  %v383_v44 = vmul.f32 1.442695, %v326_v60 }
 0x1ec   : > { %v379_v51 = vmul.f32 1.442695, %v11809_v36  ;;  %v6390_v20 = vpop.eup %6389  ;;  %6415 = vpow2.f32 %v2053_v59  ;;  %v1843_v19 = vmul.f32 %v11808_v29, %v7890_v4  ;;  %v329_v36 = vsub.f32 0.0, %v8622_v12 }
 0x1ed   : > { %v381_v3 = vmul.f32 1.442695, %v11811_v23  ;;  %v6392_v13 = vpop.eup %6391  ;;  %2883 = vrot.lane.b32.xlu1 %v2310_v40, %s6899_s11  ;;  %v2312_v42 = vmul.f32 %v2258_v43, %v7121_v9  ;;  %6417 = vrcp.f32 %v2106_v25  ;;  %v1952_v17 = vsub.f32 0.0, %v8613_v49 }
 0x1ee   : > { %v6394_v10 = vpop.eup %6393  ;;  %6419 = vrcp.f32 %v492_v16  ;;  %2881 = vrot.lane.b32.xlu0 %v2309_v38, %s6899_s11  ;;  %v2257_v60 = vmul.f32 %v6386_v22, %v8348_v26  ;;  %v2259_v4 = vmul.f32 %v6388_v32, %v8395_v45  ;;  %v8631_v59 = vsub.f32 %v1788_v52, %v1843_v19  ;;  %v8639_v45 = vpop.permute.xlu1 %2683 }
 0x1ef   : > { %v6396_v29 = vpop.eup %6395  ;;  %6421 = vpow2.f32 %v379_v51  ;;  %v387_v23 = vmul.f32 1.442695, %v328_v54  ;;  %v2059_v57 = vmul.f32 1.442695, %v1952_v17  ;;  %v389_v35 = vmul.f32 1.442695, %v329_v36  ;;  %v8644_v32 = vpop.permute.xlu0 %2681 }
 0x1f0   : > { %v6398_v40 = vpop.eup %6397  ;;  %6423 = vpow2.f32 %v381_v3  ;;  %v1951_v43 = vsub.f32 0.0, %v8631_v59  ;;  %v2260_v16 = vmul.f32 %v6390_v20, %v8380_v2  ;;  %v2262_v26 = vmul.f32 %v6392_v13, %v8403_v7  ;;  %11813 = vst [vmem:[#allocation39_spill] sm:$0xff] %v8639_v45  ;;  %11814 = vst [vmem:[#allocation98_spill] sm:$0xff] %v8644_v32  ;;  %v8656_v17 = vld [vmem:[%s6997_s6 + $0x40] sm:$0x3] }
 0x1f1   : > { %v8634_v25 = vpop.eup %6399  ;;  %2887 = vrot.lane.b32.xlu1 %v2312_v42, %s6899_s11  ;;  %6425 = vpow2.f32 %v2059_v57  ;;  %v2313_v38 = vmul.f32 %v2259_v4, %v7108_v61  ;;  %v2261_v52 = vmul.f32 %v6394_v10, %v8420_v50  ;;  %v2264_v3 = vmul.f32 %v6396_v29, %v8427_v14  ;;  %v8652_v42 = vld [vmem:[%s6997_s6 + $0x48] sm:$0xff]  ;;  %v11816_v29 = vld [vmem:[#allocation15_spill] sm:$0xff] }
 0x1f2   : > { %v6402_v22 = vpop.eup %6401  ;;  %6427 = vpow2.f32 %v383_v44  ;;  %2885 = vrot.lane.b32.xlu0 %v2257_v60, %s6899_s11  ;;  %v2057_v51 = vmul.f32 1.442695, %v1951_v43  ;;  %v2316_v57 = vmul.f32 %v2262_v26, %v7108_v61  ;;  %v331_v10 = vsub.f32 0.0, %v8656_v17  ;;  %v8659_v60 = vpop.permute.xlu1 %2687  ;;  %v8663_v43 = vld [vmem:[%s6997_s6 + $0x58] sm:$0x3] }
 0x1f3   : > { %v6404_v54 = vpop.eup %6403  ;;  %6429 = vpow2.f32 %v387_v23  ;;  %v2315_v19 = vmul.f32 %v2261_v52, %v7121_v9  ;;  %11815 = vst [vmem:[#allocation40_spill] sm:$0xff] %v8659_v60  ;;  %v489_v23 = vadd.f32 1.0, %v11816_v29  ;;  %v8666_v26 = vpop.permute.xlu0 %2685  ;;  %v8730_v60 = vld [vmem:[%s6997_s6 + $0x70] sm:$0x3] }
 0x1f4   : > { %v6406_v2 = vpop.eup %6405  ;;  %v2105_v20 = vadd.f32 1.0, %v6404_v54  ;;  %6431 = vpow2.f32 %v2057_v51  ;;  %11817 = vst [vmem:[#allocation59_spill] sm:$0xff] %v8666_v26  ;;  %v11818_v51 = vld [vmem:[#allocation25_spill] sm:$0xff]  ;;  %v8735_v26 = vld [vmem:[%s6997_s6 + $0x88] sm:$0x3] }
 0x1f5   : > { %v6408_v7 = vpop.eup %6407  ;;  %6433 = vpow2.f32 %v389_v35  ;;  %2891 = vrot.lane.b32.xlu1 %v2260_v16, %s6899_s11  ;;  %v2108_v44 = vadd.f32 1.0, %v6406_v2  ;;  %v332_v35 = vsub.f32 0.0, %v8652_v42  ;;  %v334_v16 = vsub.f32 0.0, %v8663_v43 }
 0x1f6   : > { %v6410_v50 = vpop.eup %6409  ;;  %2889 = vrot.lane.b32.xlu0 %v2313_v38, %s6899_s11  ;;  %6435 = vrcp.f32 %v2105_v20  ;;  %v2107_v13 = vadd.f32 1.0, %v6408_v7  ;;  %v485_v54 = vadd.f32 1.0, %v11818_v51  ;;  %v2318_v2 = vmul.f32 %v2264_v3, %v7121_v9 }
 0x1f7   : > { %v6412_v36 = vpop.eup %6411  ;;  %6437 = vrcp.f32 %v2108_v44  ;;  %v2110_v14 = vadd.f32 1.0, %v6410_v50  ;;  %v2263_v44 = vmul.f32 %v6398_v40, %v8430_v15  ;;  %v2265_v50 = vmul.f32 %v6402_v22, %v8470_v62  ;;  %v8680_v40 = vpop.permute.xlu1 %2691 }
 0x1f8   : > { %v6414_v4 = vpop.eup %6413  ;;  %6439 = vrcp.f32 %v2107_v13  ;;  %v2109_v38 = vadd.f32 1.0, %v6412_v36  ;;  %v393_v36 = vmul.f32 1.442695, %v331_v10  ;;  %v2266_v15 = vmul.f32 %v8634_v25, %v8439_v27  ;;  %11819 = vst [vmem:[#allocation101_spill] sm:$0xff] %v8680_v40  ;;  %v8683_v10 = vld [vmem:[%s6997_s6 + $0x60] sm:$0xff]  ;;  %v8703_v40 = vld [vmem:[%s6997_s6 + $0xb0] sm:$0xff] }
 0x1f9   : > { %v6416_v52 = vpop.eup %6415  ;;  %2895 = vrot.lane.b32.xlu1 %v2316_v57, %s6899_s11  ;;  %6441 = vrcp.f32 %v2110_v14  ;;  %v2112_v20 = vadd.f32 1.0, %v6414_v4  ;;  %v395_v57 = vmul.f32 1.442695, %v332_v35  ;;  %v335_v35 = vsub.f32 0.0, %v8683_v10  ;;  %v8688_v4 = vpop.permute.xlu0 %2689  ;;  %v8691_v27 = vld [vmem:[%s6997_s6 + $0x80] sm:$0xff] }
 0x1fa   : > { %v6418_v7 = vpop.eup %6417  ;;  %2893 = vrot.lane.b32.xlu0 %v2315_v19, %s6899_s11  ;;  %6443 = vrcp.f32 %v2109_v38  ;;  %v2111_v29 = vadd.f32 1.0, %v6416_v52  ;;  %v399_v19 = vmul.f32 1.442695, %v334_v16  ;;  %v2319_v14 = vmul.f32 %v2265_v50, %v7108_v61  ;;  %11820 = vst [vmem:[#allocation41_spill] sm:$0xff] %v8688_v4  ;;  %v8695_v16 = vld [vmem:[%s6997_s6 + $0x98] sm:$0xff] }
 0x1fb   : > { %v8674_v13 = vpop.eup %6419  ;;  %6445 = vrcp.f32 %v2112_v20  ;;  %v2268_v62 = vmul.f32 %v6418_v7, %v8477_v11  ;;  %v339_v11 = vsub.f32 0.0, %v8691_v27  ;;  %v11821_v20 = vld [vmem:[#allocation21_spill] sm:$0xff] }
 0x1fc   : > { %v6422_v51 = vpop.eup %6421  ;;  %6447 = vrcp.f32 %v2111_v29  ;;  %v498_v7 = vadd.f32 1.0, %v11821_v20  ;;  %v401_v29 = vmul.f32 1.442695, %v335_v35 }
 0x1fd   : > { %v6424_v3 = vpop.eup %6423  ;;  %6449 = vrcp.f32 %v489_v23  ;;  %2899 = vrot.lane.b32.xlu1 %v2318_v2, %s6899_s11  ;;  %v486_v25 = vadd.f32 1.0, %v6422_v51 }
 0x1fe   : > { %v6426_v22 = vpop.eup %6425  ;;  %6451 = vrcp.f32 %v485_v54  ;;  %2897 = vrot.lane.b32.xlu0 %v2263_v44, %s6899_s11  ;;  %v342_v54 = vsub.f32 0.0, %v8695_v16  ;;  %v2322_v44 = vmul.f32 %v2268_v62, %v7108_v61  ;;  %v487_v4 = vadd.f32 1.0, %v6424_v3  ;;  %v8715_v3 = vld [vmem:[%s6997_s6 + $0xc8] sm:$0xff] }
 0x1ff   : > { %v6428_v23 = vpop.eup %6427  ;;  %6453 = vpow2.f32 %v393_v36  ;;  %v2114_v38 = vadd.f32 1.0, %v6426_v22  ;;  %v409_v22 = vmul.f32 1.442695, %v339_v11 }
 0x200   : > { %v6430_v52 = vpop.eup %6429  ;;  %6455 = vpow2.f32 %v395_v57  ;;  %v345_v57 = vsub.f32 0.0, %v8703_v40 }
 0x201   : > { %v6432_v2 = vpop.eup %6431  ;;  %2903 = vrot.lane.b32.xlu1 %v2266_v15, %s6899_s11  ;;  %6457 = vrcp.f32 %v2114_v38  ;;  %v8706_v15 = vpop.permute.xlu1 %2695  ;;  %v8708_v38 = vmul.f32 1.442695, %v342_v54 }
 0x202   : > { %v6434_v50 = vpop.eup %6433  ;;  %6459 = vpow2.f32 %v399_v19  ;;  %2901 = vrot.lane.b32.xlu0 %v2319_v14, %s6899_s11  ;;  %v2113_v36 = vadd.f32 1.0, %v6432_v2  ;;  %11822 = vst [vmem:[#allocation61_spill] sm:$0xff] %v8706_v15  ;;  %v488_v19 = vadd.f32 1.0, %v6428_v23  ;;  %v8711_v14 = vpop.permute.xlu0 %2693  ;;  %v11824_v2 = vld [vmem:[#allocation7_spill] sm:$0xff]  ;;  %v8746_v1 = vmul.f32 1.442695, %v345_v57 }
 0x203   : > { %v6436_v51 = vpop.eup %6435  ;;  %6461 = vrcp.f32 %v486_v25  ;;  %11823 = vst [vmem:[#allocation102_spill] sm:$0xff] %v8711_v14  ;;  %v495_v20 = vadd.f32 1.0, %v11824_v2  ;;  %v348_v25 = vsub.f32 0.0, %v8715_v3  ;;  %v8726_v2 = vld [vmem:[%s6997_s6 + $0x78] sm:$0xff]  ;;  %v491_v45 = vadd.f32 1.0, %v6434_v50 }
 0x204   : > { %v6438_v62 = vpop.eup %6437  ;;  %v2267_v35 = vmul.f32 %v6436_v51, %v8528_v48  ;;  %6463 = vrcp.f32 %v2113_v36  ;;  %v8721_v48 = vld [vmem:[%s6997_s6 + $0xe0] sm:$0xff]  ;;  %v490_v51 = vadd.f32 1.0, %v6430_v52  ;;  %v338_v14 = vsub.f32 0.0, %v8726_v2 }
 0x205   : > { %v6440_v11 = vpop.eup %6439  ;;  %6465 = vrcp.f32 %v498_v7  ;;  %2907 = vrot.lane.b32.xlu1 %v2322_v44, %s6899_s11  ;;  %v2270_v54 = vmul.f32 %v6438_v62, %v8535_v30  ;;  %v351_v36 = vsub.f32 0.0, %v8721_v48  ;;  %v337_v30 = vsub.f32 0.0, %v8730_v60  ;;  %v8744_v32 = vpop.permute.xlu1 %2699 }
 0x206   : > { %v6442_v23 = vpop.eup %6441  ;;  %6467 = vpow2.f32 %v401_v29  ;;  %v2321_v7 = vmul.f32 %v2267_v35, %v7121_v9  ;;  %v340_v52 = vsub.f32 0.0, %v8735_v26  ;;  %11825 = vst [vmem:[#allocation42_spill] sm:$0xff] %v8744_v32  ;;  %v427_v37 = vmul.f32 1.442695, %v348_v25  ;;  %v8789_v32 = vld [vmem:[%s6997_s6 + $0xc0] sm:$0xff] }
 0x207   : > { %v6444_v15 = vpop.eup %6443  ;;  %6469 = vrcp.f32 %v487_v4  ;;  %v2324_v44 = vmul.f32 %v2270_v54, %v7121_v9  ;;  %v2269_v4 = vmul.f32 %v6440_v11, %v8543_v6  ;;  %v2272_v54 = vmul.f32 %v6442_v23, %v8545_v53 }
 0x208   : > { %v6446_v62 = vpop.eup %6445  ;;  %6471 = vrcp.f32 %v488_v19  ;;  %2905 = vrot.lane.b32.xlu0 %v2321_v7, %s6899_s11  ;;  %v2271_v29 = vmul.f32 %v6444_v15, %v8552_v28  ;;  %v8749_v7 = vld [vmem:[%s6997_s6 + $0x90] sm:$0xff]  ;;  %v8752_v28 = vpop.permute.xlu0 %2697  ;;  %v8756_v53 = vmul.f32 1.442695, %v351_v36  ;;  %v8759_v11 = vmul.f32 0.7310586, %v7108_v61 }
 0x209   : > { %v6448_v35 = vpop.eup %6447  ;;  %6473 = vrcp.f32 %v495_v20  ;;  %2911 = vrot.lane.b32.xlu1 %v2324_v44, %s6899_s11  ;;  %v2274_v19 = vmul.f32 %v6446_v62, %v8568_v58  ;;  %v341_v6 = vsub.f32 0.0, %v8749_v7  ;;  %11826 = vst [vmem:[#allocation23_spill] sm:$0xff] %v8752_v28  ;;  %v405_v58 = vmul.f32 1.442695, %v337_v30  ;;  %v8772_v62 = vld [vmem:[%s6997_s6 + $0xa8] sm:$0xff] }
 0x20a   : > { %v6450_v39 = vpop.eup %6449  ;;  %6475 = vrcp.f32 %v490_v51  ;;  %v8762_v57 = vmul.f32 0.7310586, %v7121_v9  ;;  %v2325_v20 = vmul.f32 %v2271_v29, %v7108_v61  ;;  %v2273_v25 = vmul.f32 %v6448_v35, %v8583_v55  ;;  %v8776_v55 = vld [vmem:[%s6997_s6 + $0xa0] sm:$0x3]  ;;  %v8784_v35 = vpop.permute.xlu1 %2703 }
 0x20b   : > { %v8754_v50 = vpop.eup %6451  ;;  %6477 = vpow2.f32 %v409_v22  ;;  %v407_v22 = vmul.f32 1.442695, %v338_v14  ;;  %v411_v36 = vmul.f32 1.442695, %v340_v52  ;;  %v2328_v51 = vmul.f32 0.0, %v2274_v19  ;;  %11827 = vst [vmem:[#allocation109_spill] sm:$0xff] %v8784_v35 }
 0x20c   : > { %v6454_v15 = vpop.eup %6453  ;;  %2909 = vrot.lane.b32.xlu0 %v2269_v4, %s6899_s11  ;;  %6479 = vrcp.f32 %v491_v45  ;;  %v8769_v44 = vmul.f32 1.442695, %v341_v6  ;;  %v344_v61 = vsub.f32 0.0, %v8772_v62  ;;  %v343_v45 = vsub.f32 0.0, %v8776_v55  ;;  %v8780_v4 = vld [vmem:[%s6997_s6 + $0xb8] sm:$0x3]  ;;  %v8794_v28 = vpop.permute.xlu0 %2701 }
 0x20d   : > { %v6456_v23 = vpop.eup %6455  ;;  %2915 = vrot.lane.b32.xlu1 %v2272_v54, %s6899_s11  ;;  %6481 = vpow2.f32 %v8708_v38  ;;  %v493_v52 = vadd.f32 1.0, %v6454_v15  ;;  %v346_v29 = vsub.f32 0.0, %v8780_v4  ;;  %v6803_v19 = vld [vmem:[%s6997_s6 + $0x38] sm:$0xff]  ;;  %v347_v15 = vsub.f32 0.0, %v8789_v32  ;;  %11828 = vst [vmem:[#allocation43_spill] sm:$0xff] %v8794_v28 }
 0x20e   : > { %v6458_v30 = vpop.eup %6457  ;;  %6483 = vpow2.f32 %v405_v58  ;;  %v654_v6 = vmul.f32 %v6803_v19, %v8674_v13  ;;  %v2327_v58 = vmul.f32 %v2273_v25, %v7121_v9  ;;  %v6806_v19 = vld [vmem:[%s6997_s6 + $0x20] sm:$0xff]  ;;  %v8807_v28 = vld [vmem:[%s6997_s6 + $0xd0] sm:$0x3] }
 0x20f   : > { %v6460_v14 = vpop.eup %6459  ;;  %v2276_v38 = vmul.f32 %v6458_v30, %v8613_v49  ;;  %6485 = vpow2.f32 %v427_v37  ;;  %v494_v49 = vadd.f32 1.0, %v6456_v23  ;;  %v8797_v30 = vld [vmem:[%s6997_s6 + $0xd8] sm:$0xff]  ;;  %v651_v0 = vmul.f32 %v6806_v19, %v6450_v39  ;;  %v6808_v39 = vld [vmem:[%s6997_s6] sm:$0xff] }
 0x210   : > { %v6462_v54 = vpop.eup %6461  ;;  %2913 = vrot.lane.b32.xlu0 %v2325_v20, %s6899_s11  ;;  %6487 = vpow2.f32 %v407_v22  ;;  %v350_v35 = vsub.f32 0.0, %v8797_v30  ;;  %v496_v20 = vadd.f32 1.0, %v6460_v14  ;;  %v8804_v22 = vmul.f32 1.442695, %v344_v61 }
 0x211   : > { %v6464_v34 = vpop.eup %6463  ;;  %2919 = vrot.lane.b32.xlu1 %v2328_v51, %s6899_s11  ;;  %v2330_v37 = vmul.f32 0.0, %v2276_v38  ;;  %6489 = vpow2.f32 %v411_v36  ;;  %v648_v23 = vmul.f32 %v8493_v21, %v6462_v54  ;;  %v349_v24 = vsub.f32 0.0, %v8807_v28 }
 0x212   : > { %v6466_v13 = vpop.eup %6465  ;;  %v2275_v9 = vmul.f32 %v6464_v34, %v8631_v59  ;;  %6491 = vrcp.f32 %v493_v52  ;;  %v2987_v38 = vsel %vm2979_vm2, %v654_v6, 0.7310586  ;;  %v647_v36 = vmul.f32 %v6808_v39, %v8754_v50  ;;  %v8818_v52 = vpop.permute.xlu1 %2707 }
 0x213   : > { %v6468_v25 = vpop.eup %6467  ;;  %6493 = vpow2.f32 %v8746_v1  ;;  %v417_v21 = vmul.f32 1.442695, %v343_v45  ;;  %v423_v61 = vmul.f32 1.442695, %v346_v29  ;;  %v8815_v14 = vmul.f32 1.442695, %v347_v15 }
 0x214   : > { %v6470_v51 = vpop.eup %6469  ;;  %2917 = vrot.lane.b32.xlu0 %v2327_v58, %s6899_s11  ;;  %v2329_v34 = vmul.f32 0.0, %v2275_v9  ;;  %6495 = vrcp.f32 %v494_v49  ;;  %11829 = vst [vmem:[#allocation8_spill] sm:$0xff] %v8818_v52  ;;  %v2984_v6 = vsel %vm2979_vm2, %v651_v0, 0.7310586  ;;  %v497_v1 = vadd.f32 1.0, %v6468_v25  ;;  %v8823_v58 = vpop.permute.xlu0 %2705  ;;  %v11831_v49 = vld [vmem:[#allocation63_spill] sm:$0xff] }
 0x215   : > { %v6472_v59 = vpop.eup %6471  ;;  %2923 = vrot.lane.b32.xlu1 %v2330_v37, %s6899_s11  ;;  %6497 = vrcp.f32 %v496_v20  ;;  %v8821_v50 = vmul.f32 1.442695, %v350_v35  ;;  %11830 = vst [vmem:[#allocation110_spill] sm:$0xff] %v8823_v58  ;;  %v8827_v45 = vsel %vm3034_vm3, %v2987_v38, %v11831_v49  ;;  %v2981_v29 = vsel %vm2979_vm2, %v648_v23, 0.0  ;;  %v11832_v9 = vld [vmem:[#allocation64_spill] sm:$0xff]  ;;  %v6809_v38 = vld [vmem:[%s6997_s6 + $0x68] sm:$0xff] }
 0x216   : > { %v6474_v54 = vpop.eup %6473  ;;  %6499 = vpow2.f32 %v8769_v44  ;;  %v8831_v15 = vmul.f32 1.442695, %v349_v24  ;;  %v649_v37 = vmul.f32 %v8487_v8, %v6470_v51  ;;  %v2980_v35 = vsel %vm2979_vm2, %v647_v36, 0.0  ;;  %v6810_v44 = vld [vmem:[%s6997_s6 + $0x50] sm:$0xff]  ;;  %v11833_v51 = vld [vmem:[#allocation81_spill] sm:$0xff] }
 0x217   : > { %v6476_v19 = vpop.eup %6475  ;;  %v650_v20 = vmul.f32 %v8573_v63, %v6472_v59  ;;  %v8839_v25 = vsel %vm3034_vm3, %v2984_v6, %v11832_v9  ;;  %v8842_v23 = vmul.f32 %v6809_v38, %v6466_v13  ;;  %6501 = vpow2.f32 %v8756_v53  ;;  %v11834_v59 = vld [vmem:[#allocation79_spill] sm:$0xff]  ;;  %v11835_v13 = vld [vmem:[#allocation5_spill] sm:$0xff] }
 0x218   : > { %v6478_v0 = vpop.eup %6477  ;;  %2921 = vrot.lane.b32.xlu0 %v2329_v34, %s6899_s11  ;;  %v657_v8 = vmul.f32 %v6810_v44, %v6474_v54  ;;  %v3036_v39 = vsel %vm3034_vm3, %v2981_v29, %v11833_v51  ;;  %v652_v63 = vmul.f32 %v8608_v31, %v6476_v19  ;;  %6503 = vrcp.f32 %v497_v1  ;;  %v11836_v29 = vld [vmem:[#allocation20_spill] sm:$0xff] }
 0x219   : > { %v6480_v24 = vpop.eup %6479  ;;  %v501_v34 = vadd.f32 1.0, %v6478_v0  ;;  %v3035_v6 = vsel %vm3034_vm3, %v2980_v35, %v11834_v59  ;;  %6505 = vpow2.f32 %v417_v21  ;;  %v3091_v49 = vsel %vm3089_vm4, %v3036_v39, %v11835_v13 }
 0x21a   : > { %v6482_v36 = vpop.eup %6481  ;;  %v2820_v53 = vpop.permute.xlu1 %2819  ;;  %v2982_v38 = vsel %vm2979_vm2, %v649_v37, 0.0  ;;  %v2983_v54 = vsel %vm2979_vm2, %v650_v20, %v8759_v11  ;;  %v3090_v31 = vsel %vm3089_vm4, %v3035_v6, %v11836_v29  ;;  %v653_v21 = vmul.f32 %v8622_v12, %v6480_v24  ;;  %v11837_v12 = vld [vmem:[#allocation78_spill] sm:$0xff]  ;;  %v11838_v29 = vld [vmem:[#allocation80_spill] sm:$0xff] }
 0x21b   : > { %v6484_v9 = vpop.eup %6483  ;;  %v8859_v1 = vsel %vm3144_vm5, %v3091_v49, %v2820_v53  ;;  %v2818_v19 = vpop.permute.xlu0 %2817  ;;  %v8869_v20 = vsel %vm2979_vm2, %v657_v8, 0.7310586  ;;  %v2985_v51 = vsel %vm2979_vm2, %v652_v63, %v8762_v57  ;;  %6507 = vpow2.f32 %v8804_v22 }
 0x21c   : > { %v8861_v0 = vpop.eup %6485  ;;  %v3249_v35 = vrot.slane %v8859_v1, 1  ;;  %v8866_v44 = vsel %vm3144_vm5, %v3090_v31, %v2818_v19  ;;  %v504_v6 = vadd.f32 1.0, %v6482_v36  ;;  %v3037_v24 = vsel %vm3034_vm3, %v2982_v38, %v11837_v12  ;;  %v11839_v31 = vld [vmem:[#allocation60_spill] sm:$0xff]  ;;  %v11840_v36 = vld [vmem:[#allocation83_spill] sm:$0xff] }
 0x21d   : > { %v6488_v37 = vpop.eup %6487  ;;  %v3248_v39 = vrot.slane %v8866_v44, 1  ;;  %v499_v13 = vadd.f32 1.0, %v6484_v9  ;;  %6509 = vpow2.f32 %v423_v61  ;;  %v3038_v8 = vsel %vm3034_vm3, %v2983_v54, %v11838_v29 }
 0x21e   : > { %v6490_v59 = vpop.eup %6489  ;;  %v2824_v49 = vpop.permute.xlu1 %2823  ;;  %6511 = vrcp.f32 %v501_v34  ;;  %v3092_v63 = vsel %vm3089_vm4, %v3037_v24, %v11839_v31  ;;  %v3040_v52 = vsel %vm3034_vm3, %v2985_v51, %v11840_v36  ;;  %v2986_v61 = vsel %vm2979_vm2, %v653_v21, %v8759_v11  ;;  %v11842_v21 = vld [vmem:[#allocation62_spill] sm:$0xff] }
 0x21f   : > { %v6492_v53 = vpop.eup %6491  ;;  %v2822_v19 = vpop.permute.xlu0 %2821  ;;  %v3250_v22 = vsel %vm3247_vm6, %v3248_v39, %v3249_v35  ;;  %v500_v9 = vadd.f32 1.0, %v6488_v37  ;;  %v502_v54 = vadd.f32 1.0, %v6490_v59  ;;  %6513 = vpow2.f32 %v8815_v14  ;;  %v11841_v39 = vld [vmem:[#allocation22_spill] sm:$0xff]  ;;  %v11843_v59 = vld [vmem:[#allocation84_spill] sm:$0xff] }
 0x220   : > { %v8882_v58 = vpop.eup %6493  ;;  %v8889_v34 = vsel %vm3144_vm5, %v3092_v63, %v2822_v19  ;;  %3435 = vrot.lane.b32.xlu0 %v3250_v22, %s6900_s17  ;;  %v3093_v12 = vsel %vm3089_vm4, %v3038_v8, %v11841_v39  ;;  %v655_v29 = vmul.f32 %v8656_v17, %v6492_v53  ;;  %6515 = vrcp.f32 %v499_v13  ;;  %v11844_v22 = vld [vmem:[#allocation24_spill] sm:$0xff] }
 0x221   : > { %v6496_v38 = vpop.eup %6495  ;;  %v3251_v24 = vrot.slane %v8889_v34, 1  ;;  %v3095_v37 = vsel %vm3089_vm4, %v3040_v52, %v11842_v21  ;;  %v8900_v31 = vsel %vm3144_vm5, %v3093_v12, %v2824_v49  ;;  %v3041_v14 = vsel %vm3034_vm3, %v2986_v61, %v11843_v59 }
 0x222   : > { %v6498_v51 = vpop.eup %6497  ;;  %v2828_v63 = vpop.permute.xlu1 %2827  ;;  %v3094_v8 = vsel %vm3089_vm4, %v8839_v25, %v11844_v22  ;;  %v656_v52 = vmul.f32 %v8652_v42, %v6496_v38  ;;  %6517 = vrcp.f32 %v500_v9  ;;  %v3253_v39 = vrot.slane %v8900_v31, 1  ;;  %v11845_v38 = vld [vmem:[#allocation26_spill] sm:$0xff] }
 0x223   : > { %v6500_v19 = vpop.eup %6499  ;;  %v8908_v36 = vsel %vm3144_vm5, %v3095_v37, %v2828_v63  ;;  %v2826_v17 = vpop.permute.xlu0 %2825  ;;  %v3252_v13 = vsel %vm3247_vm6, %v3249_v35, %v3251_v24  ;;  %v658_v25 = vmul.f32 %v8663_v43, %v6498_v51  ;;  %6519 = vrcp.f32 %v502_v54  ;;  %v11846_v63 = vld [vmem:[#allocation27_spill] sm:$0xff] }
 0x224   : > { %v3256_v49 = vrot.slane %v8908_v36, 1  ;;  %v8914_v53 = vsel %vm3144_vm5, %v3094_v8, %v2826_v17  ;;  %3437 = vrot.lane.b32.xlu1 %v3252_v13, %s6900_s17  ;;  %v8917_v61 = vpop.eup %6501  ;;  %v2988_v42 = vsel %vm2979_vm2, %v655_v29, %v8762_v57  ;;  %v503_v9 = vadd.f32 1.0, %v6500_v19  ;;  %v11847_v13 = vld [vmem:[#allocation86_spill] sm:$0xff] }
 0x225   : > { %v3254_v12 = vrot.slane %v8914_v53, 1  ;;  %v6504_v35 = vpop.eup %6503  ;;  %6521 = vpow2.f32 %v8831_v15  ;;  %v3097_v24 = vsel %vm3089_vm4, %v8827_v45, %v11845_v38  ;;  %v3096_v43 = vsel %vm3089_vm4, %v3041_v14, %v11846_v63  ;;  %v11848_v38 = vld [vmem:[#allocation66_spill] sm:$0xff]  ;;  %v11850_v63 = vld [vmem:[#allocation85_spill] sm:$0xff] }
 0x226   : > { %v2832_v21 = vpop.permute.xlu1 %2831  ;;  %v6506_v37 = vpop.eup %6505  ;;  %6523 = vrcp.f32 %v504_v6  ;;  %v2989_v15 = vsel %vm2979_vm2, %v656_v52, %v8759_v11  ;;  %v2991_v14 = vsel %vm2979_vm2, %v658_v25, %v8762_v57  ;;  %v659_v22 = vmul.f32 %v8683_v10, %v6504_v35  ;;  %v11849_v10 = vld [vmem:[#allocation10_spill] sm:$0xff] }
 0x227   : > { %v8931_v54 = vsel %vm3144_vm5, %v3097_v24, %v2832_v21  ;;  %v2830_v51 = vpop.permute.xlu0 %2829  ;;  %v8934_v59 = vsel %vm3247_vm6, %v3254_v12, %v3256_v49  ;;  %v8937_v29 = vsel %vm3247_vm6, %v3253_v39, %v3254_v12  ;;  %6525 = vpow2.f32 %v8821_v50 }
 0x228   : > { %v8942_v45 = vsel %vm3144_vm5, %v3096_v43, %v2830_v51  ;;  %3441 = vrot.lane.b32.xlu1 %v8934_v59, %s6900_s17  ;;  %3439 = vrot.lane.b32.xlu0 %v8937_v29, %s6900_s17  ;;  %v3259_v19 = vrot.slane %v8931_v54, 1  ;;  %v6508_v8 = vpop.eup %6507  ;;  %v2993_v17 = vsel %vm2979_vm2, %v8842_v23, 0.7310586  ;;  %v3043_v52 = vsel %vm3034_vm3, %v2988_v42, %v11847_v13 }
 0x229   : > { %v3258_v6 = vrot.slane %v8942_v45, 1  ;;  %v505_v49 = vadd.f32 1.0, %v6506_v37  ;;  %v3045_v25 = vsel %vm3034_vm3, %v8869_v20, %v11848_v38  ;;  %6527 = vrcp.f32 %v503_v9  ;;  %v11851_v37 = vld [vmem:[#allocation87_spill] sm:$0xff]  ;;  %v11853_v38 = vld [vmem:[#allocation69_spill] sm:$0xff] }
 0x22a   : > { %v2836_v39 = vpop.permute.xlu1 %2835  ;;  %v6510_v12 = vpop.eup %6509  ;;  %v3098_v50 = vsel %vm3089_vm4, %v3043_v52, %v11849_v10  ;;  %v507_v23 = vadd.f32 1.0, %v8882_v58  ;;  %v3044_v42 = vsel %vm3034_vm3, %v2989_v15, %v11850_v63  ;;  %v3046_v43 = vsel %vm3034_vm3, %v2991_v14, %v11851_v37  ;;  %v11854_v63 = vld [vmem:[#allocation65_spill] sm:$0xff] }
 0x22b   : > { %v2834_v35 = vpop.permute.xlu0 %2833  ;;  %v8964_v24 = vsel %vm3247_vm6, %v3258_v6, %v3259_v19  ;;  %v6512_v21 = vpop.eup %6511  ;;  %v2992_v20 = vsel %vm2979_vm2, %v659_v22, %v8759_v11  ;;  %v506_v9 = vadd.f32 1.0, %v6508_v8  ;;  %v11852_v6 = vld [vmem:[#allocation67_spill] sm:$0xff]  ;;  %6529 = vrcp.f32 %v505_v49  ;;  %v11855_v8 = vld [vmem:[#allocation9_spill] sm:$0xff] }
 0x22c   : > { %v8972_v51 = vsel %vm3144_vm5, %v3098_v50, %v2834_v35  ;;  %3443 = vrot.lane.b32.xlu0 %v8964_v24, %s6900_s17  ;;  %v3099_v13 = vsel %vm3089_vm4, %v3044_v42, %v11852_v6  ;;  %v6514_v52 = vpop.eup %6513  ;;  %v508_v15 = vadd.f32 1.0, %v6510_v12  ;;  %v3101_v14 = vsel %vm3089_vm4, %v3046_v43, %v11853_v38 }
 0x22d   : > { %v3261_v58 = vrot.slane %v8972_v51, 1  ;;  %v8984_v10 = vsel %vm3144_vm5, %v3099_v13, %v2836_v39  ;;  %v6516_v35 = vpop.eup %6515  ;;  %v3048_v22 = vsel %vm3034_vm3, %v2993_v17, %v11854_v63  ;;  %v3100_v37 = vsel %vm3089_vm4, %v3045_v25, %v11855_v8  ;;  %v11856_v25 = vld [vmem:[#allocation88_spill] sm:$0xff] }
 0x22e   : > { %v2840_v50 = vpop.permute.xlu1 %2839  ;;  %v510_v12 = vadd.f32 1.0, %v8861_v0  ;;  %6531 = vrcp.f32 %v507_v23  ;;  %v3047_v13 = vsel %vm3034_vm3, %v2992_v20, %v11856_v25  ;;  %v661_v0 = vmul.f32 %v8730_v60, %v6516_v35 }
 0x22f   : > { %v8991_v42 = vsel %vm3144_vm5, %v3101_v14, %v2840_v50  ;;  %v2838_v6 = vpop.permute.xlu0 %2837  ;;  %v8994_v49 = vsel %vm3247_vm6, %v3259_v19, %v3261_v58  ;;  %v6518_v17 = vpop.eup %6517  ;;  %6533 = vrcp.f32 %v506_v9  ;;  %v3263_v19 = vrot.slane %v8984_v10, 1  ;;  %v11857_v14 = vld [vmem:[#allocation71_spill] sm:$0xff] }
 0x230   : > { %v3266_v39 = vrot.slane %v8991_v42, 1  ;;  %v8999_v43 = vsel %vm3144_vm5, %v3100_v37, %v2838_v6  ;;  %3445 = vrot.lane.b32.xlu1 %v8994_v49, %s6900_s17  ;;  %v6520_v58 = vpop.eup %6519  ;;  %6535 = vrcp.f32 %v508_v15  ;;  %v509_v23 = vadd.f32 1.0, %v6514_v52  ;;  %v11858_v37 = vld [vmem:[#allocation28_spill] sm:$0xff] }
 0x231   : > { %v3264_v38 = vrot.slane %v8999_v43, 1  ;;  %v3103_v50 = vsel %vm3089_vm4, %v3048_v22, %v11857_v14  ;;  %v3102_v6 = vsel %vm3089_vm4, %v3047_v13, %v11858_v37  ;;  %6537 = vrcp.f32 %v510_v12 }
 0x232   : > { %v2844_v63 = vpop.permute.xlu1 %2843  ;;  %v6522_v8 = vpop.eup %6521  ;;  %v662_v35 = vmul.f32 %v8726_v2, %v6518_v17  ;;  %v664_v13 = vmul.f32 %v8735_v26, %v6520_v58  ;;  %v2994_v14 = vsel %vm2979_vm2, %v661_v0, %v8762_v57  ;;  %6539 = vrcp.f32 %v509_v23 }
 0x233   : > { %v9013_v20 = vsel %vm3144_vm5, %v3103_v50, %v2844_v63  ;;  %v2842_v9 = vpop.permute.xlu0 %2841  ;;  %v9016_v25 = vsel %vm3247_vm6, %v3264_v38, %v3266_v39  ;;  %v9019_v46 = vsel %vm3247_vm6, %v3263_v19, %v3264_v38  ;;  %v6524_v15 = vpop.eup %6523  ;;  %v511_v38 = vadd.f32 1.0, %v6522_v8 }
 0x234   : > { %11859 = vst [vmem:[#allocation44_spill] sm:$0xff] %v9013_v20  ;;  %v9022_v60 = vsel %vm3144_vm5, %v3102_v6, %v2842_v9  ;;  %3449 = vrot.lane.b32.xlu1 %v9016_v25, %s6900_s17  ;;  %3447 = vrot.lane.b32.xlu0 %v9019_v46, %s6900_s17  ;;  %v3269_v52 = vrot.slane %v9013_v20, 1  ;;  %v6526_v39 = vpop.eup %6525  ;;  %v663_v19 = vmul.f32 %v8691_v27, %v6512_v21  ;;  %v513_v2 = vadd.f32 1.0, %v8917_v61  ;;  %v11860_v27 = vld [vmem:[#allocation90_spill] sm:$0xff]  ;;  %v11861_v9 = vld [vmem:[#allocation89_spill] sm:$0xff] }
 0x235   : > { %v3268_v22 = vrot.slane %v9022_v60, 1  ;;  %v666_v12 = vmul.f32 %v8695_v16, %v6524_v15  ;;  %v2995_v26 = vsel %vm2979_vm2, %v662_v35, %v8759_v11  ;;  %v512_v17 = vadd.f32 1.0, %v6526_v39  ;;  %v11862_v39 = vld [vmem:[#allocation91_spill] sm:$0xff] }
 0x236   : > { %v6528_v63 = vpop.eup %6527  ;;  %v3049_v21 = vsel %vm3034_vm3, %v2994_v14, %v11860_v27  ;;  %v2997_v58 = vsel %vm2979_vm2, %v664_v13, %v8762_v57  ;;  %6541 = vrcp.f32 %v511_v38  ;;  %v2996_v16 = vsel %vm2979_vm2, %v663_v19, 0.7310586  ;;  %v11863_v38 = vld [vmem:[#allocation72_spill] sm:$0xff]  ;;  %v11864_v14 = vld [vmem:[#allocation70_spill] sm:$0xff] }
 0x237   : > { %v9036_v50 = vsel %vm3247_vm6, %v3268_v22, %v3269_v52  ;;  %v665_v61 = vmul.f32 %v8749_v7, %v6528_v63  ;;  %v3104_v8 = vsel %vm3089_vm4, %v3049_v21, %v8255_v47  ;;  %v2999_v6 = vsel %vm2979_vm2, %v666_v12, 0.7310586 }
 0x238   : > { %3451 = vrot.lane.b32.xlu0 %v9036_v50, %s6900_s17  ;;  %v6530_v23 = vpop.eup %6529  ;;  %6543 = vrcp.f32 %v513_v2  ;;  %v3050_v15 = vsel %vm3034_vm3, %v2995_v26, %v11861_v9  ;;  %v3052_v13 = vsel %vm3034_vm3, %v2997_v58, %v11862_v39  ;;  %v3051_v63 = vsel %vm3034_vm3, %v2996_v16, %v11864_v14  ;;  %v11868_v39 = vld [vmem:[#allocation92_spill] sm:$0xff] }
 0x239   : > { %6545 = vrcp.f32 %v512_v17  ;;  %v3105_v7 = vsel %vm3089_vm4, %v3050_v15, %v11863_v38  ;;  %v667_v12 = vmul.f32 %v8776_v55, %v6530_v23  ;;  %v3107_v2 = vsel %vm3089_vm4, %v3052_v13, %v8283_v56  ;;  %v11866_v23 = vld [vmem:[#allocation68_spill] sm:$0xff] }
 0x23a   : > { %v2998_v17 = vsel %vm2979_vm2, %v665_v61, %v8759_v11  ;;  %v3106_v58 = vsel %vm3089_vm4, %v3051_v63, %v8292_v41  ;;  %v3054_v56 = vsel %vm3034_vm3, %v2999_v6, %v11866_v23 }
 0x23b   : > { %v2848_v0 = vpop.permute.xlu1 %2847  ;;  %v6532_v22 = vpop.eup %6531  ;;  %v3053_v6 = vsel %vm3034_vm3, %v2998_v17, %v11868_v39  ;;  %v3000_v13 = vsel %vm2979_vm2, %v667_v12, %v8762_v57 }
 0x23c   : > { %v2846_v37 = vpop.permute.xlu0 %2845  ;;  %v6534_v19 = vpop.eup %6533  ;;  %v9069_v26 = vsel %vm3144_vm5, %v3105_v7, %v2848_v0  ;;  %v669_v41 = vmul.f32 %v8703_v40, %v6532_v22  ;;  %v11869_v7 = vld [vmem:[#allocation29_spill] sm:$0xff] }
 0x23d   : > { %v9056_v35 = vsel %vm3144_vm5, %v3104_v8, %v2846_v37  ;;  %11865 = vst [vmem:[#allocation113_spill] sm:$0xff] %v9069_v26  ;;  %v6536_v21 = vpop.eup %6535  ;;  %v668_v61 = vmul.f32 %v8772_v62, %v6534_v19  ;;  %v11870_v40 = vld [vmem:[#allocation73_spill] sm:$0xff] }
 0x23e   : > { %v3271_v47 = vrot.slane %v9056_v35, 1  ;;  %v6538_v15 = vpop.eup %6537  ;;  %v670_v38 = vmul.f32 %v8780_v4, %v6536_v21  ;;  %v3108_v62 = vsel %vm3089_vm4, %v3053_v6, %v11870_v40  ;;  %v11874_v6 = vld [vmem:[#allocation31_spill] sm:$0xff]  ;;  %v11877_v40 = vld [vmem:[#allocation30_spill] sm:$0xff] }
 0x23f   : > { %v2852_v27 = vpop.permute.xlu1 %2851  ;;  %v6540_v12 = vpop.eup %6539  ;;  %v672_v21 = vmul.f32 %v8715_v3, %v6538_v15  ;;  %v3001_v17 = vsel %vm2979_vm2, %v668_v61, %v8759_v11 }
 0x240   : > { %v9076_v8 = vsel %vm3144_vm5, %v3107_v2, %v2852_v27  ;;  %v2850_v16 = vpop.permute.xlu0 %2849  ;;  %v9079_v55 = vsel %vm3247_vm6, %v3269_v52, %v3271_v47  ;;  %v3273_v52 = vrot.slane %v9069_v26, 1  ;;  %v3109_v47 = vsel %vm3089_vm4, %v3054_v56, %v11869_v7  ;;  %v11875_v7 = vld [vmem:[#allocation94_spill] sm:$0xff] }
 0x241   : > { %v3276_v0 = vrot.slane %v9076_v8, 1  ;;  %v9085_v37 = vsel %vm3144_vm5, %v3106_v58, %v2850_v16  ;;  %3453 = vrot.lane.b32.xlu1 %v9079_v55, %s6900_s17  ;;  %v11873_v16 = vld [vmem:[#allocation95_spill] sm:$0xff]  ;;  %v3003_v56 = vsel %vm2979_vm2, %v670_v38, %v8762_v57  ;;  %v671_v39 = vmul.f32 %v8789_v32, %v6540_v12 }
 0x242   : > { %11867 = vst [vmem:[#allocation45_spill] sm:$0xff] %v9085_v37  ;;  %v3274_v9 = vrot.slane %v9085_v37, 1  ;;  %v3055_v23 = vsel %vm3034_vm3, %v3000_v13, %v11873_v16  ;;  %v11876_v32 = vld [vmem:[#allocation99_spill] sm:$0xff] }
 0x243   : > { %v2856_v14 = vpop.permute.xlu1 %2855  ;;  %v3110_v3 = vsel %vm3089_vm4, %v3055_v23, %v11874_v6  ;;  %v11879_v23 = vld [vmem:[#allocation82_spill] sm:$0xff] }
 0x244   : > { %v9103_v22 = vsel %vm3144_vm5, %v3109_v47, %v2856_v14  ;;  %v2854_v19 = vpop.permute.xlu0 %2853  ;;  %v9106_v63 = vsel %vm3247_vm6, %v3274_v9, %v3276_v0  ;;  %v9109_v2 = vsel %vm3247_vm6, %v3273_v52, %v3274_v9  ;;  %v6542_v9 = vpop.eup %6541  ;;  %v3002_v52 = vsel %vm2979_vm2, %v669_v41, 0.7310586 }
 0x245   : > { %11871 = vst [vmem:[#allocation114_spill] sm:$0xff] %v9103_v22  ;;  %v9112_v4 = vsel %vm3144_vm5, %v3108_v62, %v2854_v19  ;;  %3457 = vrot.lane.b32.xlu1 %v9106_v63, %s6900_s17  ;;  %3455 = vrot.lane.b32.xlu0 %v9109_v2, %s6900_s17  ;;  %v3279_v27 = vrot.slane %v9103_v22, 1  ;;  %v3056_v47 = vsel %vm3034_vm3, %v3001_v17, %v11875_v7  ;;  %v6544_v38 = vpop.eup %6543  ;;  %v3005_v41 = vsel %vm2979_vm2, %v672_v21, 0.7310586 }
 0x246   : > { %11872 = vst [vmem:[#allocation46_spill] sm:$0xff] %v9112_v4  ;;  %v3278_v58 = vrot.slane %v9112_v4, 1  ;;  %v3058_v14 = vsel %vm3034_vm3, %v3003_v56, %v11876_v32  ;;  %v3111_v62 = vsel %vm3089_vm4, %v3056_v47, %v11877_v40  ;;  %v6546_v12 = vpop.eup %6545  ;;  %v673_v16 = vmul.f32 %v8807_v28, %v6542_v9 }
 0x247   : > { %v2860_v0 = vpop.permute.xlu1 %2859  ;;  %v3113_v6 = vsel %vm3089_vm4, %v3058_v14, %v11879_v23  ;;  %v3004_v56 = vsel %vm2979_vm2, %v671_v39, %v8759_v11  ;;  %v674_v14 = vmul.f32 %v8797_v30, %v6546_v12  ;;  %v11883_v23 = vld [vmem:[#allocation11_spill] sm:$0xff] }
 0x248   : > { %v2858_v15 = vpop.permute.xlu0 %2857  ;;  %v9132_v61 = vsel %vm3247_vm6, %v3278_v58, %v3279_v27  ;;  %v11878_v58 = vld [vmem:[#allocation75_spill] sm:$0xff] }
 0x249   : > { %v9137_v13 = vsel %vm3144_vm5, %v3110_v3, %v2858_v15  ;;  %3459 = vrot.lane.b32.xlu0 %v9132_v61, %s6900_s17  ;;  %v3057_v17 = vsel %vm3034_vm3, %v3002_v52, %v11878_v58  ;;  %v9153_v3 = vsel %vm3144_vm5, %v3111_v62, %v2860_v0  ;;  %v11880_v15 = vld [vmem:[#allocation12_spill] sm:$0xff]  ;;  %v11881_v0 = vld [vmem:[#allocation74_spill] sm:$0xff] }
 0x24a   : > { %v3281_v19 = vrot.slane %v9137_v13, 1  ;;  %v3112_v7 = vsel %vm3089_vm4, %v3057_v17, %v11880_v15  ;;  %v3060_v39 = vsel %vm3034_vm3, %v3005_v41, %v11881_v0  ;;  %v3283_v62 = vrot.slane %v9153_v3, 1  ;;  %v11884_v15 = vld [vmem:[#allocation32_spill] sm:$0xff] }
 0x24b   : > { %v2864_v21 = vpop.permute.xlu1 %2863  ;;  %v3006_v17 = vsel %vm2979_vm2, %v673_v16, %v8762_v57 }
 0x24c   : > { %v9160_v47 = vsel %vm3144_vm5, %v3113_v6, %v2864_v21  ;;  %v2862_v32 = vpop.permute.xlu0 %2861  ;;  %v9163_v52 = vsel %vm3247_vm6, %v3279_v27, %v3281_v19  ;;  %v675_v27 = vmul.f32 %v8721_v48, %v6544_v38  ;;  %v11882_v19 = vld [vmem:[#allocation100_spill] sm:$0xff]  ;;  %v3115_v6 = vsel %vm3089_vm4, %v3060_v39, %v11883_v23  ;;  %v11886_v23 = vld [vmem:[#allocation103_spill] sm:$0xff] }
 0x24d   : > { %v3286_v28 = vrot.slane %v9160_v47, 1  ;;  %v9167_v9 = vsel %vm3144_vm5, %v3112_v7, %v2862_v32  ;;  %3461 = vrot.lane.b32.xlu1 %v9163_v52, %s6900_s17  ;;  %v3059_v58 = vsel %vm3034_vm3, %v3004_v56, %v11882_v19  ;;  %v3007_v56 = vsel %vm2979_vm2, %v674_v14, %v8759_v11 }
 0x24e   : > { %v3284_v40 = vrot.slane %v9167_v9, 1  ;;  %v3114_v41 = vsel %vm3089_vm4, %v3059_v58, %v11884_v15 }
 0x24f   : > { %v2868_v21 = vpop.permute.xlu1 %2867 }
 0x250   : > { %v9186_v30 = vsel %vm3144_vm5, %v3115_v6, %v2868_v21  ;;  %v2866_v12 = vpop.permute.xlu0 %2865  ;;  %v9189_v7 = vsel %vm3247_vm6, %v3284_v40, %v3286_v28  ;;  %v9192_v48 = vsel %vm3247_vm6, %v3283_v62, %v3284_v40  ;;  %v11885_v28 = vld [vmem:[#allocation104_spill] sm:$0xff]  ;;  %v3008_v40 = vsel %vm2979_vm2, %v675_v27, 0.7310586  ;;  %v11887_v21 = vld [vmem:[#allocation77_spill] sm:$0xff] }
 0x251   : > { %v9195_v38 = vsel %vm3144_vm5, %v3114_v41, %v2866_v12  ;;  %3465 = vrot.lane.b32.xlu1 %v9189_v7, %s6900_s17  ;;  %3463 = vrot.lane.b32.xlu0 %v9192_v48, %s6900_s17  ;;  %v3289_v16 = vrot.slane %v9186_v30, 1  ;;  %v3061_v0 = vsel %vm3034_vm3, %v3006_v17, %v11885_v28  ;;  %v3062_v6 = vsel %vm3034_vm3, %v3007_v56, %v11886_v23 }
 0x252   : > { %v3288_v32 = vrot.slane %v9195_v38, 1  ;;  %v3116_v62 = vsel %vm3089_vm4, %v3061_v0, %v8442_v33  ;;  %v3117_v17 = vsel %vm3089_vm4, %v3062_v6, %v8436_v5  ;;  %v3063_v33 = vsel %vm3034_vm3, %v3008_v40, %v11887_v21  ;;  %v4478_v6 = vld [vmem:[%s9266_s25 + $0x58] sm:$0x3]  ;;  %v4477_v21 = vld [vmem:[%s9266_s25 + $0x50] sm:$0xff] }
 0x253   : > { %v2872_v39 = vpop.permute.xlu1 %2871  ;;  %v3118_v12 = vsel %vm3089_vm4, %v3063_v33, %v8475_v18  ;;  %v3330_v56 = vrot.slane %v8859_v1, 2  ;;  %v3332_v40 = vrot.slane %v8889_v34, 2  ;;  %5513 = vmatprep.subr.msk.mxu0 %vm4576_vm8, %v4478_v6  ;;  %5585 = vmatprep.subr.msk.mxu1 %vm4576_vm8, %v4478_v6  ;;  %v3335_v33 = vrot.slane %v8914_v53, 2 }
 0x254   : > { %v2870_v19 = vpop.permute.xlu0 %2869  ;;  %v9211_v58 = vsel %vm3247_vm6, %v3288_v32, %v3289_v16  ;;  %v9226_v15 = vsel %vm3144_vm5, %v3117_v17, %v2872_v39  ;;  %v3329_v32 = vrot.slane %v8866_v44, 2  ;;  %5514 = vmatpush3.msk.msra.mxu0 %vm4576_vm8, %v4478_v6  ;;  %5597 = vmatpush3.msk.msra.mxu1 %vm4576_vm8, %v4478_v6 }
 0x255   : > { %v9216_v14 = vsel %vm3144_vm5, %v3116_v62, %v2870_v19  ;;  %3467 = vrot.lane.b32.xlu0 %v9211_v58, %s6900_s17  ;;  %v3293_v39 = vrot.slane %v9226_v15, 1  ;;  %v3333_v34 = vsel %vm3328_vm7, %v3330_v56, %v3332_v40  ;;  %5515 = vmatprep.subr.mxu0 %v4477_v21 }
 0x256   : > { %v3291_v27 = vrot.slane %v9216_v14, 1  ;;  %v3331_v62 = vsel %vm3328_vm7, %v3329_v32, %v3330_v56  ;;  %v3334_v56 = vrot.slane %v8900_v31, 2  ;;  %5586 = vmatprep.subr.mxu1 %v4477_v21  ;;  %5516 = vmatpush3.msra.mxu0 %v4477_v21  ;;  %v3337_v32 = vrot.slane %v8908_v36, 2  ;;  %v4474_v36 = vld [vmem:[%s9266_s25 + $0x38] sm:$0xff] }
 0x257   : > { %v9228_v41 = vpop.permute.xlu1 %2875  ;;  %5598 = vmatpush3.msra.mxu1 %v4477_v21  ;;  %v4472_v21 = vld [vmem:[%s9266_s25 + $0x28] sm:$0xff] }
 0x258   : > { %v2874_v28 = vpop.permute.xlu0 %2873  ;;  %v9235_v5 = vsel %vm3247_vm6, %v3289_v16, %v3291_v27 }
 0x259   : > { %v9238_v0 = vsel %vm3144_vm5, %v3118_v12, %v2874_v28  ;;  %3469 = vrot.lane.b32.xlu1 %v9235_v5, %s6900_s17  ;;  %v4476_v12 = vld [vmem:[%s9266_s25 + $0x48] sm:$0xff]  ;;  %v3336_v28 = vsel %vm3328_vm7, %v3334_v56, %v3335_v33 }
 0x25a   : > { %v11521_v18 = vrot.slane %v9238_v0, 1  ;;  %5517 = vmatprep.subr.mxu0 %v4476_v12  ;;  %5587 = vmatprep.subr.mxu1 %v4476_v12 }
 0x25b   : > { %v9251_v19 = vpop.permute.xlu1 %2879  ;;  %5518 = vmatpush3.msra.mxu0 %v4476_v12  ;;  %5599 = vmatpush3.msra.mxu1 %v4476_v12 }
 0x25c   : > { %v9249_v16 = vsel %vm3247_vm6, %v3293_v39, %v11521_v18  ;;  %v9253_v23 = vpop.permute.xlu0 %2877  ;;  %v4475_v39 = vld [vmem:[%s9266_s25 + $0x40] sm:$0xff]  ;;  %v3342_v18 = vrot.slane %v8972_v51, 2 }
 0x25d   : > { %3531 = vrot.lane.b32.xlu1 %v3331_v62, %s6901_s20  ;;  %3471 = vrot.lane.b32.xlu0 %v9249_v16, %s6900_s17  ;;  %v3338_v62 = vsel %vm3328_vm7, %v3335_v33, %v3337_v32  ;;  %v4471_v33 = vld [vmem:[%s9266_s25 + $0x20] sm:$0xff]  ;;  %v4470_v32 = vld [vmem:[%s9266_s25 + $0x18] sm:$0xff] }
 0x25e   : > { %5519 = vmatprep.subr.mxu0 %v4475_v39  ;;  %5588 = vmatprep.subr.mxu1 %v4475_v39 }
 0x25f   : > { %v9269_v17 = vpop.permute.xlu1 %2883  ;;  %5520 = vmatpush3.msra.mxu0 %v4475_v39  ;;  %5600 = vmatpush3.msra.mxu1 %v4475_v39 }
 0x260   : > { %11888 = vst [vmem:[#allocation116_spill] sm:$0xff] %v9269_v17  ;;  %v9271_v27 = vpop.permute.xlu0 %2881  ;;  %5521 = vmatprep.subr.mxu0 %v4474_v36  ;;  %5589 = vmatprep.subr.mxu1 %v4474_v36 }
 0x261   : > { %3627 = vrot.lane.b32.xlu1 %v8900_v31, %s6902_s22  ;;  %3533 = vrot.lane.b32.xlu0 %v3333_v34, %s6901_s20  ;;  %v4473_v34 = vld [vmem:[%s9266_s25 + $0x30] sm:$0xff] }
 0x262   : > { %5522 = vmatpush3.msra.mxu0 %v4474_v36  ;;  %5601 = vmatpush3.msra.mxu1 %v4474_v36 }
 0x263   : > { %v9284_v40 = vpop.permute.xlu1 %2887  ;;  %5523 = vmatprep.subr.mxu0 %v4473_v34  ;;  %5590 = vmatprep.subr.mxu1 %v4473_v34 }
 0x264   : > { %11889 = vst [vmem:[#allocation47_spill] sm:$0xff] %v9284_v40  ;;  %5524 = vmatpush3.msra.mxu0 %v4473_v34  ;;  %5602 = vmatpush3.msra.mxu1 %v4473_v34  ;;  %v3339_v34 = vrot.slane %v8942_v45, 2 }
 0x265   : > { %3723 = vrot.lane.b32.xlu1 %v8937_v29, %s6903_s26  ;;  %3629 = vrot.lane.b32.xlu0 %v8914_v53, %s6902_s22  ;;  %v9286_v29 = vpop.permute.xlu0 %2885 }
 0x266   : > { %11890 = vst [vmem:[#allocation118_spill] sm:$0xff] %v9286_v29  ;;  %5525 = vmatprep.subr.mxu0 %v4472_v21  ;;  %5591 = vmatprep.subr.mxu1 %v4472_v21 }
 0x267   : > { %v9296_v6 = vpop.permute.xlu1 %2891  ;;  %5526 = vmatpush3.msra.mxu0 %v4472_v21  ;;  %5603 = vmatpush3.msra.mxu1 %v4472_v21  ;;  %v3340_v21 = vrot.slane %v8931_v54, 2 }
 0x268   : > { %11891 = vst [vmem:[#allocation48_spill] sm:$0xff] %v9296_v6  ;;  %5527 = vmatprep.subr.mxu0 %v4471_v33  ;;  %5592 = vmatprep.subr.mxu1 %v4471_v33 }
 0x269   : > { %3819 = vrot.lane.b32.xlu1 %v3336_v28, %s6904_s27  ;;  %3725 = vrot.lane.b32.xlu0 %v8934_v59, %s6903_s26  ;;  %v9298_v59 = vpop.permute.xlu0 %2889 }
 0x26a   : > { %11892 = vst [vmem:[#allocation119_spill] sm:$0xff] %v9298_v59  ;;  %5528 = vmatpush3.msra.mxu0 %v4471_v33  ;;  %5604 = vmatpush3.msra.mxu1 %v4471_v33  ;;  %v4467_v33 = vld [vmem:[%s9266_s25] sm:$0xff] }
 0x26b   : > { %v9305_v12 = vpop.permute.xlu1 %2895  ;;  %5529 = vmatprep.subr.mxu0 %v4470_v32  ;;  %5593 = vmatprep.subr.mxu1 %v4470_v32 }
 0x26c   : > { %11893 = vst [vmem:[#allocation49_spill] sm:$0xff] %v9305_v12  ;;  %5530 = vmatpush3.msra.mxu0 %v4470_v32  ;;  %5605 = vmatpush3.msra.mxu1 %v4470_v32 }
 0x26d   : > { %3821 = vrot.lane.b32.xlu1 %v3338_v62, %s6904_s27  ;;  %3535 = vrot.lane.b32.xlu0 %v3336_v28, %s6901_s20  ;;  %v9307_v56 = vpop.permute.xlu0 %2893  ;;  %v4469_v28 = vld [vmem:[%s9266_s25 + $0x10] sm:$0xff] }
 0x26e   : > { %11894 = vst [vmem:[#allocation120_spill] sm:$0xff] %v9307_v56  ;;  %5531 = vmatprep.subr.mxu0 %v4469_v28  ;;  %5594 = vmatprep.subr.mxu1 %v4469_v28 }
 0x26f   : > { %v9319_v39 = vpop.permute.xlu1 %2899  ;;  %5532 = vmatpush3.msra.mxu0 %v4469_v28  ;;  %5606 = vmatpush3.msra.mxu1 %v4469_v28 }
 0x270   : > { %11895 = vst [vmem:[#allocation50_spill] sm:$0xff] %v9319_v39  ;;  %v3341_v39 = vsel %vm3328_vm7, %v3339_v34, %v3340_v21 }
 0x271   : > { %3537 = vrot.lane.b32.xlu1 %v3338_v62, %s6901_s20  ;;  %3915 = vrot.lane.b32.xlu0 %v8942_v45, %s6905_s28  ;;  %v9321_v36 = vpop.permute.xlu0 %2897  ;;  %v4468_v62 = vld [vmem:[%s9266_s25 + $0x8] sm:$0xff] }
 0x272   : > { %11896 = vst [vmem:[#allocation127_spill] sm:$0xff] %v9321_v36  ;;  %5533 = vmatprep.subr.mxu0 %v4468_v62  ;;  %5595 = vmatprep.subr.mxu1 %v4468_v62 }
 0x273   : > { %5534 = vmatpush3.msra.mxu0 %v4468_v62  ;;  %v9333_v36 = vpop.permute.xlu1 %2903  ;;  %5607 = vmatpush3.msra.mxu1 %v4468_v62 }
 0x274   : > { %5535 = vmatprep.subr.mxu0 %v4467_v33  ;;  %11897 = vst [vmem:[#allocation51_spill] sm:$0xff] %v9333_v36  ;;  %5596 = vmatprep.subr.mxu1 %v4467_v33 }
 0x275   : > { %3917 = vrot.lane.b32.xlu1 %v8931_v54, %s6905_s28  ;;  %3631 = vrot.lane.b32.xlu0 %v8942_v45, %s6902_s22  ;;  %v9335_v32 = vpop.permute.xlu0 %2901 }
 0x276   : > { %11898 = vst [vmem:[#allocation129_spill] sm:$0xff] %v9335_v32  ;;  %5536 = vmatpush3.msra.mxu0 %v4467_v33  ;;  %5608 = vmatpush3.msra.mxu1 %v4467_v33 }
 0x277   : > { %v9343_v51 = vpop.permute.xlu1 %2907 }
 0x278   : > { %11899 = vst [vmem:[#allocation52_spill] sm:$0xff] %v9343_v51 }
 0x279   : > { %3633 = vrot.lane.b32.xlu1 %v8931_v54, %s6902_s22  ;;  %4011 = vrot.lane.b32.xlu0 %v8964_v24, %s6906_s29 }
 0x27a   : > { %v9345_v28 = vpop.permute.xlu0 %2905 }
 0x27b   : > { %11900 = vst [vmem:[#allocation53_spill] sm:$0xff] %v9345_v28  ;;  %v3352_v28 = vrot.slane %v9056_v35, 2 }
 0x27d   : > { %4013 = vrot.lane.b32.xlu1 %v8994_v49, %s6906_s29  ;;  %3727 = vrot.lane.b32.xlu0 %v8964_v24, %s6903_s26  ;;  %v3343_v24 = vsel %vm3328_vm7, %v3340_v21, %v3342_v18 }
 0x27e   : > { %v9351_v34 = vpop.permute.xlu0 %2909 }
 0x27f   : > { %11902 = vst [vmem:[#allocation55_spill] sm:$0xff] %v9351_v34 }
 0x281   : > { %3729 = vrot.lane.b32.xlu1 %v8994_v49, %s6903_s26  ;;  %4107 = vrot.lane.b32.xlu0 %v3341_v39, %s6907_s30  ;;  %v9349_v49 = vpop.permute.xlu1 %2911 }
 0x282   : > { %11901 = vst [vmem:[#allocation54_spill] sm:$0xff] %v9349_v49  ;;  %v9362_v62 = vpop.permute.xlu0 %2913 }
 0x283   : > { %11904 = vst [vmem:[#allocation56_spill] sm:$0xff] %v9362_v62 }
 0x285   : > { %4109 = vrot.lane.b32.xlu1 %v3343_v24, %s6907_s30  ;;  %3823 = vrot.lane.b32.xlu0 %v3341_v39, %s6904_s27  ;;  %v9360_v18 = vpop.permute.xlu1 %2915 }
 0x286   : > { %11903 = vst [vmem:[#allocation133_spill] sm:$0xff] %v9360_v18  ;;  %v9371_v33 = vpop.permute.xlu0 %2917  ;;  %v3347_v18 = vrot.slane %v8991_v42, 2 }
 0x287   : > { %11906 = vst [vmem:[#allocation57_spill] sm:$0xff] %v9371_v33 }
 0x289   : > { %3825 = vrot.lane.b32.xlu1 %v3343_v24, %s6904_s27  ;;  %3539 = vrot.lane.b32.xlu0 %v3341_v39, %s6901_s20  ;;  %v3345_v39 = vrot.slane %v8999_v43, 2  ;;  %v9369_v21 = vpop.permute.xlu1 %2919 }
 0x28a   : > { %11905 = vst [vmem:[#allocation134_spill] sm:$0xff] %v9369_v21  ;;  %v9385_v33 = vpop.permute.xlu0 %2921 }
 0x28b   : > { %11908 = vst [vmem:[#allocation135_spill] sm:$0xff] %v9385_v33  ;;  %v3348_v49 = vsel %vm3328_vm7, %v3345_v39, %v3347_v18  ;;  %v3349_v33 = vrot.slane %v9022_v60, 2 }
 0x28d   : > { %3541 = vrot.lane.b32.xlu1 %v3343_v24, %s6901_s20  ;;  %3919 = vrot.lane.b32.xlu0 %v8984_v10, %s6905_s28  ;;  %v3344_v24 = vrot.slane %v8984_v10, 2  ;;  %v9383_v21 = vpop.permute.xlu1 %2923 }
 0x28e   : > { %11907 = vst [vmem:[#allocation16_spill] sm:$0xff] %v9383_v21  ;;  %v3350_v21 = vrot.slane %v9013_v20, 2 }
 0x28f   : > { %v3346_v62 = vsel %vm3328_vm7, %v3344_v24, %v3345_v39 }
 0x290   : > { %v3351_v36 = vsel %vm3328_vm7, %v3349_v33, %v3350_v21  ;;  %v3353_v12 = vsel %vm3328_vm7, %v3350_v21, %v3352_v28 }
 0x291   : > { %3921 = vrot.lane.b32.xlu1 %v8999_v43, %s6905_s28  ;;  %3635 = vrot.lane.b32.xlu0 %v8984_v10, %s6902_s22 }
 0x295   : > { %3637 = vrot.lane.b32.xlu1 %v8999_v43, %s6902_s22  ;;  %4015 = vrot.lane.b32.xlu0 %v9019_v46, %s6906_s29 }
 0x296   : > { %v9392_v42 = vpop.permute.xlu1 %3437 }
 0x299   : > { %4017 = vrot.lane.b32.xlu1 %v9016_v25, %s6906_s29  ;;  %3731 = vrot.lane.b32.xlu0 %v9019_v46, %s6903_s26  ;;  %v9390_v46 = vpop.permute.xlu0 %3435 }
 0x29a   : > { %v9398_v24 = vpop.permute.xlu1 %3441  ;;  %v4204_v40 = vsel %vm4203_vm9, %v8866_v44, %v9390_v46  ;;  %v4205_v46 = vsel %vm4203_vm9, %v8859_v1, %v9392_v42 }
 0x29d   : > { %3733 = vrot.lane.b32.xlu1 %v9016_v25, %s6903_s26  ;;  %4111 = vrot.lane.b32.xlu0 %v3346_v62, %s6907_s30  ;;  %v9396_v25 = vpop.permute.xlu0 %3439 }
 0x2a1   : > { %4113 = vrot.lane.b32.xlu1 %v3348_v49, %s6907_s30  ;;  %3827 = vrot.lane.b32.xlu0 %v3346_v62, %s6904_s27  ;;  %v9403_v18 = vpop.permute.xlu0 %3443 }
 0x2a2   : > { %v9405_v39 = vpop.permute.xlu1 %3445 }
 0x2a5   : > { %3829 = vrot.lane.b32.xlu1 %v3348_v49, %s6904_s27  ;;  %3543 = vrot.lane.b32.xlu0 %v3346_v62, %s6901_s20 }
 0x2a6   : > { %v9411_v62 = vpop.permute.xlu0 %3447 }
 0x2a9   : > { %3545 = vrot.lane.b32.xlu1 %v3348_v49, %s6901_s20  ;;  %3923 = vrot.lane.b32.xlu0 %v9022_v60, %s6905_s28  ;;  %v9417_v49 = vpop.permute.xlu1 %3449 }
 0x2aa   : > { %v9425_v34 = vpop.permute.xlu0 %3451 }
 0x2ad   : > { %3925 = vrot.lane.b32.xlu1 %v9013_v20, %s6905_s28  ;;  %3639 = vrot.lane.b32.xlu0 %v9022_v60, %s6902_s22 }
 0x2b1   : > { %3641 = vrot.lane.b32.xlu1 %v9013_v20, %s6902_s22  ;;  %4019 = vrot.lane.b32.xlu0 %v9036_v50, %s6906_s29 }
 0x2b3   : > { %v9427_v51 = vpop.permute.xlu1 %3453 }
 0x2b4   : > { %11909 = vst [vmem:[#allocation58_spill] sm:$0xff] %v9427_v51 }
 0x2b5   : > { %4021 = vrot.lane.b32.xlu1 %v9079_v55, %s6906_s29  ;;  %3735 = vrot.lane.b32.xlu0 %v9036_v50, %s6903_s26 }
 0x2b7   : > { %v9434_v32 = vpop.permute.xlu0 %3455  ;;  %v9437_v56 = vpop.permute.xlu1 %3457 }
 0x2b8   : > { %11910 = vst [vmem:[#allocation15_spill] sm:$0xff] %v9434_v32  ;;  %11911 = vst [vmem:[#allocation25_spill] sm:$0xff] %v9437_v56  ;;  %v3360_v32 = vrot.slane %v9103_v22, 2 }
 0x2b9   : > { %3737 = vrot.lane.b32.xlu1 %v9079_v55, %s6903_s26  ;;  %4115 = vrot.lane.b32.xlu0 %v3351_v36, %s6907_s30 }
 0x2bb   : > { %v9441_v50 = vpop.permute.xlu0 %3459 }
 0x2bc   : > { %11912 = vst [vmem:[#allocation21_spill] sm:$0xff] %v9441_v50 }
 0x2bd   : > { %4117 = vrot.lane.b32.xlu1 %v3353_v12, %s6907_s30  ;;  %3831 = vrot.lane.b32.xlu0 %v3351_v36, %s6904_s27 }
 0x2bf   : > { %v9443_v35 = vpop.permute.xlu1 %3461 }
 0x2c0   : > { %11913 = vst [vmem:[#allocation7_spill] sm:$0xff] %v9443_v35  ;;  %v3357_v35 = vrot.slane %v9076_v8, 2 }
 0x2c1   : > { %3833 = vrot.lane.b32.xlu1 %v3353_v12, %s6904_s27  ;;  %3547 = vrot.lane.b32.xlu0 %v3351_v36, %s6901_s20 }
 0x2c3   : > { %v9447_v55 = vpop.permute.xlu0 %3463  ;;  %v9452_v28 = vpop.permute.xlu1 %3465 }
 0x2c4   : > { %11914 = vst [vmem:[#allocation63_spill] sm:$0xff] %v9447_v55  ;;  %11915 = vst [vmem:[#allocation64_spill] sm:$0xff] %v9452_v28  ;;  %v3355_v28 = vrot.slane %v9085_v37, 2 }
 0x2c5   : > { %3549 = vrot.lane.b32.xlu1 %v3353_v12, %s6901_s20  ;;  %3927 = vrot.lane.b32.xlu0 %v9069_v26, %s6905_s28 }
 0x2c6   : > { %v3358_v59 = vsel %vm3328_vm7, %v3355_v28, %v3357_v35 }
 0x2c7   : > { %v9458_v21 = vpop.permute.xlu0 %3467 }
 0x2c8   : > { %11916 = vst [vmem:[#allocation81_spill] sm:$0xff] %v9458_v21  ;;  %v3354_v21 = vrot.slane %v9069_v26, 2 }
 0x2c9   : > { %3929 = vrot.lane.b32.xlu1 %v9085_v37, %s6905_s28  ;;  %3643 = vrot.lane.b32.xlu0 %v9069_v26, %s6902_s22  ;;  %v3359_v26 = vrot.slane %v9112_v4, 2 }
 0x2ca   : > { %v3356_v50 = vsel %vm3328_vm7, %v3354_v21, %v3355_v28 }
 0x2cb   : > { %v9460_v33 = vpop.permute.xlu1 %3469  ;;  %v3361_v44 = vsel %vm3328_vm7, %v3359_v26, %v3360_v32 }
 0x2cc   : > { %11917 = vst [vmem:[#allocation79_spill] sm:$0xff] %v9460_v33 }
 0x2cd   : > { %3645 = vrot.lane.b32.xlu1 %v9085_v37, %s6902_s22  ;;  %4023 = vrot.lane.b32.xlu0 %v9109_v2, %s6906_s29 }
 0x2cf   : > { %v3532_v12 = vpop.permute.xlu1 %3531  ;;  %v9466_v36 = vpop.permute.xlu0 %3471 }
 0x2d0   : > { %11918 = vst [vmem:[#allocation5_spill] sm:$0xff] %v9466_v36  ;;  %v4237_v29 = vsel %vm4236_vm10, %v4204_v40, %v3532_v12 }
 0x2d1   : > { %4025 = vrot.lane.b32.xlu1 %v9106_v63, %s6906_s29  ;;  %3739 = vrot.lane.b32.xlu0 %v9109_v2, %s6903_s26 }
 0x2d3   : > { %v3628_v33 = vpop.permute.xlu1 %3627  ;;  %v3534_v55 = vpop.permute.xlu0 %3533 }
 0x2d4   : > { %v4270_v17 = vsel %vm4269_vm11, %v4237_v29, %v3628_v33  ;;  %v4238_v40 = vsel %vm4236_vm10, %v4205_v46, %v3534_v55 }
 0x2d5   : > { %3741 = vrot.lane.b32.xlu1 %v9106_v63, %s6903_s26  ;;  %4119 = vrot.lane.b32.xlu0 %v3356_v50, %s6907_s30 }
 0x2d7   : > { %v3724_v36 = vpop.permute.xlu1 %3723  ;;  %v3630_v6 = vpop.permute.xlu0 %3629 }
 0x2d8   : > { %v4303_v51 = vsel %vm4302_vm12, %v4270_v17, %v3724_v36  ;;  %v4271_v17 = vsel %vm4269_vm11, %v4238_v40, %v3630_v6  ;;  %v3365_v40 = vrot.slane %v9167_v9, 2 }
 0x2d9   : > { %4121 = vrot.lane.b32.xlu1 %v3358_v59, %s6907_s30  ;;  %3835 = vrot.lane.b32.xlu0 %v3356_v50, %s6904_s27 }
 0x2db   : > { %v3820_v2 = vpop.permute.xlu1 %3819  ;;  %v3726_v37 = vpop.permute.xlu0 %3725 }
 0x2dc   : > { %v4304_v1 = vsel %vm4302_vm12, %v4271_v17, %v3726_v37 }
 0x2dd   : > { %3837 = vrot.lane.b32.xlu1 %v3358_v59, %s6904_s27  ;;  %3551 = vrot.lane.b32.xlu0 %v3356_v50, %s6901_s20 }
 0x2df   : > { %v3822_v8 = vpop.permute.xlu1 %3821  ;;  %v9484_v21 = vpop.permute.xlu0 %3535 }
 0x2e0   : > { %v4337_v42 = vsel %vm4335_vm13, %v4304_v1, %v3822_v8 }
 0x2e1   : > { %3553 = vrot.lane.b32.xlu1 %v3358_v59, %s6901_s20  ;;  %3931 = vrot.lane.b32.xlu0 %v9112_v4, %s6905_s28 }
 0x2e3   : > { %v9489_v63 = vpop.permute.xlu1 %3537  ;;  %v3916_v35 = vpop.permute.xlu0 %3915 }
 0x2e5   : > { %3933 = vrot.lane.b32.xlu1 %v9103_v22, %s6905_s28  ;;  %3647 = vrot.lane.b32.xlu0 %v9112_v4, %s6902_s22 }
 0x2e7   : > { %v3918_v28 = vpop.permute.xlu1 %3917  ;;  %v9495_v56 = vpop.permute.xlu0 %3631 }
 0x2e8   : > { %v4370_v55 = vsel %vm4368_vm14, %v4337_v42, %v3918_v28  ;;  %v9555_v28 = vld [vmem:[%s6997_s6 + $0xe8] sm:$0x3] }
 0x2e9   : > { %3649 = vrot.lane.b32.xlu1 %v9103_v22, %s6902_s22  ;;  %4027 = vrot.lane.b32.xlu0 %v9132_v61, %s6906_s29  ;;  %v3362_v22 = vrot.slane %v9137_v13, 2 }
 0x2eb   : > { %v9501_v59 = vpop.permute.xlu1 %3633  ;;  %v4012_v50 = vpop.permute.xlu0 %4011 }
 0x2ed   : > { %4029 = vrot.lane.b32.xlu1 %v9163_v52, %s6906_s29  ;;  %3743 = vrot.lane.b32.xlu0 %v9132_v61, %s6903_s26  ;;  %v4336_v61 = vsel %vm4335_vm13, %v4303_v51, %v3820_v2  ;;  %v3363_v51 = vsel %vm3328_vm7, %v3360_v32, %v3362_v22 }
 0x2ee   : > { %v4369_v13 = vsel %vm4368_vm14, %v4336_v61, %v3916_v35 }
 0x2ef   : > { %v4014_v4 = vpop.permute.xlu1 %4013  ;;  %v3728_v20 = vpop.permute.xlu0 %3727  ;;  %v4402_v26 = vsel %vm4401_vm15, %v4369_v13, %v4012_v50  ;;  %v352_v50 = vsub.f32 0.0, %v9555_v28  ;;  %v4206_v13 = vsel %vm4203_vm9, %v8900_v31, %v9396_v25  ;;  %v3367_v31 = vrot.slane %v9160_v47, 2 }
 0x2f0   : > { %v4403_v6 = vsel %vm4401_vm15, %v4370_v55, %v4014_v4  ;;  %v4239_v17 = vsel %vm4236_vm10, %v4206_v13, %v9484_v21  ;;  %v9622_v13 = vld [vmem:[%s6997_s6 + $0xf8] sm:$0xff] }
 0x2f1   : > { %3745 = vrot.lane.b32.xlu1 %v9163_v52, %s6903_s26  ;;  %4123 = vrot.lane.b32.xlu0 %v3361_v44, %s6907_s30  ;;  %v435_v61 = vmul.f32 1.442695, %v352_v50 }
 0x2f3   : > { %v3730_v29 = vpop.permute.xlu1 %3729  ;;  %v4108_v33 = vpop.permute.xlu0 %4107  ;;  %6547 = vpow2.f32 %v435_v61 }
 0x2f4   : > { %v4435_v52 = vsel %vm4434_vm0, %v4402_v26, %v4108_v33  ;;  %v3364_v26 = vrot.slane %v9153_v3, 2  ;;  %v4272_v33 = vsel %vm4269_vm11, %v4239_v17, %v9495_v56  ;;  %v354_v17 = vsub.f32 0.0, %v9622_v13 }
 0x2f5   : > { %4125 = vrot.lane.b32.xlu1 %v3363_v51, %s6907_s30  ;;  %3839 = vrot.lane.b32.xlu0 %v3361_v44, %s6904_s27  ;;  %v4305_v25 = vsel %vm4302_vm12, %v4272_v33, %v3728_v20 }
 0x2f6   : > { %5537 = vmatprep.mubr.msk.f32.mxu0 %vm4479_vm1, %v4435_v52  ;;  %v3366_v52 = vsel %vm3328_vm7, %v3364_v26, %v3365_v40 }
 0x2f7   : > { %v4110_v12 = vpop.permute.xlu1 %4109  ;;  %v3824_v36 = vpop.permute.xlu0 %3823 }
 0x2f8   : > { %v4436_v37 = vsel %vm4434_vm0, %v4403_v6, %v4110_v12  ;;  %v4338_v21 = vsel %vm4335_vm13, %v4305_v25, %v3824_v36  ;;  %v439_v25 = vmul.f32 1.442695, %v354_v17 }
 0x2f9   : > { %3841 = vrot.lane.b32.xlu1 %v3363_v51, %s6904_s27  ;;  %3555 = vrot.lane.b32.xlu0 %v3361_v44, %s6901_s20 }
 0x2fa   : > { %5538 = vmatmul.mubr.msk.f32.vlgmr.msra.gmra.mxu0 %vm4479_vm1, %v4436_v37 }
 0x2fb   : > { %v3826_v22 = vpop.permute.xlu1 %3825  ;;  %v9541_v32 = vpop.permute.xlu0 %3539 }
 0x2fd   : > { %3557 = vrot.lane.b32.xlu1 %v3363_v51, %s6901_s20  ;;  %3935 = vrot.lane.b32.xlu0 %v9153_v3, %s6905_s28 }
 0x2ff   : > { %v9546_v4 = vpop.permute.xlu1 %3541  ;;  %v3920_v2 = vpop.permute.xlu0 %3919 }
 0x300   : > { %v4371_v47 = vsel %vm4368_vm14, %v4338_v21, %v3920_v2  ;;  %v6548_v50 = vpop.eup %6547  ;;  %v9638_v21 = vld [vmem:[%s6997_s6 + $0x100] sm:$0x3] }
 0x301   : > { %3937 = vrot.lane.b32.xlu1 %v9167_v9, %s6905_s28  ;;  %3651 = vrot.lane.b32.xlu0 %v9153_v3, %s6902_s22  ;;  %v514_v26 = vadd.f32 1.0, %v6548_v50 }
 0x303   : > { %v3922_v8 = vpop.permute.xlu1 %3921  ;;  %v9552_v35 = vpop.permute.xlu0 %3635  ;;  %6549 = vrcp.f32 %v514_v26 }
 0x305   : > { %3653 = vrot.lane.b32.xlu1 %v9167_v9, %s6902_s22  ;;  %4031 = vrot.lane.b32.xlu0 %v9192_v48, %s6906_s29 }
 0x307   : > { %v9562_v44 = vpop.permute.xlu1 %3637  ;;  %v4016_v46 = vpop.permute.xlu0 %4015 }
 0x308   : > { %v4404_v42 = vsel %vm4401_vm15, %v4371_v47, %v4016_v46  ;;  %v3369_v47 = vrot.slane %v9195_v38, 2 }
 0x309   : > { %4033 = vrot.lane.b32.xlu1 %v9189_v7, %s6906_s29  ;;  %3747 = vrot.lane.b32.xlu0 %v9192_v48, %s6903_s26  ;;  %v4207_v48 = vsel %vm4203_vm9, %v8914_v53, %v9398_v24 }
 0x30a   : > { %v4240_v56 = vsel %vm4236_vm10, %v4207_v48, %v9489_v63 }
 0x30b   : > { %v4018_v1 = vpop.permute.xlu1 %4017  ;;  %v9577_v51 = vpop.permute.xlu0 %3731  ;;  %v4273_v20 = vsel %vm4269_vm11, %v4240_v56, %v9501_v59  ;;  %v355_v56 = vsub.f32 0.0, %v9638_v21 }
 0x30c   : > { %v4306_v24 = vsel %vm4302_vm12, %v4273_v20, %v3730_v29  ;;  %v3370_v20 = vrot.slane %v9186_v30, 2 }
 0x30d   : > { %3749 = vrot.lane.b32.xlu1 %v9189_v7, %s6903_s26  ;;  %4127 = vrot.lane.b32.xlu0 %v3366_v52, %s6907_s30  ;;  %v3368_v7 = vsel %vm3328_vm7, %v3365_v40, %v3367_v31  ;;  %v4339_v12 = vsel %vm4335_vm13, %v4306_v24, %v3826_v22 }
 0x30e   : > { %v4372_v63 = vsel %vm4368_vm14, %v4339_v12, %v3922_v8  ;;  %v9616_v8 = vld [vmem:[%s6997_s6 + $0xf0] sm:$0xff]  ;;  %v441_v12 = vmul.f32 1.442695, %v355_v56 }
 0x30f   : > { %v9595_v55 = vpop.permute.xlu1 %3733  ;;  %v4112_v53 = vpop.permute.xlu0 %4111  ;;  %v4405_v59 = vsel %vm4401_vm15, %v4372_v63, %v4018_v1  ;;  %v353_v46 = vsub.f32 0.0, %v9616_v8  ;;  %v3372_v63 = vrot.slane %v9216_v14, 2 }
 0x310   : > { %v4437_v6 = vsel %vm4434_vm0, %v4404_v42, %v4112_v53  ;;  %v4208_v42 = vsel %vm4203_vm9, %v8942_v45, %v9403_v18  ;;  %v3371_v18 = vsel %vm3328_vm7, %v3369_v47, %v3370_v20 }
 0x311   : > { %4129 = vrot.lane.b32.xlu1 %v3368_v7, %s6907_s30  ;;  %3843 = vrot.lane.b32.xlu0 %v3366_v52, %s6904_s27  ;;  %v437_v33 = vmul.f32 1.442695, %v353_v46  ;;  %v4241_v53 = vsel %vm4236_vm10, %v4208_v42, %v9541_v32 }
 0x312   : > { %5540 = vmatprep.mubr.msk.f32.mxu0 %vm4479_vm1, %v4437_v6  ;;  %v4274_v24 = vsel %vm4269_vm11, %v4241_v53, %v9552_v35  ;;  %v11920_v53 = vld [vmem:[#allocation33_spill] sm:$0xff] }
 0x313   : > { %v4114_v36 = vpop.permute.xlu1 %4113  ;;  %v3828_v29 = vpop.permute.xlu0 %3827  ;;  %6551 = vpow2.f32 %v437_v33  ;;  %v4307_v45 = vsel %vm4302_vm12, %v4274_v24, %v9577_v51 }
 0x314   : > { %v4438_v37 = vsel %vm4434_vm0, %v4405_v59, %v4114_v36  ;;  %6553 = vpow2.f32 %v439_v25  ;;  %v4340_v32 = vsel %vm4335_vm13, %v4307_v45, %v3828_v29  ;;  %v3373_v29 = vsel %vm3328_vm7, %v3370_v20, %v3372_v63  ;;  %v9712_v63 = vld [vmem:[%s6997_s6 + $0x108] sm:$0xff] }
 0x315   : > { %3845 = vrot.lane.b32.xlu1 %v3368_v7, %s6904_s27  ;;  %3559 = vrot.lane.b32.xlu0 %v3366_v52, %s6901_s20  ;;  %6555 = vpow2.f32 %v441_v12  ;;  %v356_v45 = vsub.f32 0.0, %v9712_v63 }
 0x316   : > { %5541 = vmatmul.mubr.msk.f32.gmra.mxu0 %vm4479_vm1, %v4438_v37  ;;  %v6550_v37 = vpop.eup %6549 }
 0x317   : > { %v3830_v22 = vpop.permute.xlu1 %3829  ;;  %v9610_v2 = vpop.permute.xlu0 %3543  ;;  %v676_v17 = vmul.f32 %v9555_v28, %v6550_v37  ;;  %v11919_v28 = vld [vmem:[#allocation105_spill] sm:$0xff]  ;;  %v3375_v37 = vrot.slane %v9238_v0, 2 }
 0x319   : > { %3561 = vrot.lane.b32.xlu1 %v3368_v7, %s6901_s20  ;;  %3939 = vrot.lane.b32.xlu0 %v9195_v38, %s6905_s28  ;;  %v3009_v56 = vsel %vm2979_vm2, %v676_v17, %v8762_v57 }
 0x31a   : > { %v3064_v47 = vsel %vm3034_vm3, %v3009_v56, %v11919_v28 }
 0x31b   : > { %v9619_v61 = vpop.permute.xlu1 %3545  ;;  %v3924_v40 = vpop.permute.xlu0 %3923  ;;  %v3119_v24 = vsel %vm3089_vm4, %v3064_v47, %v11920_v53 }
 0x31c   : > { %v4373_v14 = vsel %vm4368_vm14, %v4340_v32, %v3924_v40  ;;  %v3174_v12 = vsel %vm3144_vm5, %v3119_v24, %v9228_v41  ;;  %v443_v41 = vmul.f32 1.442695, %v356_v45 }
 0x31d   : > { %3941 = vrot.lane.b32.xlu1 %v9186_v30, %s6905_s28  ;;  %3655 = vrot.lane.b32.xlu0 %v9195_v38, %s6902_s22 }
 0x31f   : > { %v3926_v1 = vpop.permute.xlu1 %3925  ;;  %v9629_v31 = vpop.permute.xlu0 %3639 }
 0x321   : > { %3657 = vrot.lane.b32.xlu1 %v9186_v30, %s6902_s22  ;;  %4035 = vrot.lane.b32.xlu0 %v9211_v58, %s6906_s29 }
 0x323   : > { %v9635_v52 = vpop.permute.xlu1 %3641  ;;  %v4020_v48 = vpop.permute.xlu0 %4019 }
 0x324   : > { %v4406_v59 = vsel %vm4401_vm15, %v4373_v14, %v4020_v48 }
 0x325   : > { %4037 = vrot.lane.b32.xlu1 %v9235_v5, %s6906_s29  ;;  %3751 = vrot.lane.b32.xlu0 %v9211_v58, %s6903_s26  ;;  %v4209_v58 = vsel %vm4203_vm9, %v8931_v54, %v9405_v39 }
 0x326   : > { %v4242_v35 = vsel %vm4236_vm10, %v4209_v58, %v9546_v4 }
 0x327   : > { %v4022_v6 = vpop.permute.xlu1 %4021  ;;  %v9654_v7 = vpop.permute.xlu0 %3735  ;;  %v4275_v51 = vsel %vm4269_vm11, %v4242_v35, %v9562_v44  ;;  %v9718_v35 = vld [vmem:[%s6997_s6 + $0x110] sm:$0xff] }
 0x328   : > { %v4308_v39 = vsel %vm4302_vm12, %v4275_v51, %v9595_v55  ;;  %v6552_v55 = vpop.eup %6551  ;;  %v357_v14 = vsub.f32 0.0, %v9718_v35  ;;  %v3296_v51 = vrot.slane %v3174_v12, 1 }
 0x329   : > { %3753 = vrot.lane.b32.xlu1 %v9235_v5, %s6903_s26  ;;  %4131 = vrot.lane.b32.xlu0 %v3371_v18, %s6907_s30  ;;  %v4341_v4 = vsel %vm4335_vm13, %v4308_v39, %v3830_v22  ;;  %v6554_v33 = vpop.eup %6553  ;;  %v515_v22 = vadd.f32 1.0, %v6552_v55 }
 0x32a   : > { %v4374_v44 = vsel %vm4368_vm14, %v4341_v4, %v3926_v1  ;;  %v516_v48 = vadd.f32 1.0, %v6554_v33  ;;  %v445_v39 = vmul.f32 1.442695, %v357_v14  ;;  %v4210_v4 = vsel %vm4203_vm9, %v8984_v10, %v9411_v62 }
 0x32b   : > { %v9673_v36 = vpop.permute.xlu1 %3737  ;;  %v4116_v54 = vpop.permute.xlu0 %4115  ;;  %v4407_v50 = vsel %vm4401_vm15, %v4374_v44, %v4022_v6  ;;  %6557 = vrcp.f32 %v515_v22  ;;  %v4243_v44 = vsel %vm4236_vm10, %v4210_v4, %v9610_v2  ;;  %v3377_v33 = vrot.slane %v3174_v12, 2 }
 0x32c   : > { %v4439_v5 = vsel %vm4434_vm0, %v4406_v59, %v4116_v54  ;;  %6559 = vrcp.f32 %v516_v48  ;;  %v6556_v6 = vpop.eup %6555  ;;  %v4276_v17 = vsel %vm4269_vm11, %v4243_v44, %v9629_v31  ;;  %v4211_v48 = vsel %vm4203_vm9, %v8999_v43, %v9417_v49 }
 0x32d   : > { %4133 = vrot.lane.b32.xlu1 %v3373_v29, %s6907_s30  ;;  %3847 = vrot.lane.b32.xlu0 %v3371_v18, %s6904_s27  ;;  %v517_v32 = vadd.f32 1.0, %v6556_v6  ;;  %v4244_v31 = vsel %vm4236_vm10, %v4211_v48, %v9619_v61 }
 0x32e   : > { %5543 = vmatprep.mubr.msk.f32.mxu0 %vm4479_vm1, %v4439_v5  ;;  %v11921_v5 = vrot.slane %v9238_v0, 1  ;;  %v4277_v53 = vsel %vm4269_vm11, %v4244_v31, %v9635_v52 }
 0x32f   : > { %v4118_v46 = vpop.permute.xlu1 %4117  ;;  %v3832_v40 = vpop.permute.xlu0 %3831  ;;  %6561 = vrcp.f32 %v517_v32  ;;  %v4310_v6 = vsel %vm4302_vm12, %v4277_v53, %v9673_v36 }
 0x330   : > { %v4440_v26 = vsel %vm4434_vm0, %v4407_v50, %v4118_v46  ;;  %v3374_v50 = vrot.slane %v9226_v15, 2  ;;  %6563 = vpow2.f32 %v443_v41  ;;  %v9741_v46 = vld [vmem:[%s6997_s6 + $0x118] sm:$0x3] }
 0x331   : > { %3849 = vrot.lane.b32.xlu1 %v3373_v29, %s6904_s27  ;;  %3563 = vrot.lane.b32.xlu0 %v3371_v18, %s6901_s20  ;;  %v358_v55 = vsub.f32 0.0, %v9741_v46  ;;  %6565 = vpow2.f32 %v445_v39  ;;  %v11923_v41 = vld [vmem:[#allocation76_spill] sm:$0xff]  ;;  %v11924_v39 = vld [vmem:[#allocation35_spill] sm:$0xff] }
 0x332   : > { %5544 = vmatmul.mubr.msk.f32.gmra.mxu0 %vm4479_vm1, %v4440_v26  ;;  %v3376_v2 = vsel %vm3328_vm7, %v3374_v50, %v3375_v37 }
 0x333   : > { %v9690_v1 = vpop.permute.xlu1 %3833  ;;  %v9692_v25 = vpop.permute.xlu0 %3547  ;;  %v447_v47 = vmul.f32 1.442695, %v358_v55  ;;  %v11925_v55 = vld [vmem:[#allocation34_spill] sm:$0xff] }
 0x335   : > { %3565 = vrot.lane.b32.xlu1 %v3373_v29, %s6901_s20  ;;  %3943 = vrot.lane.b32.xlu0 %v9226_v15, %s6905_s28  ;;  %v3297_v29 = vsel %vm3247_vm6, %v11921_v5, %v3296_v51  ;;  %6567 = vpow2.f32 %v447_v47 }
 0x337   : > { %v9701_v20 = vpop.permute.xlu1 %3549  ;;  %v3928_v42 = vpop.permute.xlu0 %3927 }
 0x338   : > { %v6558_v62 = vpop.eup %6557 }
 0x339   : > { %3945 = vrot.lane.b32.xlu1 %v9238_v0, %s6905_s28  ;;  %3659 = vrot.lane.b32.xlu0 %v9226_v15, %s6902_s22  ;;  %v6560_v22 = vpop.eup %6559 }
 0x33b   : > { %v3930_v18 = vpop.permute.xlu1 %3929  ;;  %v9715_v58 = vpop.permute.xlu0 %3643 }
 0x33c   : > { %v6562_v14 = vpop.eup %6561 }
 0x33d   : > { %3661 = vrot.lane.b32.xlu1 %v9238_v0, %s6902_s22  ;;  %4039 = vrot.lane.b32.xlu0 %v9249_v16, %s6906_s29  ;;  %v6564_v44 = vpop.eup %6563  ;;  %v679_v50 = vmul.f32 %v9638_v21, %v6562_v14 }
 0x33f   : > { %v9725_v59 = vpop.permute.xlu1 %3645  ;;  %v4024_v54 = vpop.permute.xlu0 %4023 }
 0x341   : > { %4041 = vrot.lane.b32.xlu1 %v3297_v29, %s6906_s29  ;;  %3755 = vrot.lane.b32.xlu0 %v9249_v16, %s6903_s26  ;;  %v4309_v16 = vsel %vm4302_vm12, %v4276_v17, %v9654_v7  ;;  %v677_v7 = vmul.f32 %v9616_v8, %v6558_v62  ;;  %v4343_v8 = vsel %vm4335_vm13, %v4310_v6, %v9690_v1 }
 0x342   : > { %v4342_v56 = vsel %vm4335_vm13, %v4309_v16, %v3832_v40  ;;  %v678_v40 = vmul.f32 %v9622_v13, %v6560_v22  ;;  %v4376_v52 = vsel %vm4368_vm14, %v4343_v8, %v3930_v18  ;;  %v11922_v18 = vld [vmem:[#allocation106_spill] sm:$0xff] }
 0x343   : > { %v4026_v26 = vpop.permute.xlu1 %4025  ;;  %v9746_v10 = vpop.permute.xlu0 %3739  ;;  %v4375_v28 = vsel %vm4368_vm14, %v4342_v56, %v3928_v42  ;;  %v3378_v42 = vsel %vm3328_vm7, %v3375_v37, %v3377_v33  ;;  %v3010_v13 = vsel %vm2979_vm2, %v677_v7, %v8759_v11  ;;  %v518_v33 = vadd.f32 1.0, %v6564_v44  ;;  %v11927_v7 = vld [vmem:[#allocation13_spill] sm:$0xff]  ;;  %v11929_v44 = vld [vmem:[#allocation44_spill] sm:$0xff] }
 0x344   : > { %v4408_v24 = vsel %vm4401_vm15, %v4375_v28, %v4024_v54  ;;  %v4409_v36 = vsel %vm4401_vm15, %v4376_v52, %v4026_v26  ;;  %v3011_v32 = vsel %vm2979_vm2, %v678_v40, 0.7310586  ;;  %v3065_v51 = vsel %vm3034_vm3, %v3010_v13, %v11922_v18  ;;  %v6566_v26 = vpop.eup %6565  ;;  %v9833_v40 = vld [vmem:[%s6997_s6 + $0x128] sm:$0xff] }
 0x345   : > { %3757 = vrot.lane.b32.xlu1 %v3297_v29, %s6903_s26  ;;  %4135 = vrot.lane.b32.xlu0 %v3376_v2, %s6907_s30  ;;  %v3066_v54 = vsel %vm3034_vm3, %v3011_v32, %v11923_v41  ;;  %v3120_v5 = vsel %vm3089_vm4, %v3065_v51, %v11924_v39  ;;  %v519_v22 = vadd.f32 1.0, %v6566_v26  ;;  %6569 = vrcp.f32 %v518_v33 }
 0x346   : > { %v9802_v17 = vsel %vm3144_vm5, %v3120_v5, %v9253_v23  ;;  %v360_v6 = vsub.f32 0.0, %v9833_v40  ;;  %v4212_v32 = vsel %vm4203_vm9, %v9022_v60, %v9425_v34  ;;  %v11928_v5 = vld [vmem:[#allocation58_spill] sm:$0xff] }
 0x347   : > { %v9764_v43 = vpop.permute.xlu1 %3741  ;;  %v4120_v49 = vpop.permute.xlu0 %4119  ;;  %v3298_v23 = vrot.slane %v9802_v17, 1  ;;  %6571 = vrcp.f32 %v519_v22 }
 0x348   : > { %v4441_v61 = vsel %vm4434_vm0, %v4408_v24, %v4120_v49  ;;  %v6568_v24 = vpop.eup %6567  ;;  %v451_v14 = vmul.f32 1.442695, %v360_v6 }
 0x349   : > { %4137 = vrot.lane.b32.xlu1 %v3378_v42, %s6907_s30  ;;  %3851 = vrot.lane.b32.xlu0 %v3376_v2, %s6904_s27  ;;  %v520_v13 = vadd.f32 1.0, %v6568_v24 }
 0x34a   : > { %5546 = vmatprep.mubr.msk.f32.mxu0 %vm4479_vm1, %v4441_v61  ;;  %v9837_v61 = vld [vmem:[%s6997_s6 + $0x120] sm:$0xff] }
 0x34b   : > { %v4122_v12 = vpop.permute.xlu1 %4121  ;;  %v9780_v45 = vpop.permute.xlu0 %3835  ;;  %6573 = vrcp.f32 %v520_v13 }
 0x34c   : > { %v4442_v1 = vsel %vm4434_vm0, %v4409_v36, %v4122_v12 }
 0x34d   : > { %3567 = vrot.lane.b32.xlu1 %v3376_v2, %s6901_s20  ;;  %3473 = vrot.lane.b32.xlu0 %v3297_v29, %s6900_s17  ;;  %v3121_v29 = vsel %vm3089_vm4, %v3066_v54, %v11925_v55  ;;  %v3012_v2 = vsel %vm2979_vm2, %v679_v50, %v8762_v57  ;;  %v9871_v55 = vld [vmem:[%s6997_s6 + $0x130] sm:$0x3] }
 0x34e   : > { %5547 = vmatmul.mubr.msk.f32.gmra.mxu0 %vm4479_vm1, %v4442_v1  ;;  %v9806_v62 = vsel %vm3144_vm5, %v3121_v29, %v9251_v19  ;;  %v11926_v19 = vld [vmem:[#allocation108_spill] sm:$0xff]  ;;  %v4245_v1 = vsel %vm4236_vm10, %v4212_v32, %v9692_v25  ;;  %v4213_v25 = vsel %vm4203_vm9, %v11929_v44, %v11928_v5  ;;  %v361_v29 = vsub.f32 0.0, %v9871_v55  ;;  %v11935_v44 = vld [vmem:[#allocation118_spill] sm:$0xff] }
 0x34f   : > { %v9793_v37 = vpop.permute.xlu1 %3837  ;;  %v9795_v4 = vpop.permute.xlu0 %3551  ;;  %v3299_v48 = vrot.slane %v9806_v62, 1  ;;  %v3067_v56 = vsel %vm3034_vm3, %v3012_v2, %v11926_v19  ;;  %v3380_v12 = vrot.slane %v9806_v62, 2  ;;  %v4278_v51 = vsel %vm4269_vm11, %v4245_v1, %v9715_v58 }
 0x350   : > { %v3122_v47 = vsel %vm3089_vm4, %v3067_v56, %v11927_v7  ;;  %v4311_v60 = vsel %vm4302_vm12, %v4278_v51, %v9746_v10  ;;  %v4246_v58 = vsel %vm4236_vm10, %v4213_v25, %v9701_v20  ;;  %v453_v7 = vmul.f32 1.442695, %v361_v29 }
 0x351   : > { %3947 = vrot.lane.b32.xlu1 %v9802_v17, %s6905_s28  ;;  %3853 = vrot.lane.b32.xlu0 %v3378_v42, %s6904_s27  ;;  %v3300_v53 = vsel %vm3247_vm6, %v3298_v23, %v3299_v48  ;;  %v3177_v49 = vsel %vm3144_vm5, %v3122_v47, %v9271_v27  ;;  %v3379_v27 = vrot.slane %v9802_v17, 2  ;;  %v4344_v50 = vsel %vm4335_vm13, %v4311_v60, %v9780_v45 }
 0x352   : > { %v3301_v36 = vrot.slane %v3177_v49, 1  ;;  %v4279_v26 = vsel %vm4269_vm11, %v4246_v58, %v9725_v59  ;;  %v6570_v22 = vpop.eup %6569  ;;  %v3382_v23 = vrot.slane %v3177_v49, 2 }
 0x353   : > { %v9811_v16 = vpop.permute.xlu1 %3553  ;;  %v3932_v21 = vpop.permute.xlu0 %3931  ;;  %v3381_v34 = vsel %vm3328_vm7, %v3379_v27, %v3380_v12  ;;  %v4312_v20 = vsel %vm4302_vm12, %v4279_v26, %v9764_v43  ;;  %v680_v56 = vmul.f32 %v9712_v63, %v6570_v22 }
 0x354   : > { %v3302_v39 = vsel %vm3247_vm6, %v3299_v48, %v3301_v36  ;;  %v4377_v10 = vsel %vm4368_vm14, %v4344_v50, %v3932_v21  ;;  %v6572_v48 = vpop.eup %6571  ;;  %v4345_v19 = vsel %vm4335_vm13, %v4312_v20, %v9793_v37  ;;  %v3383_v6 = vsel %vm3328_vm7, %v3380_v12, %v3382_v23  ;;  %v11931_v36 = vld [vmem:[#allocation112_spill] sm:$0xff]  ;;  %v11932_v12 = vld [vmem:[#allocation14_spill] sm:$0xff] }
 0x355   : > { %3663 = vrot.lane.b32.xlu1 %v9802_v17, %s6902_s22  ;;  %3569 = vrot.lane.b32.xlu0 %v3378_v42, %s6901_s20  ;;  %v359_v42 = vsub.f32 0.0, %v9837_v61  ;;  %v681_v49 = vmul.f32 %v9718_v35, %v6572_v48  ;;  %v3013_v63 = vsel %vm2979_vm2, %v680_v56, %v8759_v11  ;;  %v11937_v48 = vld [vmem:[#allocation36_spill] sm:$0xff]  ;;  %v11938_v56 = vld [vmem:[#allocation47_spill] sm:$0xff] }
 0x357   : > { %v3934_v31 = vpop.permute.xlu1 %3933  ;;  %v9822_v28 = vpop.permute.xlu0 %3647  ;;  %v449_v18 = vmul.f32 1.442695, %v359_v42  ;;  %v3014_v35 = vsel %vm2979_vm2, %v681_v49, 0.7310586 }
 0x358   : > { %v4378_v59 = vsel %vm4368_vm14, %v4345_v19, %v3934_v31  ;;  %v6574_v42 = vpop.eup %6573  ;;  %v3069_v27 = vsel %vm3034_vm3, %v3014_v35, %v11931_v36 }
 0x359   : > { %4043 = vrot.lane.b32.xlu1 %v3300_v53, %s6906_s29  ;;  %3949 = vrot.lane.b32.xlu0 %v9806_v62, %s6905_s28  ;;  %6575 = vpow2.f32 %v449_v18  ;;  %v682_v51 = vmul.f32 %v9741_v46, %v6574_v42  ;;  %v9960_v42 = vld [vmem:[%s6997_s6 + $0x140] sm:$0xff] }
 0x35a   : > { %6577 = vpow2.f32 %v451_v14 }
 0x35b   : > { %v9840_v8 = vpop.permute.xlu1 %3649  ;;  %v4028_v52 = vpop.permute.xlu0 %4027  ;;  %6579 = vpow2.f32 %v453_v7 }
 0x35c   : > { %v4410_v33 = vsel %vm4401_vm15, %v4377_v10, %v4028_v52  ;;  %v11930_v52 = vld [vmem:[#allocation107_spill] sm:$0xff]  ;;  %v3015_v10 = vsel %vm2979_vm2, %v682_v51, %v8762_v57  ;;  %v11941_v51 = vld [vmem:[#allocation25_spill] sm:$0xff] }
 0x35d   : > { %3759 = vrot.lane.b32.xlu1 %v3300_v53, %s6903_s26  ;;  %3665 = vrot.lane.b32.xlu0 %v9806_v62, %s6902_s22  ;;  %v3068_v13 = vsel %vm3034_vm3, %v3013_v63, %v11930_v52  ;;  %v363_v52 = vsub.f32 0.0, %v9960_v42 }
 0x35e   : > { %v3123_v32 = vsel %vm3089_vm4, %v3068_v13, %v11932_v12 }
 0x35f   : > { %v4030_v41 = vpop.permute.xlu1 %4029  ;;  %v9854_v54 = vpop.permute.xlu0 %3743 }
 0x360   : > { %v4411_v47 = vsel %vm4401_vm15, %v4378_v59, %v4030_v41  ;;  %v11933_v41 = vld [vmem:[#allocation93_spill] sm:$0xff] }
 0x361   : > { %4139 = vrot.lane.b32.xlu1 %v3381_v34, %s6907_s30  ;;  %4045 = vrot.lane.b32.xlu0 %v3302_v39, %s6906_s29  ;;  %v3124_v60 = vsel %vm3089_vm4, %v3069_v27, %v11933_v41  ;;  %v11942_v41 = vld [vmem:[#allocation45_spill] sm:$0xff] }
 0x362   : > { %v9924_v25 = vsel %vm3144_vm5, %v3124_v60, %v11935_v44  ;;  %v457_v44 = vmul.f32 1.442695, %v363_v52 }
 0x363   : > { %v9877_v45 = vpop.permute.xlu1 %3745  ;;  %v4124_v2 = vpop.permute.xlu0 %4123  ;;  %v3304_v26 = vrot.slane %v9924_v25, 1 }
 0x364   : > { %v4443_v21 = vsel %vm4434_vm0, %v4410_v33, %v4124_v2  ;;  %v11936_v2 = vld [vmem:[#allocation111_spill] sm:$0xff] }
 0x365   : > { %3761 = vrot.lane.b32.xlu1 %v3302_v39, %s6903_s26  ;;  %3475 = vrot.lane.b32.xlu0 %v3300_v53, %s6900_s17  ;;  %v3070_v22 = vsel %vm3034_vm3, %v3015_v10, %v11936_v2 }
 0x366   : > { %5549 = vmatprep.mubr.msk.f32.mxu0 %vm4479_vm1, %v4443_v21  ;;  %v6576_v18 = vpop.eup %6575  ;;  %v3125_v19 = vsel %vm3089_vm4, %v3070_v22, %v11937_v48 }
 0x367   : > { %v4126_v43 = vpop.permute.xlu1 %4125  ;;  %v9890_v24 = vpop.permute.xlu0 %3839  ;;  %v521_v50 = vadd.f32 1.0, %v6576_v18  ;;  %v3180_v7 = vsel %vm3144_vm5, %v3125_v19, %v11938_v56  ;;  %v3385_v18 = vrot.slane %v9924_v25, 2 }
 0x368   : > { %v4444_v37 = vsel %vm4434_vm0, %v4411_v47, %v4126_v43  ;;  %v6578_v5 = vpop.eup %6577  ;;  %v11939_v47 = vld [vmem:[#allocation15_spill] sm:$0xff]  ;;  %v11940_v43 = vld [vmem:[#allocation113_spill] sm:$0xff]  ;;  %v3306_v12 = vrot.slane %v3180_v7, 1 }
 0x369   : > { %4141 = vrot.lane.b32.xlu1 %v3383_v6, %s6907_s30  ;;  %3855 = vrot.lane.b32.xlu0 %v3381_v34, %s6904_s27  ;;  %v522_v29 = vadd.f32 1.0, %v6578_v5  ;;  %6581 = vrcp.f32 %v521_v50  ;;  %v6580_v21 = vpop.eup %6579  ;;  %v4214_v49 = vsel %vm4203_vm9, %v11940_v43, %v11939_v47 }
 0x36a   : > { %5550 = vmatmul.mubr.msk.f32.gmra.mxu0 %vm4479_vm1, %v4444_v37  ;;  %v9954_v37 = vld [vmem:[%s6997_s6 + $0x138] sm:$0xff]  ;;  %v4247_v63 = vsel %vm4236_vm10, %v4214_v49, %v9795_v4  ;;  %v523_v35 = vadd.f32 1.0, %v6580_v21  ;;  %v4215_v4 = vsel %vm4203_vm9, %v11942_v41, %v11941_v51  ;;  %v3307_v2 = vsel %vm3247_vm6, %v3304_v26, %v3306_v12  ;;  %v11944_v12 = vld [vmem:[#allocation115_spill] sm:$0xff] }
 0x36b   : > { %v9900_v31 = vpop.permute.xlu1 %3841  ;;  %v9902_v53 = vpop.permute.xlu0 %3555  ;;  %6583 = vrcp.f32 %v522_v29  ;;  %v4280_v13 = vsel %vm4269_vm11, %v4247_v63, %v9822_v28 }
 0x36c   : > { %6585 = vrcp.f32 %v523_v35 }
 0x36d   : > { %3571 = vrot.lane.b32.xlu1 %v3381_v34, %s6901_s20  ;;  %3477 = vrot.lane.b32.xlu0 %v3302_v39, %s6900_s17  ;;  %v11934_v34 = vld [vmem:[#allocation116_spill] sm:$0xff] }
 0x36e   : > { %v9920_v39 = vsel %vm3144_vm5, %v3123_v32, %v11934_v34  ;;  %v4313_v32 = vsel %vm4302_vm12, %v4280_v13, %v9854_v54  ;;  %v4248_v34 = vsel %vm4236_vm10, %v4215_v4, %v9811_v16 }
 0x36f   : > { %v9913_v1 = vpop.permute.xlu1 %3557  ;;  %v3936_v14 = vpop.permute.xlu0 %3935  ;;  %v3303_v33 = vrot.slane %v9920_v39, 1  ;;  %v4346_v60 = vsel %vm4335_vm13, %v4313_v32, %v9890_v24  ;;  %v3384_v5 = vrot.slane %v9920_v39, 2  ;;  %v4281_v50 = vsel %vm4269_vm11, %v4248_v34, %v9840_v8  ;;  %v11946_v34 = vld [vmem:[#allocation37_spill] sm:$0xff] }
 0x370   : > { %v4379_v54 = vsel %vm4368_vm14, %v4346_v60, %v3936_v14 }
 0x371   : > { %3951 = vrot.lane.b32.xlu1 %v9920_v39, %s6905_s28  ;;  %3857 = vrot.lane.b32.xlu0 %v3383_v6, %s6904_s27  ;;  %v3305_v59 = vsel %vm3247_vm6, %v3303_v33, %v3304_v26  ;;  %v4314_v33 = vsel %vm4302_vm12, %v4281_v50, %v9877_v45  ;;  %v3386_v14 = vsel %vm3328_vm7, %v3384_v5, %v3385_v18  ;;  %v11947_v5 = vld [vmem:[#allocation119_spill] sm:$0xff] }
 0x372   : > { %v4347_v22 = vsel %vm4335_vm13, %v4314_v33, %v9900_v31  ;;  %v3387_v31 = vrot.slane %v3180_v7, 2 }
 0x373   : > { %v3938_v58 = vpop.permute.xlu1 %3937  ;;  %v9929_v46 = vpop.permute.xlu0 %3651 }
 0x374   : > { %v4380_v8 = vsel %vm4368_vm14, %v4347_v22, %v3938_v58  ;;  %v3388_v7 = vsel %vm3328_vm7, %v3385_v18, %v3387_v31  ;;  %v11945_v18 = vld [vmem:[#allocation96_spill] sm:$0xff]  ;;  %v11951_v31 = vld [vmem:[#allocation122_spill] sm:$0xff] }
 0x375   : > { %3667 = vrot.lane.b32.xlu1 %v9920_v39, %s6902_s22  ;;  %3573 = vrot.lane.b32.xlu0 %v3383_v6, %s6901_s20  ;;  %v362_v6 = vsub.f32 0.0, %v9954_v37 }
 0x376   : > { %v6582_v19 = vpop.eup %6581 }
 0x377   : > { %v9940_v23 = vpop.permute.xlu1 %3653  ;;  %v4032_v20 = vpop.permute.xlu0 %4031  ;;  %v455_v28 = vmul.f32 1.442695, %v362_v6  ;;  %v683_v58 = vmul.f32 %v9837_v61, %v6582_v19 }
 0x378   : > { %v4412_v24 = vsel %vm4401_vm15, %v4379_v54, %v4032_v20  ;;  %v9999_v20 = vld [vmem:[%s6997_s6 + $0x148] sm:$0x3]  ;;  %v6584_v47 = vpop.eup %6583 }
 0x379   : > { %4047 = vrot.lane.b32.xlu1 %v3305_v59, %s6906_s29  ;;  %3953 = vrot.lane.b32.xlu0 %v9924_v25, %s6905_s28  ;;  %6587 = vpow2.f32 %v455_v28  ;;  %v364_v45 = vsub.f32 0.0, %v9999_v20  ;;  %v684_v63 = vmul.f32 %v9833_v40, %v6584_v47  ;;  %v6586_v52 = vpop.eup %6585  ;;  %v11943_v40 = vld [vmem:[#allocation117_spill] sm:$0xff] }
 0x37a   : > { %6589 = vpow2.f32 %v457_v44  ;;  %v685_v28 = vmul.f32 %v9871_v55, %v6586_v52 }
 0x37b   : > { %v4034_v36 = vpop.permute.xlu1 %4033  ;;  %v9965_v27 = vpop.permute.xlu0 %3747  ;;  %v459_v43 = vmul.f32 1.442695, %v364_v45  ;;  %v3017_v13 = vsel %vm2979_vm2, %v684_v63, 0.7310586  ;;  %v11949_v45 = vld [vmem:[#allocation21_spill] sm:$0xff] }
 0x37c   : > { %v4413_v21 = vsel %vm4401_vm15, %v4380_v8, %v4034_v36  ;;  %v3072_v32 = vsel %vm3034_vm3, %v3017_v13, %v11944_v12  ;;  %v11953_v13 = vld [vmem:[#allocation120_spill] sm:$0xff]  ;;  %v11955_v12 = vld [vmem:[#allocation114_spill] sm:$0xff] }
 0x37d   : > { %3763 = vrot.lane.b32.xlu1 %v3305_v59, %s6903_s26  ;;  %3669 = vrot.lane.b32.xlu0 %v9924_v25, %s6902_s22  ;;  %6591 = vpow2.f32 %v459_v43  ;;  %v3127_v54 = vsel %vm3089_vm4, %v3072_v32, %v11946_v34 }
 0x37f   : > { %v9985_v10 = vpop.permute.xlu1 %3749  ;;  %v4128_v29 = vpop.permute.xlu0 %4127 }
 0x380   : > { %v4445_v16 = vsel %vm4434_vm0, %v4412_v24, %v4128_v29  ;;  %v11948_v24 = vld [vmem:[#allocation48_spill] sm:$0xff] }
 0x381   : > { %4143 = vrot.lane.b32.xlu1 %v3386_v14, %s6907_s30  ;;  %4049 = vrot.lane.b32.xlu0 %v3307_v2, %s6906_s29  ;;  %v10040_v29 = vsel %vm3144_vm5, %v3127_v54, %v11948_v24 }
 0x382   : > { %5552 = vmatprep.mubr.msk.f32.mxu0 %vm4479_vm1, %v4445_v16  ;;  %v3309_v8 = vrot.slane %v10040_v29, 1 }
 0x383   : > { %v4130_v48 = vpop.permute.xlu1 %4129  ;;  %v3844_v26 = vpop.permute.xlu0 %3843 }
 0x384   : > { %v4446_v56 = vsel %vm4434_vm0, %v4413_v21, %v4130_v48  ;;  %v11950_v21 = vld [vmem:[#allocation46_spill] sm:$0xff] }
 0x385   : > { %3765 = vrot.lane.b32.xlu1 %v3307_v2, %s6903_s26  ;;  %3479 = vrot.lane.b32.xlu0 %v3305_v59, %s6900_s17  ;;  %v3016_v59 = vsel %vm2979_vm2, %v683_v58, %v8759_v11  ;;  %v4216_v48 = vsel %vm4203_vm9, %v11950_v21, %v11949_v45 }
 0x386   : > { %5553 = vmatmul.mubr.msk.f32.gmra.mxu0 %vm4479_vm1, %v4446_v56  ;;  %v3071_v36 = vsel %vm3034_vm3, %v3016_v59, %v11943_v40  ;;  %v6588_v60 = vpop.eup %6587  ;;  %v4249_v19 = vsel %vm4236_vm10, %v4216_v48, %v9902_v53  ;;  %v11952_v59 = vld [vmem:[#allocation97_spill] sm:$0xff] }
 0x387   : > { %v10008_v49 = vpop.permute.xlu1 %3845  ;;  %v10010_v6 = vpop.permute.xlu0 %3559  ;;  %v3126_v51 = vsel %vm3089_vm4, %v3071_v36, %v11945_v18  ;;  %v524_v33 = vadd.f32 1.0, %v6588_v60  ;;  %v4282_v47 = vsel %vm4269_vm11, %v4249_v19, %v9929_v46  ;;  %v11954_v36 = vld [vmem:[#allocation7_spill] sm:$0xff]  ;;  %v10080_v18 = vld [vmem:[%s6997_s6 + $0x158] sm:$0xff] }
 0x388   : > { %v10036_v44 = vsel %vm3144_vm5, %v3126_v51, %v11947_v5  ;;  %v6590_v50 = vpop.eup %6589  ;;  %v4315_v53 = vsel %vm4302_vm12, %v4282_v47, %v9965_v27  ;;  %v4217_v46 = vsel %vm4203_vm9, %v11955_v12, %v11954_v36  ;;  %v366_v27 = vsub.f32 0.0, %v10080_v18  ;;  %v10084_v51 = vld [vmem:[%s6997_s6 + $0x150] sm:$0xff] }
 0x389   : > { %4145 = vrot.lane.b32.xlu1 %v3388_v7, %s6907_s30  ;;  %3859 = vrot.lane.b32.xlu0 %v3386_v14, %s6904_s27  ;;  %v3308_v22 = vrot.slane %v10036_v44, 1  ;;  %6593 = vrcp.f32 %v524_v33  ;;  %v4348_v32 = vsel %vm4335_vm13, %v4315_v53, %v3844_v26  ;;  %v365_v60 = vsub.f32 0.0, %v10084_v51 }
 0x38a   : > { %v6592_v63 = vpop.eup %6591  ;;  %v3390_v33 = vrot.slane %v10040_v29, 2 }
 0x38b   : > { %v10018_v35 = vpop.permute.xlu1 %3561  ;;  %v3940_v61 = vpop.permute.xlu0 %3939  ;;  %v3310_v52 = vsel %vm3247_vm6, %v3308_v22, %v3309_v8  ;;  %v526_v54 = vadd.f32 1.0, %v6592_v63  ;;  %v461_v45 = vmul.f32 1.442695, %v365_v60 }
 0x38c   : > { %v4381_v34 = vsel %vm4368_vm14, %v4348_v32, %v3940_v61 }
 0x38d   : > { %3575 = vrot.lane.b32.xlu1 %v3386_v14, %s6901_s20  ;;  %3481 = vrot.lane.b32.xlu0 %v3307_v2, %s6900_s17  ;;  %v3018_v14 = vsel %vm2979_vm2, %v685_v28, %v8762_v57  ;;  %v525_v2 = vadd.f32 1.0, %v6590_v50  ;;  %v4250_v28 = vsel %vm4236_vm10, %v4217_v46, %v9913_v1  ;;  %v3389_v1 = vrot.slane %v10036_v44, 2 }
 0x38e   : > { %v3073_v56 = vsel %vm3034_vm3, %v3018_v14, %v11951_v31  ;;  %v4283_v26 = vsel %vm4269_vm11, %v4250_v28, %v9940_v23  ;;  %v463_v23 = vmul.f32 1.442695, %v366_v27 }
 0x38f   : > { %v3942_v41 = vpop.permute.xlu1 %3941  ;;  %v10029_v4 = vpop.permute.xlu0 %3655  ;;  %6595 = vrcp.f32 %v525_v2  ;;  %v4316_v2 = vsel %vm4302_vm12, %v4283_v26, %v9985_v10  ;;  %v11958_v26 = vld [vmem:[#allocation38_spill] sm:$0xff] }
 0x390   : > { %v4349_v61 = vsel %vm4335_vm13, %v4316_v2, %v10008_v49  ;;  %6597 = vrcp.f32 %v526_v54  ;;  %v3391_v49 = vsel %vm3328_vm7, %v3389_v1, %v3390_v33 }
 0x391   : > { %3955 = vrot.lane.b32.xlu1 %v10036_v44, %s6905_s28  ;;  %3861 = vrot.lane.b32.xlu0 %v3388_v7, %s6904_s27  ;;  %6599 = vpow2.f32 %v463_v23 }
 0x392   : > { %6601 = vpow2.f32 %v461_v45 }
 0x393   : > { %v10045_v16 = vpop.permute.xlu1 %3657  ;;  %v4036_v55 = vpop.permute.xlu0 %4035 }
 0x394   : > { %v4414_v5 = vsel %vm4401_vm15, %v4381_v34, %v4036_v55  ;;  %v4382_v55 = vsel %vm4368_vm14, %v4349_v61, %v3942_v41  ;;  %v11957_v34 = vld [vmem:[#allocation124_spill] sm:$0xff]  ;;  %v11960_v61 = vld [vmem:[#allocation49_spill] sm:$0xff] }
 0x395   : > { %3671 = vrot.lane.b32.xlu1 %v10036_v44, %s6902_s22  ;;  %3577 = vrot.lane.b32.xlu0 %v3388_v7, %s6901_s20  ;;  %v3128_v7 = vsel %vm3089_vm4, %v3073_v56, %v11952_v59 }
 0x396   : > { %v3183_v40 = vsel %vm3144_vm5, %v3128_v7, %v11953_v13  ;;  %v6594_v47 = vpop.eup %6593 }
 0x397   : > { %v4038_v58 = vpop.permute.xlu1 %4037  ;;  %v10063_v43 = vpop.permute.xlu0 %3751  ;;  %v3311_v14 = vrot.slane %v3183_v40, 1  ;;  %v3392_v59 = vrot.slane %v3183_v40, 2 }
 0x398   : > { %v4415_v10 = vsel %vm4401_vm15, %v4382_v55, %v4038_v58  ;;  %v10119_v58 = vld [vmem:[%s6997_s6 + $0x160] sm:$0x3]  ;;  %v11961_v55 = vld [vmem:[#allocation127_spill] sm:$0xff] }
 0x399   : > { %4051 = vrot.lane.b32.xlu1 %v3310_v52, %s6906_s29  ;;  %3957 = vrot.lane.b32.xlu0 %v10040_v29, %s6905_s28  ;;  %v3312_v31 = vsel %vm3247_vm6, %v3309_v8, %v3311_v14  ;;  %v367_v63 = vsub.f32 0.0, %v10119_v58  ;;  %v686_v8 = vmul.f32 %v9954_v37, %v6594_v47  ;;  %v3393_v46 = vsel %vm3328_vm7, %v3390_v33, %v3392_v59 }
 0x39b   : > { %v10093_v50 = vpop.permute.xlu1 %3753  ;;  %v4132_v24 = vpop.permute.xlu0 %4131  ;;  %v465_v12 = vmul.f32 1.442695, %v367_v63  ;;  %v3019_v40 = vsel %vm2979_vm2, %v686_v8, %v8759_v11  ;;  %v11963_v8 = vld [vmem:[#allocation64_spill] sm:$0xff] }
 0x39c   : > { %v4447_v22 = vsel %vm4434_vm0, %v4414_v5, %v4132_v24  ;;  %v6596_v7 = vpop.eup %6595 }
 0x39d   : > { %3767 = vrot.lane.b32.xlu1 %v3310_v52, %s6903_s26  ;;  %3673 = vrot.lane.b32.xlu0 %v10040_v29, %s6902_s22  ;;  %v687_v36 = vmul.f32 %v9960_v42, %v6596_v7  ;;  %6603 = vpow2.f32 %v465_v12  ;;  %v11956_v42 = vld [vmem:[#allocation121_spill] sm:$0xff] }
 0x39e   : > { %5555 = vmatprep.mubr.msk.f32.mxu0 %vm4479_vm1, %v4447_v22  ;;  %v3074_v60 = vsel %vm3034_vm3, %v3019_v40, %v11956_v42  ;;  %v11959_v22 = vld [vmem:[#allocation98_spill] sm:$0xff]  ;;  %v11964_v40 = vld [vmem:[#allocation123_spill] sm:$0xff] }
 0x39f   : > { %v4134_v21 = vpop.permute.xlu1 %4133  ;;  %v3848_v48 = vpop.permute.xlu0 %3847  ;;  %v3020_v37 = vsel %vm2979_vm2, %v687_v36, 0.7310586  ;;  %v3129_v5 = vsel %vm3089_vm4, %v3074_v60, %v11958_v26  ;;  %v4219_v36 = vsel %vm4203_vm9, %v9167_v9, %v11963_v8  ;;  %v11965_v42 = vld [vmem:[#allocation39_spill] sm:$0xff]  ;;  %v10232_v8 = vld [vmem:[%s6997_s6 + $0x178] sm:$0x3] }
 0x3a0   : > { %v4448_v19 = vsel %vm4434_vm0, %v4415_v10, %v4134_v21  ;;  %v3075_v54 = vsel %vm3034_vm3, %v3020_v37, %v11957_v34  ;;  %v10151_v23 = vsel %vm3144_vm5, %v3129_v5, %v11960_v61  ;;  %v11962_v10 = vld [vmem:[#allocation63_spill] sm:$0xff]  ;;  %v10206_v5 = vld [vmem:[%s6997_s6 + $0x168] sm:$0xff] }
 0x3a1   : > { %4147 = vrot.lane.b32.xlu1 %v3391_v49, %s6907_s30  ;;  %4053 = vrot.lane.b32.xlu0 %v3312_v31, %s6906_s29  ;;  %v3130_v1 = vsel %vm3089_vm4, %v3075_v54, %v11959_v22  ;;  %v4218_v21 = vsel %vm4203_vm9, %v9153_v3, %v11962_v10  ;;  %v11966_v54 = vld [vmem:[#allocation50_spill] sm:$0xff] }
 0x3a2   : > { %5556 = vmatmul.mubr.msk.f32.gmra.mxu0 %vm4479_vm1, %v4448_v19  ;;  %v10155_v45 = vsel %vm3144_vm5, %v3130_v1, %v11961_v55  ;;  %v4251_v19 = vsel %vm4236_vm10, %v4218_v21, %v10010_v6 }
 0x3a3   : > { %v10114_v41 = vpop.permute.xlu1 %3849  ;;  %v10116_v56 = vpop.permute.xlu0 %3563  ;;  %v3314_v7 = vrot.slane %v10155_v45, 1  ;;  %v3395_v21 = vrot.slane %v10155_v45, 2 }
 0x3a5   : > { %3769 = vrot.lane.b32.xlu1 %v3312_v31, %s6903_s26  ;;  %3483 = vrot.lane.b32.xlu0 %v3310_v52, %s6900_s17  ;;  %v6598_v52 = vpop.eup %6597 }
 0x3a6   : > { %v6600_v28 = vpop.eup %6599  ;;  %v688_v2 = vmul.f32 %v9999_v20, %v6598_v52 }
 0x3a7   : > { %v10125_v53 = vpop.permute.xlu1 %3565  ;;  %v3944_v13 = vpop.permute.xlu0 %3943  ;;  %v528_v20 = vadd.f32 1.0, %v6600_v28 }
 0x3a8   : > { %v6602_v14 = vpop.eup %6601  ;;  %v3021_v59 = vsel %vm2979_vm2, %v688_v2, %v8762_v57 }
 0x3a9   : > { %4149 = vrot.lane.b32.xlu1 %v3393_v46, %s6907_s30  ;;  %3863 = vrot.lane.b32.xlu0 %v3391_v49, %s6904_s27  ;;  %6605 = vrcp.f32 %v528_v20  ;;  %v3076_v37 = vsel %vm3034_vm3, %v3021_v59, %v11964_v40  ;;  %v3394_v20 = vrot.slane %v10151_v23, 2 }
 0x3aa   : > { %v6604_v34 = vpop.eup %6603 }
 0x3ab   : > { %v3946_v32 = vpop.permute.xlu1 %3945  ;;  %v10133_v27 = vpop.permute.xlu0 %3659  ;;  %v529_v61 = vadd.f32 1.0, %v6604_v34 }
 0x3ad   : > { %3579 = vrot.lane.b32.xlu1 %v3391_v49, %s6901_s20  ;;  %3485 = vrot.lane.b32.xlu0 %v3312_v31, %s6900_s17  ;;  %v527_v49 = vadd.f32 1.0, %v6602_v14  ;;  %v4284_v31 = vsel %vm4269_vm11, %v4251_v19, %v10029_v4  ;;  %v4252_v4 = vsel %vm4236_vm10, %v4219_v36, %v10018_v35  ;;  %v3131_v35 = vsel %vm3089_vm4, %v3076_v37, %v11965_v42  ;;  %v10212_v14 = vld [vmem:[%s6997_s6 + $0x170] sm:$0xff] }
 0x3ae   : > { %v4317_v3 = vsel %vm4302_vm12, %v4284_v31, %v10063_v43  ;;  %v3313_v43 = vrot.slane %v10151_v23, 1  ;;  %v4285_v9 = vsel %vm4269_vm11, %v4252_v4, %v10045_v16  ;;  %v3186_v16 = vsel %vm3144_vm5, %v3131_v35, %v11966_v54 }
 0x3af   : > { %v10144_v24 = vpop.permute.xlu1 %3661  ;;  %v4040_v33 = vpop.permute.xlu0 %4039  ;;  %v4350_v6 = vsel %vm4335_vm13, %v4317_v3, %v3848_v48  ;;  %6607 = vrcp.f32 %v527_v49  ;;  %v369_v2 = vsub.f32 0.0, %v10212_v14  ;;  %v3316_v55 = vrot.slane %v3186_v16, 1 }
 0x3b0   : > { %v4383_v12 = vsel %vm4368_vm14, %v4350_v6, %v3944_v13  ;;  %v4318_v13 = vsel %vm4302_vm12, %v4285_v9, %v10093_v50  ;;  %v3315_v28 = vsel %vm3247_vm6, %v3313_v43, %v3314_v7  ;;  %v368_v50 = vsub.f32 0.0, %v10206_v5 }
 0x3b1   : > { %3959 = vrot.lane.b32.xlu1 %v10151_v23, %s6905_s28  ;;  %3865 = vrot.lane.b32.xlu0 %v3393_v46, %s6904_s27  ;;  %v4416_v48 = vsel %vm4401_vm15, %v4383_v12, %v4040_v33  ;;  %v4351_v26 = vsel %vm4335_vm13, %v4318_v13, %v10114_v41  ;;  %v469_v19 = vmul.f32 1.442695, %v369_v2  ;;  %6609 = vrcp.f32 %v529_v61  ;;  %v11970_v2 = vld [vmem:[#allocation59_spill] sm:$0xff] }
 0x3b2   : > { %v4384_v33 = vsel %vm4368_vm14, %v4351_v26, %v3946_v32  ;;  %v467_v32 = vmul.f32 1.442695, %v368_v50  ;;  %v3317_v59 = vsel %vm3247_vm6, %v3314_v7, %v3316_v55  ;;  %v370_v36 = vsub.f32 0.0, %v10232_v8  ;;  %v11969_v50 = vld [vmem:[#allocation125_spill] sm:$0xff] }
 0x3b3   : > { %v4042_v47 = vpop.permute.xlu1 %4041  ;;  %v10167_v63 = vpop.permute.xlu0 %3755  ;;  %v3397_v43 = vrot.slane %v3186_v16, 2 }
 0x3b4   : > { %v4417_v22 = vsel %vm4401_vm15, %v4384_v33, %v4042_v47  ;;  %v3396_v47 = vsel %vm3328_vm7, %v3394_v20, %v3395_v21  ;;  %6611 = vpow2.f32 %v467_v32  ;;  %v471_v40 = vmul.f32 1.442695, %v370_v36  ;;  %v11972_v32 = vld [vmem:[#allocation129_spill] sm:$0xff] }
 0x3b5   : > { %3675 = vrot.lane.b32.xlu1 %v10151_v23, %s6902_s22  ;;  %3581 = vrot.lane.b32.xlu0 %v3393_v46, %s6901_s20  ;;  %6613 = vpow2.f32 %v469_v19 }
 0x3b6   : > { %v6606_v3 = vpop.eup %6605  ;;  %6615 = vpow2.f32 %v471_v40 }
 0x3b7   : > { %v10190_v46 = vpop.permute.xlu1 %3757  ;;  %v4136_v52 = vpop.permute.xlu0 %4135 }
 0x3b8   : > { %v4449_v60 = vsel %vm4434_vm0, %v4416_v48, %v4136_v52  ;;  %v690_v48 = vmul.f32 %v10080_v18, %v6606_v3  ;;  %v3398_v52 = vsel %vm3328_vm7, %v3395_v21, %v3397_v43  ;;  %v11968_v18 = vld [vmem:[#allocation126_spill] sm:$0xff]  ;;  %v11971_v21 = vld [vmem:[#allocation40_spill] sm:$0xff] }
 0x3b9   : > { %4055 = vrot.lane.b32.xlu1 %v3315_v28, %s6906_s29  ;;  %3961 = vrot.lane.b32.xlu0 %v10155_v45, %s6905_s28 }
 0x3ba   : > { %5558 = vmatprep.mubr.msk.f32.mxu0 %vm4479_vm1, %v4449_v60 }
 0x3bb   : > { %v4138_v41 = vpop.permute.xlu1 %4137  ;;  %v3852_v1 = vpop.permute.xlu0 %3851 }
 0x3bc   : > { %v4450_v10 = vsel %vm4434_vm0, %v4417_v22, %v4138_v41  ;;  %v6608_v12 = vpop.eup %6607 }
 0x3bd   : > { %3771 = vrot.lane.b32.xlu1 %v3315_v28, %s6903_s26  ;;  %3677 = vrot.lane.b32.xlu0 %v10155_v45, %s6902_s22  ;;  %v689_v7 = vmul.f32 %v10084_v51, %v6608_v12  ;;  %v3023_v51 = vsel %vm2979_vm2, %v690_v48, 0.7310586 }
 0x3be   : > { %5559 = vmatmul.mubr.msk.f32.gmra.mxu0 %vm4479_vm1, %v4450_v10  ;;  %v6610_v60 = vpop.eup %6609  ;;  %v3078_v33 = vsel %vm3034_vm3, %v3023_v51, %v11969_v50 }
 0x3bf   : > { %v10223_v49 = vpop.permute.xlu1 %3567  ;;  %v10225_v31 = vpop.permute.xlu0 %3473  ;;  %v3022_v42 = vsel %vm2979_vm2, %v689_v7, %v8759_v11  ;;  %v691_v10 = vmul.f32 %v10119_v58, %v6610_v60 }
 0x3c0   : > { %v3077_v54 = vsel %vm3034_vm3, %v3022_v42, %v11968_v18  ;;  %v11974_v42 = vld [vmem:[#allocation79_spill] sm:$0xff] }
 0x3c1   : > { %4151 = vrot.lane.b32.xlu1 %v3396_v47, %s6907_s30  ;;  %4057 = vrot.lane.b32.xlu0 %v3317_v59, %s6906_s29  ;;  %v6612_v26 = vpop.eup %6611  ;;  %v3132_v22 = vsel %vm3089_vm4, %v3077_v54, %v11970_v2  ;;  %v4221_v51 = vsel %vm4203_vm9, %v9186_v30, %v11974_v42 }
 0x3c2   : > { %v6614_v55 = vpop.eup %6613  ;;  %v10275_v20 = vsel %vm3144_vm5, %v3132_v22, %v11972_v32  ;;  %v530_v3 = vadd.f32 1.0, %v6612_v26  ;;  %v11977_v26 = vld [vmem:[#allocation53_spill] sm:$0xff] }
 0x3c3   : > { %v3948_v6 = vpop.permute.xlu1 %3947  ;;  %v10235_v4 = vpop.permute.xlu0 %3853  ;;  %v531_v36 = vadd.f32 1.0, %v6614_v55 }
 0x3c4   : > { %6617 = vrcp.f32 %v530_v3  ;;  %v6616_v18 = vpop.eup %6615 }
 0x3c5   : > { %3773 = vrot.lane.b32.xlu1 %v3317_v59, %s6903_s26  ;;  %3487 = vrot.lane.b32.xlu0 %v3315_v28, %s6900_s17  ;;  %v11967_v28 = vld [vmem:[#allocation81_spill] sm:$0xff]  ;;  %6619 = vrcp.f32 %v531_v36 }
 0x3c6   : > { %v4220_v34 = vsel %vm4203_vm9, %v9195_v38, %v11967_v28 }
 0x3c7   : > { %v10240_v37 = vpop.permute.xlu1 %3663  ;;  %v10242_v9 = vpop.permute.xlu0 %3569  ;;  %v4253_v16 = vsel %vm4236_vm10, %v4220_v34, %v10116_v56  ;;  %v3133_v56 = vsel %vm3089_vm4, %v3078_v33, %v11971_v21  ;;  %v10324_v33 = vld [vmem:[%s6997_s6 + $0x188] sm:$0xff] }
 0x3c8   : > { %v4286_v38 = vsel %vm4269_vm11, %v4253_v16, %v10133_v27  ;;  %v372_v2 = vsub.f32 0.0, %v10324_v33 }
 0x3c9   : > { %4153 = vrot.lane.b32.xlu1 %v3398_v52, %s6907_s30  ;;  %3867 = vrot.lane.b32.xlu0 %v3396_v47, %s6904_s27  ;;  %v4319_v19 = vsel %vm4302_vm12, %v4286_v38, %v10167_v63  ;;  %v3024_v63 = vsel %vm2979_vm2, %v691_v10, %v8762_v57  ;;  %v10329_v38 = vld [vmem:[%s6997_s6 + $0x180] sm:$0xff] }
 0x3ca   : > { %v371_v55 = vsub.f32 0.0, %v10329_v38 }
 0x3cb   : > { %v4044_v35 = vpop.permute.xlu1 %4043  ;;  %v3950_v13 = vpop.permute.xlu0 %3949 }
 0x3cd   : > { %3583 = vrot.lane.b32.xlu1 %v3396_v47, %s6901_s20  ;;  %3489 = vrot.lane.b32.xlu0 %v3317_v59, %s6900_s17  ;;  %v11973_v47 = vld [vmem:[#allocation51_spill] sm:$0xff]  ;;  %v4352_v59 = vsel %vm4335_vm13, %v4319_v19, %v3852_v1  ;;  %v3318_v1 = vrot.slane %v10275_v20, 1  ;;  %v3399_v19 = vrot.slane %v10275_v20, 2 }
 0x3ce   : > { %v10281_v27 = vsel %vm3144_vm5, %v3133_v56, %v11973_v47  ;;  %v4385_v58 = vsel %vm4368_vm14, %v4352_v59, %v3948_v6  ;;  %v4254_v6 = vsel %vm4236_vm10, %v4221_v51, %v10125_v53  ;;  %v473_v59 = vmul.f32 1.442695, %v371_v55 }
 0x3cf   : > { %v10266_v41 = vpop.permute.xlu1 %3759  ;;  %v10268_v61 = vpop.permute.xlu0 %3665  ;;  %v4418_v12 = vsel %vm4401_vm15, %v4385_v58, %v4044_v35  ;;  %v3319_v48 = vrot.slane %v10281_v27, 1  ;;  %v11975_v35 = vld [vmem:[#allocation130_spill] sm:$0xff]  ;;  %v4287_v28 = vsel %vm4269_vm11, %v4254_v6, %v10144_v24  ;;  %v3400_v47 = vrot.slane %v10281_v27, 2 }
 0x3d0   : > { %v3079_v60 = vsel %vm3034_vm3, %v3024_v63, %v11975_v35  ;;  %v4320_v54 = vsel %vm4302_vm12, %v4287_v28, %v10190_v46  ;;  %v532_v46 = vadd.f32 1.0, %v6616_v18 }
 0x3d1   : > { %3963 = vrot.lane.b32.xlu1 %v10275_v20, %s6905_s28  ;;  %3869 = vrot.lane.b32.xlu0 %v3398_v52, %s6904_s27  ;;  %v3320_v16 = vsel %vm3247_vm6, %v3318_v1, %v3319_v48  ;;  %v4353_v24 = vsel %vm4335_vm13, %v4320_v54, %v10235_v4  ;;  %v3401_v36 = vsel %vm3328_vm7, %v3399_v19, %v3400_v47  ;;  %v6618_v1 = vpop.eup %6617 }
 0x3d2   : > { %v4386_v22 = vsel %vm4368_vm14, %v4353_v24, %v3950_v13  ;;  %v475_v13 = vmul.f32 1.442695, %v372_v2  ;;  %6621 = vrcp.f32 %v532_v46  ;;  %v6620_v51 = vpop.eup %6619  ;;  %v11980_v46 = vld [vmem:[#allocation132_spill] sm:$0xff] }
 0x3d3   : > { %v4140_v43 = vpop.permute.xlu1 %4139  ;;  %v4046_v7 = vpop.permute.xlu0 %4045  ;;  %v693_v28 = vmul.f32 %v10212_v14, %v6620_v51  ;;  %v11979_v14 = vld [vmem:[#allocation128_spill] sm:$0xff] }
 0x3d4   : > { %v4451_v40 = vsel %vm4434_vm0, %v4418_v12, %v4140_v43  ;;  %v4419_v10 = vsel %vm4401_vm15, %v4386_v22, %v4046_v7  ;;  %6623 = vpow2.f32 %v475_v13  ;;  %v10349_v43 = vld [vmem:[%s6997_s6 + $0x190] sm:$0x3]  ;;  %v11982_v13 = vld [vmem:[#allocation102_spill] sm:$0xff] }
 0x3d5   : > { %3679 = vrot.lane.b32.xlu1 %v10275_v20, %s6902_s22  ;;  %3585 = vrot.lane.b32.xlu0 %v3398_v52, %s6901_s20  ;;  %v11976_v52 = vld [vmem:[#allocation41_spill] sm:$0xff]  ;;  %6625 = vpow2.f32 %v473_v59  ;;  %v373_v7 = vsub.f32 0.0, %v10349_v43  ;;  %v11983_v59 = vld [vmem:[#allocation52_spill] sm:$0xff] }
 0x3d6   : > { %5561 = vmatprep.mubr.msk.f32.mxu1 %vm4479_vm1, %v4451_v40  ;;  %v3134_v53 = vsel %vm3089_vm4, %v3079_v60, %v11976_v52 }
 0x3d7   : > { %v10307_v30 = vpop.permute.xlu1 %3761  ;;  %v10309_v34 = vpop.permute.xlu0 %3475  ;;  %v3189_v50 = vsel %vm3144_vm5, %v3134_v53, %v11977_v26  ;;  %v477_v6 = vmul.f32 1.442695, %v373_v7  ;;  %v11978_v26 = vld [vmem:[#allocation5_spill] sm:$0xff]  ;;  %v11984_v7 = vld [vmem:[#allocation55_spill] sm:$0xff] }
 0x3d8   : > { %v3321_v56 = vrot.slane %v3189_v50, 1  ;;  %v3402_v42 = vrot.slane %v3189_v50, 2  ;;  %v4222_v50 = vsel %vm4203_vm9, %v9226_v15, %v11978_v26 }
 0x3d9   : > { %4059 = vrot.lane.b32.xlu1 %v3320_v16, %s6906_s29  ;;  %3965 = vrot.lane.b32.xlu0 %v10281_v27, %s6905_s28  ;;  %6627 = vpow2.f32 %v477_v6  ;;  %v4255_v2 = vsel %vm4236_vm10, %v4222_v50, %v10223_v49  ;;  %v4223_v50 = vsel %vm4203_vm9, %v9238_v0, %v10225_v31 }
 0x3da   : > { %v3322_v12 = vsel %vm3247_vm6, %v3319_v48, %v3321_v56  ;;  %v692_v48 = vmul.f32 %v10206_v5, %v6618_v1  ;;  %v3403_v18 = vsel %vm3328_vm7, %v3400_v47, %v3402_v42  ;;  %v3026_v5 = vsel %vm2979_vm2, %v693_v28, 0.7310586 }
 0x3db   : > { %v4142_v21 = vpop.permute.xlu1 %4141  ;;  %v3856_v4 = vpop.permute.xlu0 %3855  ;;  %v3081_v55 = vsel %vm3034_vm3, %v3026_v5, %v11980_v46  ;;  %v4288_v15 = vsel %vm4269_vm11, %v4255_v2, %v10240_v37  ;;  %v10413_v5 = vld [vmem:[%s6997_s6 + $0x1a0] sm:$0xff] }
 0x3dc   : > { %v4452_v32 = vsel %vm4434_vm0, %v4419_v10, %v4142_v21  ;;  %v3025_v52 = vsel %vm2979_vm2, %v692_v48, %v8759_v11  ;;  %v11981_v10 = vld [vmem:[#allocation101_spill] sm:$0xff]  ;;  %v3136_v49 = vsel %vm3089_vm4, %v3081_v55, %v11982_v13  ;;  %v10406_v48 = vld [vmem:[%s6997_s6 + $0x1a8] sm:$0x3] }
 0x3dd   : > { %3775 = vrot.lane.b32.xlu1 %v3320_v16, %s6903_s26  ;;  %3681 = vrot.lane.b32.xlu0 %v10281_v27, %s6902_s22  ;;  %v3080_v24 = vsel %vm3034_vm3, %v3025_v52, %v11979_v14  ;;  %v10398_v37 = vsel %vm3144_vm5, %v3136_v49, %v11984_v7  ;;  %v11987_v13 = vld [vmem:[#allocation54_spill] sm:$0xff] }
 0x3de   : > { %5562 = vmatmul.mubr.msk.f32.vlgmr.msra.gmra.mxu1 %vm4479_vm1, %v4452_v32  ;;  %v3135_v21 = vsel %vm3089_vm4, %v3080_v24, %v11981_v10  ;;  %v4256_v24 = vsel %vm4236_vm10, %v4223_v50, %v10242_v9 }
 0x3df   : > { %v10340_v58 = vpop.permute.xlu1 %3571  ;;  %v10342_v3 = vpop.permute.xlu0 %3477 }
 0x3e1   : > { %4155 = vrot.lane.b32.xlu1 %v3401_v36, %s6907_s30  ;;  %4061 = vrot.lane.b32.xlu0 %v3322_v12, %s6906_s29 }
 0x3e3   : > { %v3952_v63 = vpop.permute.xlu1 %3951  ;;  %v10352_v40 = vpop.permute.xlu0 %3857 }
 0x3e5   : > { %3777 = vrot.lane.b32.xlu1 %v3322_v12, %s6903_s26  ;;  %3491 = vrot.lane.b32.xlu0 %v3320_v16, %s6900_s17  ;;  %v6622_v16 = vpop.eup %6621 }
 0x3e6   : > { %v6624_v22 = vpop.eup %6623  ;;  %v694_v47 = vmul.f32 %v10232_v8, %v6622_v16  ;;  %v375_v16 = vsub.f32 0.0, %v10413_v5 }
 0x3e7   : > { %v10357_v35 = vpop.permute.xlu1 %3667  ;;  %v10359_v60 = vpop.permute.xlu0 %3573  ;;  %v534_v8 = vadd.f32 1.0, %v6624_v22  ;;  %v11985_v22 = vld [vmem:[#allocation131_spill] sm:$0xff] }
 0x3e8   : > { %v6626_v19 = vpop.eup %6625 }
 0x3e9   : > { %4157 = vrot.lane.b32.xlu1 %v3403_v18, %s6907_s30  ;;  %3871 = vrot.lane.b32.xlu0 %v3401_v36, %s6904_s27  ;;  %v533_v51 = vadd.f32 1.0, %v6626_v19  ;;  %6629 = vrcp.f32 %v534_v8  ;;  %v6628_v10 = vpop.eup %6627 }
 0x3ea   : > { %v535_v7 = vadd.f32 1.0, %v6628_v10 }
 0x3eb   : > { %v4048_v53 = vpop.permute.xlu1 %4047  ;;  %v3954_v54 = vpop.permute.xlu0 %3953  ;;  %6631 = vrcp.f32 %v533_v51 }
 0x3ed   : > { %3587 = vrot.lane.b32.xlu1 %v3401_v36, %s6901_s20  ;;  %3493 = vrot.lane.b32.xlu0 %v3322_v12, %s6900_s17  ;;  %v10392_v36 = vsel %vm3144_vm5, %v3135_v21, %v11983_v59  ;;  %v4321_v12 = vsel %vm4302_vm12, %v4288_v15, %v10266_v41  ;;  %v376_v41 = vsub.f32 0.0, %v10406_v48  ;;  %v481_v21 = vmul.f32 1.442695, %v375_v16  ;;  %v11986_v15 = vld [vmem:[#allocation61_spill] sm:$0xff] }
 0x3ee   : > { %v4354_v1 = vsel %vm4335_vm13, %v4321_v12, %v3856_v4  ;;  %v3027_v4 = vsel %vm2979_vm2, %v694_v47, %v8762_v57  ;;  %v3323_v2 = vrot.slane %v10392_v36, 1 }
 0x3ef   : > { %v10383_v56 = vpop.permute.xlu1 %3763  ;;  %v10385_v32 = vpop.permute.xlu0 %3669  ;;  %v4387_v42 = vsel %vm4368_vm14, %v4354_v1, %v3952_v63  ;;  %v3324_v63 = vrot.slane %v10398_v37, 1  ;;  %v3082_v0 = vsel %vm3034_vm3, %v3027_v4, %v11985_v22  ;;  %v483_v31 = vmul.f32 1.442695, %v376_v41 }
 0x3f0   : > { %v4420_v6 = vsel %vm4401_vm15, %v4387_v42, %v4048_v53  ;;  %v10425_v53 = vld [vmem:[%s6997_s6 + $0x198] sm:$0xff]  ;;  %v3137_v9 = vsel %vm3089_vm4, %v3082_v0, %v11986_v15  ;;  %s238_s6 = sadd.s32 %s5430_s5, %s5429_s4 }
 0x3f1   : > { %3967 = vrot.lane.b32.xlu1 %v10392_v36, %s6905_s28  ;;  %3873 = vrot.lane.b32.xlu0 %v3403_v18, %s6904_s27  ;;  %v374_v14 = vsub.f32 0.0, %v10425_v53  ;;  %v3325_v47 = vsel %vm3247_vm6, %v3323_v2, %v3324_v63  ;;  %v3192_v49 = vsel %vm3144_vm5, %v3137_v9, %v11987_v13  ;;  %6633 = vpow2.f32 %v483_v31  ;;  %s5431_s12 = sshll.u32 %s238_s6, 3 }
 0x3f2   : > { %6635 = vpow2.f32 %v481_v21  ;;  %v3326_v42 = vrot.slane %v3192_v49, 1  ;;  %v4224_v13 = vsel %vm4203_vm9, %v9802_v17, %v10309_v34  ;;  %s11258_s8 = scalar_lea.vmem %s11379_s3, %s5431_s12 }
 0x3f3   : > { %v4144_v28 = vpop.permute.xlu1 %4143  ;;  %v4050_v52 = vpop.permute.xlu0 %4049  ;;  %v479_v59 = vmul.f32 1.442695, %v374_v14  ;;  %v3407_v14 = vrot.slane %v3192_v49, 2  ;;  %v11988_v49 = vld [vmem:[#allocation136_spill] sm:$0xff] }
 0x3f4   : > { %v4453_v26 = vsel %vm4434_vm0, %v4420_v6, %v4144_v28 }
 0x3f5   : > { %3683 = vrot.lane.b32.xlu1 %v10392_v36, %s6902_s22  ;;  %3589 = vrot.lane.b32.xlu0 %v3403_v18, %s6901_s20  ;;  %v4289_v18 = vsel %vm4269_vm11, %v4256_v24, %v10268_v61  ;;  %6637 = vpow2.f32 %v479_v59  ;;  %v11989_v59 = vld [vmem:[#allocation137_spill] sm:$0xff] }
 0x3f6   : > { %5564 = vmatprep.mubr.msk.f32.mxu1 %vm4479_vm1, %v4453_v26  ;;  %v4322_v19 = vsel %vm4302_vm12, %v4289_v18, %v10307_v30  ;;  %6639 = vrcp.f32 %v535_v7  ;;  %v6630_v4 = vpop.eup %6629  ;;  %v4257_v7 = vsel %vm4236_vm10, %v4224_v13, %v10340_v58 }
 0x3f7   : > { %v10436_v46 = vpop.permute.xlu1 %3765  ;;  %v10438_v55 = vpop.permute.xlu0 %3479  ;;  %v4355_v61 = vsel %vm4335_vm13, %v4322_v19, %v10352_v40  ;;  %v3405_v40 = vrot.slane %v10398_v37, 2  ;;  %v696_v24 = vmul.f32 %v10324_v33, %v6630_v4  ;;  %v4290_v34 = vsel %vm4269_vm11, %v4257_v7, %v10357_v35 }
 0x3f8   : > { %v4388_v12 = vsel %vm4368_vm14, %v4355_v61, %v3954_v54  ;;  %v3404_v54 = vrot.slane %v10392_v36, 2  ;;  %v6632_v50 = vpop.eup %6631 }
 0x3f9   : > { %4063 = vrot.lane.b32.xlu1 %v3325_v47, %s6906_s29  ;;  %3969 = vrot.lane.b32.xlu0 %v10398_v37, %s6905_s28  ;;  %v4421_v30 = vsel %vm4401_vm15, %v4388_v12, %v4050_v52  ;;  %v3327_v52 = vsel %vm3247_vm6, %v3324_v63, %v3326_v42  ;;  %v695_v2 = vmul.f32 %v10329_v38, %v6632_v50  ;;  %v3029_v21 = vsel %vm2979_vm2, %v696_v24, 0.7310586 }
 0x3fa   : > { %v3406_v28 = vsel %vm3328_vm7, %v3404_v54, %v3405_v40  ;;  %v3408_v31 = vsel %vm3328_vm7, %v3405_v40, %v3407_v14  ;;  %v3084_v61 = vsel %vm3034_vm3, %v3029_v21, %v11988_v49  ;;  %v11991_v40 = vld [vmem:[#allocation42_spill] sm:$0xff]  ;;  %v11994_v21 = vld [vmem:[#allocation17_spill] sm:$0xff] }
 0x3fb   : > { %v4146_v1 = vpop.permute.xlu1 %4145  ;;  %v3860_v8 = vpop.permute.xlu0 %3859  ;;  %v3028_v33 = vsel %vm2979_vm2, %v695_v2, %v8759_v11  ;;  %v3139_v54 = vsel %vm3089_vm4, %v3084_v61, %v11991_v40 }
 0x3fc   : > { %v4454_v51 = vsel %vm4434_vm0, %v4421_v30, %v4146_v1  ;;  %v3083_v12 = vsel %vm3034_vm3, %v3028_v33, %v11989_v59  ;;  %v11990_v1 = vld [vmem:[#allocation23_spill] sm:$0xff] }
 0x3fd   : > { %3779 = vrot.lane.b32.xlu1 %v3325_v47, %s6903_s26  ;;  %3685 = vrot.lane.b32.xlu0 %v10398_v37, %s6902_s22  ;;  %v3138_v17 = vsel %vm3089_vm4, %v3083_v12, %v11990_v1 }
 0x3fe   : > { %5565 = vmatmul.mubr.msk.f32.gmra.mxu1 %vm4479_vm1, %v4454_v51  ;;  %v6634_v0 = vpop.eup %6633 }
 0x3ff   : > { %v10461_v41 = vpop.permute.xlu1 %3575  ;;  %v10463_v6 = vpop.permute.xlu0 %3481  ;;  %v538_v15 = vadd.f32 1.0, %v6634_v0 }
 0x400   : > { %v6636_v18 = vpop.eup %6635 }
 0x401   : > { %4159 = vrot.lane.b32.xlu1 %v3406_v28, %s6907_s30  ;;  %4065 = vrot.lane.b32.xlu0 %v3327_v52, %s6906_s29  ;;  %6641 = vrcp.f32 %v538_v15 }
 0x402   : > { %v6638_v10 = vpop.eup %6637 }
 0x403   : > { %v3956_v16 = vpop.permute.xlu1 %3955  ;;  %v10469_v26 = vpop.permute.xlu0 %3861  ;;  %v536_v11 = vadd.f32 1.0, %v6638_v10 }
 0x404   : > { %v6640_v19 = vpop.eup %6639 }
 0x405   : > { %3781 = vrot.lane.b32.xlu1 %v3327_v52, %s6903_s26  ;;  %3495 = vrot.lane.b32.xlu0 %v3325_v47, %s6900_s17  ;;  %v537_v47 = vadd.f32 1.0, %v6636_v18  ;;  %v697_v30 = vmul.f32 %v10349_v43, %v6640_v19  ;;  %v4323_v43 = vsel %vm4302_vm12, %v4290_v34, %v10383_v56  ;;  %v11996_v19 = vld [vmem:[#allocation57_spill] sm:$0xff] }
 0x406   : > { %v4356_v35 = vsel %vm4335_vm13, %v4323_v43, %v3860_v8  ;;  %v4225_v8 = vsel %vm4203_vm9, %v9806_v62, %v10342_v3  ;;  %v11995_v62 = vld [vmem:[#allocation43_spill] sm:$0xff] }
 0x407   : > { %v10475_v22 = vpop.permute.xlu1 %3671  ;;  %v10477_v63 = vpop.permute.xlu0 %3577  ;;  %6643 = vrcp.f32 %v537_v47  ;;  %v4389_v50 = vsel %vm4368_vm14, %v4356_v35, %v3956_v16  ;;  %v3030_v56 = vsel %vm2979_vm2, %v697_v30, %v8762_v57  ;;  %v4258_v16 = vsel %vm4236_vm10, %v4225_v8, %v10359_v60 }
 0x408   : > { %6645 = vrcp.f32 %v536_v11  ;;  %v3085_v57 = vsel %vm3034_vm3, %v3030_v56, %v11994_v21  ;;  %v4291_v33 = vsel %vm4269_vm11, %v4258_v16, %v10385_v32  ;;  %v12001_v21 = vld [vmem:[#allocation18_spill] sm:$0xff] }
 0x409   : > { %4161 = vrot.lane.b32.xlu1 %v3408_v31, %s6907_s30  ;;  %3875 = vrot.lane.b32.xlu0 %v3406_v28, %s6904_s27  ;;  %v3140_v3 = vsel %vm3089_vm4, %v3085_v57, %v11995_v62 }
 0x40a   : > { %v3195_v47 = vsel %vm3144_vm5, %v3140_v3, %v11996_v19  ;;  %v12003_v3 = vld [vmem:[#allocation135_spill] sm:$0xff] }
 0x40b   : > { %v4052_v38 = vpop.permute.xlu1 %4051  ;;  %v3958_v9 = vpop.permute.xlu0 %3957  ;;  %v3415_v7 = vrot.slane %v3195_v47, 1 }
 0x40c   : > { %v4422_v14 = vsel %vm4401_vm15, %v4389_v50, %v4052_v38  ;;  %v3420_v50 = vrot.slane %v3195_v47, 2  ;;  %v12005_v47 = vld [vmem:[#allocation134_spill] sm:$0xff] }
 0x40d   : > { %3591 = vrot.lane.b32.xlu1 %v3406_v28, %s6901_s20  ;;  %3497 = vrot.lane.b32.xlu0 %v3327_v52, %s6900_s17  ;;  %v11992_v28 = vld [vmem:[#allocation56_spill] sm:$0xff]  ;;  %v11993_v52 = vld [vmem:[#allocation133_spill] sm:$0xff] }
 0x40e   : > { %v3193_v58 = vsel %vm3144_vm5, %v3138_v17, %v11992_v28  ;;  %v10513_v4 = vsel %vm3144_vm5, %v3139_v54, %v11993_v52 }
 0x40f   : > { %v10501_v42 = vpop.permute.xlu1 %3767  ;;  %v10503_v51 = vpop.permute.xlu0 %3673  ;;  %v3413_v0 = vrot.slane %v10513_v4, 1  ;;  %v3412_v18 = vrot.slane %v3193_v58, 1  ;;  %v3418_v12 = vrot.slane %v10513_v4, 2  ;;  %v3417_v11 = vrot.slane %v3193_v58, 2 }
 0x411   : > { %3971 = vrot.lane.b32.xlu1 %v3193_v58, %s6905_s28  ;;  %3877 = vrot.lane.b32.xlu0 %v3408_v31, %s6904_s27  ;;  %v3414_v60 = vsel %vm3247_vm6, %v3412_v18, %v3413_v0  ;;  %v3419_v54 = vsel %vm3328_vm7, %v3417_v11, %v3418_v12  ;;  %v3416_v28 = vsel %vm3247_vm6, %v3413_v0, %v3415_v7  ;;  %v11999_v0 = vld [vmem:[#allocation8_spill] sm:$0xff] }
 0x412   : > { %v3421_v16 = vsel %vm3328_vm7, %v3418_v12, %v3420_v50  ;;  %v4226_v12 = vsel %vm4203_vm9, %v9920_v39, %v10438_v55 }
 0x413   : > { %v4148_v24 = vpop.permute.xlu1 %4147  ;;  %v4054_v2 = vpop.permute.xlu0 %4053  ;;  %v4259_v7 = vsel %vm4236_vm10, %v4226_v12, %v10461_v41 }
 0x414   : > { %v4455_v10 = vsel %vm4434_vm0, %v4422_v14, %v4148_v24  ;;  %v11998_v24 = vld [vmem:[#allocation6_spill] sm:$0xff] }
 0x415   : > { %3687 = vrot.lane.b32.xlu1 %v3193_v58, %s6902_s22  ;;  %3593 = vrot.lane.b32.xlu0 %v3408_v31, %s6901_s20  ;;  %v4324_v31 = vsel %vm4302_vm12, %v4291_v33, %v10436_v46  ;;  %v6642_v46 = vpop.eup %6641  ;;  %v12002_v33 = vld [vmem:[#allocation16_spill] sm:$0xff] }
 0x416   : > { %5567 = vmatprep.mubr.msk.f32.mxu1 %vm4479_vm1, %v4455_v10  ;;  %v4357_v13 = vsel %vm4335_vm13, %v4324_v31, %v10469_v26  ;;  %v6644_v1 = vpop.eup %6643  ;;  %v700_v34 = vmul.f32 %v10406_v48, %v6642_v46  ;;  %v12000_v10 = vld [vmem:[#allocation110_spill] sm:$0xff] }
 0x417   : > { %v10536_v15 = vpop.permute.xlu1 %3769  ;;  %v10538_v38 = vpop.permute.xlu0 %3483  ;;  %v4390_v32 = vsel %vm4368_vm14, %v4357_v13, %v3958_v9  ;;  %v699_v40 = vmul.f32 %v10413_v5, %v6644_v1  ;;  %v11997_v5 = vld [vmem:[#allocation19_spill] sm:$0xff]  ;;  %v4292_v1 = vsel %vm4269_vm11, %v4259_v7, %v10475_v22 }
 0x418   : > { %v4423_v49 = vsel %vm4401_vm15, %v4390_v32, %v4054_v2  ;;  %v6646_v26 = vpop.eup %6645 }
 0x419   : > { %4067 = vrot.lane.b32.xlu1 %v3414_v60, %s6906_s29  ;;  %3973 = vrot.lane.b32.xlu0 %v10513_v4, %s6905_s28  ;;  %v698_v58 = vmul.f32 %v10425_v53, %v6646_v26  ;;  %v3032_v35 = vsel %vm2979_vm2, %v699_v40, 0.0 }
 0x41a   : > { %v3087_v2 = vsel %vm3034_vm3, %v3032_v35, %v11998_v24 }
 0x41b   : > { %v4150_v61 = vpop.permute.xlu1 %4149  ;;  %v3864_v59 = vpop.permute.xlu0 %3863  ;;  %v3031_v48 = vsel %vm2979_vm2, %v698_v58, 0.0  ;;  %v3142_v8 = vsel %vm3089_vm4, %v3087_v2, %v12000_v10 }
 0x41c   : > { %v4456_v30 = vsel %vm4434_vm0, %v4423_v49, %v4150_v61  ;;  %v3086_v57 = vsel %vm3034_vm3, %v3031_v48, %v12001_v21  ;;  %v3197_v31 = vsel %vm3144_vm5, %v3142_v8, %v12003_v3 }
 0x41d   : > { %3783 = vrot.lane.b32.xlu1 %v3414_v60, %s6903_s26  ;;  %3689 = vrot.lane.b32.xlu0 %v10513_v4, %s6902_s22  ;;  %v3033_v4 = vsel %vm2979_vm2, %v700_v34, 0.0  ;;  %v12004_v60 = vld [vmem:[#allocation109_spill] sm:$0xff]  ;;  %v3426_v46 = vrot.slane %v3197_v31, 1  ;;  %v3431_v40 = vrot.slane %v3197_v31, 2 }
 0x41e   : > { %5568 = vmatmul.mubr.msk.f32.gmra.mxu1 %vm4479_vm1, %v4456_v30  ;;  %v3088_v14 = vsel %vm3034_vm3, %v3033_v4, %v11997_v5  ;;  %v3141_v19 = vsel %vm3089_vm4, %v3086_v57, %v12004_v60 }
 0x41f   : > { %v10560_v9 = vpop.permute.xlu1 %3579  ;;  %v10562_v17 = vpop.permute.xlu0 %3485  ;;  %v3143_v18 = vsel %vm3089_vm4, %v3088_v14, %v11999_v0  ;;  %v3196_v13 = vsel %vm3144_vm5, %v3141_v19, %v12005_v47 }
 0x420   : > { %v3198_v62 = vsel %vm3144_vm5, %v3143_v18, %v12002_v33  ;;  %v3425_v11 = vrot.slane %v3196_v13, 1  ;;  %v3430_v41 = vrot.slane %v3196_v13, 2 }
 0x421   : > { %4163 = vrot.lane.b32.xlu1 %v3419_v54, %s6907_s30  ;;  %4069 = vrot.lane.b32.xlu0 %v3416_v28, %s6906_s29  ;;  %v3428_v61 = vrot.slane %v3198_v62, 1  ;;  %v3433_v30 = vrot.slane %v3198_v62, 2 }
 0x422   : > { %v3427_v55 = vsel %vm3247_vm6, %v3425_v11, %v3426_v46  ;;  %v3432_v48 = vsel %vm3328_vm7, %v3430_v41, %v3431_v40 }
 0x423   : > { %v3960_v43 = vpop.permute.xlu1 %3959  ;;  %v3866_v52 = vpop.permute.xlu0 %3865  ;;  %v3429_v39 = vsel %vm3247_vm6, %v3426_v46, %v3428_v61 }
 0x425   : > { %3879 = vrot.lane.b32.xlu1 %v3419_v54, %s6904_s27  ;;  %3785 = vrot.lane.b32.xlu0 %v3416_v28, %s6903_s26  ;;  %v4325_v54 = vsel %vm4302_vm12, %v4292_v1, %v10501_v42  ;;  %v3434_v42 = vsel %vm3328_vm7, %v3431_v40, %v3433_v30 }
 0x426   : > { %v4358_v28 = vsel %vm4335_vm13, %v4325_v54, %v3864_v59  ;;  %v4227_v59 = vsel %vm4203_vm9, %v9924_v25, %v10463_v6 }
 0x427   : > { %v10580_v53 = vpop.permute.xlu1 %3675  ;;  %v10582_v56 = vpop.permute.xlu0 %3581  ;;  %v4391_v58 = vsel %vm4368_vm14, %v4358_v28, %v3960_v43  ;;  %v4260_v43 = vsel %vm4236_vm10, %v4227_v59, %v10477_v63 }
 0x428   : > { %v4293_v5 = vsel %vm4269_vm11, %v4260_v43, %v10503_v51 }
 0x429   : > { %3881 = vrot.lane.b32.xlu1 %v3421_v16, %s6904_s27  ;;  %4165 = vrot.lane.b32.xlu0 %v3421_v16, %s6907_s30  ;;  %v4326_v2 = vsel %vm4302_vm12, %v4293_v5, %v10536_v15 }
 0x42a   : > { %v4359_v0 = vsel %vm4335_vm13, %v4326_v2, %v3866_v52  ;;  %v4228_v52 = vsel %vm4203_vm9, %v10036_v44, %v10538_v38  ;;  %v4229_v38 = vsel %vm4203_vm9, %v10040_v29, %v10562_v17 }
 0x42b   : > { %v4056_v32 = vpop.permute.xlu1 %4055  ;;  %v3962_v49 = vpop.permute.xlu0 %3961  ;;  %v4261_v3 = vsel %vm4236_vm10, %v4228_v52, %v10560_v9  ;;  %v4262_v9 = vsel %vm4236_vm10, %v4229_v38, %v10582_v56 }
 0x42c   : > { %v4424_v22 = vsel %vm4401_vm15, %v4391_v58, %v4056_v32  ;;  %v4392_v25 = vsel %vm4368_vm14, %v4359_v0, %v3962_v49 }
 0x42d   : > { %3977 = vrot.lane.b32.xlu1 %v3197_v31, %s6905_s28  ;;  %3975 = vrot.lane.b32.xlu0 %v3196_v13, %s6905_s28  ;;  %v4294_v31 = vsel %vm4269_vm11, %v4261_v3, %v10580_v53 }
 0x42f   : > { %v3772_v26 = vpop.permute.xlu1 %3771  ;;  %v3678_v34 = vpop.permute.xlu0 %3677 }
 0x430   : > { %v4327_v47 = vsel %vm4302_vm12, %v4294_v31, %v3772_v26  ;;  %v4295_v53 = vsel %vm4269_vm11, %v4262_v9, %v3678_v34 }
 0x431   : > { %4073 = vrot.lane.b32.xlu1 %v3429_v39, %s6906_s29  ;;  %4071 = vrot.lane.b32.xlu0 %v3427_v55, %s6906_s29 }
 0x433   : > { %v4152_v4 = vpop.permute.xlu1 %4151  ;;  %v4058_v35 = vpop.permute.xlu0 %4057 }
 0x434   : > { %v4457_v50 = vsel %vm4434_vm0, %v4424_v22, %v4152_v4  ;;  %v4425_v6 = vsel %vm4401_vm15, %v4392_v25, %v4058_v35 }
 0x435   : > { %4169 = vrot.lane.b32.xlu1 %v3434_v42, %s6907_s30  ;;  %4167 = vrot.lane.b32.xlu0 %v3432_v48, %s6907_s30 }
 0x436   : > { %5570 = vmatprep.mubr.msk.f32.mxu1 %vm4479_vm1, %v4457_v50 }
 0x437   : > { %v3774_v14 = vpop.permute.xlu1 %3773  ;;  %v3488_v24 = vpop.permute.xlu0 %3487 }
 0x438   : > { %v4328_v7 = vsel %vm4302_vm12, %v4295_v53, %v3774_v14  ;;  %v4230_v22 = vsel %vm4203_vm9, %v10151_v23, %v3488_v24 }
 0x43b   : > { %v4154_v18 = vpop.permute.xlu1 %4153  ;;  %v3868_v10 = vpop.permute.xlu0 %3867 }
 0x43c   : > { %v4458_v63 = vsel %vm4434_vm0, %v4425_v6, %v4154_v18  ;;  %v4360_v13 = vsel %vm4335_vm13, %v4327_v47, %v3868_v10 }
 0x43d   : > { %5571 = vmatmul.mubr.msk.f32.gmra.mxu1 %vm4479_vm1, %v4458_v63 }
 0x43f   : > { %v3584_v8 = vpop.permute.xlu1 %3583  ;;  %v3490_v16 = vpop.permute.xlu0 %3489 }
 0x440   : > { %v4263_v4 = vsel %vm4236_vm10, %v4230_v22, %v3584_v8  ;;  %v4231_v23 = vsel %vm4203_vm9, %v10155_v45, %v3490_v16 }
 0x443   : > { %v3964_v51 = vpop.permute.xlu1 %3963  ;;  %v3870_v21 = vpop.permute.xlu0 %3869 }
 0x444   : > { %v4393_v32 = vsel %vm4368_vm14, %v4360_v13, %v3964_v51  ;;  %v4361_v30 = vsel %vm4335_vm13, %v4328_v7, %v3870_v21 }
 0x447   : > { %v3680_v57 = vpop.permute.xlu1 %3679  ;;  %v3586_v33 = vpop.permute.xlu0 %3585 }
 0x448   : > { %v4296_v35 = vsel %vm4269_vm11, %v4263_v4, %v3680_v57  ;;  %v4264_v24 = vsel %vm4236_vm10, %v4231_v23, %v3586_v33 }
 0x44b   : > { %v4060_v62 = vpop.permute.xlu1 %4059  ;;  %v3966_v15 = vpop.permute.xlu0 %3965 }
 0x44c   : > { %v4426_v49 = vsel %vm4401_vm15, %v4393_v32, %v4060_v62  ;;  %v4394_v1 = vsel %vm4368_vm14, %v4361_v30, %v3966_v15 }
 0x44f   : > { %v3776_v60 = vpop.permute.xlu1 %3775  ;;  %v3682_v19 = vpop.permute.xlu0 %3681 }
 0x450   : > { %v4329_v48 = vsel %vm4302_vm12, %v4296_v35, %v3776_v60  ;;  %v4297_v25 = vsel %vm4269_vm11, %v4264_v24, %v3682_v19 }
 0x453   : > { %v4156_v61 = vpop.permute.xlu1 %4155  ;;  %v4062_v46 = vpop.permute.xlu0 %4061 }
 0x454   : > { %v4459_v44 = vsel %vm4434_vm0, %v4426_v49, %v4156_v61  ;;  %v4427_v26 = vsel %vm4401_vm15, %v4394_v1, %v4062_v46 }
 0x455   : > { %5573 = vmatprep.mubr.msk.f32.mxu1 %vm4479_vm1, %v4459_v44 }
 0x457   : > { %v3778_v12 = vpop.permute.xlu1 %3777  ;;  %v3492_v11 = vpop.permute.xlu0 %3491 }
 0x458   : > { %v4330_v10 = vsel %vm4302_vm12, %v4297_v25, %v3778_v12  ;;  %v4232_v19 = vsel %vm4203_vm9, %v10275_v20, %v3492_v11  ;;  %v10724_v25 = vpop.f32.mrf.mxu0 }
 0x45b   : > { %v4158_v40 = vpop.permute.xlu1 %4157  ;;  %v3872_v54 = vpop.permute.xlu0 %3871 }
 0x45c   : > { %v4460_v29 = vsel %vm4434_vm0, %v4427_v26, %v4158_v40  ;;  %v4362_v59 = vsel %vm4335_vm13, %v4329_v48, %v3872_v54 }
 0x45d   : > { %5574 = vmatmul.mubr.msk.f32.gmra.mxu1 %vm4479_vm1, %v4460_v29 }
 0x45f   : > { %v3588_v17 = vpop.permute.xlu1 %3587  ;;  %v3494_v56 = vpop.permute.xlu0 %3493 }
 0x460   : > { %v4265_v47 = vsel %vm4236_vm10, %v4232_v19, %v3588_v17  ;;  %v4233_v20 = vsel %vm4203_vm9, %v10281_v27, %v3494_v56 }
 0x463   : > { %v3968_v39 = vpop.permute.xlu1 %3967  ;;  %v3874_v34 = vpop.permute.xlu0 %3873 }
 0x464   : > { %v4395_v43 = vsel %vm4368_vm14, %v4362_v59, %v3968_v39  ;;  %v4363_v63 = vsel %vm4335_vm13, %v4330_v10, %v3874_v34 }
 0x467   : > { %v3684_v55 = vpop.permute.xlu1 %3683  ;;  %v3590_v28 = vpop.permute.xlu0 %3589 }
 0x468   : > { %v4298_v13 = vsel %vm4269_vm11, %v4265_v47, %v3684_v55  ;;  %v4266_v11 = vsel %vm4236_vm10, %v4233_v20, %v3590_v28 }
 0x46b   : > { %v4064_v41 = vpop.permute.xlu1 %4063  ;;  %v3970_v58 = vpop.permute.xlu0 %3969 }
 0x46c   : > { %v4428_v5 = vsel %vm4401_vm15, %v4395_v43, %v4064_v41  ;;  %v4396_v8 = vsel %vm4368_vm14, %v4363_v63, %v3970_v58 }
 0x46f   : > { %v3780_v50 = vpop.permute.xlu1 %3779  ;;  %v3686_v42 = vpop.permute.xlu0 %3685 }
 0x470   : > { %v4331_v61 = vsel %vm4302_vm12, %v4298_v13, %v3780_v50  ;;  %v4299_v7 = vsel %vm4269_vm11, %v4266_v11, %v3686_v42 }
 0x473   : > { %v4160_v14 = vpop.permute.xlu1 %4159  ;;  %v4066_v2 = vpop.permute.xlu0 %4065 }
 0x474   : > { %v4461_v0 = vsel %vm4434_vm0, %v4428_v5, %v4160_v14  ;;  %v4429_v51 = vsel %vm4401_vm15, %v4396_v8, %v4066_v2 }
 0x475   : > { %5576 = vmatprep.mubr.msk.f32.mxu1 %vm4479_vm1, %v4461_v0 }
 0x477   : > { %v3782_v6 = vpop.permute.xlu1 %3781  ;;  %v3496_v18 = vpop.permute.xlu0 %3495 }
 0x478   : > { %v4332_v26 = vsel %vm4302_vm12, %v4299_v7, %v3782_v6  ;;  %v4234_v55 = vsel %vm4203_vm9, %v10392_v36, %v3496_v18  ;;  %v10726_v6 = vpop.f32.mrf.mxu0 }
 0x479   : > { %v4805_v63 = vsel %vm3034_vm3, %v10726_v6, 0.0 }
 0x47a   : > { %v10728_v18 = vpop.f32.mrf.mxu0 }
 0x47b   : > { %v4162_v21 = vpop.permute.xlu1 %4161  ;;  %v3876_v57 = vpop.permute.xlu0 %3875 }
 0x47c   : > { %v4462_v45 = vsel %vm4434_vm0, %v4429_v51, %v4162_v21  ;;  %v4364_v46 = vsel %vm4335_vm13, %v4331_v61, %v3876_v57  ;;  %v10730_v10 = vpop.f32.mrf.mxu0  ;;  %v4806_v51 = vsel %vm3034_vm3, %v10724_v25, 0.0 }
 0x47d   : > { %5577 = vmatmul.mubr.msk.f32.gmra.mxu1 %vm4479_vm1, %v4462_v45  ;;  %v4808_v21 = vsel %vm3034_vm3, %v10730_v10, 0.0  ;;  %v4807_v57 = vadd.f32 %v4806_v51, %v4805_v63 }
 0x47e   : > { %v10734_v8 = vpop.f32.mrf.mxu0 }
 0x47f   : > { %v3592_v16 = vpop.permute.xlu1 %3591  ;;  %v3498_v33 = vpop.permute.xlu0 %3497  ;;  %v4809_v45 = vadd.f32 %v4808_v21, %v4807_v57  ;;  %v4814_v19 = vsel %vm3034_vm3, %v10734_v8, 0.0 }
 0x480   : > { %v4235_v28 = vsel %vm4203_vm9, %v10398_v37, %v3498_v33  ;;  %v4267_v41 = vsel %vm4236_vm10, %v4234_v55, %v3592_v16  ;;  %v10740_v16 = vpop.f32.mrf.mxu0 }
 0x482   : > { %v10742_v33 = vpop.f32.mrf.mxu0 }
 0x483   : > { %v3972_v62 = vpop.permute.xlu1 %3971  ;;  %v3878_v15 = vpop.permute.xlu0 %3877 }
 0x484   : > { %v4397_v44 = vsel %vm4368_vm14, %v4364_v46, %v3972_v62  ;;  %v4365_v40 = vsel %vm4335_vm13, %v4332_v26, %v3878_v15  ;;  %v4810_v62 = vsel %vm3034_vm3, %v10728_v18, 0.0  ;;  %v4812_v15 = vsel %vm3034_vm3, %v10740_v16, 0.0 }
 0x485   : > { %v4818_v46 = vsel %vm3034_vm3, %v10742_v33, 0.0 }
 0x487   : > { %v3688_v52 = vpop.permute.xlu1 %3687  ;;  %v3594_v3 = vpop.permute.xlu0 %3593 }
 0x488   : > { %v4268_v58 = vsel %vm4236_vm10, %v4235_v28, %v3594_v3  ;;  %v4300_v22 = vsel %vm4269_vm11, %v4267_v41, %v3688_v52  ;;  %v4811_v52 = vadd.f32 %v4810_v62, %v4809_v45 }
 0x48a   : > { %v4813_v3 = vadd.f32 %v4812_v15, %v4811_v52 }
 0x48b   : > { %v4068_v31 = vpop.permute.xlu1 %4067  ;;  %v3974_v60 = vpop.permute.xlu0 %3973 }
 0x48c   : > { %v4430_v38 = vsel %vm4401_vm15, %v4397_v44, %v4068_v31  ;;  %v4398_v54 = vsel %vm4368_vm14, %v4365_v40, %v3974_v60  ;;  %v10748_v31 = vpop.f32.mrf.mxu0  ;;  %v4815_v13 = vadd.f32 %v4814_v19, %v4813_v3 }
 0x48d   : > { %v4816_v47 = vsel %vm3034_vm3, %v10748_v31, 0.0 }
 0x48e   : > { %v10750_v60 = vpop.f32.mrf.mxu0 }
 0x48f   : > { %v3784_v32 = vpop.permute.xlu1 %3783  ;;  %v3690_v49 = vpop.permute.xlu0 %3689  ;;  %v4822_v20 = vsel %vm3034_vm3, %v10750_v60, 0.0 }
 0x490   : > { %v4301_v4 = vsel %vm4269_vm11, %v4268_v58, %v3690_v49  ;;  %v4333_v42 = vsel %vm4302_vm12, %v4300_v22, %v3784_v32  ;;  %v4817_v32 = vadd.f32 %v4816_v47, %v4815_v13  ;;  %v10756_v49 = vpop.f32.mrf.mxu0 }
 0x491   : > { %v4820_v44 = vsel %vm3034_vm3, %v10756_v49, 0.0 }
 0x492   : > { %v10758_v61 = vpop.f32.mrf.mxu0 }
 0x493   : > { %v4164_v9 = vpop.permute.xlu1 %4163  ;;  %v4070_v53 = vpop.permute.xlu0 %4069  ;;  %v4826_v40 = vsel %vm3034_vm3, %v10758_v61, 0.0 }
 0x494   : > { %v4463_v12 = vsel %vm4434_vm0, %v4430_v38, %v4164_v9  ;;  %v4431_v29 = vsel %vm4401_vm15, %v4398_v54, %v4070_v53  ;;  %v4819_v38 = vadd.f32 %v4818_v46, %v4817_v32  ;;  %v10764_v53 = vpop.f32.mrf.mxu0 }
 0x495   : > { %5579 = vmatprep.mubr.msk.f32.mxu1 %vm4479_vm1, %v4463_v12  ;;  %v4824_v11 = vsel %vm3034_vm3, %v10764_v53, 0.0 }
 0x496   : > { %v4821_v9 = vadd.f32 %v4820_v44, %v4819_v38  ;;  %v10766_v12 = vpop.f32.mrf.mxu0 }
 0x497   : > { %v3880_v30 = vpop.permute.xlu1 %3879  ;;  %v3786_v1 = vpop.permute.xlu0 %3785 }
 0x498   : > { %v4334_v48 = vsel %vm4302_vm12, %v4301_v4, %v3786_v1  ;;  %v4366_v59 = vsel %vm4335_vm13, %v4333_v42, %v3880_v30  ;;  %v4823_v7 = vadd.f32 %v4822_v20, %v4821_v9  ;;  %v10772_v1 = vpop.f32.mrf.mxu0 }
 0x499   : > { %v4828_v54 = vsel %vm3034_vm3, %v10772_v1, 0.0 }
 0x49a   : > { %v4825_v30 = vadd.f32 %v4824_v11, %v4823_v7  ;;  %v10774_v26 = vpop.f32.mrf.mxu0 }
 0x49b   : > { %v3882_v17 = vpop.permute.xlu1 %3881  ;;  %v4166_v39 = vpop.permute.xlu0 %4165  ;;  %v4834_v22 = vsel %vm3034_vm3, %v10774_v26, 0.0 }
 0x49c   : > { %v4464_v27 = vsel %vm4434_vm0, %v4431_v29, %v4166_v39  ;;  %v4367_v36 = vsel %vm4335_vm13, %v4334_v48, %v3882_v17  ;;  %v4827_v29 = vadd.f32 %v4826_v40, %v4825_v30  ;;  %v10780_v39 = vpop.f32.mrf.mxu0 }
 0x49d   : > { %5580 = vmatmul.mubr.msk.f32.gmra.mxu1 %vm4479_vm1, %v4464_v27 }
 0x49e   : > { %v4829_v17 = vadd.f32 %v4828_v54, %v4827_v29  ;;  %v10782_v27 = vpop.f32.mrf.mxu1 }
 0x49f   : > { %v3978_v56 = vpop.permute.xlu1 %3977  ;;  %v3976_v34 = vpop.permute.xlu0 %3975 }
 0x4a0   : > { %v4400_v37 = vsel %vm4368_vm14, %v4367_v36, %v3978_v56  ;;  %v4399_v43 = vsel %vm4368_vm14, %v4366_v59, %v3976_v34  ;;  %v4830_v56 = vsel %vm3034_vm3, %v10766_v12, 0.0  ;;  %v4832_v34 = vsel %vm3034_vm3, %v10780_v39, 0.0  ;;  %v10788_v41 = vpop.f32.mrf.mxu1 }
 0x4a1   : > { %v4831_v55 = vadd.f32 %v4830_v56, %v4829_v17  ;;  %v4836_v4 = vsel %vm3034_vm3, %v10788_v41, 0.0  ;;  %v4838_v59 = vsel %vm3034_vm3, %v10782_v27, 0.0 }
 0x4a3   : > { %v4074_v35 = vpop.permute.xlu1 %4073  ;;  %v4072_v50 = vpop.permute.xlu0 %4071  ;;  %v4833_v28 = vadd.f32 %v4832_v34, %v4831_v55 }
 0x4a4   : > { %v4433_v5 = vsel %vm4401_vm15, %v4400_v37, %v4074_v35  ;;  %v4432_v14 = vsel %vm4401_vm15, %v4399_v43, %v4072_v50 }
 0x4a5   : > { %v4835_v35 = vadd.f32 %v4834_v22, %v4833_v28 }
 0x4a7   : > { %v4170_v2 = vpop.permute.xlu1 %4169  ;;  %v4168_v0 = vpop.permute.xlu0 %4167  ;;  %v4837_v50 = vadd.f32 %v4836_v4, %v4835_v35 }
 0x4a8   : > { %v4466_v23 = vsel %vm4434_vm0, %v4433_v5, %v4170_v2  ;;  %v4465_v24 = vsel %vm4434_vm0, %v4432_v14, %v4168_v0 }
 0x4a9   : > { %5582 = vmatprep.mubr.msk.f32.mxu1 %vm4479_vm1, %v4465_v24  ;;  %v4839_v37 = vadd.f32 %v4838_v59, %v4837_v50 }
 0x4aa   : > { %5583 = vmatmul.mubr.msk.f32.gmra.mxu1 %vm4479_vm1, %v4466_v23 }
 0x4be   : > { %v10790_v58 = vpop.f32.mrf.mxu1 }
 0x4bf   : > { %v4842_v2 = vsel %vm3034_vm3, %v10790_v58, 0.0 }
 0x4c0   : > { %v10796_v42 = vpop.f32.mrf.mxu1 }
 0x4c1   : > { %v4840_v36 = vsel %vm3034_vm3, %v10796_v42, 0.0 }
 0x4c2   : > { %v4841_v43 = vadd.f32 %v4840_v36, %v4839_v37 }
 0x4c4   : > { %v4843_v23 = vadd.f32 %v4842_v2, %v4841_v43 }
 0x4de   : > { %v10798_v48 = vpop.f32.mrf.mxu1 }
 0x4df   : > { %v4846_v21 = vsel %vm3034_vm3, %v10798_v48, 0.0 }
 0x4e0   : > { %v10804_v5 = vpop.f32.mrf.mxu1 }
 0x4e1   : > { %v4844_v0 = vsel %vm3034_vm3, %v10804_v5, 0.0 }
 0x4e2   : > { %v4845_v24 = vadd.f32 %v4844_v0, %v4843_v23 }
 0x4e4   : > { %v4847_v45 = vadd.f32 %v4846_v21, %v4845_v24 }
 0x4fd   : > { %v10806_v14 = vpop.f32.mrf.mxu1 }
 0x4fe   : > { %v4850_v3 = vsel %vm3034_vm3, %v10806_v14, 0.0 }
 0x4ff   : > { %v10812_v63 = vpop.f32.mrf.mxu1 }
 0x500   : > { %v4848_v57 = vsel %vm3034_vm3, %v10812_v63, 0.0 }
 0x501   : > { %v4849_v62 = vadd.f32 %v4848_v57, %v4847_v45 }
 0x503   : > { %v4851_v47 = vadd.f32 %v4850_v3, %v4849_v62 }
 0x51d   : > { %v10814_v51 = vpop.f32.mrf.mxu1 }
 0x51e   : > { %v4854_v44 = vsel %vm3034_vm3, %v10814_v51, 0.0 }
 0x51f   : > { %v10820_v15 = vpop.f32.mrf.mxu1 }
 0x520   : > { %v4852_v19 = vsel %vm3034_vm3, %v10820_v15, 0.0 }
 0x521   : > { %v4853_v13 = vadd.f32 %v4852_v19, %v4851_v47 }
 0x523   : > { %v4855_v9 = vadd.f32 %v4854_v44, %v4853_v13 }
 0x53d   : > { %v10822_v52 = vpop.f32.mrf.mxu1 }
 0x53e   : > { %v4858_v7 = vsel %vm3034_vm3, %v10822_v52, 0.0 }
 0x53f   : > { %v10828_v32 = vpop.f32.mrf.mxu1 }
 0x540   : > { %v4856_v38 = vsel %vm3034_vm3, %v10828_v32, 0.0 }
 0x541   : > { %v4857_v20 = vadd.f32 %v4856_v38, %v4855_v9 }
 0x543   : > { %v4859_v40 = vadd.f32 %v4858_v7, %v4857_v20 }
 0x55d   : > { %v10830_v46 = vpop.f32.mrf.mxu1 }
 0x55e   : > { %v4862_v17 = vsel %vm3034_vm3, %v10830_v46, 0.0 }
 0x55f   : > { %v10836_v11 = vpop.f32.mrf.mxu1 }
 0x560   : > { %v4860_v30 = vsel %vm3034_vm3, %v10836_v11, 0.0 }
 0x561   : > { %v4861_v54 = vadd.f32 %v4860_v30, %v4859_v40 }
 0x563   : > { %v4863_v34 = vadd.f32 %v4862_v17, %v4861_v54 }
 0x56a   : > { %v10842_v29 = vpop.f32.mrf.mxu1 }
 0x56b   : > { %v4866_v22 = vsel %vm3034_vm3, %v10842_v29, 0.0 }
 0x56c   : > { %v10846_v56 = vpop.f32.mrf.mxu1 }
 0x56d   : > { %v4864_v55 = vsel %vm3034_vm3, %v10846_v56, 0.0 }
 0x56e   : > { %v4865_v28 = vadd.f32 %v4864_v55, %v4863_v34 }
 0x570   : > { %v4867_v4 = vadd.f32 %v4866_v22, %v4865_v28 }
 0x572   : > { %v4868_v35 = vrot.slane %v4867_v4, 4 }
 0x574   : > { %v4869_v50 = vadd.f32 %v4868_v35, %v4867_v4 }
 0x576   : > { %v4870_v59 = vrot.slane %v4869_v50, 2 }
 0x578   : > { %v4871_v36 = vadd.f32 %v4870_v59, %v4869_v50 }
 0x57a   : > { %v4872_v37 = vrot.slane %v4871_v36, 1 }
 0x57c   : > { %v4873_v43 = vadd.f32 %v4872_v37, %v4871_v36 }
 0x57e   : > { %v10852_v2 = vmul.f32 0.00390625, %v4873_v43 }
 0x580   : > { %v10856_v0 = vsub.f32 %v10726_v6, %v10852_v2  ;;  %v10860_v23 = vsub.f32 %v10724_v25, %v10852_v2  ;;  %v10864_v24 = vsub.f32 %v10730_v10, %v10852_v2  ;;  %v10868_v21 = vsub.f32 %v10728_v18, %v10852_v2 }
 0x581   : > { %v10876_v6 = vsub.f32 %v10740_v16, %v10852_v2  ;;  %v10882_v10 = vsub.f32 %v10734_v8, %v10852_v2  ;;  %v10890_v47 = vsub.f32 %v10748_v31, %v10852_v2  ;;  %v10897_v8 = vsub.f32 %v10742_v33, %v10852_v2 }
 0x582   : > { %v4908_v57 = vmul.f32 %v10856_v0, %v10856_v0  ;;  %v4909_v45 = vmul.f32 %v10860_v23, %v10860_v23  ;;  %v4910_v25 = vmul.f32 %v10864_v24, %v10864_v24  ;;  %v4911_v18 = vmul.f32 %v10868_v21, %v10868_v21 }
 0x583   : > { %v4912_v16 = vmul.f32 %v10876_v6, %v10876_v6  ;;  %v4913_v38 = vmul.f32 %v10882_v10, %v10882_v10  ;;  %v10904_v31 = vsub.f32 %v10756_v49, %v10852_v2  ;;  %v4914_v7 = vmul.f32 %v10890_v47, %v10890_v47 }
 0x584   : > { %v4940_v62 = vsel %vm3034_vm3, %v4908_v57, 0.0  ;;  %v4941_v3 = vsel %vm3034_vm3, %v4909_v45, 0.0  ;;  %v4943_v13 = vsel %vm3034_vm3, %v4910_v25, 0.0  ;;  %v4945_v9 = vsel %vm3034_vm3, %v4911_v18, 0.0 }
 0x585   : > { %v4942_v19 = vadd.f32 %v4941_v3, %v4940_v62  ;;  %v4947_v30 = vsel %vm3034_vm3, %v4912_v16, 0.0  ;;  %v10911_v33 = vsub.f32 %v10750_v60, %v10852_v2  ;;  %v4915_v54 = vmul.f32 %v10897_v8, %v10897_v8 }
 0x586   : > { %v4949_v17 = vsel %vm3034_vm3, %v4913_v38, 0.0  ;;  %v10918_v49 = vsub.f32 %v10764_v53, %v10852_v2  ;;  %v4916_v55 = vmul.f32 %v10904_v31, %v10904_v31  ;;  %v4951_v28 = vsel %vm3034_vm3, %v4914_v7, 0.0 }
 0x587   : > { %v4944_v44 = vadd.f32 %v4943_v13, %v4942_v19  ;;  %v10925_v60 = vsub.f32 %v10758_v61, %v10852_v2  ;;  %v4917_v4 = vmul.f32 %v10911_v33, %v10911_v33  ;;  %v4953_v35 = vsel %vm3034_vm3, %v4915_v54, 0.0 }
 0x588   : > { %v10932_v53 = vsub.f32 %v10772_v1, %v10852_v2  ;;  %v4918_v59 = vmul.f32 %v10918_v49, %v10918_v49  ;;  %v4955_v36 = vsel %vm3034_vm3, %v4916_v55, 0.0  ;;  %v10939_v61 = vsub.f32 %v10766_v12, %v10852_v2 }
 0x589   : > { %v4946_v20 = vadd.f32 %v4945_v9, %v4944_v44  ;;  %v4919_v43 = vmul.f32 %v10925_v60, %v10925_v60  ;;  %v4957_v57 = vsel %vm3034_vm3, %v4917_v4, 0.0  ;;  %v10946_v1 = vsub.f32 %v10780_v39, %v10852_v2 }
 0x58a   : > { %v4920_v25 = vmul.f32 %v10932_v53, %v10932_v53  ;;  %v4959_v18 = vsel %vm3034_vm3, %v4918_v59, 0.0  ;;  %v10953_v12 = vsub.f32 %v10774_v26, %v10852_v2  ;;  %v4921_v3 = vmul.f32 %v10939_v61, %v10939_v61 }
 0x58b   : > { %v4948_v40 = vadd.f32 %v4947_v30, %v4946_v20  ;;  %v4961_v19 = vsel %vm3034_vm3, %v4919_v43, 0.0  ;;  %v10960_v39 = vsub.f32 %v10788_v41, %v10852_v2  ;;  %v4922_v13 = vmul.f32 %v10946_v1, %v10946_v1 }
 0x58c   : > { %v4963_v44 = vsel %vm3034_vm3, %v4920_v25, 0.0  ;;  %v10967_v26 = vsub.f32 %v10782_v27, %v10852_v2  ;;  %v4923_v9 = vmul.f32 %v10953_v12, %v10953_v12  ;;  %v4965_v20 = vsel %vm3034_vm3, %v4921_v3, 0.0 }
 0x58d   : > { %v4950_v34 = vadd.f32 %v4949_v17, %v4948_v40  ;;  %v10974_v41 = vsub.f32 %v10796_v42, %v10852_v2  ;;  %v4924_v30 = vmul.f32 %v10960_v39, %v10960_v39  ;;  %v4967_v40 = vsel %vm3034_vm3, %v4922_v13, 0.0 }
 0x58e   : > { %v10981_v27 = vsub.f32 %v10790_v58, %v10852_v2  ;;  %v4925_v17 = vmul.f32 %v10967_v26, %v10967_v26  ;;  %v10988_v42 = vsub.f32 %v10804_v5, %v10852_v2  ;;  %v10995_v58 = vsub.f32 %v10798_v48, %v10852_v2 }
 0x58f   : > { %v4952_v22 = vadd.f32 %v4951_v28, %v4950_v34  ;;  %v4969_v34 = vsel %vm3034_vm3, %v4923_v9, 0.0  ;;  %v4926_v28 = vmul.f32 %v10974_v41, %v10974_v41  ;;  %v11002_v5 = vsub.f32 %v10812_v63, %v10852_v2 }
 0x590   : > { %v11009_v48 = vsub.f32 %v10806_v14, %v10852_v2  ;;  %v11016_v63 = vsub.f32 %v10820_v15, %v10852_v2  ;;  %v11023_v14 = vsub.f32 %v10814_v51, %v10852_v2  ;;  %v11030_v15 = vsub.f32 %v10828_v32, %v10852_v2 }
 0x591   : > { %v4954_v50 = vadd.f32 %v4953_v35, %v4952_v22  ;;  %v4971_v22 = vsel %vm3034_vm3, %v4924_v30, 0.0  ;;  %v4927_v35 = vmul.f32 %v10981_v27, %v10981_v27  ;;  %v11037_v51 = vsub.f32 %v10822_v52, %v10852_v2 }
 0x592   : > { %v11044_v32 = vsub.f32 %v10836_v11, %v10852_v2  ;;  %v11051_v52 = vsub.f32 %v10830_v46, %v10852_v2  ;;  %v11058_v11 = vsub.f32 %v10846_v56, %v10852_v2  ;;  %v11065_v46 = vsub.f32 %v10842_v29, %v10852_v2 }
 0x593   : > { %v4956_v37 = vadd.f32 %v4955_v36, %v4954_v50  ;;  %v4973_v50 = vsel %vm3034_vm3, %v4925_v17, 0.0  ;;  %v4928_v36 = vmul.f32 %v10988_v42, %v10988_v42 }
 0x594   : > { %v4938_v56 = vmul.f32 %v11058_v11, %v11058_v11 }
 0x595   : > { %v4958_v45 = vadd.f32 %v4957_v57, %v4956_v37  ;;  %v4975_v37 = vsel %vm3034_vm3, %v4926_v28, 0.0  ;;  %v4929_v57 = vmul.f32 %v10995_v58, %v10995_v58 }
 0x596   : > { %v4999_v29 = vsel %vm3034_vm3, %v4938_v56, 0.0 }
 0x597   : > { %v4960_v62 = vadd.f32 %v4959_v18, %v4958_v45  ;;  %v4977_v45 = vsel %vm3034_vm3, %v4927_v35, 0.0  ;;  %v4930_v18 = vmul.f32 %v11002_v5, %v11002_v5 }
 0x599   : > { %v4962_v16 = vadd.f32 %v4961_v19, %v4960_v62  ;;  %v4979_v62 = vsel %vm3034_vm3, %v4928_v36, 0.0  ;;  %v4931_v19 = vmul.f32 %v11009_v48, %v11009_v48 }
 0x59b   : > { %v4964_v38 = vadd.f32 %v4963_v44, %v4962_v16  ;;  %v4981_v16 = vsel %vm3034_vm3, %v4929_v57, 0.0  ;;  %v4932_v44 = vmul.f32 %v11016_v63, %v11016_v63  ;;  %v4939_v57 = vmul.f32 %v11065_v46, %v11065_v46 }
 0x59d   : > { %v4966_v7 = vadd.f32 %v4965_v20, %v4964_v38  ;;  %v4983_v38 = vsel %vm3034_vm3, %v4930_v18, 0.0  ;;  %v4933_v20 = vmul.f32 %v11023_v14, %v11023_v14  ;;  %v5001_v18 = vsel %vm3034_vm3, %v4939_v57, 0.0 }
 0x59f   : > { %v4968_v54 = vadd.f32 %v4967_v40, %v4966_v7  ;;  %v4985_v7 = vsel %vm3034_vm3, %v4931_v19, 0.0  ;;  %v4934_v40 = vmul.f32 %v11030_v15, %v11030_v15 }
 0x5a1   : > { %v4970_v55 = vadd.f32 %v4969_v34, %v4968_v54  ;;  %v4987_v54 = vsel %vm3034_vm3, %v4932_v44, 0.0  ;;  %v4935_v34 = vmul.f32 %v11037_v51, %v11037_v51 }
 0x5a3   : > { %v4972_v4 = vadd.f32 %v4971_v22, %v4970_v55  ;;  %v4989_v55 = vsel %vm3034_vm3, %v4933_v20, 0.0  ;;  %v4936_v22 = vmul.f32 %v11044_v32, %v11044_v32 }
 0x5a5   : > { %v4974_v59 = vadd.f32 %v4973_v50, %v4972_v4  ;;  %v4991_v4 = vsel %vm3034_vm3, %v4934_v40, 0.0  ;;  %v4937_v50 = vmul.f32 %v11051_v52, %v11051_v52 }
 0x5a7   : > { %v4976_v43 = vadd.f32 %v4975_v37, %v4974_v59  ;;  %v4993_v59 = vsel %vm3034_vm3, %v4935_v34, 0.0  ;;  %v4995_v37 = vsel %vm3034_vm3, %v4936_v22, 0.0 }
 0x5a9   : > { %v4978_v25 = vadd.f32 %v4977_v45, %v4976_v43  ;;  %v4997_v45 = vsel %vm3034_vm3, %v4937_v50, 0.0 }
 0x5ab   : > { %v4980_v3 = vadd.f32 %v4979_v62, %v4978_v25 }
 0x5ad   : > { %v4982_v13 = vadd.f32 %v4981_v16, %v4980_v3 }
 0x5af   : > { %v4984_v9 = vadd.f32 %v4983_v38, %v4982_v13 }
 0x5b1   : > { %v4986_v30 = vadd.f32 %v4985_v7, %v4984_v9 }
 0x5b3   : > { %v4988_v17 = vadd.f32 %v4987_v54, %v4986_v30 }
 0x5b5   : > { %v4990_v28 = vadd.f32 %v4989_v55, %v4988_v17 }
 0x5b7   : > { %v4992_v35 = vadd.f32 %v4991_v4, %v4990_v28 }
 0x5b9   : > { %v4994_v36 = vadd.f32 %v4993_v59, %v4992_v35 }
 0x5bb   : > { %v4996_v43 = vadd.f32 %v4995_v37, %v4994_v36 }
 0x5bd   : > { %v4998_v25 = vadd.f32 %v4997_v45, %v4996_v43 }
 0x5bf   : > { %v5000_v2 = vadd.f32 %v4999_v29, %v4998_v25 }
 0x5c1   : > { %v5002_v62 = vadd.f32 %v5001_v18, %v5000_v2 }
 0x5c3   : > { %v5003_v3 = vrot.slane %v5002_v62, 4 }
 0x5c5   : > { %v5004_v19 = vadd.f32 %v5003_v3, %v5002_v62 }
 0x5c7   : > { %v5005_v16 = vrot.slane %v5004_v19, 2 }
 0x5c9   : > { %v5006_v13 = vadd.f32 %v5005_v16, %v5004_v19 }
 0x5cb   : > { %v5007_v44 = vrot.slane %v5006_v13, 1 }
 0x5cd   : > { %v5008_v38 = vadd.f32 %v5007_v44, %v5006_v13 }
 0x5cf   : > { %v5009_v9 = vmul.f32 0.00390625, %v5008_v38 }
 0x5d1   : > { %v5010_v20 = vadd.f32 1e-05, %v5009_v9 }
 0x5d3   : > { %6647 = vrsqrt.f32 %v5010_v20 }
 0x5e0   : > { %v11078_v7 = vpop.eup %6647 }
 0x5e1   : > { %v11082_v30 = vmul.f32 %v11078_v7, %v10856_v0  ;;  %v11086_v40 = vmul.f32 %v11078_v7, %v10860_v23  ;;  %v11090_v54 = vmul.f32 %v11078_v7, %v10864_v24  ;;  %v11094_v17 = vmul.f32 %v11078_v7, %v10868_v21 }
 0x5e2   : > { %v11098_v34 = vmul.f32 %v11078_v7, %v10876_v6  ;;  %v11102_v0 = vmul.f32 %v11078_v7, %v10882_v10  ;;  %v11106_v23 = vmul.f32 %v11078_v7, %v10890_v47  ;;  %v11113_v21 = vmul.f32 %v11078_v7, %v10897_v8 }
 0x5e3   : > { %v5044_v55 = vsub.f32 0.0, %v11082_v30  ;;  %v5045_v24 = vsub.f32 0.0, %v11086_v40  ;;  %v5046_v28 = vsub.f32 0.0, %v11090_v54  ;;  %v5047_v6 = vsub.f32 0.0, %v11094_v17 }
 0x5e4   : > { %v11118_v10 = vmul.f32 %v11078_v7, %v10904_v31  ;;  %v5048_v22 = vsub.f32 0.0, %v11098_v34  ;;  %v11123_v47 = vmul.f32 %v11078_v7, %v10911_v33  ;;  %v5049_v4 = vsub.f32 0.0, %v11102_v0 }
 0x5e5   : > { %v5050_v35 = vsub.f32 0.0, %v11106_v23  ;;  %v11129_v8 = vmul.f32 %v11078_v7, %v10918_v49  ;;  %v5076_v50 = vmul.f32 1.442695, %v5044_v55  ;;  %v5078_v59 = vmul.f32 1.442695, %v5045_v24 }
 0x5e6   : > { %v5080_v36 = vmul.f32 1.442695, %v5046_v28  ;;  %v11133_v31 = vmul.f32 %v11078_v7, %v10925_v60  ;;  %v5051_v56 = vsub.f32 0.0, %v11113_v21  ;;  %v5082_v37 = vmul.f32 1.442695, %v5047_v6 }
 0x5e7   : > { %v11138_v33 = vmul.f32 %v11078_v7, %v10932_v53  ;;  %v5052_v43 = vsub.f32 0.0, %v11118_v10  ;;  %6649 = vpow2.f32 %v5076_v50  ;;  %v5084_v57 = vmul.f32 1.442695, %v5048_v22 }
 0x5e8   : > { %v11143_v49 = vmul.f32 %v11078_v7, %v10939_v61  ;;  %v5053_v45 = vsub.f32 0.0, %v11123_v47  ;;  %6651 = vpow2.f32 %v5078_v59  ;;  %v5086_v60 = vmul.f32 1.442695, %v5049_v4 }
 0x5e9   : > { %v11148_v25 = vmul.f32 %v11078_v7, %v10946_v1  ;;  %v5054_v29 = vsub.f32 0.0, %v11129_v8  ;;  %6653 = vpow2.f32 %v5080_v36  ;;  %v5088_v53 = vmul.f32 1.442695, %v5050_v35 }
 0x5ea   : > { %v11153_v2 = vmul.f32 %v11078_v7, %v10953_v12  ;;  %v5055_v18 = vsub.f32 0.0, %v11133_v31  ;;  %6655 = vpow2.f32 %v5082_v37  ;;  %v5090_v61 = vmul.f32 1.442695, %v5051_v56 }
 0x5eb   : > { %v11158_v62 = vmul.f32 %v11078_v7, %v10960_v39  ;;  %v5056_v3 = vsub.f32 0.0, %v11138_v33  ;;  %6657 = vpow2.f32 %v5084_v57  ;;  %v5092_v1 = vmul.f32 1.442695, %v5052_v43 }
 0x5ec   : > { %v11163_v19 = vmul.f32 %v11078_v7, %v10967_v26  ;;  %v5057_v16 = vsub.f32 0.0, %v11143_v49  ;;  %6659 = vpow2.f32 %v5086_v60  ;;  %v5094_v12 = vmul.f32 1.442695, %v5053_v45 }
 0x5ed   : > { %v11168_v13 = vmul.f32 %v11078_v7, %v10974_v41  ;;  %v5058_v44 = vsub.f32 0.0, %v11148_v25  ;;  %6661 = vpow2.f32 %v5088_v53  ;;  %v5096_v39 = vmul.f32 1.442695, %v5054_v29 }
 0x5ee   : > { %v11173_v38 = vmul.f32 %v11078_v7, %v10981_v27  ;;  %v5059_v9 = vsub.f32 0.0, %v11153_v2  ;;  %6663 = vpow2.f32 %v5090_v61  ;;  %v5098_v26 = vmul.f32 1.442695, %v5055_v18 }
 0x5ef   : > { %v11178_v20 = vmul.f32 %v11078_v7, %v10988_v42  ;;  %v5060_v55 = vsub.f32 0.0, %v11158_v62  ;;  %6665 = vpow2.f32 %v5092_v1  ;;  %v5100_v41 = vmul.f32 1.442695, %v5056_v3 }
 0x5f0   : > { %v11183_v24 = vmul.f32 %v11078_v7, %v10995_v58  ;;  %v5061_v28 = vsub.f32 0.0, %v11163_v19  ;;  %6667 = vpow2.f32 %v5094_v12  ;;  %v5102_v27 = vmul.f32 1.442695, %v5057_v16 }
 0x5f1   : > { %v11188_v6 = vmul.f32 %v11078_v7, %v11002_v5  ;;  %v5062_v22 = vsub.f32 0.0, %v11168_v13  ;;  %6669 = vpow2.f32 %v5096_v39  ;;  %v5104_v42 = vmul.f32 1.442695, %v5058_v44 }
 0x5f2   : > { %v11193_v4 = vmul.f32 %v11078_v7, %v11009_v48  ;;  %v5063_v35 = vsub.f32 0.0, %v11173_v38  ;;  %6671 = vpow2.f32 %v5098_v26  ;;  %v5106_v58 = vmul.f32 1.442695, %v5059_v9 }
 0x5f3   : > { %v11198_v50 = vmul.f32 %v11078_v7, %v11016_v63  ;;  %v5064_v59 = vsub.f32 0.0, %v11178_v20  ;;  %6673 = vpow2.f32 %v5100_v41  ;;  %v5108_v5 = vmul.f32 1.442695, %v5060_v55 }
 0x5f4   : > { %v11201_v36 = vpop.eup %6649  ;;  %v11205_v56 = vmul.f32 %v11078_v7, %v11023_v14  ;;  %v5065_v48 = vsub.f32 0.0, %v11183_v24  ;;  %6675 = vpow2.f32 %v5102_v27  ;;  %v5110_v37 = vmul.f32 1.442695, %v5061_v28 }
 0x5f5   : > { %v6652_v43 = vpop.eup %6651  ;;  %v11210_v57 = vmul.f32 %v11078_v7, %v11030_v15  ;;  %v5066_v63 = vsub.f32 0.0, %v11188_v6  ;;  %6677 = vpow2.f32 %v5104_v42  ;;  %v5112_v45 = vmul.f32 1.442695, %v5062_v22 }
 0x5f6   : > { %v6654_v60 = vpop.eup %6653  ;;  %v11215_v29 = vmul.f32 %v11078_v7, %v11037_v51  ;;  %v5067_v14 = vsub.f32 0.0, %v11193_v4  ;;  %6679 = vpow2.f32 %v5106_v58  ;;  %v5114_v53 = vmul.f32 1.442695, %v5063_v35 }
 0x5f7   : > { %v6656_v18 = vpop.eup %6655  ;;  %v11220_v61 = vmul.f32 %v11078_v7, %v11044_v32  ;;  %v5068_v15 = vsub.f32 0.0, %v11198_v50  ;;  %6681 = vpow2.f32 %v5108_v5  ;;  %v5116_v3 = vmul.f32 1.442695, %v5064_v59 }
 0x5f8   : > { %v6658_v1 = vpop.eup %6657  ;;  %v11225_v16 = vmul.f32 %v11078_v7, %v11051_v52  ;;  %v5069_v51 = vsub.f32 0.0, %v11205_v56  ;;  %6683 = vpow2.f32 %v5110_v37  ;;  %v5118_v12 = vmul.f32 1.442695, %v5065_v48 }
 0x5f9   : > { %v6660_v44 = vpop.eup %6659  ;;  %v11230_v39 = vmul.f32 %v11078_v7, %v11058_v11  ;;  %v5070_v32 = vsub.f32 0.0, %v11210_v57  ;;  %6685 = vpow2.f32 %v5112_v45  ;;  %v5120_v9 = vmul.f32 1.442695, %v5066_v63 }
 0x5fa   : > { %v6662_v26 = vpop.eup %6661  ;;  %v11235_v55 = vmul.f32 %v11078_v7, %v11065_v46  ;;  %v5071_v52 = vsub.f32 0.0, %v11215_v29  ;;  %6687 = vpow2.f32 %v5114_v53  ;;  %v5122_v41 = vmul.f32 1.442695, %v5067_v14 }
 0x5fb   : > { %v6664_v28 = vpop.eup %6663  ;;  %v5072_v27 = vsub.f32 0.0, %v11220_v61  ;;  %6689 = vpow2.f32 %v5116_v3  ;;  %v5124_v22 = vmul.f32 1.442695, %v5068_v15  ;;  %v5073_v42 = vsub.f32 0.0, %v11225_v16 }
 0x5fc   : > { %v6666_v11 = vpop.eup %6665  ;;  %6691 = vpow2.f32 %v5118_v12  ;;  %v5126_v35 = vmul.f32 1.442695, %v5069_v51  ;;  %v5074_v59 = vsub.f32 0.0, %v11230_v39  ;;  %v5128_v46 = vmul.f32 1.442695, %v5070_v32 }
 0x5fd   : > { %v6668_v58 = vpop.eup %6667  ;;  %6693 = vpow2.f32 %v5120_v9  ;;  %v5075_v5 = vsub.f32 0.0, %v11235_v55  ;;  %v5130_v48 = vmul.f32 1.442695, %v5071_v52  ;;  %v5132_v63 = vmul.f32 1.442695, %v5072_v27 }
 0x5fe   : > { %v6670_v7 = vpop.eup %6669  ;;  %6695 = vpow2.f32 %v5122_v41  ;;  %v5134_v14 = vmul.f32 1.442695, %v5073_v42  ;;  %v5136_v15 = vmul.f32 1.442695, %v5074_v59  ;;  %v5140_v32 = vadd.f32 1.0, %v11201_v36 }
 0x5ff   : > { %v6672_v37 = vpop.eup %6671  ;;  %6697 = vpow2.f32 %v5124_v22  ;;  %v5138_v51 = vmul.f32 1.442695, %v5075_v5  ;;  %v5141_v41 = vadd.f32 1.0, %v6652_v43  ;;  %v5142_v22 = vadd.f32 1.0, %v6654_v60 }
 0x600   : > { %v6674_v45 = vpop.eup %6673  ;;  %6699 = vpow2.f32 %v5126_v35  ;;  %v5143_v42 = vadd.f32 1.0, %v6656_v18  ;;  %v5144_v59 = vadd.f32 1.0, %v6658_v1  ;;  %v5145_v5 = vadd.f32 1.0, %v6660_v44 }
 0x601   : > { %v6676_v53 = vpop.eup %6675  ;;  %6701 = vpow2.f32 %v5128_v46  ;;  %v5148_v60 = vadd.f32 1.0, %v6666_v11  ;;  %v5150_v1 = vadd.f32 1.0, %v6670_v7  ;;  %v5151_v44 = vadd.f32 1.0, %v6672_v37 }
 0x602   : > { %v6678_v3 = vpop.eup %6677  ;;  %6703 = vpow2.f32 %v5130_v48 }
 0x603   : > { %v6680_v12 = vpop.eup %6679  ;;  %6705 = vpow2.f32 %v5132_v63  ;;  %v5146_v63 = vadd.f32 1.0, %v6662_v26 }
 0x604   : > { %v6682_v9 = vpop.eup %6681  ;;  %6707 = vpow2.f32 %v5134_v14  ;;  %v5147_v14 = vadd.f32 1.0, %v6664_v28  ;;  %v5155_v7 = vadd.f32 1.0, %v6680_v12 }
 0x605   : > { %v6684_v52 = vpop.eup %6683  ;;  %6709 = vpow2.f32 %v5136_v15  ;;  %v5156_v37 = vadd.f32 1.0, %v6682_v9 }
 0x606   : > { %v6686_v27 = vpop.eup %6685  ;;  %6711 = vpow2.f32 %v5138_v51  ;;  %v5149_v51 = vadd.f32 1.0, %v6668_v58  ;;  %v5154_v58 = vadd.f32 1.0, %v6678_v3 }
 0x607   : > { %v6688_v35 = vpop.eup %6687  ;;  %6713 = vrcp.f32 %v5140_v32  ;;  %v5158_v3 = vadd.f32 1.0, %v6686_v27 }
 0x608   : > { %v6690_v46 = vpop.eup %6689  ;;  %6715 = vrcp.f32 %v5141_v41  ;;  %v5152_v41 = vadd.f32 1.0, %v6674_v45  ;;  %v5157_v45 = vadd.f32 1.0, %v6684_v52 }
 0x609   : > { %v6692_v48 = vpop.eup %6691  ;;  %6717 = vrcp.f32 %v5142_v22  ;;  %v5153_v22 = vadd.f32 1.0, %v6676_v53 }
 0x60a   : > { %v6694_v36 = vpop.eup %6693  ;;  %6719 = vrcp.f32 %v5143_v42  ;;  %v5161_v27 = vadd.f32 1.0, %v6692_v48 }
 0x60b   : > { %v6696_v43 = vpop.eup %6695  ;;  %6721 = vrcp.f32 %v5144_v59 }
 0x60c   : > { %v6698_v15 = vpop.eup %6697  ;;  %6723 = vrcp.f32 %v5145_v5 }
 0x60d   : > { %v6700_v18 = vpop.eup %6699  ;;  %6725 = vrcp.f32 %v5146_v63  ;;  %v5164_v48 = vadd.f32 1.0, %v6698_v15 }
 0x60e   : > { %v6702_v32 = vpop.eup %6701  ;;  %6727 = vrcp.f32 %v5147_v14  ;;  %v5159_v14 = vadd.f32 1.0, %v6688_v35  ;;  %v5162_v35 = vadd.f32 1.0, %v6694_v36  ;;  %v5165_v36 = vadd.f32 1.0, %v6700_v18 }
 0x60f   : > { %v11245_v26 = vpop.eup %6703  ;;  %6729 = vrcp.f32 %v5148_v60 }
 0x610   : > { %v11247_v28 = vpop.eup %6705  ;;  %6731 = vrcp.f32 %v5149_v51  ;;  %v5160_v51 = vadd.f32 1.0, %v6690_v46  ;;  %v5163_v46 = vadd.f32 1.0, %v6696_v43  ;;  %v5166_v43 = vadd.f32 1.0, %v6702_v32 }
 0x611   : > { %v11249_v11 = vpop.eup %6707  ;;  %6733 = vrcp.f32 %v5150_v1  ;;  %v5167_v15 = vadd.f32 1.0, %v11245_v26 }
 0x612   : > { %v11251_v42 = vpop.eup %6709  ;;  %6735 = vrcp.f32 %v5151_v44 }
 0x613   : > { %v11253_v59 = vpop.eup %6711  ;;  %6737 = vrcp.f32 %v5152_v41 }
 0x614   : > { %v6714_v5 = vpop.eup %6713  ;;  %6739 = vrcp.f32 %v5153_v22 }
 0x615   : > { %v6716_v53 = vpop.eup %6715  ;;  %6741 = vrcp.f32 %v5154_v58  ;;  %v5236_v12 = vmul.f32 %v6714_v5, %v11082_v30  ;;  %v5169_v5 = vadd.f32 1.0, %v11249_v11 }
 0x616   : > { %v6718_v63 = vpop.eup %6717  ;;  %6743 = vrcp.f32 %v5155_v7  ;;  %v5237_v9 = vmul.f32 %v6716_v53, %v11086_v40  ;;  %v5171_v53 = vadd.f32 1.0, %v11253_v59 }
 0x617   : > { %v6720_v60 = vpop.eup %6719  ;;  %6745 = vrcp.f32 %v5156_v37  ;;  %v5238_v1 = vmul.f32 %v6718_v63, %v11090_v54  ;;  %5268 = vst.msk [vmem:[%s11258_s8] sm:$0xff] %vm3034_vm3, %v5236_v12  ;;  %v5168_v37 = vadd.f32 1.0, %v11247_v28 }
 0x618   : > { %v6722_v52 = vpop.eup %6721  ;;  %6747 = vrcp.f32 %v5157_v45  ;;  %v5239_v44 = vmul.f32 %v6720_v60, %v11094_v17  ;;  %5269 = vst.msk [vmem:[%s11258_s8 + $0x8] sm:$0xff] %vm3034_vm3, %v5237_v9  ;;  %v5170_v45 = vadd.f32 1.0, %v11251_v42 }
 0x619   : > { %v6724_v30 = vpop.eup %6723  ;;  %6749 = vrcp.f32 %v5158_v3  ;;  %v5240_v40 = vmul.f32 %v6722_v52, %v11098_v34  ;;  %5270 = vst.msk [vmem:[%s11258_s8 + $0x10] sm:$0xff] %vm3034_vm3, %v5238_v1 }
 0x61a   : > { %v6726_v54 = vpop.eup %6725  ;;  %6751 = vrcp.f32 %v5159_v14  ;;  %v5241_v41 = vmul.f32 %v6724_v30, %v11102_v0  ;;  %5271 = vst.msk [vmem:[%s11258_s8 + $0x18] sm:$0xff] %vm3034_vm3, %v5239_v44 }
 0x61b   : > { %v6728_v17 = vpop.eup %6727  ;;  %6753 = vrcp.f32 %v5160_v51  ;;  %v5242_v22 = vmul.f32 %v6726_v54, %v11106_v23  ;;  %5272 = vst.msk [vmem:[%s11258_s8 + $0x20] sm:$0xff] %vm3034_vm3, %v5240_v40 }
 0x61c   : > { %v6730_v34 = vpop.eup %6729  ;;  %6755 = vrcp.f32 %v5161_v27  ;;  %v5243_v58 = vmul.f32 %v6728_v17, %v11113_v21  ;;  %5273 = vst.msk [vmem:[%s11258_s8 + $0x28] sm:$0xff] %vm3034_vm3, %v5241_v41 }
 0x61d   : > { %v6732_v0 = vpop.eup %6731  ;;  %6757 = vrcp.f32 %v5162_v35  ;;  %v5244_v7 = vmul.f32 %v6730_v34, %v11118_v10  ;;  %5274 = vst.msk [vmem:[%s11258_s8 + $0x30] sm:$0xff] %vm3034_vm3, %v5242_v22 }
 0x61e   : > { %v6734_v23 = vpop.eup %6733  ;;  %6759 = vrcp.f32 %v5163_v46  ;;  %v5245_v18 = vmul.f32 %v6732_v0, %v11123_v47  ;;  %5275 = vst.msk [vmem:[%s11258_s8 + $0x38] sm:$0xff] %vm3034_vm3, %v5243_v58 }
 0x61f   : > { %v6736_v21 = vpop.eup %6735  ;;  %6761 = vrcp.f32 %v5164_v48  ;;  %v5246_v32 = vmul.f32 %v6734_v23, %v11129_v8  ;;  %5276 = vst.msk [vmem:[%s11258_s8 + $0x40] sm:$0xff] %vm3034_vm3, %v5244_v7 }
 0x620   : > { %v6738_v10 = vpop.eup %6737  ;;  %6763 = vrcp.f32 %v5165_v36  ;;  %v5247_v26 = vmul.f32 %v6736_v21, %v11133_v31  ;;  %5277 = vst.msk [vmem:[%s11258_s8 + $0x48] sm:$0xff] %vm3034_vm3, %v5245_v18 }
 0x621   : > { %v6740_v47 = vpop.eup %6739  ;;  %6765 = vrcp.f32 %v5166_v43  ;;  %v5248_v28 = vmul.f32 %v6738_v10, %v11138_v33  ;;  %5278 = vst.msk [vmem:[%s11258_s8 + $0x50] sm:$0xff] %vm3034_vm3, %v5246_v32 }
 0x622   : > { %v6742_v8 = vpop.eup %6741  ;;  %6767 = vrcp.f32 %v5167_v15  ;;  %v5249_v11 = vmul.f32 %v6740_v47, %v11143_v49  ;;  %5279 = vst.msk [vmem:[%s11258_s8 + $0x58] sm:$0xff] %vm3034_vm3, %v5247_v26 }
 0x623   : > { %v6744_v31 = vpop.eup %6743  ;;  %6769 = vrcp.f32 %v5168_v37  ;;  %v5250_v42 = vmul.f32 %v6742_v8, %v11148_v25  ;;  %5280 = vst.msk [vmem:[%s11258_s8 + $0x60] sm:$0xff] %vm3034_vm3, %v5248_v28 }
 0x624   : > { %v6746_v33 = vpop.eup %6745  ;;  %6771 = vrcp.f32 %v5169_v5  ;;  %v5251_v3 = vmul.f32 %v6744_v31, %v11153_v2  ;;  %5281 = vst.msk [vmem:[%s11258_s8 + $0x68] sm:$0xff] %vm3034_vm3, %v5249_v11 }
 0x625   : > { %v6748_v59 = vpop.eup %6747  ;;  %6773 = vrcp.f32 %v5170_v45  ;;  %v5252_v49 = vmul.f32 %v6746_v33, %v11158_v62  ;;  %5282 = vst.msk [vmem:[%s11258_s8 + $0x70] sm:$0xff] %vm3034_vm3, %v5250_v42 }
 0x626   : > { %v6750_v12 = vpop.eup %6749  ;;  %6775 = vrcp.f32 %v5171_v53  ;;  %v5253_v25 = vmul.f32 %v6748_v59, %v11163_v19  ;;  %5283 = vst.msk [vmem:[%s11258_s8 + $0x78] sm:$0xff] %vm3034_vm3, %v5251_v3 }
 0x627   : > { %v6752_v63 = vpop.eup %6751  ;;  %v5254_v2 = vmul.f32 %v6750_v12, %v11168_v13  ;;  %5284 = vst.msk [vmem:[%s11258_s8 + $0x80] sm:$0xff] %vm3034_vm3, %v5252_v49 }
 0x628   : > { %v6754_v14 = vpop.eup %6753  ;;  %v5255_v9 = vmul.f32 %v6752_v63, %v11173_v38  ;;  %5285 = vst.msk [vmem:[%s11258_s8 + $0x88] sm:$0xff] %vm3034_vm3, %v5253_v25 }
 0x629   : > { %v6756_v62 = vpop.eup %6755  ;;  %v5256_v60 = vmul.f32 %v6754_v14, %v11178_v20  ;;  %5286 = vst.msk [vmem:[%s11258_s8 + $0x90] sm:$0xff] %vm3034_vm3, %v5254_v2 }
 0x62a   : > { %v6758_v19 = vpop.eup %6757  ;;  %v5257_v51 = vmul.f32 %v6756_v62, %v11183_v24  ;;  %5287 = vst.msk [vmem:[%s11258_s8 + $0x98] sm:$0xff] %vm3034_vm3, %v5255_v9 }
 0x62b   : > { %v6760_v13 = vpop.eup %6759  ;;  %v5258_v1 = vmul.f32 %v6758_v19, %v11188_v6  ;;  %5288 = vst.msk [vmem:[%s11258_s8 + $0xa0] sm:$0xff] %vm3034_vm3, %v5256_v60 }
 0x62c   : > { %v6762_v38 = vpop.eup %6761  ;;  %v5259_v52 = vmul.f32 %v6760_v13, %v11193_v4  ;;  %5289 = vst.msk [vmem:[%s11258_s8 + $0xa8] sm:$0xff] %vm3034_vm3, %v5257_v51 }
 0x62d   : > { %v6764_v20 = vpop.eup %6763  ;;  %v5260_v27 = vmul.f32 %v6762_v38, %v11198_v50  ;;  %5290 = vst.msk [vmem:[%s11258_s8 + $0xb0] sm:$0xff] %vm3034_vm3, %v5258_v1 }
 0x62e   : > { %v6766_v24 = vpop.eup %6765  ;;  %v5261_v44 = vmul.f32 %v6764_v20, %v11205_v56  ;;  %5291 = vst.msk [vmem:[%s11258_s8 + $0xb8] sm:$0xff] %vm3034_vm3, %v5259_v52 }
 0x62f   : > { %v6768_v6 = vpop.eup %6767  ;;  %v5262_v30 = vmul.f32 %v6766_v24, %v11210_v57  ;;  %5292 = vst.msk [vmem:[%s11258_s8 + $0xc0] sm:$0xff] %vm3034_vm3, %v5260_v27 }
 0x630   : > { %v6770_v4 = vpop.eup %6769  ;;  %v5263_v50 = vmul.f32 %v6768_v6, %v11215_v29  ;;  %5293 = vst.msk [vmem:[%s11258_s8 + $0xc8] sm:$0xff] %vm3034_vm3, %v5261_v44 }
 0x631   : > { %v6772_v35 = vpop.eup %6771  ;;  %v5264_v40 = vmul.f32 %v6770_v4, %v11220_v61  ;;  %5294 = vst.msk [vmem:[%s11258_s8 + $0xd0] sm:$0xff] %vm3034_vm3, %v5262_v30 }
 0x632   : > { %v6774_v56 = vpop.eup %6773  ;;  %v5265_v54 = vmul.f32 %v6772_v35, %v11225_v16  ;;  %5295 = vst.msk [vmem:[%s11258_s8 + $0xd8] sm:$0xff] %vm3034_vm3, %v5263_v50 }
 0x633   : > { %v6776_v57 = vpop.eup %6775  ;;  %v5266_v46 = vmul.f32 %v6774_v56, %v11230_v39  ;;  %5296 = vst.msk [vmem:[%s11258_s8 + $0xe0] sm:$0xff] %vm3034_vm3, %v5264_v40 }
 0x634   : > { %v5267_v41 = vmul.f32 %v6776_v57, %v11235_v55  ;;  %5297 = vst.msk [vmem:[%s11258_s8 + $0xe8] sm:$0xff] %vm3034_vm3, %v5265_v54 }
 0x635   : > { %5298 = vst.msk [vmem:[%s11258_s8 + $0xf0] sm:$0xff] %vm3034_vm3, %v5266_v46 }
 0x636   : > { %5299 = vst.msk [vmem:[%s11258_s8 + $0xf8] sm:$0xff] %vm3034_vm3, %v5267_v41 }
 0x637 PF: > { %s14_s16 = sadd.s32 1, %s6893_s16   ;;  %s12006_s12 = smov %s6885_s14 }
 0x638   : > { %p11_p3 = scmp.ge.s32.totalorder %s14_s16, 6   ;;  %s12007_s13 = smov %s6889_s15 }
 0x639   : > { %s12008_s14 = smov %s12011_s18  ;;  %s12009_s15 = smov %s12015_s19 }
 0x63a   :  { %13 = sbr.rel (!%p11_p3) target bundleno = 3 (0x3), region = 70 }
 0x63f   :  { %5329 = vsyncpa [#allocation3], 1 }
 0x640   :  { %5331 = vsyncpa [#allocation3 + $0x1], 1 }

</bundles_post_ra>
